<compile_context>
chip_gen: v7x
topology: tpu7x:2x2x1
jax: 0.10.0
libtpu: 0.0.40
codegen_flags: <defaults>
</compile_context>

<pallas_src>
import functools

import jax
import jax.numpy as jnp
from jax.experimental import pallas as pl
from jax.experimental.pallas import tpu as pltpu


def _round_up(x, m):
    return ((x + m - 1) // m) * m


# ----------------------------------------------------------------------------
# Kernel 1: tiled linear  y = x @ w + b   (patch embedding matmul)
# grid = (M_tiles, K_tiles); f32 accumulator in VMEM scratch, bias added on the
# last K step.  K axis is "arbitrary" (reduction), M axis is "parallel".
# ----------------------------------------------------------------------------
def _linear_kernel(x_ref, w_ref, b_ref, o_ref, acc_ref):
    k = pl.program_id(1)

    @pl.when(k == 0)
    def _():
        acc_ref[...] = jnp.zeros_like(acc_ref)

    acc_ref[...] += jnp.dot(x_ref[...], w_ref[...],
                            preferred_element_type=jnp.float32)

    @pl.when(k == pl.num_programs(1) - 1)
    def _():
        o_ref[...] = (acc_ref[...] + b_ref[...]).astype(o_ref.dtype)


def linear_pallas(x, w, b, *, tm=256, tk=2048, out_dtype=jnp.bfloat16):
    M, K = x.shape
    N = w.shape[1]
    tm = min(tm, _round_up(M, 8))      # sublane-aligned row tile
    tk = min(tk, _round_up(K, 128))    # lane-aligned reduction tile
    Mp = _round_up(M, tm)
    Kp = _round_up(K, tk)
    if Mp != M or Kp != K:
        x = jnp.pad(x, ((0, Mp - M), (0, Kp - K)))   # zero pad: no effect on the matmul
    if Kp != K:
        w = jnp.pad(w, ((0, Kp - K), (0, 0)))

    out = pl.pallas_call(
        _linear_kernel,
        out_shape=jax.ShapeDtypeStruct((Mp, N), out_dtype),
        grid=(Mp // tm, Kp // tk),
        in_specs=[
            pl.BlockSpec((tm, tk), lambda i, k: (i, k)),
            pl.BlockSpec((tk, N), lambda i, k: (k, 0)),
            pl.BlockSpec((1, N), lambda i, k: (0, 0)),
        ],
        out_specs=pl.BlockSpec((tm, N), lambda i, k: (i, 0)),
        scratch_shapes=[pltpu.VMEM((tm, N), jnp.float32)],
        compiler_params=pltpu.CompilerParams(
            dimension_semantics=("parallel", "arbitrary"),
            vmem_limit_bytes=64 * 1024 * 1024),
    )(x, w, b.reshape(1, N).astype(jnp.float32))
    return out[:M]


# ----------------------------------------------------------------------------
# Kernel 2: one nn.TransformerEncoderLayer (post-norm, ReLU, no dropout).
# The activation is a 2-D (T_pad*L, D) slab; each grid step handles T_TILE token
# positions (= T_TILE*L rows) so QKV / out-proj / FFN run as large matmuls.
# Attention (length L = real batch) is computed per head with batched einsums
# over the T_TILE positions, then a single K=D out-projection.
# ----------------------------------------------------------------------------
def _encoder_layer_kernel(x_ref, w_in_ref, b_in_ref, w_out_ref, b_out_ref,
                          w1_ref, b1_ref, w2_ref, b2_ref,
                          ln1w_ref, ln1b_ref, ln2w_ref, ln2b_ref,
                          o_ref, *, num_heads, att_len, t_tile):
    rows, D = x_ref.shape
    dh = D // num_heads
    scale = 1.0 / (float(dh) ** 0.5)

    x_bf = x_ref[...]                       # (rows, D) bf16 — feed the MXU directly
    x = x_bf.astype(jnp.float32)            # f32 copy for residuals / LayerNorm

    # --- QKV projection (one big matmul, pre-transposed weight) -------------
    qkv = jnp.dot(x_bf, w_in_ref[...],
                  preferred_element_type=jnp.float32) + b_in_ref[...]   # (rows, 3D)
    q = qkv[:, :D] * scale
    k = qkv[:, D:2 * D]
    v = qkv[:, 2 * D:]

    q3 = q.reshape(t_tile, att_len, D)
    k3 = k.reshape(t_tile, att_len, D)
    v3 = v.reshape(t_tile, att_len, D)

    # --- per-head attention over length att_len, batched over T_TILE --------
    ctx_heads = []
    for h in range(num_heads):
        sl = slice(h * dh, (h + 1) * dh)
        qh, kh, vh = q3[:, :, sl], k3[:, :, sl], v3[:, :, sl]          # (t, L, dh)
        s = jnp.einsum('tld,tmd->tlm', qh, kh,
                       preferred_element_type=jnp.float32)             # (t, L, L)
        s = s - jnp.max(s, axis=-1, keepdims=True)
        p = jnp.exp(s)
        p = p * pl.reciprocal(jnp.sum(p, axis=-1, keepdims=True), approx=True)
        ctx_heads.append(jnp.einsum('tlm,tmd->tld', p, vh,
                                    preferred_element_type=jnp.float32))
    ctx = jnp.concatenate(ctx_heads, axis=-1).reshape(rows, D)         # (rows, D)

    # --- single out-projection (K = D, MXU friendly) -------------------------
    attn = jnp.dot(ctx.astype(jnp.bfloat16), w_out_ref[...],
                   preferred_element_type=jnp.float32) + b_out_ref[...]

    # --- residual + LayerNorm 1 (f32) ----------------------------------------
    x1 = x + attn
    mu = jnp.mean(x1, axis=-1, keepdims=True)
    var = jnp.mean(jnp.square(x1 - mu), axis=-1, keepdims=True)
    x1 = (x1 - mu) * jax.lax.rsqrt(var + 1e-5) * ln1w_ref[...] + ln1b_ref[...]

    # --- feed-forward: relu(x1 @ W1 + b1) @ W2 + b2 ---------------------------
    h1 = jnp.dot(x1.astype(jnp.bfloat16), w1_ref[...],
                 preferred_element_type=jnp.float32) + b1_ref[...]
    h1 = jnp.maximum(h1, 0.0)
    h2 = jnp.dot(h1.astype(jnp.bfloat16), w2_ref[...],
                 preferred_element_type=jnp.float32) + b2_ref[...]

    # --- residual + LayerNorm 2 (f32) ----------------------------------------
    x2 = x1 + h2
    mu2 = jnp.mean(x2, axis=-1, keepdims=True)
    var2 = jnp.mean(jnp.square(x2 - mu2), axis=-1, keepdims=True)
    x2 = (x2 - mu2) * jax.lax.rsqrt(var2 + 1e-5) * ln2w_ref[...] + ln2b_ref[...]

    o_ref[...] = x2.astype(o_ref.dtype)


def encoder_layer_pallas(x2d, lp, *, num_heads, att_len, t_tile):
    TL, D = x2d.shape                      # TL = T_pad * att_len
    T_pad = TL // att_len
    rows = t_tile * att_len
    Fd = lp['w1_t'].shape[1]

    def rep2(shape):                       # weight blocks resident across the whole grid
        return pl.BlockSpec(shape, lambda i: (0, 0))

    kernel = functools.partial(_encoder_layer_kernel, num_heads=num_heads,
                               att_len=att_len, t_tile=t_tile)
    return pl.pallas_call(
        kernel,
        out_shape=jax.ShapeDtypeStruct((TL, D), jnp.bfloat16),
        grid=(T_pad // t_tile,),
        in_specs=[
            pl.BlockSpec((rows, D), lambda i: (i, 0)),
            rep2((D, 3 * D)), rep2((1, 3 * D)),
            rep2((D, D)), rep2((1, D)),
            rep2((D, Fd)), rep2((1, Fd)),
            rep2((Fd, D)), rep2((1, D)),
            rep2((1, D)), rep2((1, D)),
            rep2((1, D)), rep2((1, D)),
        ],
        out_specs=pl.BlockSpec((rows, D), lambda i: (i, 0)),
        compiler_params=pltpu.CompilerParams(
            dimension_semantics=("parallel",),      # token-position tiles are independent
            vmem_limit_bytes=64 * 1024 * 1024),
    )(x2d,
      lp['w_in_t'], lp['b_in'], lp['w_out_t'], lp['b_out'],
      lp['w1_t'], lp['b1'], lp['w2_t'], lp['b2'],
      lp['ln1_w'], lp['ln1_b'], lp['ln2_w'], lp['ln2_b'])


# ----------------------------------------------------------------------------
# Kernel 3: mean over tokens + final fc, single grid step.
# Input is (S, B, D); mean over axis 0 == PyTorch x.mean(dim=1) on (B, S, D).
# ----------------------------------------------------------------------------
def _pool_fc_kernel(x_ref, w_ref, b_ref, o_ref):
    x = x_ref[...].astype(jnp.float32)                       # (S, B, D)
    m = jnp.mean(x, axis=0)                                   # (B, D)
    y = jnp.dot(m.astype(jnp.bfloat16), w_ref[...],
                preferred_element_type=jnp.float32) + b_ref[...]
    o_ref[...] = y.astype(o_ref.dtype)


def pool_fc_pallas(x, w_t, b):
    S, B, D = x.shape
    C = w_t.shape[1]
    return pl.pallas_call(
        _pool_fc_kernel,
        out_shape=jax.ShapeDtypeStruct((B, C), jnp.float32),
        grid=(1,),
        in_specs=[
            pl.BlockSpec((S, B, D), lambda i: (0, 0, 0)),
            pl.BlockSpec((D, C), lambda i: (0, 0)),
            pl.BlockSpec((1, C), lambda i: (0, 0)),
        ],
        out_specs=pl.BlockSpec((B, C), lambda i: (0, 0)),
        compiler_params=pltpu.CompilerParams(dimension_semantics=("arbitrary",)),
    )(x, w_t, b.reshape(1, C).astype(jnp.float32))


# ----------------------------------------------------------------------------
# Parameter initialization (deterministic, synthetic weights).
# Matmul weights are stored pre-transposed (contraction dim first) in bf16;
# biases / LayerNorm params stay f32 with a leading broadcast dim.
# ----------------------------------------------------------------------------
def init_params(key, *, C, H, W, patch_size, hidden, num_layers, num_classes):
    p = patch_size
    n_patches = (H // p) * (W // p)
    keys = jax.random.split(key, 4 + num_layers)

    def n(k, shape, s=0.02, dtype=jnp.float32):
        return (s * jax.random.normal(k, shape)).astype(dtype)

    params = {
        'conv_w': n(keys[0], (hidden, C, p, p)),              # Conv2d weight (O, C, p, p)
        'conv_b': jnp.zeros((hidden,), jnp.float32),
        'pos': n(keys[1], (1, n_patches + 1, hidden), s=1.0),
        'fc_w_t': n(keys[2], (hidden, num_classes), dtype=jnp.bfloat16),   # fc weight^T
        'fc_b': jnp.zeros((num_classes,), jnp.float32),
        'layers': [],
    }
    F = hidden   # dim_feedforward == hidden_dim in the reference module
    for l in range(num_layers):
        ks = jax.random.split(keys[4 + l], 4)
        params['layers'].append({
            'w_in_t': n(ks[0], (hidden, 3 * hidden), dtype=jnp.bfloat16),  # in_proj^T
            'b_in': jnp.zeros((1, 3 * hidden), jnp.float32),
            'w_out_t': n(ks[1], (hidden, hidden), dtype=jnp.bfloat16),     # out_proj^T
            'b_out': jnp.zeros((1, hidden), jnp.float32),
            'w1_t': n(ks[2], (hidden, F), dtype=jnp.bfloat16),             # linear1^T
            'b1': jnp.zeros((1, F), jnp.float32),
            'w2_t': n(ks[3], (F, hidden), dtype=jnp.bfloat16),             # linear2^T
            'b2': jnp.zeros((1, hidden), jnp.float32),
            'ln1_w': jnp.ones((1, hidden), jnp.float32),
            'ln1_b': jnp.zeros((1, hidden), jnp.float32),
            'ln2_w': jnp.ones((1, hidden), jnp.float32),
            'ln2_b': jnp.zeros((1, hidden), jnp.float32),
        })
    return params


# ----------------------------------------------------------------------------
# Forward pass (glue in plain JAX; hot paths in Pallas kernels above).
# ----------------------------------------------------------------------------
def vision_transformer_forward(x, params, *, patch_size, num_heads, output_shape,
                               t_tile=32):
    B, C, H, W = x.shape
    p = patch_size
    Hp, Wp = H // p, W // p
    n_patches = Hp * Wp
    hidden = params['conv_w'].shape[0]

    # Conv2d(k=p, stride=p) == matmul over flattened patches.
    patches = x.reshape(B, C, Hp, p, Wp, p).transpose(0, 2, 4, 1, 3, 5)
    patches = patches.reshape(B * n_patches, C * p * p).astype(jnp.bfloat16)
    w_pe = params['conv_w'].reshape(hidden, C * p * p).T.astype(jnp.bfloat16)
    emb = linear_pallas(patches, w_pe, params['conv_b'])          # (B*n_patches, hidden) bf16
    emb = emb.reshape(B, n_patches, hidden)

    # torch.cat([x, pos.repeat(B,1,1)], dim=1)  -> (B, S, hidden), S = 2*n_patches + 1
    pos = jnp.broadcast_to(params['pos'], (B, n_patches + 1, hidden)).astype(jnp.bfloat16)
    seq = jnp.concatenate([emb, pos], axis=1)
    S = seq.shape[1]

    # nn.TransformerEncoder default batch_first=False: attention runs over dim 0
    # (the real batch axis, length B) independently for each of the S positions.
    t = seq.transpose(1, 0, 2)                                    # (S, B, hidden)
    S_pad = _round_up(S, t_tile)
    if S_pad != S:
        t = jnp.pad(t, ((0, S_pad - S), (0, 0), (0, 0)))          # zero token positions
    x2d = t.reshape(S_pad * B, hidden)                            # rows grouped per position

    for lp in params['layers']:
        x2d = encoder_layer_pallas(x2d, lp, num_heads=num_heads,
                                   att_len=B, t_tile=t_tile)

    t = x2d.reshape(S_pad, B, hidden)[:S]                         # drop padded positions

    # x.mean(dim=1) ; fc ; view(output_shape)
    logits = pool_fc_pallas(t, params['fc_w_t'], params['fc_b'])
    return logits.reshape(output_shape)


if __name__ == "__main__":
    # Small shapes consistent with the module (original: (10, 27, 128, 320),
    # patch=16, hidden=256, heads=8, layers=6, classes=448).
    B, C, H, W = 2, 4, 16, 32
    patch_size = 16
    hidden_dim = 32
    num_heads = 4
    num_layers = 2
    num_classes = 8
    output_shape = (B, num_classes)

    key = jax.random.PRNGKey(0)
    kx, kp = jax.random.split(key)
    x = jax.random.normal(kx, (B, C, H, W), dtype=jnp.float32)
    params = init_params(kp, C=C, H=H, W=W, patch_size=patch_size,
                         hidden=hidden_dim, num_layers=num_layers,
                         num_classes=num_classes)

    fwd = jax.jit(functools.partial(vision_transformer_forward,
                                    patch_size=patch_size, num_heads=num_heads,
                                    output_shape=output_shape))
    out = jax.block_until_ready(fwd(x, params))
    assert out.shape == output_shape and out.dtype == jnp.float32
    assert bool(jnp.all(jnp.isfinite(out)))
    print("KERNEL_OK")
</pallas_src>

<mosaic_0001>
module attributes {stable_mosaic.version = 11 : i64} {
  func.func @_linear_kernel(%arg0: i32, %arg1: i32, %arg2: memref<8x1024xbf16, #tpu.memory_space<vmem>>, %arg3: memref<1024x32xbf16, #tpu.memory_space<vmem>>, %arg4: memref<1x32xf32, #tpu.memory_space<vmem>>, %arg5: memref<8x32xbf16, #tpu.memory_space<vmem>>, %arg6: memref<8x32xf32, #tpu.memory_space<vmem>>) attributes {dimension_semantics = [#tpu.dimension_semantics<parallel>, #tpu.dimension_semantics<arbitrary>], iteration_bounds = array<i64: 1, 1>, scalar_prefetch = 0 : i64, scratch_operands = 1 : i64, tpu.core_type = #tpu.core_type<tc>, window_params = [{transform_indices = @transform_0, window_bounds = array<i64: 8, 1024>}, {transform_indices = @transform_1, window_bounds = array<i64: 1024, 32>}, {pipeline_mode = #tpu.pipeline_mode<synchronous>, transform_indices = @transform_2, window_bounds = array<i64: 1, 32>}, {transform_indices = @transform_3, window_bounds = array<i64: 8, 32>}]} {
    %c0_i32 = arith.constant 0 : i32
    %0 = arith.cmpi eq, %arg1, %c0_i32 : i32
    %1 = arith.extui %0 : i1 to i32
    %c0_i32_0 = arith.constant 0 : i32
    %2 = arith.cmpi ne, %1, %c0_i32_0 : i32
    scf.if %2 {
      %cst_10 = arith.constant 0.000000e+00 : f32
      %12 = vector.broadcast %cst_10 : f32 to vector<8x32xf32>
      %c0_11 = arith.constant 0 : index
      %c0_12 = arith.constant 0 : index
      %13 = vector.load %arg6[%c0_11, %c0_12] : memref<8x32xf32, #tpu.memory_space<vmem>>, vector<8x32xf32>
      tpu.vector_store %arg6[%c0_11, %c0_12], %12 {strides = array<i32>} : memref<8x32xf32, #tpu.memory_space<vmem>>, vector<8x32xf32>,
    } else {
    }
    %c0 = arith.constant 0 : index
    %c0_1 = arith.constant 0 : index
    %3 = vector.load %arg6[%c0, %c0_1] : memref<8x32xf32, #tpu.memory_space<vmem>>, vector<8x32xf32>
    %c0_2 = arith.constant 0 : index
    %c0_3 = arith.constant 0 : index
    %4 = vector.load %arg2[%c0_2, %c0_3] : memref<8x1024xbf16, #tpu.memory_space<vmem>>, vector<8x1024xbf16>
    %c0_4 = arith.constant 0 : index
    %c0_5 = arith.constant 0 : index
    %5 = vector.load %arg3[%c0_4, %c0_5] : memref<1024x32xbf16, #tpu.memory_space<vmem>>, vector<1024x32xbf16>
    %cst = arith.constant dense<0.000000e+00> : vector<8x32xf32>
    %6 = tpu.matmul %4, %5, %cst {dimension_numbers = #tpu.dot_dimension_numbers<[1], [0], [0], [1], [0, 0, 1, 1], [], []>} : vector<8x1024xbf16>, vector<1024x32xbf16>, vector<8x32xf32> -> vector<8x32xf32>
    %7 = arith.addf %3, %6 : vector<8x32xf32>
    %c0_6 = arith.constant 0 : index
    %c0_7 = arith.constant 0 : index
    %8 = vector.load %arg6[%c0_6, %c0_7] : memref<8x32xf32, #tpu.memory_space<vmem>>, vector<8x32xf32>
    tpu.vector_store %arg6[%c0_6, %c0_7], %7 {strides = array<i32>} : memref<8x32xf32, #tpu.memory_space<vmem>>, vector<8x32xf32>,
    %c0_i32_8 = arith.constant 0 : i32
    %9 = arith.cmpi eq, %arg1, %c0_i32_8 : i32
    %10 = arith.extui %9 : i1 to i32
    %c0_i32_9 = arith.constant 0 : i32
    %11 = arith.cmpi ne, %10, %c0_i32_9 : i32
    scf.if %11 {
      %c0_10 = arith.constant 0 : index
      %c0_11 = arith.constant 0 : index
      %12 = vector.load %arg6[%c0_10, %c0_11] : memref<8x32xf32, #tpu.memory_space<vmem>>, vector<8x32xf32>
      %c0_12 = arith.constant 0 : index
      %c0_13 = arith.constant 0 : index
      %13 = vector.load %arg4[%c0_12, %c0_13] : memref<1x32xf32, #tpu.memory_space<vmem>>, vector<1x32xf32>
      %14 = vector.broadcast %13 : vector<1x32xf32> to vector<8x32xf32>
      %15 = arith.addf %12, %14 : vector<8x32xf32>
      %16 = arith.truncf %15 : vector<8x32xf32> to vector<8x32xbf16>
      %c0_14 = arith.constant 0 : index
      %c0_15 = arith.constant 0 : index
      %17 = vector.load %arg5[%c0_14, %c0_15] : memref<8x32xbf16, #tpu.memory_space<vmem>>, vector<8x32xbf16>
      tpu.vector_store %arg5[%c0_14, %c0_15], %16 {strides = array<i32>} : memref<8x32xbf16, #tpu.memory_space<vmem>>, vector<8x32xbf16>,
    } else {
    }
    return
  }
  func.func @transform_0(%arg0: i32, %arg1: i32) -> (i32, i32) {
    %c0_i32 = arith.constant 0 : i32
    return %arg0, %arg1 : i32, i32
  }
  func.func @transform_1(%arg0: i32, %arg1: i32) -> (i32, i32) {
    %c0_i32 = arith.constant 0 : i32
    %c0_i32_0 = arith.constant 0 : i32
    return %arg1, %c0_i32 : i32, i32
  }
  func.func @transform_2(%arg0: i32, %arg1: i32) -> (i32, i32) {
    %c0_i32 = arith.constant 0 : i32
    %c0_i32_0 = arith.constant 0 : i32
    %c0_i32_1 = arith.constant 0 : i32
    return %c0_i32, %c0_i32_0 : i32, i32
  }
  func.func @transform_3(%arg0: i32, %arg1: i32) -> (i32, i32) {
    %c0_i32 = arith.constant 0 : i32
    %c0_i32_0 = arith.constant 0 : i32
    return %arg0, %c0_i32 : i32, i32
  }
}

module attributes {stable_mosaic.version = 11 : i64} {
  func.func @_pool_fc_kernel(%arg0: i32, %arg1: memref<5x2x32xbf16, #tpu.memory_space<vmem>>, %arg2: memref<32x8xbf16, #tpu.memory_space<vmem>>, %arg3: memref<1x8xf32, #tpu.memory_space<vmem>>, %arg4: memref<2x8xf32, #tpu.memory_space<vmem>>) attributes {dimension_semantics = [#tpu.dimension_semantics<arbitrary>], iteration_bounds = array<i64: 1>, scalar_prefetch = 0 : i64, scratch_operands = 0 : i64, tpu.core_type = #tpu.core_type<tc>, window_params = [{pipeline_mode = #tpu.pipeline_mode<synchronous>, transform_indices = @transform_0, window_bounds = array<i64: 5, 2, 32>}, {pipeline_mode = #tpu.pipeline_mode<synchronous>, transform_indices = @transform_1, window_bounds = array<i64: 32, 8>}, {pipeline_mode = #tpu.pipeline_mode<synchronous>, transform_indices = @transform_2, window_bounds = array<i64: 1, 8>}, {pipeline_mode = #tpu.pipeline_mode<synchronous>, transform_indices = @transform_3, window_bounds = array<i64: 2, 8>}]} {
    %c0 = arith.constant 0 : index
    %c0_0 = arith.constant 0 : index
    %c0_1 = arith.constant 0 : index
    %0 = vector.load %arg1[%c0, %c0_0, %c0_1] : memref<5x2x32xbf16, #tpu.memory_space<vmem>>, vector<5x2x32xbf16>
    %1 = arith.extf %0 : vector<5x2x32xbf16> to vector<5x2x32xf32>
    %cst = arith.constant dense<0.000000e+00> : vector<2x32xf32>
    %2 = vector.multi_reduction <add>, %1, %cst [0] : vector<5x2x32xf32> to vector<2x32xf32>
    %cst_2 = arith.constant 5.000000e+00 : f32
    %3 = vector.broadcast %cst_2 : f32 to vector<2x32xf32>
    %4 = arith.divf %2, %3 : vector<2x32xf32>
    %5 = arith.truncf %4 : vector<2x32xf32> to vector<2x32xbf16>
    %c0_3 = arith.constant 0 : index
    %c0_4 = arith.constant 0 : index
    %6 = vector.load %arg2[%c0_3, %c0_4] : memref<32x8xbf16, #tpu.memory_space<vmem>>, vector<32x8xbf16>
    %cst_5 = arith.constant dense<0.000000e+00> : vector<2x8xf32>
    %7 = tpu.matmul %5, %6, %cst_5 {dimension_numbers = #tpu.dot_dimension_numbers<[1], [0], [0], [1], [0, 0, 1, 1], [], []>} : vector<2x32xbf16>, vector<32x8xbf16>, vector<2x8xf32> -> vector<2x8xf32>
    %c0_6 = arith.constant 0 : index
    %c0_7 = arith.constant 0 : index
    %8 = vector.load %arg3[%c0_6, %c0_7] : memref<1x8xf32, #tpu.memory_space<vmem>>, vector<1x8xf32>
    %9 = vector.broadcast %8 : vector<1x8xf32> to vector<2x8xf32>
    %10 = arith.addf %7, %9 : vector<2x8xf32>
    %c0_8 = arith.constant 0 : index
    %c0_9 = arith.constant 0 : index
    %11 = vector.load %arg4[%c0_8, %c0_9] : memref<2x8xf32, #tpu.memory_space<vmem>>, vector<2x8xf32>
    tpu.vector_store %arg4[%c0_8, %c0_9], %10 {strides = array<i32>} : memref<2x8xf32, #tpu.memory_space<vmem>>, vector<2x8xf32>,
    return
  }
  func.func @transform_0(%arg0: i32) -> (i32, i32, i32) {
    %c0_i32 = arith.constant 0 : i32
    %c0_i32_0 = arith.constant 0 : i32
    %c0_i32_1 = arith.constant 0 : i32
    %c0_i32_2 = arith.constant 0 : i32
    return %c0_i32, %c0_i32_0, %c0_i32_1 : i32, i32, i32
  }
  func.func @transform_1(%arg0: i32) -> (i32, i32) {
    %c0_i32 = arith.constant 0 : i32
    %c0_i32_0 = arith.constant 0 : i32
    %c0_i32_1 = arith.constant 0 : i32
    return %c0_i32, %c0_i32_0 : i32, i32
  }
  func.func @transform_2(%arg0: i32) -> (i32, i32) {
    %c0_i32 = arith.constant 0 : i32
    %c0_i32_0 = arith.constant 0 : i32
    %c0_i32_1 = arith.constant 0 : i32
    return %c0_i32, %c0_i32_0 : i32, i32
  }
  func.func @transform_3(%arg0: i32) -> (i32, i32) {
    %c0_i32 = arith.constant 0 : i32
    %c0_i32_0 = arith.constant 0 : i32
    %c0_i32_1 = arith.constant 0 : i32
    return %c0_i32, %c0_i32_0 : i32, i32
  }
}

module attributes {stable_mosaic.version = 11 : i64} {
  func.func @_encoder_layer_kernel(%arg0: i32, %arg1: memref<64x32xbf16, #tpu.memory_space<vmem>>, %arg2: memref<32x96xbf16, #tpu.memory_space<vmem>>, %arg3: memref<1x96xf32, #tpu.memory_space<vmem>>, %arg4: memref<32x32xbf16, #tpu.memory_space<vmem>>, %arg5: memref<1x32xf32, #tpu.memory_space<vmem>>, %arg6: memref<32x32xbf16, #tpu.memory_space<vmem>>, %arg7: memref<1x32xf32, #tpu.memory_space<vmem>>, %arg8: memref<32x32xbf16, #tpu.memory_space<vmem>>, %arg9: memref<1x32xf32, #tpu.memory_space<vmem>>, %arg10: memref<1x32xf32, #tpu.memory_space<vmem>>, %arg11: memref<1x32xf32, #tpu.memory_space<vmem>>, %arg12: memref<1x32xf32, #tpu.memory_space<vmem>>, %arg13: memref<1x32xf32, #tpu.memory_space<vmem>>, %arg14: memref<64x32xbf16, #tpu.memory_space<vmem>>) attributes {dimension_semantics = [#tpu.dimension_semantics<parallel>], iteration_bounds = array<i64: 1>, scalar_prefetch = 0 : i64, scratch_operands = 0 : i64, tpu.core_type = #tpu.core_type<tc>, window_params = [{transform_indices = @transform_0, window_bounds = array<i64: 64, 32>}, {pipeline_mode = #tpu.pipeline_mode<synchronous>, transform_indices = @transform_1, window_bounds = array<i64: 32, 96>}, {pipeline_mode = #tpu.pipeline_mode<synchronous>, transform_indices = @transform_2, window_bounds = array<i64: 1, 96>}, {pipeline_mode = #tpu.pipeline_mode<synchronous>, transform_indices = @transform_3, window_bounds = array<i64: 32, 32>}, {pipeline_mode = #tpu.pipeline_mode<synchronous>, transform_indices = @transform_4, window_bounds = array<i64: 1, 32>}, {pipeline_mode = #tpu.pipeline_mode<synchronous>, transform_indices = @transform_5, window_bounds = array<i64: 32, 32>}, {pipeline_mode = #tpu.pipeline_mode<synchronous>, transform_indices = @transform_6, window_bounds = array<i64: 1, 32>}, {pipeline_mode = #tpu.pipeline_mode<synchronous>, transform_indices = @transform_7, window_bounds = array<i64: 32, 32>}, {pipeline_mode = #tpu.pipeline_mode<synchronous>, transform_indices = @transform_8, window_bounds = array<i64: 1, 32>}, {pipeline_mode = #tpu.pipeline_mode<synchronous>, transform_indices = @transform_9, window_bounds = array<i64: 1, 32>}, {pipeline_mode = #tpu.pipeline_mode<synchronous>, transform_indices = @transform_10, window_bounds = array<i64: 1, 32>}, {pipeline_mode = #tpu.pipeline_mode<synchronous>, transform_indices = @transform_11, window_bounds = array<i64: 1, 32>}, {pipeline_mode = #tpu.pipeline_mode<synchronous>, transform_indices = @transform_12, window_bounds = array<i64: 1, 32>}, {transform_indices = @transform_13, window_bounds = array<i64: 64, 32>}]} {
    %c0 = arith.constant 0 : index
    %c0_0 = arith.constant 0 : index
    %0 = vector.load %arg1[%c0, %c0_0] : memref<64x32xbf16, #tpu.memory_space<vmem>>, vector<64x32xbf16>
    %1 = arith.extf %0 : vector<64x32xbf16> to vector<64x32xf32>
    %c0_1 = arith.constant 0 : index
    %c0_2 = arith.constant 0 : index
    %2 = vector.load %arg2[%c0_1, %c0_2] : memref<32x96xbf16, #tpu.memory_space<vmem>>, vector<32x96xbf16>
    %cst = arith.constant dense<0.000000e+00> : vector<64x96xf32>
    %3 = tpu.matmul %0, %2, %cst {dimension_numbers = #tpu.dot_dimension_numbers<[1], [0], [0], [1], [0, 0, 1, 1], [], []>} : vector<64x32xbf16>, vector<32x96xbf16>, vector<64x96xf32> -> vector<64x96xf32>
    %c0_3 = arith.constant 0 : index
    %c0_4 = arith.constant 0 : index
    %4 = vector.load %arg3[%c0_3, %c0_4] : memref<1x96xf32, #tpu.memory_space<vmem>>, vector<1x96xf32>
    %5 = vector.broadcast %4 : vector<1x96xf32> to vector<64x96xf32>
    %6 = arith.addf %3, %5 : vector<64x96xf32>
    %7 = vector.extract_strided_slice %6 {offsets = [0, 0], sizes = [64, 32], strides = [1, 1]} : vector<64x96xf32> to vector<64x32xf32>
    %cst_5 = arith.constant 0.353553385 : f32
    %8 = vector.broadcast %cst_5 : f32 to vector<64x32xf32>
    %9 = arith.mulf %7, %8 : vector<64x32xf32>
    %10 = vector.extract_strided_slice %6 {offsets = [0, 32], sizes = [64, 32], strides = [1, 1]} : vector<64x96xf32> to vector<64x32xf32>
    %11 = vector.extract_strided_slice %6 {offsets = [0, 64], sizes = [64, 32], strides = [1, 1]} : vector<64x96xf32> to vector<64x32xf32>
    %12 = vector.shape_cast %9 : vector<64x32xf32> to vector<32x2x32xf32>
    %13 = vector.shape_cast %10 : vector<64x32xf32> to vector<32x2x32xf32>
    %14 = vector.shape_cast %11 : vector<64x32xf32> to vector<32x2x32xf32>
    %15 = vector.extract_strided_slice %12 {offsets = [0, 0, 0], sizes = [32, 2, 8], strides = [1, 1, 1]} : vector<32x2x32xf32> to vector<32x2x8xf32>
    %16 = vector.extract_strided_slice %13 {offsets = [0, 0, 0], sizes = [32, 2, 8], strides = [1, 1, 1]} : vector<32x2x32xf32> to vector<32x2x8xf32>
    %17 = vector.extract_strided_slice %14 {offsets = [0, 0, 0], sizes = [32, 2, 8], strides = [1, 1, 1]} : vector<32x2x32xf32> to vector<32x2x8xf32>
    "tpu.trace_start"() <{level = 10 : i32, message = "tld,tmd->tlm"}> : () -> ()
    %cst_6 = arith.constant dense<0.000000e+00> : vector<32x2x2xf32>
    %18 = tpu.matmul %15, %16, %cst_6 {dimension_numbers = #tpu.dot_dimension_numbers<[2], [2], [1], [1], [0, 0, 0, 1, 1, 1], [0], [0]>} : vector<32x2x8xf32>, vector<32x2x8xf32>, vector<32x2x2xf32> -> vector<32x2x2xf32>
    "tpu.trace_stop"() : () -> ()
    %cst_7 = arith.constant dense<0xFF800000> : vector<32x2xf32>
    %19 = vector.multi_reduction <maximumf>, %18, %cst_7 [2] : vector<32x2x2xf32> to vector<32x2xf32>
    %20 = vector.shape_cast %19 : vector<32x2xf32> to vector<32x2x1xf32>
    %21 = vector.broadcast %20 : vector<32x2x1xf32> to vector<32x2x2xf32>
    %22 = arith.subf %18, %21 : vector<32x2x2xf32>
    %23 = math.exp %22 : vector<32x2x2xf32>
    %cst_8 = arith.constant dense<0.000000e+00> : vector<32x2xf32>
    %24 = vector.multi_reduction <add>, %23, %cst_8 [2] : vector<32x2x2xf32> to vector<32x2xf32>
    %25 = vector.shape_cast %24 : vector<32x2xf32> to vector<32x2x1xf32>
    %26 = tpu.reciprocal %25 {approx = true} : vector<32x2x1xf32> -> vector<32x2x1xf32>
    %27 = vector.broadcast %26 : vector<32x2x1xf32> to vector<32x2x2xf32>
    %28 = arith.mulf %23, %27 : vector<32x2x2xf32>
    "tpu.trace_start"() <{level = 10 : i32, message = "tlm,tmd->tld"}> : () -> ()
    %cst_9 = arith.constant dense<0.000000e+00> : vector<32x2x8xf32>
    %29 = tpu.matmul %28, %17, %cst_9 {dimension_numbers = #tpu.dot_dimension_numbers<[2], [1], [1], [2], [0, 0, 0, 1, 1, 2], [0], [0]>} : vector<32x2x2xf32>, vector<32x2x8xf32>, vector<32x2x8xf32> -> vector<32x2x8xf32>
    "tpu.trace_stop"() : () -> ()
    %30 = vector.extract_strided_slice %12 {offsets = [0, 0, 8], sizes = [32, 2, 8], strides = [1, 1, 1]} : vector<32x2x32xf32> to vector<32x2x8xf32>
    %31 = vector.extract_strided_slice %13 {offsets = [0, 0, 8], sizes = [32, 2, 8], strides = [1, 1, 1]} : vector<32x2x32xf32> to vector<32x2x8xf32>
    %32 = vector.extract_strided_slice %14 {offsets = [0, 0, 8], sizes = [32, 2, 8], strides = [1, 1, 1]} : vector<32x2x32xf32> to vector<32x2x8xf32>
    "tpu.trace_start"() <{level = 10 : i32, message = "tld,tmd->tlm"}> : () -> ()
    %cst_10 = arith.constant dense<0.000000e+00> : vector<32x2x2xf32>
    %33 = tpu.matmul %30, %31, %cst_10 {dimension_numbers = #tpu.dot_dimension_numbers<[2], [2], [1], [1], [0, 0, 0, 1, 1, 1], [0], [0]>} : vector<32x2x8xf32>, vector<32x2x8xf32>, vector<32x2x2xf32> -> vector<32x2x2xf32>
    "tpu.trace_stop"() : () -> ()
    %cst_11 = arith.constant dense<0xFF800000> : vector<32x2xf32>
    %34 = vector.multi_reduction <maximumf>, %33, %cst_11 [2] : vector<32x2x2xf32> to vector<32x2xf32>
    %35 = vector.shape_cast %34 : vector<32x2xf32> to vector<32x2x1xf32>
    %36 = vector.broadcast %35 : vector<32x2x1xf32> to vector<32x2x2xf32>
    %37 = arith.subf %33, %36 : vector<32x2x2xf32>
    %38 = math.exp %37 : vector<32x2x2xf32>
    %cst_12 = arith.constant dense<0.000000e+00> : vector<32x2xf32>
    %39 = vector.multi_reduction <add>, %38, %cst_12 [2] : vector<32x2x2xf32> to vector<32x2xf32>
    %40 = vector.shape_cast %39 : vector<32x2xf32> to vector<32x2x1xf32>
    %41 = tpu.reciprocal %40 {approx = true} : vector<32x2x1xf32> -> vector<32x2x1xf32>
    %42 = vector.broadcast %41 : vector<32x2x1xf32> to vector<32x2x2xf32>
    %43 = arith.mulf %38, %42 : vector<32x2x2xf32>
    "tpu.trace_start"() <{level = 10 : i32, message = "tlm,tmd->tld"}> : () -> ()
    %cst_13 = arith.constant dense<0.000000e+00> : vector<32x2x8xf32>
    %44 = tpu.matmul %43, %32, %cst_13 {dimension_numbers = #tpu.dot_dimension_numbers<[2], [1], [1], [2], [0, 0, 0, 1, 1, 2], [0], [0]>} : vector<32x2x2xf32>, vector<32x2x8xf32>, vector<32x2x8xf32> -> vector<32x2x8xf32>
    "tpu.trace_stop"() : () -> ()
    %45 = vector.extract_strided_slice %12 {offsets = [0, 0, 16], sizes = [32, 2, 8], strides = [1, 1, 1]} : vector<32x2x32xf32> to vector<32x2x8xf32>
    %46 = vector.extract_strided_slice %13 {offsets = [0, 0, 16], sizes = [32, 2, 8], strides = [1, 1, 1]} : vector<32x2x32xf32> to vector<32x2x8xf32>
    %47 = vector.extract_strided_slice %14 {offsets = [0, 0, 16], sizes = [32, 2, 8], strides = [1, 1, 1]} : vector<32x2x32xf32> to vector<32x2x8xf32>
    "tpu.trace_start"() <{level = 10 : i32, message = "tld,tmd->tlm"}> : () -> ()
    %cst_14 = arith.constant dense<0.000000e+00> : vector<32x2x2xf32>
    %48 = tpu.matmul %45, %46, %cst_14 {dimension_numbers = #tpu.dot_dimension_numbers<[2], [2], [1], [1], [0, 0, 0, 1, 1, 1], [0], [0]>} : vector<32x2x8xf32>, vector<32x2x8xf32>, vector<32x2x2xf32> -> vector<32x2x2xf32>
    "tpu.trace_stop"() : () -> ()
    %cst_15 = arith.constant dense<0xFF800000> : vector<32x2xf32>
    %49 = vector.multi_reduction <maximumf>, %48, %cst_15 [2] : vector<32x2x2xf32> to vector<32x2xf32>
    %50 = vector.shape_cast %49 : vector<32x2xf32> to vector<32x2x1xf32>
    %51 = vector.broadcast %50 : vector<32x2x1xf32> to vector<32x2x2xf32>
    %52 = arith.subf %48, %51 : vector<32x2x2xf32>
    %53 = math.exp %52 : vector<32x2x2xf32>
    %cst_16 = arith.constant dense<0.000000e+00> : vector<32x2xf32>
    %54 = vector.multi_reduction <add>, %53, %cst_16 [2] : vector<32x2x2xf32> to vector<32x2xf32>
    %55 = vector.shape_cast %54 : vector<32x2xf32> to vector<32x2x1xf32>
    %56 = tpu.reciprocal %55 {approx = true} : vector<32x2x1xf32> -> vector<32x2x1xf32>
    %57 = vector.broadcast %56 : vector<32x2x1xf32> to vector<32x2x2xf32>
    %58 = arith.mulf %53, %57 : vector<32x2x2xf32>
    "tpu.trace_start"() <{level = 10 : i32, message = "tlm,tmd->tld"}> : () -> ()
    %cst_17 = arith.constant dense<0.000000e+00> : vector<32x2x8xf32>
    %59 = tpu.matmul %58, %47, %cst_17 {dimension_numbers = #tpu.dot_dimension_numbers<[2], [1], [1], [2], [0, 0, 0, 1, 1, 2], [0], [0]>} : vector<32x2x2xf32>, vector<32x2x8xf32>, vector<32x2x8xf32> -> vector<32x2x8xf32>
    "tpu.trace_stop"() : () -> ()
    %60 = vector.extract_strided_slice %12 {offsets = [0, 0, 24], sizes = [32, 2, 8], strides = [1, 1, 1]} : vector<32x2x32xf32> to vector<32x2x8xf32>
    %61 = vector.extract_strided_slice %13 {offsets = [0, 0, 24], sizes = [32, 2, 8], strides = [1, 1, 1]} : vector<32x2x32xf32> to vector<32x2x8xf32>
    %62 = vector.extract_strided_slice %14 {offsets = [0, 0, 24], sizes = [32, 2, 8], strides = [1, 1, 1]} : vector<32x2x32xf32> to vector<32x2x8xf32>
    "tpu.trace_start"() <{level = 10 : i32, message = "tld,tmd->tlm"}> : () -> ()
    %cst_18 = arith.constant dense<0.000000e+00> : vector<32x2x2xf32>
    %63 = tpu.matmul %60, %61, %cst_18 {dimension_numbers = #tpu.dot_dimension_numbers<[2], [2], [1], [1], [0, 0, 0, 1, 1, 1], [0], [0]>} : vector<32x2x8xf32>, vector<32x2x8xf32>, vector<32x2x2xf32> -> vector<32x2x2xf32>
    "tpu.trace_stop"() : () -> ()
    %cst_19 = arith.constant dense<0xFF800000> : vector<32x2xf32>
    %64 = vector.multi_reduction <maximumf>, %63, %cst_19 [2] : vector<32x2x2xf32> to vector<32x2xf32>
    %65 = vector.shape_cast %64 : vector<32x2xf32> to vector<32x2x1xf32>
    %66 = vector.broadcast %65 : vector<32x2x1xf32> to vector<32x2x2xf32>
    %67 = arith.subf %63, %66 : vector<32x2x2xf32>
    %68 = math.exp %67 : vector<32x2x2xf32>
    %cst_20 = arith.constant dense<0.000000e+00> : vector<32x2xf32>
    %69 = vector.multi_reduction <add>, %68, %cst_20 [2] : vector<32x2x2xf32> to vector<32x2xf32>
    %70 = vector.shape_cast %69 : vector<32x2xf32> to vector<32x2x1xf32>
    %71 = tpu.reciprocal %70 {approx = true} : vector<32x2x1xf32> -> vector<32x2x1xf32>
    %72 = vector.broadcast %71 : vector<32x2x1xf32> to vector<32x2x2xf32>
    %73 = arith.mulf %68, %72 : vector<32x2x2xf32>
    "tpu.trace_start"() <{level = 10 : i32, message = "tlm,tmd->tld"}> : () -> ()
    %cst_21 = arith.constant dense<0.000000e+00> : vector<32x2x8xf32>
    %74 = tpu.matmul %73, %62, %cst_21 {dimension_numbers = #tpu.dot_dimension_numbers<[2], [1], [1], [2], [0, 0, 0, 1, 1, 2], [0], [0]>} : vector<32x2x2xf32>, vector<32x2x8xf32>, vector<32x2x8xf32> -> vector<32x2x8xf32>
    "tpu.trace_stop"() : () -> ()
    %75 = tpu.concatenate %29, %44, %59, %74 in 2 : vector<32x2x8xf32>, vector<32x2x8xf32>, vector<32x2x8xf32>, vector<32x2x8xf32> -> vector<32x2x32xf32>
    %76 = vector.shape_cast %75 : vector<32x2x32xf32> to vector<64x32xf32>
    %77 = arith.truncf %76 : vector<64x32xf32> to vector<64x32xbf16>
    %c0_22 = arith.constant 0 : index
    %c0_23 = arith.constant 0 : index
    %78 = vector.load %arg4[%c0_22, %c0_23] : memref<32x32xbf16, #tpu.memory_space<vmem>>, vector<32x32xbf16>
    %cst_24 = arith.constant dense<0.000000e+00> : vector<64x32xf32>
    %79 = tpu.matmul %77, %78, %cst_24 {dimension_numbers = #tpu.dot_dimension_numbers<[1], [0], [0], [1], [0, 0, 1, 1], [], []>} : vector<64x32xbf16>, vector<32x32xbf16>, vector<64x32xf32> -> vector<64x32xf32>
    %c0_25 = arith.constant 0 : index
    %c0_26 = arith.constant 0 : index
    %80 = vector.load %arg5[%c0_25, %c0_26] : memref<1x32xf32, #tpu.memory_space<vmem>>, vector<1x32xf32>
    %81 = vector.broadcast %80 : vector<1x32xf32> to vector<64x32xf32>
    %82 = arith.addf %79, %81 : vector<64x32xf32>
    %83 = arith.addf %1, %82 : vector<64x32xf32>
    %cst_27 = arith.constant dense<0.000000e+00> : vector<64xf32>
    %84 = vector.multi_reduction <add>, %83, %cst_27 [1] : vector<64x32xf32> to vector<64xf32>
    %85 = vector.shape_cast %84 : vector<64xf32> to vector<64x1xf32>
    %cst_28 = arith.constant 3.200000e+01 : f32
    %86 = vector.broadcast %cst_28 : f32 to vector<64x1xf32>
    %87 = arith.divf %85, %86 : vector<64x1xf32>
    %88 = vector.broadcast %87 : vector<64x1xf32> to vector<64x32xf32>
    %89 = arith.subf %83, %88 : vector<64x32xf32>
    %90 = arith.mulf %89, %89 : vector<64x32xf32>
    %cst_29 = arith.constant dense<0.000000e+00> : vector<64xf32>
    %91 = vector.multi_reduction <add>, %90, %cst_29 [1] : vector<64x32xf32> to vector<64xf32>
    %92 = vector.shape_cast %91 : vector<64xf32> to vector<64x1xf32>
    %cst_30 = arith.constant 3.200000e+01 : f32
    %93 = vector.broadcast %cst_30 : f32 to vector<64x1xf32>
    %94 = arith.divf %92, %93 : vector<64x1xf32>
    %95 = vector.broadcast %87 : vector<64x1xf32> to vector<64x32xf32>
    %96 = arith.subf %83, %95 : vector<64x32xf32>
    %cst_31 = arith.constant 9.99999974E-6 : f32
    %97 = vector.broadcast %cst_31 : f32 to vector<64x1xf32>
    %98 = arith.addf %94, %97 : vector<64x1xf32>
    %99 = math.rsqrt %98 : vector<64x1xf32>
    %100 = vector.broadcast %99 : vector<64x1xf32> to vector<64x32xf32>
    %101 = arith.mulf %96, %100 : vector<64x32xf32>
    %c0_32 = arith.constant 0 : index
    %c0_33 = arith.constant 0 : index
    %102 = vector.load %arg10[%c0_32, %c0_33] : memref<1x32xf32, #tpu.memory_space<vmem>>, vector<1x32xf32>
    %103 = vector.broadcast %102 : vector<1x32xf32> to vector<64x32xf32>
    %104 = arith.mulf %101, %103 : vector<64x32xf32>
    %c0_34 = arith.constant 0 : index
    %c0_35 = arith.constant 0 : index
    %105 = vector.load %arg11[%c0_34, %c0_35] : memref<1x32xf32, #tpu.memory_space<vmem>>, vector<1x32xf32>
    %106 = vector.broadcast %105 : vector<1x32xf32> to vector<64x32xf32>
    %107 = arith.addf %104, %106 : vector<64x32xf32>
    %108 = arith.truncf %107 : vector<64x32xf32> to vector<64x32xbf16>
    %c0_36 = arith.constant 0 : index
    %c0_37 = arith.constant 0 : index
    %109 = vector.load %arg6[%c0_36, %c0_37] : memref<32x32xbf16, #tpu.memory_space<vmem>>, vector<32x32xbf16>
    %cst_38 = arith.constant dense<0.000000e+00> : vector<64x32xf32>
    %110 = tpu.matmul %108, %109, %cst_38 {dimension_numbers = #tpu.dot_dimension_numbers<[1], [0], [0], [1], [0, 0, 1, 1], [], []>} : vector<64x32xbf16>, vector<32x32xbf16>, vector<64x32xf32> -> vector<64x32xf32>
    %c0_39 = arith.constant 0 : index
    %c0_40 = arith.constant 0 : index
    %111 = vector.load %arg7[%c0_39, %c0_40] : memref<1x32xf32, #tpu.memory_space<vmem>>, vector<1x32xf32>
    %112 = vector.broadcast %111 : vector<1x32xf32> to vector<64x32xf32>
    %113 = arith.addf %110, %112 : vector<64x32xf32>
    %cst_41 = arith.constant 0.000000e+00 : f32
    %114 = vector.broadcast %cst_41 : f32 to vector<64x32xf32>
    %115 = arith.maximumf %113, %114 : vector<64x32xf32>
    %116 = arith.truncf %115 : vector<64x32xf32> to vector<64x32xbf16>
    %c0_42 = arith.constant 0 : index
    %c0_43 = arith.constant 0 : index
    %117 = vector.load %arg8[%c0_42, %c0_43] : memref<32x32xbf16, #tpu.memory_space<vmem>>, vector<32x32xbf16>
    %cst_44 = arith.constant dense<0.000000e+00> : vector<64x32xf32>
    %118 = tpu.matmul %116, %117, %cst_44 {dimension_numbers = #tpu.dot_dimension_numbers<[1], [0], [0], [1], [0, 0, 1, 1], [], []>} : vector<64x32xbf16>, vector<32x32xbf16>, vector<64x32xf32> -> vector<64x32xf32>
    %c0_45 = arith.constant 0 : index
    %c0_46 = arith.constant 0 : index
    %119 = vector.load %arg9[%c0_45, %c0_46] : memref<1x32xf32, #tpu.memory_space<vmem>>, vector<1x32xf32>
    %120 = vector.broadcast %119 : vector<1x32xf32> to vector<64x32xf32>
    %121 = arith.addf %118, %120 : vector<64x32xf32>
    %122 = arith.addf %107, %121 : vector<64x32xf32>
    %cst_47 = arith.constant dense<0.000000e+00> : vector<64xf32>
    %123 = vector.multi_reduction <add>, %122, %cst_47 [1] : vector<64x32xf32> to vector<64xf32>
    %124 = vector.shape_cast %123 : vector<64xf32> to vector<64x1xf32>
    %cst_48 = arith.constant 3.200000e+01 : f32
    %125 = vector.broadcast %cst_48 : f32 to vector<64x1xf32>
    %126 = arith.divf %124, %125 : vector<64x1xf32>
    %127 = vector.broadcast %126 : vector<64x1xf32> to vector<64x32xf32>
    %128 = arith.subf %122, %127 : vector<64x32xf32>
    %129 = arith.mulf %128, %128 : vector<64x32xf32>
    %cst_49 = arith.constant dense<0.000000e+00> : vector<64xf32>
    %130 = vector.multi_reduction <add>, %129, %cst_49 [1] : vector<64x32xf32> to vector<64xf32>
    %131 = vector.shape_cast %130 : vector<64xf32> to vector<64x1xf32>
    %cst_50 = arith.constant 3.200000e+01 : f32
    %132 = vector.broadcast %cst_50 : f32 to vector<64x1xf32>
    %133 = arith.divf %131, %132 : vector<64x1xf32>
    %134 = vector.broadcast %126 : vector<64x1xf32> to vector<64x32xf32>
    %135 = arith.subf %122, %134 : vector<64x32xf32>
    %cst_51 = arith.constant 9.99999974E-6 : f32
    %136 = vector.broadcast %cst_51 : f32 to vector<64x1xf32>
    %137 = arith.addf %133, %136 : vector<64x1xf32>
    %138 = math.rsqrt %137 : vector<64x1xf32>
    %139 = vector.broadcast %138 : vector<64x1xf32> to vector<64x32xf32>
    %140 = arith.mulf %135, %139 : vector<64x32xf32>
    %c0_52 = arith.constant 0 : index
    %c0_53 = arith.constant 0 : index
    %141 = vector.load %arg12[%c0_52, %c0_53] : memref<1x32xf32, #tpu.memory_space<vmem>>, vector<1x32xf32>
    %142 = vector.broadcast %141 : vector<1x32xf32> to vector<64x32xf32>
    %143 = arith.mulf %140, %142 : vector<64x32xf32>
    %c0_54 = arith.constant 0 : index
    %c0_55 = arith.constant 0 : index
    %144 = vector.load %arg13[%c0_54, %c0_55] : memref<1x32xf32, #tpu.memory_space<vmem>>, vector<1x32xf32>
    %145 = vector.broadcast %144 : vector<1x32xf32> to vector<64x32xf32>
    %146 = arith.addf %143, %145 : vector<64x32xf32>
    %147 = arith.truncf %146 : vector<64x32xf32> to vector<64x32xbf16>
    %c0_56 = arith.constant 0 : index
    %c0_57 = arith.constant 0 : index
    %148 = vector.load %arg14[%c0_56, %c0_57] : memref<64x32xbf16, #tpu.memory_space<vmem>>, vector<64x32xbf16>
    tpu.vector_store %arg14[%c0_56, %c0_57], %147 {strides = array<i32>} : memref<64x32xbf16, #tpu.memory_space<vmem>>, vector<64x32xbf16>,
    return
  }
  func.func @transform_0(%arg0: i32) -> (i32, i32) {
    %c0_i32 = arith.constant 0 : i32
    %c0_i32_0 = arith.constant 0 : i32
    return %arg0, %c0_i32 : i32, i32
  }
  func.func @transform_1(%arg0: i32) -> (i32, i32) {
    %c0_i32 = arith.constant 0 : i32
    %c0_i32_0 = arith.constant 0 : i32
    %c0_i32_1 = arith.constant 0 : i32
    return %c0_i32, %c0_i32_0 : i32, i32
  }
  func.func @transform_2(%arg0: i32) -> (i32, i32) {
    %c0_i32 = arith.constant 0 : i32
    %c0_i32_0 = arith.constant 0 : i32
    %c0_i32_1 = arith.constant 0 : i32
    return %c0_i32, %c0_i32_0 : i32, i32
  }
  func.func @transform_3(%arg0: i32) -> (i32, i32) {
    %c0_i32 = arith.constant 0 : i32
    %c0_i32_0 = arith.constant 0 : i32
    %c0_i32_1 = arith.constant 0 : i32
    return %c0_i32, %c0_i32_0 : i32, i32
  }
  func.func @transform_4(%arg0: i32) -> (i32, i32) {
    %c0_i32 = arith.constant 0 : i32
    %c0_i32_0 = arith.constant 0 : i32
    %c0_i32_1 = arith.constant 0 : i32
    return %c0_i32, %c0_i32_0 : i32, i32
  }
  func.func @transform_5(%arg0: i32) -> (i32, i32) {
    %c0_i32 = arith.constant 0 : i32
    %c0_i32_0 = arith.constant 0 : i32
    %c0_i32_1 = arith.constant 0 : i32
    return %c0_i32, %c0_i32_0 : i32, i32
  }
  func.func @transform_6(%arg0: i32) -> (i32, i32) {
    %c0_i32 = arith.constant 0 : i32
    %c0_i32_0 = arith.constant 0 : i32
    %c0_i32_1 = arith.constant 0 : i32
    return %c0_i32, %c0_i32_0 : i32, i32
  }
  func.func @transform_7(%arg0: i32) -> (i32, i32) {
    %c0_i32 = arith.constant 0 : i32
    %c0_i32_0 = arith.constant 0 : i32
    %c0_i32_1 = arith.constant 0 : i32
    return %c0_i32, %c0_i32_0 : i32, i32
  }
  func.func @transform_8(%arg0: i32) -> (i32, i32) {
    %c0_i32 = arith.constant 0 : i32
    %c0_i32_0 = arith.constant 0 : i32
    %c0_i32_1 = arith.constant 0 : i32
    return %c0_i32, %c0_i32_0 : i32, i32
  }
  func.func @transform_9(%arg0: i32) -> (i32, i32) {
    %c0_i32 = arith.constant 0 : i32
    %c0_i32_0 = arith.constant 0 : i32
    %c0_i32_1 = arith.constant 0 : i32
    return %c0_i32, %c0_i32_0 : i32, i32
  }
  func.func @transform_10(%arg0: i32) -> (i32, i32) {
    %c0_i32 = arith.constant 0 : i32
    %c0_i32_0 = arith.constant 0 : i32
    %c0_i32_1 = arith.constant 0 : i32
    return %c0_i32, %c0_i32_0 : i32, i32
  }
  func.func @transform_11(%arg0: i32) -> (i32, i32) {
    %c0_i32 = arith.constant 0 : i32
    %c0_i32_0 = arith.constant 0 : i32
    %c0_i32_1 = arith.constant 0 : i32
    return %c0_i32, %c0_i32_0 : i32, i32
  }
  func.func @transform_12(%arg0: i32) -> (i32, i32) {
    %c0_i32 = arith.constant 0 : i32
    %c0_i32_0 = arith.constant 0 : i32
    %c0_i32_1 = arith.constant 0 : i32
    return %c0_i32, %c0_i32_0 : i32, i32
  }
  func.func @transform_13(%arg0: i32) -> (i32, i32) {
    %c0_i32 = arith.constant 0 : i32
    %c0_i32_0 = arith.constant 0 : i32
    return %arg0, %c0_i32 : i32, i32
  }
}

</mosaic_0001>

<bundles_post_ra>
// kernel: vision_transformer_forward.7
= control target key start
LH: loop header
LB: loop body
LE: loop exit
PB: predicated region body
PF: predicated region fallthrough
CT: control target
= control target key end

     0   :  { %v166_v1 = vmov 0.0   ;;  %vm167_vm0 = vmmov 0   ;;  %vm26_vm1 = vcmask 254976   ;;  %s225_s0 = inlined_call_operand.vmem [shape: bf16[5,2,32], index: 0, kind: input, shape index: {}]   ;;  %s226_s1 = inlined_call_operand.vmem [shape: bf16[32,8], index: 1, kind: input, shape index: {}]   ;;  %s227_s2 = inlined_call_operand.vmem [shape: f32[1,8], index: 2, kind: input, shape index: {}]   ;;  %s228_s3 = inlined_call_operand.hbm [shape: f32[2,8], index: 3, kind: output, shape index: {}]  }
   0x1   :  { %v140_v0 = vld [vmem:[%s226_s1] sm:$0xff]   ;;  %129 = vmatprep.subr.bf16.mxu0 %v166_v1  ;;  %v141_v2 = vld [vmem:[%s226_s1 + $0x8] sm:$0xff]   ;;  %133 = vmatprep.mubr.msk.bf16.mxu0 %vm167_vm0, %v166_v1 }
   0x2   :  { %130 = vmatpush3.bf16.msra.mxu0 %v140_v0  ;;  %v16_v3 = vld [vmem:[%s225_s0] sm:$0x1]  ;;  %v17_v4 = vld [vmem:[%s225_s0 + $0x1] sm:$0x1]  ;;  %v18_v5 = vld [vmem:[%s225_s0 + $0x2] sm:$0x1] }
   0x3   :  { %131 = vmatprep.subr.bf16.mxu0 %v166_v1  ;;  %v19_v6 = vld [vmem:[%s225_s0 + $0x3] sm:$0x1]  ;;  %v20_v7 = vld [vmem:[%s225_s0 + $0x4] sm:$0x1]  ;;  %v21_v8 = vunpack.c.l.bf16 %v16_v3  ;;  %v22_v9 = vunpack.c.l.bf16 %v17_v4  ;;  %v23_v10 = vunpack.c.l.bf16 %v18_v5 }
   0x4   :  { %v24_v11 = vunpack.c.l.bf16 %v19_v6 }
   0x5   :  { %8 = vsyncpa [#allocation3], 0  ;;  %v25_v12 = vunpack.c.l.bf16 %v20_v7  ;;  %v27_v13 = vsel %vm26_vm1, %v21_v8, 0.0  ;;  %v28_v14 = vsel %vm26_vm1, %v22_v9, 0.0  ;;  %v30_v15 = vsel %vm26_vm1, %v23_v10, 0.0  ;;  %s168_s26 = smov [#allocation2]  }
   0x6   :  { %132 = vmatpush3.bf16.msra.mxu0 %v141_v2  ;;  %v29_v16 = vadd.f32 %v28_v14, %v27_v13  ;;  %v32_v17 = vsel %vm26_vm1, %v24_v11, 0.0  ;;  %vm62_vm2 = vcmask 261120   ;;  %v122_v24 = vld [vmem:[%s227_s2] ss:$0 sm:$0xff]  ;;  %s114_s27 = sshll.u32 %s168_s26, 4  ;;  %vm106_vm3 = vcmask 58368   ;;  %s115_s27 = int_to_ptr.vmem [resolvable:$true] %s114_s27 }
   0x7   :  { %v34_v19 = vsel %vm26_vm1, %v25_v12, 0.0  ;;  %s142_s28 = scalar_lea.vmem %s115_s27, 32  ;;  %p147_p1 = scmp.lt.s32.totalorder %s115_s27, %s115_s27 }
   0x8   :  { %v31_v18 = vadd.f32 %v30_v15, %v29_v16  ;;  %p143_p0 = scmp.ne.s32.totalorder %s115_s27, %s142_s28  ;;  %p148_p2 = scmp.lt.s32.totalorder %s142_s28, %s142_s28 }
   0xa   :  { %v33_v20 = vadd.f32 %v32_v17, %v31_v18  ;;  %p149_p3 = por %p148_p2, %p147_p1 }
   0xc   :  { %v35_v21 = vadd.f32 %v34_v19, %v33_v20  ;;  %p150_p4 = pnand %p149_p3, %p143_p0 }
   0xe   :  { %v37_v22 = vmul.f32 0.2, %v35_v21 }
  0x10   :  { %v38_v23 = vpack.c.bf16 %v37_v22, %v37_v22 }
  0x12   :  { %134 = vmatmul.mubr.msk.bf16.vlgmr.msra.gmra.mrb[0].mxu0 %vm62_vm2, %v38_v23 }
  0xe5   :  { %v100_v25 = vpop.f32.mrb[0].mxu0 }
  0xe6   :  { %v101_v26 = vadd.f32 %v122_v24, %v100_v25  ;;  %v135_v27 = vpop.f32.mrb[1].mxu0 }
  0xe7   :  { %v103_v28 = vpop.f32.mrb[2].mxu0 }
  0xe8   :  { %v136_v29 = vpop.f32.mrb[3].mxu0  ;;  %107 = vst.msk [vmem:[#allocation2] sm:$0x3] %vm106_vm3, %v101_v26 }
  0xe9   :  { %153 = shalt.err (!%p150_p4)
}
  0xea   :  { %s154_s2 = scalar_lea.hbm %s228_s3, 32 }
  0xeb   :  { %p155_p5 = scmp.ne.s32.totalorder %s228_s3, %s154_s2  ;;  %p158_p6 = scmp.lt.u32.totalorder %s154_s2, %s228_s3 }
  0xed   :  { %p160_p7 = pnand %p158_p6, %p155_p5 }
  0xef   :  { %163 = shalt.err (!%p160_p7)
}
  0xf0   :  { %117 = dma.vmem_to_hbm [thread:$0]  %s115_s27, 32, %s228_s3, [#allocation3]  }
  0xf1   :  { %164 = dma.done.wait [#allocation3], 32  }
  0xf2   :  { %165 = vsyncadd [#allocation3], 4294967264 }
  0xf3   :  { %121 = vsyncpa [#allocation3], 1 }

// kernel: vision_transformer_forward.4
= control target key start
LH: loop header
LB: loop body
LE: loop exit
PB: predicated region body
PF: predicated region fallthrough
CT: control target
= control target key end

     0   :  { %8 = vsyncpa [#allocation4], 0  ;;  %s1209_s0 = inlined_call_operand.hbm [shape: bf16[8,1024], index: 0, kind: input, shape index: {}]   ;;  %s1210_s1 = inlined_call_operand.hbm [shape: bf16[1024,32], index: 1, kind: input, shape index: {}]   ;;  %s1211_s2 = inlined_call_operand.hbm [shape: f32[1,32], index: 2, kind: input, shape index: {}]   ;;  %s1212_s3 = inlined_call_operand.hbm [shape: bf16[8,32], index: 3, kind: output, shape index: {}]  }
   0x1   :  { %9 = vsyncpa [#allocation7], 0 }
   0x2   :  { %10 = vsyncpa [#allocation5], 0  ;;  %s1132_s12 = smov [#allocation6]   ;;  %s1038_s16 = scalar_lea.hbm %s1210_s1, 8192 }
   0x3   :  { %s26_s13 = sshll.u32 %s1132_s12, 4  ;;  %p1039_p0 = scmp.ne.s32.totalorder %s1210_s1, %s1038_s16  ;;  %s27_s13 = int_to_ptr.vmem [resolvable:$true] %s26_s13 }
   0x4   :  { %p1042_p1 = scmp.lt.u32.totalorder %s1038_s16, %s1210_s1 }
   0x6   :  { %p1044_p2 = pnand %p1042_p1, %p1039_p0 }
   0x8   :  { %1047 = shalt.err (!%p1044_p2)
}
   0x9   :  { %s1048_s21 = scalar_lea.vmem %s27_s13, 8192  ;;  %p1053_p4 = scmp.lt.s32.totalorder %s27_s13, %s27_s13 }
   0xa   :  { %p1049_p3 = scmp.ne.s32.totalorder %s27_s13, %s1048_s21  ;;  %p1054_p5 = scmp.lt.s32.totalorder %s1048_s21, %s1048_s21 }
   0xc   :  { %p1055_p6 = por %p1054_p5, %p1053_p4 }
   0xe   :  { %p1056_p7 = pnand %p1055_p6, %p1049_p3 }
  0x10   :  { %1059 = shalt.err (!%p1056_p7)
}
  0x11   :  { %s1133_s22 = smov 64   ;;  %s1134_s23 = smov 4  }
  0x12   :  { %32 = dma.hbm_to_vmem [thread:$0]  %s1210_s1, 8192, %s27_s13, [#allocation7], %s1133_s22, %s1133_s22, %s1134_s23  }
  0x13   :  { %s1135_s26 = smov [#allocation3]   ;;  %s1136_s28 = smov [#allocation8]  }
  0x14   :  { %s17_s27 = sshll.u32 %s1135_s26, 4  ;;  %s39_s29 = sshll.u32 %s1136_s28, 4  ;;  %s18_s27 = int_to_ptr.vmem [resolvable:$true] %s17_s27  ;;  %s40_s29 = int_to_ptr.vmem [resolvable:$true] %s39_s29 }
  0x15   :  { %s1060_s5 = scalar_lea.hbm %s1209_s0, 512 }
  0x16   :  { %p1061_p8 = scmp.ne.s32.totalorder %s1209_s0, %s1060_s5  ;;  %p1064_p9 = scmp.lt.u32.totalorder %s1060_s5, %s1209_s0 }
  0x18   :  { %p1066_p10 = pnand %p1064_p9, %p1061_p8 }
  0x1a   :  { %1069 = shalt.err (!%p1066_p10)
}
  0x1b   :  { %s1070_s1 = scalar_lea.vmem %s18_s27, 512  ;;  %p1075_p12 = scmp.lt.s32.totalorder %s18_s27, %s18_s27 }
  0x1c   :  { %p1071_p11 = scmp.ne.s32.totalorder %s18_s27, %s1070_s1  ;;  %p1076_p13 = scmp.lt.s32.totalorder %s1070_s1, %s1070_s1 }
  0x1e   :  { %p1077_p0 = por %p1076_p13, %p1075_p12 }
  0x20   :  { %p1078_p1 = pnand %p1077_p0, %p1071_p11 }
  0x22   :  { %1081 = shalt.err (!%p1078_p1)
}
  0x23   :  { %20 = dma.hbm_to_vmem [thread:$0]  %s1209_s0, 512, %s18_s27, [#allocation4]  }
  0x24   :  { %s1082_s14 = scalar_lea.hbm %s1211_s2, 16 }
  0x25   :  { %p1083_p2 = scmp.ne.s32.totalorder %s1211_s2, %s1082_s14  ;;  %p1086_p3 = scmp.lt.u32.totalorder %s1082_s14, %s1211_s2 }
  0x27   :  { %p1088_p4 = pnand %p1086_p3, %p1083_p2 }
  0x29   :  { %1091 = shalt.err (!%p1088_p4)
}
  0x2a   :  { %s1092_s19 = scalar_lea.vmem %s40_s29, 16  ;;  %s1096_s20 = scalar_lea.vmem %s40_s29, 32 }
  0x2b   :  { %p1093_p5 = scmp.ne.s32.totalorder %s40_s29, %s1092_s19  ;;  %p1097_p6 = scmp.lt.s32.totalorder %s40_s29, %s40_s29 }
  0x2c   :  { %p1098_p7 = scmp.lt.s32.totalorder %s1096_s20, %s1092_s19 }
  0x2e   :  { %p1099_p8 = por %p1098_p7, %p1097_p6 }
  0x30   :  { %p1100_p9 = pnand %p1099_p8, %p1093_p5 }
  0x32   :  { %1103 = shalt.err (!%p1100_p9)
}
  0x33   :  { %42 = dma.hbm_to_vmem [thread:$0]  %s1211_s2, 16, %s40_s29, [#allocation7]  }
  0x34   :  { %1126 = dma.done.wait [#allocation4], 512  }
  0x35   :  { %1127 = vsyncadd [#allocation4], 4294966784 }
  0x36   :  { %1128 = dma.done.wait [#allocation7], 8208  }
  0x37   :  { %1129 = vsyncadd [#allocation7], 4294959088  ;;  %v966_v0 = vld [vmem:[#allocation6 + $0x40] sm:$0xff]   ;;  %v970_v4 = vld [vmem:[#allocation6 + $0x48] sm:$0xff]   ;;  %vm57_vm0 = vcmask 261120   ;;  %s1138_s2 = smov [#allocation9]  }
  0x38   :  { %v967_v1 = vld [vmem:[#allocation6 + $0xc0] sm:$0xff]   ;;  %871 = vmatprep.subr.bf16.mxu0 %v966_v0  ;;  %v971_v5 = vld [vmem:[#allocation6 + $0xc8] sm:$0xff]   ;;  %v974_v8 = vld [vmem:[#allocation6 + $0x50] sm:$0xff]   ;;  %s788_s22 = sshll.u32 %s1138_s2, 4  ;;  %vm780_vm1 = vcmask 257024   ;;  %s789_s22 = int_to_ptr.vmem [resolvable:$true] %s788_s22 }
  0x39   :  { %v968_v2 = vld [vmem:[#allocation6] sm:$0xff]   ;;  %893 = vmatprep.subr.bf16.mxu1 %v967_v1  ;;  %v972_v6 = vld [vmem:[#allocation6 + $0x8] sm:$0xff]   ;;  %v975_v9 = vld [vmem:[#allocation6 + $0xd0] sm:$0xff]   ;;  %s1104_s23 = scalar_lea.vmem %s789_s22, 64  ;;  %p1109_p11 = scmp.lt.s32.totalorder %s789_s22, %s789_s22 }
  0x3a   :  { %v969_v3 = vld [vmem:[#allocation6 + $0x80] sm:$0xff]   ;;  %872 = vmatpush3.bf16.msra.mxu0 %v968_v2  ;;  %v973_v7 = vld [vmem:[#allocation6 + $0x88] sm:$0xff]   ;;  %v976_v10 = vld [vmem:[#allocation6 + $0x10] sm:$0xff]   ;;  %p1105_p10 = scmp.ne.s32.totalorder %s789_s22, %s1104_s23  ;;  %p1110_p12 = scmp.lt.s32.totalorder %s1104_s23, %s1104_s23 }
  0x3b   :  { %894 = vmatpush3.bf16.msra.mxu1 %v969_v3  ;;  %873 = vmatprep.subr.bf16.mxu0 %v970_v4  ;;  %v977_v11 = vld [vmem:[#allocation6 + $0x90] sm:$0xff]   ;;  %v978_v12 = vld [vmem:[#allocation6 + $0x58] sm:$0xff]   ;;  %v982_v16 = vld [vmem:[#allocation6 + $0x60] sm:$0xff]  }
  0x3c   :  { %895 = vmatprep.subr.bf16.mxu1 %v971_v5  ;;  %v979_v13 = vld [vmem:[#allocation6 + $0xd8] sm:$0xff]   ;;  %v983_v17 = vld [vmem:[#allocation6 + $0xe0] sm:$0xff]   ;;  %v986_v20 = vld [vmem:[#allocation6 + $0x68] sm:$0xff]   ;;  %p1111_p13 = por %p1110_p12, %p1109_p11 }
  0x3d   :  { %v980_v14 = vld [vmem:[#allocation6 + $0x18] sm:$0xff]   ;;  %v984_v18 = vld [vmem:[#allocation6 + $0x20] sm:$0xff]   ;;  %v987_v21 = vld [vmem:[#allocation6 + $0xe8] sm:$0xff]  }
  0x3e   :  { %874 = vmatpush3.bf16.msra.mxu0 %v972_v6  ;;  %v981_v15 = vld [vmem:[#allocation6 + $0x98] sm:$0xff]   ;;  %v985_v19 = vld [vmem:[#allocation6 + $0xa0] sm:$0xff]   ;;  %v988_v22 = vld [vmem:[#allocation6 + $0x28] sm:$0xff]   ;;  %p1112_p0 = pnand %p1111_p13, %p1105_p10 }
  0x3f   :  { %896 = vmatpush3.bf16.msra.mxu1 %v973_v7  ;;  %875 = vmatprep.subr.bf16.mxu0 %v974_v8  ;;  %v989_v23 = vld [vmem:[#allocation6 + $0xa8] sm:$0xff]   ;;  %v990_v24 = vld [vmem:[#allocation6 + $0x70] sm:$0xff]   ;;  %v994_v28 = vld [vmem:[#allocation6 + $0x78] sm:$0xff]  }
  0x40   :  { %897 = vmatprep.subr.bf16.mxu1 %v975_v9  ;;  %v991_v25 = vld [vmem:[#allocation6 + $0xf0] sm:$0xff]   ;;  %v995_v29 = vld [vmem:[#allocation6 + $0xf8] sm:$0xff]   ;;  %v60_v32 = vld [vmem:[#allocation3] sm:$0xff] }
  0x41   :  { %v992_v26 = vld [vmem:[#allocation6 + $0x30] sm:$0xff]   ;;  %v996_v30 = vld [vmem:[#allocation6 + $0x38] sm:$0xff]   ;;  %v61_v33 = vld [vmem:[#allocation3 + $0x8] sm:$0xff]  ;;  %v798_v34 = vcombine.low %v60_v32, %v60_v32  ;;  %v799_v35 = vcombine.high %v60_v32, %v60_v32 }
  0x42   :  { %876 = vmatpush3.bf16.msra.mxu0 %v976_v10  ;;  %v993_v27 = vld [vmem:[#allocation6 + $0xb0] sm:$0xff]   ;;  %v997_v31 = vld [vmem:[#allocation6 + $0xb8] sm:$0xff]   ;;  %v800_v36 = vcombine.low %v61_v33, %v61_v33  ;;  %v801_v37 = vcombine.high %v61_v33, %v61_v33  ;;  %v1002_v38 = vld [vmem:[#allocation6 + $0x140] sm:$0xff]  }
  0x43   :  { %898 = vmatpush3.bf16.msra.mxu1 %v977_v11  ;;  %877 = vmatprep.subr.bf16.mxu0 %v978_v12  ;;  %v1003_v39 = vld [vmem:[#allocation6 + $0x1c0] sm:$0xff]   ;;  %v1006_v42 = vld [vmem:[#allocation6 + $0x148] sm:$0xff]   ;;  %v1010_v46 = vld [vmem:[#allocation6 + $0x150] sm:$0xff]   ;;  %v1137_v12 = vmov 0.0  }
  0x44   :  { %899 = vmatprep.subr.bf16.mxu1 %v979_v13  ;;  %636 = vmatprep.mubr.bf16.mxu0 %v799_v35  ;;  %v1004_v40 = vld [vmem:[#allocation6 + $0x100] sm:$0xff]   ;;  %v1007_v43 = vld [vmem:[#allocation6 + $0x1c8] sm:$0xff]   ;;  %v1011_v47 = vld [vmem:[#allocation6 + $0x1d0] sm:$0xff]   ;;  %58 = vst.msk [vmem:[#allocation2] sm:$0xff] %vm57_vm0, %v1137_v12 }
  0x45   :  { %676 = vmatprep.mubr.bf16.mxu1 %v801_v37  ;;  %v1005_v41 = vld [vmem:[#allocation6 + $0x180] sm:$0xff]   ;;  %v1008_v44 = vld [vmem:[#allocation6 + $0x108] sm:$0xff]   ;;  %v1012_v48 = vld [vmem:[#allocation6 + $0x110] sm:$0xff]  }
  0x46   :  { %878 = vmatpush3.bf16.msra.mxu0 %v980_v14  ;;  %v1009_v45 = vld [vmem:[#allocation6 + $0x188] sm:$0xff]   ;;  %v1013_v49 = vld [vmem:[#allocation6 + $0x190] sm:$0xff]   ;;  %v1014_v50 = vld [vmem:[#allocation6 + $0x158] sm:$0xff]  }
  0x47   :  { %900 = vmatpush3.bf16.msra.mxu1 %v981_v15  ;;  %879 = vmatprep.subr.bf16.mxu0 %v982_v16  ;;  %v1015_v51 = vld [vmem:[#allocation6 + $0x1d8] sm:$0xff]   ;;  %v1018_v54 = vld [vmem:[#allocation6 + $0x160] sm:$0xff]   ;;  %v1022_v58 = vld [vmem:[#allocation6 + $0x168] sm:$0xff]  }
  0x48   :  { %901 = vmatprep.subr.bf16.mxu1 %v983_v17  ;;  %v1016_v52 = vld [vmem:[#allocation6 + $0x118] sm:$0xff]   ;;  %v1019_v55 = vld [vmem:[#allocation6 + $0x1e0] sm:$0xff]   ;;  %v1023_v59 = vld [vmem:[#allocation6 + $0x1e8] sm:$0xff]  }
  0x49   :  { %v1017_v53 = vld [vmem:[#allocation6 + $0x198] sm:$0xff]   ;;  %v1020_v56 = vld [vmem:[#allocation6 + $0x120] sm:$0xff]   ;;  %v1024_v60 = vld [vmem:[#allocation6 + $0x128] sm:$0xff]  }
  0x4a   :  { %880 = vmatpush3.bf16.msra.mxu0 %v984_v18  ;;  %v1021_v57 = vld [vmem:[#allocation6 + $0x1a0] sm:$0xff]   ;;  %v1025_v61 = vld [vmem:[#allocation6 + $0x1a8] sm:$0xff]   ;;  %v1026_v62 = vld [vmem:[#allocation6 + $0x170] sm:$0xff]  }
  0x4b   :  { %902 = vmatpush3.bf16.msra.mxu1 %v985_v19  ;;  %881 = vmatprep.subr.bf16.mxu0 %v986_v20  ;;  %v1027_v63 = vld [vmem:[#allocation6 + $0x1f0] sm:$0xff]   ;;  %v1030_v2 = vld [vmem:[#allocation6 + $0x178] sm:$0xff]  }
  0x4c   :  { %903 = vmatprep.subr.bf16.mxu1 %v987_v21  ;;  %v1028_v0 = vld [vmem:[#allocation6 + $0x130] sm:$0xff]   ;;  %v1031_v3 = vld [vmem:[#allocation6 + $0x1f8] sm:$0xff]  }
  0x4d   :  { %v1029_v1 = vld [vmem:[#allocation6 + $0x1b0] sm:$0xff]   ;;  %v1032_v4 = vld [vmem:[#allocation6 + $0x138] sm:$0xff]  }
  0x4e   :  { %882 = vmatpush3.bf16.msra.mxu0 %v988_v22  ;;  %v1033_v5 = vld [vmem:[#allocation6 + $0x1b8] sm:$0xff]   ;;  %v62_v6 = vld [vmem:[#allocation3 + $0x10] sm:$0xff] }
  0x4f   :  { %904 = vmatpush3.bf16.msra.mxu1 %v989_v23  ;;  %883 = vmatprep.subr.bf16.mxu0 %v990_v24  ;;  %v802_v7 = vcombine.low %v62_v6, %v62_v6  ;;  %v803_v8 = vcombine.high %v62_v6, %v62_v6  ;;  %v63_v9 = vld [vmem:[#allocation3 + $0x18] sm:$0xff] }
  0x50   :  { %905 = vmatprep.subr.bf16.mxu1 %v991_v25  ;;  %v804_v10 = vcombine.low %v63_v9, %v63_v9  ;;  %v805_v11 = vcombine.high %v63_v9, %v63_v9  ;;  %v59_v35 = vld [vmem:[#allocation2] sm:$0xff] }
  0x52   :  { %884 = vmatpush3.bf16.msra.mxu0 %v992_v26 }
  0x53   :  { %906 = vmatpush3.bf16.msra.mxu1 %v993_v27  ;;  %885 = vmatprep.subr.bf16.mxu0 %v994_v28 }
  0x54   :  { %907 = vmatprep.subr.bf16.mxu1 %v995_v29 }
  0x56   :  { %886 = vmatpush3.bf16.msra.mxu0 %v996_v30 }
  0x57   :  { %908 = vmatpush3.bf16.msra.mxu1 %v997_v31  ;;  %915 = vmatprep.subr.bf16.mxu0 %v1002_v38  ;;  %v870_v38 = vld [vmem:[#allocation8] ss:$0 sm:$0xff] }
  0x58   :  { %937 = vmatprep.subr.bf16.mxu1 %v1003_v39 }
  0x59   :  { %637 = vmatmul.mubr.bf16.vlgmr.msra.gmra.mrb[0].mxu0 %v798_v34 }
  0x5a   :  { %677 = vmatmul.mubr.bf16.vlgmr.msra.gmra.mrb[0].mxu1 %v800_v36  ;;  %916 = vmatpush3.bf16.msra.mxu0 %v1004_v40 }
  0x5b   :  { %938 = vmatpush3.bf16.msra.mxu1 %v1005_v41  ;;  %917 = vmatprep.subr.bf16.mxu0 %v1006_v42 }
  0x5c   :  { %939 = vmatprep.subr.bf16.mxu1 %v1007_v43  ;;  %716 = vmatprep.mubr.bf16.mxu0 %v803_v8 }
  0x5d   :  { %756 = vmatprep.mubr.bf16.mxu1 %v805_v11 }
  0x5e   :  { %918 = vmatpush3.bf16.msra.mxu0 %v1008_v44 }
  0x5f   :  { %940 = vmatpush3.bf16.msra.mxu1 %v1009_v45  ;;  %919 = vmatprep.subr.bf16.mxu0 %v1010_v46 }
  0x60   :  { %941 = vmatprep.subr.bf16.mxu1 %v1011_v47 }
  0x62   :  { %920 = vmatpush3.bf16.msra.mxu0 %v1012_v48 }
  0x63   :  { %942 = vmatpush3.bf16.msra.mxu1 %v1013_v49  ;;  %921 = vmatprep.subr.bf16.mxu0 %v1014_v50 }
  0x64   :  { %943 = vmatprep.subr.bf16.mxu1 %v1015_v51 }
  0x66   :  { %922 = vmatpush3.bf16.msra.mxu0 %v1016_v52 }
  0x67   :  { %944 = vmatpush3.bf16.msra.mxu1 %v1017_v53  ;;  %923 = vmatprep.subr.bf16.mxu0 %v1018_v54 }
  0x68   :  { %945 = vmatprep.subr.bf16.mxu1 %v1019_v55 }
  0x6a   :  { %924 = vmatpush3.bf16.msra.mxu0 %v1020_v56 }
  0x6b   :  { %946 = vmatpush3.bf16.msra.mxu1 %v1021_v57  ;;  %925 = vmatprep.subr.bf16.mxu0 %v1022_v58 }
  0x6c   :  { %947 = vmatprep.subr.bf16.mxu1 %v1023_v59 }
  0x6e   :  { %926 = vmatpush3.bf16.msra.mxu0 %v1024_v60 }
  0x6f   :  { %948 = vmatpush3.bf16.msra.mxu1 %v1025_v61  ;;  %927 = vmatprep.subr.bf16.mxu0 %v1026_v62 }
  0x70   :  { %949 = vmatprep.subr.bf16.mxu1 %v1027_v63 }
  0x72   :  { %928 = vmatpush3.bf16.msra.mxu0 %v1028_v0 }
  0x73   :  { %950 = vmatpush3.bf16.msra.mxu1 %v1029_v1  ;;  %929 = vmatprep.subr.bf16.mxu0 %v1030_v2 }
  0x74   :  { %951 = vmatprep.subr.bf16.mxu1 %v1031_v3 }
  0x76   :  { %930 = vmatpush3.bf16.msra.mxu0 %v1032_v4 }
  0x77   :  { %952 = vmatpush3.bf16.msra.mxu1 %v1033_v5 }
  0x79   :  { %717 = vmatmul.mubr.bf16.vlgmr.msra.gmra.mrb[4].mxu0 %v802_v7 }
  0x7a   :  { %757 = vmatmul.mubr.bf16.vlgmr.msra.gmra.mrb[4].mxu1 %v804_v10 }
 0x12c   :  { %v887_v13 = vpop.f32.mrb[0].mxu0 }
 0x12d   :  { %v909_v14 = vpop.f32.mrb[0].mxu1  ;;  %v888_v15 = vpop.f32.mrb[1].mxu0 }
 0x12e   :  { %v910_v16 = vpop.f32.mrb[1].mxu1  ;;  %v889_v17 = vadd.f32 %v888_v15, %v887_v13  ;;  %v890_v19 = vpop.f32.mrb[2].mxu0 }
 0x12f   :  { %v911_v18 = vadd.f32 %v910_v16, %v909_v14  ;;  %v912_v20 = vpop.f32.mrb[2].mxu1  ;;  %v891_v21 = vpop.f32.mrb[3].mxu0 }
 0x130   :  { %v913_v22 = vpop.f32.mrb[3].mxu1 }
 0x131   :  { %v679_v23 = vadd.f32 %v911_v18, %v889_v17 }
 0x14c   :  { %v931_v24 = vpop.f32.mrb[4].mxu0 }
 0x14d   :  { %v953_v25 = vpop.f32.mrb[4].mxu1  ;;  %v932_v26 = vpop.f32.mrb[5].mxu0 }
 0x14e   :  { %v954_v27 = vpop.f32.mrb[5].mxu1  ;;  %v933_v28 = vadd.f32 %v932_v26, %v931_v24  ;;  %v934_v30 = vpop.f32.mrb[6].mxu0 }
 0x14f   :  { %v955_v29 = vadd.f32 %v954_v27, %v953_v25  ;;  %v956_v31 = vpop.f32.mrb[6].mxu1  ;;  %v935_v32 = vpop.f32.mrb[7].mxu0 }
 0x150   :  { %v957_v33 = vpop.f32.mrb[7].mxu1  ;;  %v719_v34 = vadd.f32 %v933_v28, %v679_v23 }
 0x152   :  { %v759_v36 = vadd.f32 %v955_v29, %v719_v34 }
 0x154   :  { %v764_v37 = vadd.f32 %v759_v36, %v59_v35 }
 0x156   :  { %766 = vst.msk [vmem:[#allocation2] sm:$0xff] %vm57_vm0, %v764_v37 }
 0x15d   :  { %v770_v39 = vld [vmem:[#allocation2] sm:$0xff] }
 0x15e   :  { %v778_v40 = vadd.f32 %v870_v38, %v770_v39 }
 0x160   :  { %v779_v41 = vpack.c.bf16 %v778_v40, %v778_v40 }
 0x162   :  { %781 = vst.msk [vmem:[#allocation9] sm:$0xf] %vm780_vm1, %v779_v41 }
 0x163   :  { %1115 = shalt.err (!%p1112_p0)
}
 0x164   :  { %s1116_s26 = scalar_lea.hbm %s1212_s3, 64 }
 0x165   :  { %p1117_p1 = scmp.ne.s32.totalorder %s1212_s3, %s1116_s26  ;;  %p1120_p2 = scmp.lt.u32.totalorder %s1116_s26, %s1212_s3 }
 0x167   :  { %p1122_p3 = pnand %p1120_p2, %p1117_p1 }
 0x169   :  { %1125 = shalt.err (!%p1122_p3)
}
 0x16a   :  { %791 = dma.vmem_to_hbm [thread:$0]  %s789_s22, 64, %s1212_s3, [#allocation5]  }
 0x16b   :  { %1130 = dma.done.wait [#allocation5], 64  }
 0x16c   :  { %1131 = vsyncadd [#allocation5], 4294967232 }
 0x16d   :  { %795 = vsyncpa [#allocation4], 1 }
 0x16e   :  { %796 = vsyncpa [#allocation7], 1 }
 0x16f   :  { %797 = vsyncpa [#allocation5], 1 }

// kernel: vision_transformer_forward.5
= control target key start
LH: loop header
LB: loop body
LE: loop exit
PB: predicated region body
PF: predicated region fallthrough
CT: control target
= control target key end

     0   :  { %18 = vsyncpa [#allocation3], 0  ;;  %s32276_s0 = inlined_call_operand.hbm [shape: bf16[64,32], index: 0, kind: input, shape index: {}]   ;;  %s32277_s1 = inlined_call_operand.hbm [shape: bf16[32,96], index: 1, kind: input, shape index: {}]   ;;  %s32278_s2 = inlined_call_operand.hbm [shape: f32[1,96], index: 2, kind: input, shape index: {}]   ;;  %s32279_s3 = inlined_call_operand.hbm [shape: bf16[32,32], index: 3, kind: input, shape index: {}]   ;;  %s32280_s4 = inlined_call_operand.hbm [shape: f32[1,32], index: 4, kind: input, shape index: {}]   ;;  %s32281_s5 = inlined_call_operand.hbm [shape: bf16[32,32], index: 5, kind: input, shape index: {}]   ;;  %s32282_s6 = inlined_call_operand.hbm [shape: f32[1,32], index: 6, kind: input, shape index: {}]   ;;  %s32283_s7 = inlined_call_operand.hbm [shape: bf16[32,32], index: 7, kind: input, shape index: {}]   ;;  %s32284_s8 = inlined_call_operand.hbm [shape: f32[1,32], index: 8, kind: input, shape index: {}]   ;;  %s32285_s9 = inlined_call_operand.hbm [shape: f32[1,32], index: 9, kind: input, shape index: {}]   ;;  %s32286_s10 = inlined_call_operand.hbm [shape: f32[1,32], index: 10, kind: input, shape index: {}]   ;;  %s32287_s11 = inlined_call_operand.hbm [shape: f32[1,32], index: 11, kind: input, shape index: {}]   ;;  %s32288_s12 = inlined_call_operand.hbm [shape: f32[1,32], index: 12, kind: input, shape index: {}]   ;;  %s32289_s13 = inlined_call_operand.hbm [shape: bf16[64,32], index: 13, kind: output, shape index: {}]  }
   0x1   :  { %19 = vsyncpa [#allocation6], 0 }
   0x2   :  { %20 = vsyncpa [#allocation9], 0 }
   0x3   :  { %21 = vsyncpa [#allocation12], 0 }
   0x4   :  { %22 = vsyncpa [#allocation15], 0 }
   0x5   :  { %23 = vsyncpa [#allocation18], 0 }
   0x6   :  { %24 = vsyncpa [#allocation21], 0 }
   0x7   :  { %25 = vsyncpa [#allocation4], 0  ;;  %s26950_s25 = smov [#allocation5]   ;;  %s26951_s27 = smov [#allocation8]  }
   0x8   :  { %s43_s26 = sshll.u32 %s26950_s25, 4  ;;  %s65_s28 = sshll.u32 %s26951_s27, 4  ;;  %s44_s26 = int_to_ptr.vmem [resolvable:$true] %s43_s26  ;;  %s27052_s28 = int_to_ptr.vmem [resolvable:$true] %s65_s28 }
   0x9   :  { %s26626_s14 = scalar_lea.hbm %s32277_s1, 256 }
   0xa   :  { %p26627_p0 = scmp.ne.s32.totalorder %s32277_s1, %s26626_s14  ;;  %p26630_p1 = scmp.lt.u32.totalorder %s26626_s14, %s32277_s1 }
   0xc   :  { %p26632_p2 = pnand %p26630_p1, %p26627_p0 }
   0xe   :  { %26635 = shalt.err (!%p26632_p2)
}
   0xf   :  { %s26636_s19 = scalar_lea.vmem %s44_s26, 256  ;;  %p26641_p4 = scmp.lt.s32.totalorder %s44_s26, %s44_s26 }
  0x10   :  { %p26637_p3 = scmp.ne.s32.totalorder %s44_s26, %s26636_s19  ;;  %p26642_p5 = scmp.lt.s32.totalorder %s26636_s19, %s26636_s19 }
  0x12   :  { %p26643_p6 = por %p26642_p5, %p26641_p4 }
  0x14   :  { %p26644_p7 = pnand %p26643_p6, %p26637_p3 }
  0x16   :  { %26647 = shalt.err (!%p26644_p7)
}
  0x17   :  { %s26952_s20 = smov 64   ;;  %s26953_s21 = smov 4  }
  0x18   :  { %49 = dma.hbm_to_vmem [thread:$0]  %s32277_s1, 256, %s44_s26, [#allocation6], %s26952_s20, %s26952_s20, %s26953_s21  }
  0x19   :  { %s26648_s27 = scalar_lea.hbm %s32279_s3, 256 }
  0x1a   :  { %p26649_p8 = scmp.ne.s32.totalorder %s32279_s3, %s26648_s27  ;;  %p26652_p9 = scmp.lt.u32.totalorder %s26648_s27, %s32279_s3 }
  0x1c   :  { %p26654_p10 = pnand %p26652_p9, %p26649_p8 }
  0x1e   :  { %26657 = shalt.err (!%p26654_p10)
}
  0x1f   :  { %s26658_s16 = scalar_lea.vmem %s27052_s28, 256  ;;  %p26663_p12 = scmp.lt.s32.totalorder %s27052_s28, %s27052_s28 }
  0x20   :  { %p26659_p11 = scmp.ne.s32.totalorder %s27052_s28, %s26658_s16  ;;  %p26664_p13 = scmp.lt.s32.totalorder %s26658_s16, %s26658_s16 }
  0x22   :  { %p26665_p0 = por %p26664_p13, %p26663_p12 }
  0x24   :  { %p26666_p1 = pnand %p26665_p0, %p26659_p11 }
  0x26   :  { %26669 = shalt.err (!%p26666_p1)
}
  0x27   :  { %71 = dma.hbm_to_vmem [thread:$0]  %s32279_s3, 256, %s27052_s28, [#allocation9], %s26952_s20, %s26952_s20, %s26953_s21  }
  0x28   :  { %s26954_s17 = smov [#allocation11]   ;;  %s26955_s19 = smov [#allocation14]  }
  0x29   :  { %s87_s18 = sshll.u32 %s26954_s17, 4  ;;  %s109_s22 = sshll.u32 %s26955_s19, 4  ;;  %s88_s18 = int_to_ptr.vmem [resolvable:$true] %s87_s18  ;;  %s27089_s22 = int_to_ptr.vmem [resolvable:$true] %s109_s22 }
  0x2a   :  { %s26670_s25 = scalar_lea.hbm %s32281_s5, 256 }
  0x2b   :  { %p26671_p2 = scmp.ne.s32.totalorder %s32281_s5, %s26670_s25  ;;  %p26674_p3 = scmp.lt.u32.totalorder %s26670_s25, %s32281_s5 }
  0x2d   :  { %p26676_p4 = pnand %p26674_p3, %p26671_p2 }
  0x2f   :  { %26679 = shalt.err (!%p26676_p4)
}
  0x30   :  { %s26680_s3 = scalar_lea.vmem %s88_s18, 256  ;;  %p26685_p6 = scmp.lt.s32.totalorder %s88_s18, %s88_s18 }
  0x31   :  { %p26681_p5 = scmp.ne.s32.totalorder %s88_s18, %s26680_s3  ;;  %p26686_p7 = scmp.lt.s32.totalorder %s26680_s3, %s26680_s3 }
  0x33   :  { %p26687_p8 = por %p26686_p7, %p26685_p6 }
  0x35   :  { %p26688_p9 = pnand %p26687_p8, %p26681_p5 }
  0x37   :  { %26691 = shalt.err (!%p26688_p9)
}
  0x38   :  { %93 = dma.hbm_to_vmem [thread:$0]  %s32281_s5, 256, %s88_s18, [#allocation12], %s26952_s20, %s26952_s20, %s26953_s21  }
  0x39   :  { %s26692_s26 = scalar_lea.hbm %s32283_s7, 256 }
  0x3a   :  { %p26693_p10 = scmp.ne.s32.totalorder %s32283_s7, %s26692_s26  ;;  %p26696_p11 = scmp.lt.u32.totalorder %s26692_s26, %s32283_s7 }
  0x3c   :  { %p26698_p12 = pnand %p26696_p11, %p26693_p10 }
  0x3e   :  { %26701 = shalt.err (!%p26698_p12)
}
  0x3f   :  { %s26702_s25 = scalar_lea.vmem %s27089_s22, 256  ;;  %p26707_p0 = scmp.lt.s32.totalorder %s27089_s22, %s27089_s22 }
  0x40   :  { %p26703_p13 = scmp.ne.s32.totalorder %s27089_s22, %s26702_s25  ;;  %p26708_p1 = scmp.lt.s32.totalorder %s26702_s25, %s26702_s25 }
  0x42   :  { %p26709_p2 = por %p26708_p1, %p26707_p0 }
  0x44   :  { %p26710_p3 = pnand %p26709_p2, %p26703_p13 }
  0x46   :  { %26713 = shalt.err (!%p26710_p3)
}
  0x47   :  { %115 = dma.hbm_to_vmem [thread:$0]  %s32283_s7, 256, %s27089_s22, [#allocation15], %s26952_s20, %s26952_s20, %s26953_s21  }
  0x48   :  { %s26956_s27 = smov [#allocation17]   ;;  %s26957_s30 = smov [#allocation20]  }
  0x49   :  { %s132_s29 = sshll.u32 %s26956_s27, 4  ;;  %s152_s14 = sshll.u32 %s26957_s30, 4  ;;  %s133_s29 = int_to_ptr.vmem [resolvable:$true] %s132_s29  ;;  %s153_s14 = int_to_ptr.vmem [resolvable:$true] %s152_s14 }
  0x4a   :  { %s26714_s15 = scalar_lea.hbm %s32285_s9, 16 }
  0x4b   :  { %p26715_p4 = scmp.ne.s32.totalorder %s32285_s9, %s26714_s15  ;;  %p26718_p5 = scmp.lt.u32.totalorder %s26714_s15, %s32285_s9 }
  0x4d   :  { %p26720_p6 = pnand %p26718_p5, %p26715_p4 }
  0x4f   :  { %26723 = shalt.err (!%p26720_p6)
}
  0x50   :  { %s26724_s7 = scalar_lea.vmem %s133_s29, 16  ;;  %s26728_s22 = scalar_lea.vmem %s133_s29, 32 }
  0x51   :  { %p26725_p7 = scmp.ne.s32.totalorder %s133_s29, %s26724_s7  ;;  %p26729_p8 = scmp.lt.s32.totalorder %s133_s29, %s133_s29 }
  0x52   :  { %p26730_p9 = scmp.lt.s32.totalorder %s26728_s22, %s26724_s7 }
  0x54   :  { %p26731_p10 = por %p26730_p9, %p26729_p8 }
  0x56   :  { %p26732_p11 = pnand %p26731_p10, %p26725_p7 }
  0x58   :  { %26735 = shalt.err (!%p26732_p11)
}
  0x59   :  { %135 = dma.hbm_to_vmem [thread:$0]  %s32285_s9, 16, %s133_s29, [#allocation18]  }
  0x5a   :  { %s26736_s5 = scalar_lea.hbm %s32287_s11, 16 }
  0x5b   :  { %p26737_p12 = scmp.ne.s32.totalorder %s32287_s11, %s26736_s5  ;;  %p26740_p13 = scmp.lt.u32.totalorder %s26736_s5, %s32287_s11 }
  0x5d   :  { %p26742_p0 = pnand %p26740_p13, %p26737_p12 }
  0x5f   :  { %26745 = shalt.err (!%p26742_p0)
}
  0x60   :  { %s26746_s28 = scalar_lea.vmem %s153_s14, 16  ;;  %s26750_s15 = scalar_lea.vmem %s153_s14, 32 }
  0x61   :  { %p26747_p1 = scmp.ne.s32.totalorder %s153_s14, %s26746_s28  ;;  %p26751_p2 = scmp.lt.s32.totalorder %s153_s14, %s153_s14 }
  0x62   :  { %p26752_p3 = scmp.lt.s32.totalorder %s26750_s15, %s26746_s28 }
  0x64   :  { %p26753_p4 = por %p26752_p3, %p26751_p2 }
  0x66   :  { %p26754_p5 = pnand %p26753_p4, %p26747_p1 }
  0x68   :  { %26757 = shalt.err (!%p26754_p5)
}
  0x69   :  { %155 = dma.hbm_to_vmem [thread:$0]  %s32287_s11, 16, %s153_s14, [#allocation21]  }
  0x6a   :  { %s26958_s16 = smov [#allocation2]   ;;  %s26959_s26 = smov [#allocation7]  }
  0x6b   :  { %s31_s1 = sshll.u32 %s26958_s16, 4  ;;  %s56_s17 = sshll.u32 %s26959_s26, 4  ;;  %s32_s1 = int_to_ptr.vmem [resolvable:$true] %s31_s1  ;;  %s57_s17 = int_to_ptr.vmem [resolvable:$true] %s56_s17 }
  0x6c   :  { %s26758_s19 = scalar_lea.hbm %s32276_s0, 512 }
  0x6d   :  { %p26759_p6 = scmp.ne.s32.totalorder %s32276_s0, %s26758_s19  ;;  %p26762_p7 = scmp.lt.u32.totalorder %s26758_s19, %s32276_s0 }
  0x6f   :  { %p26764_p8 = pnand %p26762_p7, %p26759_p6 }
  0x71   :  { %26767 = shalt.err (!%p26764_p8)
}
  0x72   :  { %s26768_s11 = scalar_lea.vmem %s32_s1, 512  ;;  %p26773_p10 = scmp.lt.s32.totalorder %s32_s1, %s32_s1 }
  0x73   :  { %p26769_p9 = scmp.ne.s32.totalorder %s32_s1, %s26768_s11  ;;  %p26774_p11 = scmp.lt.s32.totalorder %s26768_s11, %s26768_s11 }
  0x75   :  { %p26775_p12 = por %p26774_p11, %p26773_p10 }
  0x77   :  { %p26776_p13 = pnand %p26775_p12, %p26769_p9 }
  0x79   :  { %26779 = shalt.err (!%p26776_p13)
}
  0x7a   :  { %37 = dma.hbm_to_vmem [thread:$0]  %s32276_s0, 512, %s32_s1, [#allocation3], %s26952_s20, %s26952_s20, %s26953_s21  }
  0x7b   :  { %s26780_s3 = scalar_lea.hbm %s32278_s2, 16 }
  0x7c   :  { %p26781_p0 = scmp.ne.s32.totalorder %s32278_s2, %s26780_s3  ;;  %p26784_p1 = scmp.lt.u32.totalorder %s26780_s3, %s32278_s2 }
  0x7e   :  { %p26786_p2 = pnand %p26784_p1, %p26781_p0 }
  0x80   :  { %26789 = shalt.err (!%p26786_p2)
}
  0x81   :  { %s26790_s16 = scalar_lea.vmem %s57_s17, 16  ;;  %s26794_s26 = scalar_lea.vmem %s57_s17, 32 }
  0x82   :  { %p26791_p3 = scmp.ne.s32.totalorder %s57_s17, %s26790_s16  ;;  %p26795_p4 = scmp.lt.s32.totalorder %s57_s17, %s57_s17 }
  0x83   :  { %p26796_p5 = scmp.lt.s32.totalorder %s26794_s26, %s26790_s16 }
  0x85   :  { %p26797_p6 = por %p26796_p5, %p26795_p4 }
  0x87   :  { %p26798_p7 = pnand %p26797_p6, %p26791_p3 }
  0x89   :  { %26801 = shalt.err (!%p26798_p7)
}
  0x8a   :  { %59 = dma.hbm_to_vmem [thread:$0]  %s32278_s2, 16, %s57_s17, [#allocation6]  }
  0x8b   :  { %s26960_s7 = smov [#allocation10]   ;;  %s26961_s19 = smov [#allocation13]  }
  0x8c   :  { %s78_s22 = sshll.u32 %s26960_s7, 4  ;;  %s100_s23 = sshll.u32 %s26961_s19, 4  ;;  %s79_s22 = int_to_ptr.vmem [resolvable:$true] %s78_s22  ;;  %s101_s23 = int_to_ptr.vmem [resolvable:$true] %s100_s23 }
  0x8d   :  { %s26802_s5 = scalar_lea.hbm %s32280_s4, 16 }
  0x8e   :  { %p26803_p8 = scmp.ne.s32.totalorder %s32280_s4, %s26802_s5  ;;  %p26806_p9 = scmp.lt.u32.totalorder %s26802_s5, %s32280_s4 }
  0x90   :  { %p26808_p10 = pnand %p26806_p9, %p26803_p8 }
  0x92   :  { %26811 = shalt.err (!%p26808_p10)
}
  0x93   :  { %s26812_s2 = scalar_lea.vmem %s79_s22, 16  ;;  %s26816_s17 = scalar_lea.vmem %s79_s22, 32 }
  0x94   :  { %p26813_p11 = scmp.ne.s32.totalorder %s79_s22, %s26812_s2  ;;  %p26817_p12 = scmp.lt.s32.totalorder %s79_s22, %s79_s22 }
  0x95   :  { %p26818_p13 = scmp.lt.s32.totalorder %s26816_s17, %s26812_s2 }
  0x97   :  { %p26819_p0 = por %p26818_p13, %p26817_p12 }
  0x99   :  { %p26820_p1 = pnand %p26819_p0, %p26813_p11 }
  0x9b   :  { %26823 = shalt.err (!%p26820_p1)
}
  0x9c   :  { %81 = dma.hbm_to_vmem [thread:$0]  %s32280_s4, 16, %s79_s22, [#allocation9]  }
  0x9d   :  { %s26824_s9 = scalar_lea.hbm %s32282_s6, 16 }
  0x9e   :  { %p26825_p2 = scmp.ne.s32.totalorder %s32282_s6, %s26824_s9  ;;  %p26828_p3 = scmp.lt.u32.totalorder %s26824_s9, %s32282_s6 }
  0xa0   :  { %p26830_p4 = pnand %p26828_p3, %p26825_p2 }
  0xa2   :  { %26833 = shalt.err (!%p26830_p4)
}
  0xa3   :  { %s26834_s1 = scalar_lea.vmem %s101_s23, 16  ;;  %s26838_s7 = scalar_lea.vmem %s101_s23, 32 }
  0xa4   :  { %p26835_p5 = scmp.ne.s32.totalorder %s101_s23, %s26834_s1  ;;  %p26839_p6 = scmp.lt.s32.totalorder %s101_s23, %s101_s23 }
  0xa5   :  { %p26840_p7 = scmp.lt.s32.totalorder %s26838_s7, %s26834_s1 }
  0xa7   :  { %p26841_p8 = por %p26840_p7, %p26839_p6 }
  0xa9   :  { %p26842_p9 = pnand %p26841_p8, %p26835_p5 }
  0xab   :  { %26845 = shalt.err (!%p26842_p9)
}
  0xac   :  { %103 = dma.hbm_to_vmem [thread:$0]  %s32282_s6, 16, %s101_s23, [#allocation12]  }
  0xad   :  { %s26962_s19 = smov [#allocation16]   ;;  %s26963_s25 = smov [#allocation19]  }
  0xae   :  { %s122_s24 = sshll.u32 %s26962_s19, 4  ;;  %s142_s5 = sshll.u32 %s26963_s25, 4  ;;  %s123_s24 = int_to_ptr.vmem [resolvable:$true] %s122_s24  ;;  %s143_s5 = int_to_ptr.vmem [resolvable:$true] %s142_s5 }
  0xaf   :  { %s26846_s18 = scalar_lea.hbm %s32284_s8, 16 }
  0xb0   :  { %p26847_p10 = scmp.ne.s32.totalorder %s32284_s8, %s26846_s18  ;;  %p26850_p11 = scmp.lt.u32.totalorder %s26846_s18, %s32284_s8 }
  0xb2   :  { %p26852_p12 = pnand %p26850_p11, %p26847_p10 }
  0xb4   :  { %26855 = shalt.err (!%p26852_p12)
}
  0xb5   :  { %s26856_s6 = scalar_lea.vmem %s123_s24, 16  ;;  %s26860_s23 = scalar_lea.vmem %s123_s24, 32 }
  0xb6   :  { %p26857_p13 = scmp.ne.s32.totalorder %s123_s24, %s26856_s6  ;;  %p26861_p0 = scmp.lt.s32.totalorder %s123_s24, %s123_s24 }
  0xb7   :  { %p26862_p1 = scmp.lt.s32.totalorder %s26860_s23, %s26856_s6 }
  0xb9   :  { %p26863_p2 = por %p26862_p1, %p26861_p0 }
  0xbb   :  { %p26864_p3 = pnand %p26863_p2, %p26857_p13 }
  0xbd   :  { %26867 = shalt.err (!%p26864_p3)
}
  0xbe   :  { %125 = dma.hbm_to_vmem [thread:$0]  %s32284_s8, 16, %s123_s24, [#allocation15]  }
  0xbf   :  { %s26868_s29 = scalar_lea.hbm %s32286_s10, 16 }
  0xc0   :  { %p26869_p4 = scmp.ne.s32.totalorder %s32286_s10, %s26868_s29  ;;  %p26872_p5 = scmp.lt.u32.totalorder %s26868_s29, %s32286_s10 }
  0xc2   :  { %p26874_p6 = pnand %p26872_p5, %p26869_p4 }
  0xc4   :  { %26877 = shalt.err (!%p26874_p6)
}
  0xc5   :  { %s26878_s7 = scalar_lea.vmem %s143_s5, 16  ;;  %s26882_s4 = scalar_lea.vmem %s143_s5, 32 }
  0xc6   :  { %p26879_p7 = scmp.ne.s32.totalorder %s143_s5, %s26878_s7  ;;  %p26883_p8 = scmp.lt.s32.totalorder %s143_s5, %s143_s5 }
  0xc7   :  { %p26884_p9 = scmp.lt.s32.totalorder %s26882_s4, %s26878_s7 }
  0xc9   :  { %p26885_p10 = por %p26884_p9, %p26883_p8 }
  0xcb   :  { %p26886_p11 = pnand %p26885_p10, %p26879_p7 }
  0xcd   :  { %26889 = shalt.err (!%p26886_p11)
}
  0xce   :  { %145 = dma.hbm_to_vmem [thread:$0]  %s32286_s10, 16, %s143_s5, [#allocation18]  }
  0xcf   :  { %s26964_s19 = smov [#allocation22]   ;;  %s26890_s14 = scalar_lea.hbm %s32288_s12, 16 }
  0xd0   :  { %s162_s24 = sshll.u32 %s26964_s19, 4  ;;  %p26891_p12 = scmp.ne.s32.totalorder %s32288_s12, %s26890_s14  ;;  %s163_s24 = int_to_ptr.vmem [resolvable:$true] %s162_s24 }
  0xd1   :  { %p26894_p13 = scmp.lt.u32.totalorder %s26890_s14, %s32288_s12 }
  0xd3   :  { %p26896_p0 = pnand %p26894_p13, %p26891_p12 }
  0xd5   :  { %26899 = shalt.err (!%p26896_p0)
}
  0xd6   :  { %s26900_s30 = scalar_lea.vmem %s163_s24, 16  ;;  %s26904_s10 = scalar_lea.vmem %s163_s24, 32 }
  0xd7   :  { %p26901_p1 = scmp.ne.s32.totalorder %s163_s24, %s26900_s30  ;;  %p26905_p2 = scmp.lt.s32.totalorder %s163_s24, %s163_s24 }
  0xd8   :  { %p26906_p3 = scmp.lt.s32.totalorder %s26904_s10, %s26900_s30 }
  0xda   :  { %p26907_p4 = por %p26906_p3, %p26905_p2 }
  0xdc   :  { %p26908_p5 = pnand %p26907_p4, %p26901_p1 }
  0xde   :  { %26911 = shalt.err (!%p26908_p5)
}
  0xdf   :  { %165 = dma.hbm_to_vmem [thread:$0]  %s32288_s12, 16, %s163_s24, [#allocation21]  }
  0xe0   :  { %26934 = dma.done.wait [#allocation3], 512  }
  0xe1   :  { %26935 = vsyncadd [#allocation3], 4294966784 }
  0xe2   :  { %26936 = dma.done.wait [#allocation6], 272  }
  0xe3   :  { %26937 = vsyncadd [#allocation6], 4294967024 }
  0xe4   :  { %26938 = dma.done.wait [#allocation9], 272  }
  0xe5   :  { %26939 = vsyncadd [#allocation9], 4294967024 }
  0xe6   :  { %26940 = dma.done.wait [#allocation12], 272  }
  0xe7   :  { %26941 = vsyncadd [#allocation12], 4294967024 }
  0xe8   :  { %26942 = dma.done.wait [#allocation15], 272  }
  0xe9   :  { %26943 = vsyncadd [#allocation15], 4294967024 }
  0xea   :  { %26944 = dma.done.wait [#allocation18], 32  }
  0xeb   :  { %26945 = vsyncadd [#allocation18], 4294967264 }
  0xec   :  { %26946 = dma.done.wait [#allocation21], 32  }
  0xed   :  { %26947 = vsyncadd [#allocation21], 4294967264  ;;  %v26062_v0 = vld [vmem:[#allocation5] sm:$0xff]   ;;  %v26063_v1 = vld [vmem:[#allocation5 + $0x8] sm:$0xff]   ;;  %vm265_vm0 = vcmask 261120   ;;  %v363_v8 = vlaneseq  ;;  %v32294_v11 = vmov 0.0  }
  0xee   :  { %24702 = vmatprep.subr.bf16.mxu0 %v26062_v0  ;;  %v206_v2 = vld [vmem:[#allocation2] sm:$0xff]   ;;  %v208_v3 = vld [vmem:[#allocation2 + $0x8] sm:$0xff]   ;;  %v210_v4 = vld [vmem:[#allocation2 + $0x10] sm:$0xff]   ;;  %v26965_v6 = vmov 1983009808   ;;  %24719 = vmatprep.subr.mxu1 %v32294_v11  ;;  %vm26967_vm1 = vmmov 0  }
  0xef   :  { %24703 = vmatpush3.bf16.msra.mxu0 %v26062_v0  ;;  %24706 = vmatprep.mubr.msk.bf16.mxu0 %vm265_vm0, %v206_v2  ;;  %v212_v5 = vld [vmem:[#allocation2 + $0x18] sm:$0xff]   ;;  %v361_v7 = vunpack.c.l.s4 %v26965_v6  ;;  %v364_v10 = vshrl.u32 %v363_v8, 7  ;;  %v23602_v12 = vld [vmem:[#allocation7] ss:$0 sm:$0xff]  ;;  %s26968_s12 = smov 96   ;;  %vm648_vm2 = vcmask 64512  }
  0xf0   :  { %24704 = vmatprep.subr.bf16.mxu0 %v26063_v1  ;;  %24721 = vmatprep.mubr.msk.f32.mxu1 %vm26967_vm1, %v32294_v11  ;;  %s26969_s23 = smov 88   ;;  %s26970_s3 = smov 120   ;;  %vm3655_vm3 = vcmask 1041408   ;;  %vm3296_vm4 = vcmask 9216   ;;  %vm3651_vm5 = vcmask 15360   ;;  %vm22691_vm6 = vcmask 130048  }
  0xf1   :  { %v362_v9 = vunpack.c.0.s8 %v361_v7  ;;  %s26971_s28 = smov 56   ;;  %s26972_s15 = smov 80   ;;  %vm22724_vm7 = vcmask 195584   ;;  %vm23570_vm8 = vcmask 257024  }
  0xf2   :  { %s26973_s9 = smov 112   ;;  %s26974_s29 = smov 48  }
  0xf3   :  { %24705 = vmatpush3.bf16.msra.mxu0 %v26063_v1  ;;  %v27243_v13 = vsub.s32 %v362_v9, %v364_v10  ;;  %s26975_s16 = smov 72   ;;  %s26976_s26 = smov 104  }
  0xf4   :  { %24714 = vmatprep.subr.mxu0 %v32294_v11  ;;  %s26977_s0 = smov 40   ;;  %s26978_s1 = smov 8  }
  0xf5   :  { %32462 = vst [vmem:[#allocation32_spill] sm:$0xff] %v27243_v13  ;;  %s26979_s7 = smov 16   ;;  %s26980_s4 = smov 24  }
  0xf6   :  { %24707 = vmatmul.mubr.msk.bf16.vlgmr.msra.gmra.mrb[0].mxu0 %vm265_vm0, %v208_v3  ;;  %s26981_s8 = smov [#allocation23]  }
  0xf7   :  { %24710 = vmatprep.mubr.msk.bf16.mxu0 %vm265_vm0, %v210_v4  ;;  %s23584_s22 = sshll.u32 %s26981_s8, 4  ;;  %s23585_s22 = int_to_ptr.vmem [resolvable:$true] %s23584_s22 }
  0xf8   :  { %s26912_s19 = scalar_lea.vmem %s23585_s22, 512  ;;  %p26917_p7 = scmp.lt.s32.totalorder %s23585_s22, %s23585_s22 }
  0xf9   :  { %p26913_p6 = scmp.ne.s32.totalorder %s23585_s22, %s26912_s19  ;;  %p26918_p8 = scmp.lt.s32.totalorder %s26912_s19, %s26912_s19 }
  0xfb   :  { %p26919_p9 = por %p26918_p8, %p26917_p7 }
  0xfd   :  { %p26920_p10 = pnand %p26919_p9, %p26913_p6 }
  0xfe   :  { %24711 = vmatmul.mubr.msk.bf16.gmra.mrb[4].mxu0 %vm265_vm0, %v212_v5 }
  0xff   :  { %24716 = vmatprep.mubr.msk.f32.mxu0 %vm26967_vm1, %v32294_v11 }
 0x1c9   :  { %v24708_v14 = vpop.f32.mrb[0].mxu0 }
 0x1ca   :  { %v27245_v15 = vadd.f32 %v24708_v14, %v23602_v12  ;;  %v312_v16 = vpop.f32.mrb[1].mxu0 }
 0x1cb   :  { %v27251_v17 = vadd.f32 %v23602_v12, %v312_v16  ;;  %v24709_v18 = vpop.f32.mrb[2].mxu0 }
 0x1cc   :  { %v544_v19 = vrot.slane %v27245_v15, %v27243_v13  ;;  %v315_v20 = vpop.f32.mrb[3].mxu0  ;;  %v537_v23 = vcombine.high %v27245_v15, %v27245_v15  ;;  %v27270_v29 = vadd.f32 %v24709_v18, %v23602_v12 }
 0x1cd   :  { %v510_v22 = vrot.slane %v27251_v17, %v27243_v13  ;;  %v503_v37 = vcombine.high %v27251_v17, %v27251_v17  ;;  %v27306_v43 = vadd.f32 %v23602_v12, %v315_v20 }
 0x1ce   :  { %v27256_v21 = vrot.slane %v544_v19, %v27243_v13  ;;  %v552_v25 = vcombine.high %v544_v19, %v544_v19  ;;  %v551_v28 = vrot.slane %v537_v23, %v27243_v13  ;;  %v561_v36 = vrot.slane %v27270_v29, %v27243_v13 }
 0x1cf   :  { %v27267_v26 = vrot.slane %v510_v22, %v27243_v13  ;;  %v517_v41 = vrot.slane %v503_v37, %v27243_v13  ;;  %v518_v42 = vcombine.high %v510_v22, %v510_v22  ;;  %v527_v46 = vrot.slane %v27306_v43, %v27243_v13 }
 0x1d0   :  { %32463 = vst [vmem:[#allocation33_spill] sm:$0xff] %v27256_v21  ;;  %4267 = vrot.lane.b32.xlu1 %v27256_v21, %s26952_s20  ;;  %1311 = vrot.lane.b32.xlu0 %v27256_v21, %s26968_s12  ;;  %v27279_v33 = vrot.slane %v552_v25, %v27243_v13  ;;  %v27284_v35 = vrot.slane %v551_v28, %v27243_v13 }
 0x1d1   :  { %v24712_v24 = vpop.f32.mrb[4].mxu0  ;;  %32464 = vst [vmem:[#allocation34_spill] sm:$0xff] %v27267_v26  ;;  %v27295_v38 = vrot.slane %v561_v36, %v27243_v13  ;;  %v27313_v44 = vrot.slane %v517_v41, %v27243_v13  ;;  %v27316_v45 = vrot.slane %v518_v42, %v27243_v13  ;;  %v554_v47 = vcombine.high %v27270_v29, %v27270_v29 }
 0x1d2   :  { %v328_v27 = vpop.f32.mrb[5].mxu0  ;;  %v27276_v32 = vadd.f32 %v24712_v24, %v23602_v12  ;;  %32465 = vst [vmem:[#allocation35_spill] sm:$0xff] %v27279_v33  ;;  %32466 = vst [vmem:[#allocation36_spill] sm:$0xff] %v27284_v35  ;;  %v27327_v48 = vrot.slane %v527_v46, %v27243_v13  ;;  %v553_v49 = vcombine.high %v551_v28, %v551_v28 }
 0x1d3   :  { %v24713_v30 = vpop.f32.mrb[6].mxu0  ;;  %v27281_v34 = vadd.f32 %v23602_v12, %v328_v27  ;;  %32467 = vst [vmem:[#allocation37_spill] sm:$0xff] %v27295_v38  ;;  %32468 = vst [vmem:[#allocation38_spill] sm:$0xff] %v27313_v44  ;;  %v568_v50 = vrot.slane %v554_v47, %v27243_v13  ;;  %v569_v52 = vcombine.high %v561_v36, %v561_v36 }
 0x1d4   :  { %3649 = vrot.lane.b32.xlu1 %v27267_v26, %s26952_s20  ;;  %v331_v31 = vpop.f32.mrb[7].mxu0  ;;  %646 = vrot.lane.b32.xlu0 %v27267_v26, %s26968_s12  ;;  %v27297_v39 = vadd.f32 %v24713_v30, %v23602_v12  ;;  %32469 = vst [vmem:[#allocation39_spill] sm:$0xff] %v27316_v45  ;;  %32470 = vst [vmem:[#allocation40_spill] sm:$0xff] %v27327_v48  ;;  %v27339_v51 = vrot.slane %v553_v49, %v27243_v13 }
 0x1d5   :  { %v27301_v40 = vadd.f32 %v23602_v12, %v331_v31  ;;  %v27342_v53 = vrot.slane %v568_v50, %v27243_v13  ;;  %v27349_v54 = vrot.slane %v569_v52, %v27243_v13  ;;  %v520_v55 = vcombine.high %v27306_v43, %v27306_v43 }
 0x1d6   :  { %32471 = vst [vmem:[#allocation41_spill] sm:$0xff] %v27339_v51  ;;  %v519_v56 = vcombine.high %v517_v41, %v517_v41  ;;  %v535_v59 = vcombine.high %v527_v46, %v527_v46  ;;  %v570_v62 = vcombine.high %v568_v50, %v568_v50  ;;  %v578_v1 = vrot.slane %v27281_v34, %v27243_v13 }
 0x1d7   :  { %32472 = vst [vmem:[#allocation42_spill] sm:$0xff] %v27342_v53  ;;  %32473 = vst [vmem:[#allocation43_spill] sm:$0xff] %v27349_v54  ;;  %v534_v57 = vrot.slane %v520_v55, %v27243_v13  ;;  %v612_v2 = vrot.slane %v27276_v32, %v27243_v13  ;;  %v605_v6 = vcombine.high %v27276_v32, %v27276_v32 }
 0x1d8   :  { %1394 = vrot.lane.b32.xlu1 %v27279_v33, %s26968_s12  ;;  %1477 = vrot.lane.b32.xlu0 %v27284_v35, %s26968_s12  ;;  %v27363_v58 = vrot.slane %v519_v56, %v27243_v13  ;;  %v27373_v61 = vrot.slane %v535_v59, %v27243_v13  ;;  %v27384_v63 = vrot.slane %v570_v62, %v27243_v13 }
 0x1d9   :  { %v27366_v60 = vrot.slane %v534_v57, %v27243_v13  ;;  %v536_v0 = vcombine.high %v534_v57, %v534_v57  ;;  %v27398_v4 = vrot.slane %v578_v1, %v27243_v13  ;;  %v27403_v5 = vrot.slane %v612_v2, %v27243_v13 }
 0x1da   :  { %32474 = vst [vmem:[#allocation44_spill] sm:$0xff] %v27363_v58  ;;  %32476 = vst [vmem:[#allocation46_spill] sm:$0xff] %v27373_v61  ;;  %v620_v7 = vcombine.high %v612_v2, %v612_v2  ;;  %v619_v8 = vrot.slane %v605_v6, %v27243_v13  ;;  %v586_v10 = vcombine.high %v578_v1, %v578_v1  ;;  %v343_v1 = vmul.f32 0.35355338, %v27251_v17 }
 0x1db   :  { %32475 = vst [vmem:[#allocation45_spill] sm:$0xff] %v27366_v60  ;;  %32477 = vst [vmem:[#allocation47_spill] sm:$0xff] %v27384_v63  ;;  %v27395_v3 = vrot.slane %v536_v0, %v27243_v13  ;;  %v571_v14 = vcombine.high %v27281_v34, %v27281_v34  ;;  %v629_v18 = vrot.slane %v27297_v39, %v27243_v13 }
 0x1dc   :  { %4421 = vrot.lane.b32.xlu1 %v27284_v35, %s26952_s20  ;;  %1643 = vrot.lane.b32.xlu0 %v27295_v38, %s26968_s12  ;;  %32479 = vst [vmem:[#allocation49_spill] sm:$0xff] %v27398_v4  ;;  %32480 = vst [vmem:[#allocation50_spill] sm:$0xff] %v27403_v5  ;;  %v27415_v9 = vrot.slane %v620_v7, %v27243_v13  ;;  %v621_v12 = vcombine.high %v619_v8, %v619_v8 }
 0x1dd   :  { %32478 = vst [vmem:[#allocation48_spill] sm:$0xff] %v27395_v3  ;;  %v27424_v16 = vrot.slane %v586_v10, %v27243_v13  ;;  %v27429_v19 = vrot.slane %v619_v8, %v27243_v13  ;;  %v585_v22 = vrot.slane %v571_v14, %v27243_v13  ;;  %v637_v23 = vcombine.high %v629_v18, %v629_v18 }
 0x1de   :  { %32481 = vst [vmem:[#allocation51_spill] sm:$0xff] %v27415_v9  ;;  %v27436_v20 = vrot.slane %v621_v12, %v27243_v13  ;;  %v27440_v24 = vrot.slane %v629_v18, %v27243_v13  ;;  %v595_v28 = vrot.slane %v27301_v40, %v27243_v13  ;;  %v622_v31 = vcombine.high %v27297_v39, %v27297_v39 }
 0x1df   :  { %32482 = vst [vmem:[#allocation52_spill] sm:$0xff] %v27424_v16  ;;  %32483 = vst [vmem:[#allocation53_spill] sm:$0xff] %v27429_v19  ;;  %v587_v25 = vcombine.high %v585_v22, %v585_v22  ;;  %v27447_v27 = vrot.slane %v637_v23, %v27243_v13  ;;  %v27452_v30 = vrot.slane %v585_v22, %v27243_v13 }
 0x1e0   :  { %4575 = vrot.lane.b32.xlu1 %v27295_v38, %s26952_s20  ;;  %4344 = vrot.lane.b32.xlu0 %v27279_v33, %s26952_s20  ;;  %32484 = vst [vmem:[#allocation54_spill] sm:$0xff] %v27436_v20  ;;  %32485 = vst [vmem:[#allocation55_spill] sm:$0xff] %v27440_v24  ;;  %v603_v37 = vcombine.high %v595_v28, %v595_v28  ;;  %v636_v41 = vrot.slane %v622_v31, %v27243_v13 }
 0x1e1   :  { %32486 = vst [vmem:[#allocation56_spill] sm:$0xff] %v27447_v27  ;;  %32487 = vst [vmem:[#allocation57_spill] sm:$0xff] %v27452_v30  ;;  %v27461_v36 = vrot.slane %v587_v25, %v27243_v13  ;;  %v588_v42 = vcombine.high %v27301_v40, %v27301_v40  ;;  %v27467_v46 = vrot.slane %v595_v28, %v27243_v13 }
 0x1e2   :  { %v27474_v47 = vrot.slane %v603_v37, %v27243_v13  ;;  %v27477_v49 = vrot.slane %v636_v41, %v27243_v13  ;;  %v638_v55 = vcombine.high %v636_v41, %v636_v41  ;;  %v366_v7 = vrot.slane %v343_v1, %v27243_v13 }
 0x1e3   :  { %32488 = vst [vmem:[#allocation58_spill] sm:$0xff] %v27461_v36  ;;  %32489 = vst [vmem:[#allocation59_spill] sm:$0xff] %v27467_v46  ;;  %v602_v50 = vrot.slane %v588_v42, %v27243_v13  ;;  %v359_v12 = vcombine.high %v343_v1, %v343_v1  ;;  %v344_v41 = vmul.f32 0.35355338, %v27306_v43 }
 0x1e4   :  { %813 = vrot.lane.b32.xlu1 %v27313_v44, %s26968_s12  ;;  %730 = vrot.lane.b32.xlu0 %v27316_v45, %s26968_s12  ;;  %32490 = vst [vmem:[#allocation60_spill] sm:$0xff] %v27474_v47  ;;  %32491 = vst [vmem:[#allocation61_spill] sm:$0xff] %v27477_v49  ;;  %v27508_v56 = vrot.slane %v638_v55, %v27243_v13  ;;  %v27551_v18 = vrot.slane %v366_v7, %v27243_v13 }
 0x1e5   :  { %v27485_v52 = vrot.slane %v602_v50, %v27243_v13  ;;  %v604_v57 = vcombine.high %v602_v50, %v602_v50  ;;  %v374_v23 = vcombine.high %v366_v7, %v366_v7  ;;  %v373_v28 = vrot.slane %v359_v12, %v27243_v13 }
 0x1e6   :  { %32493 = vst [vmem:[#allocation63_spill] sm:$0xff] %v27508_v56  ;;  %32497 = vst [vmem:[#allocation67_spill] sm:$0xff] %v27551_v18  ;;  %v383_v43 = vrot.slane %v344_v41, %v27243_v13  ;;  %v376_v12 = vcombine.high %v344_v41, %v344_v41 }
 0x1e7   :  { %32492 = vst [vmem:[#allocation62_spill] sm:$0xff] %v27485_v52  ;;  %v27515_v59 = vrot.slane %v604_v57, %v27243_v13  ;;  %v27567_v37 = vrot.slane %v374_v23, %v27243_v13  ;;  %v27571_v50 = vrot.slane %v373_v28, %v27243_v13  ;;  %v375_v57 = vcombine.high %v373_v28, %v373_v28 }
 0x1e8   :  { %3805 = vrot.lane.b32.xlu1 %v27313_v44, %s26952_s20  ;;  %979 = vrot.lane.b32.xlu0 %v27327_v48, %s26968_s12 }
 0x1e9   :  { %32494 = vst [vmem:[#allocation64_spill] sm:$0xff] %v27515_v59  ;;  %32500 = vst [vmem:[#allocation70_spill] sm:$0xff] %v27567_v37 }
 0x1ea   :  { %32501 = vst [vmem:[#allocation71_spill] sm:$0xff] %v27571_v50 }
 0x1ec   :  { %3959 = vrot.lane.b32.xlu1 %v27327_v48, %s26952_s20  ;;  %3728 = vrot.lane.b32.xlu0 %v27316_v45, %s26952_s20 }
 0x1f0   :  { %1560 = vrot.lane.b32.xlu1 %v27339_v51, %s26968_s12  ;;  %1809 = vrot.lane.b32.xlu0 %v27342_v53, %s26968_s12 }
 0x1f4   :  { %1726 = vrot.lane.b32.xlu1 %v27349_v54, %s26968_s12  ;;  %4498 = vrot.lane.b32.xlu0 %v27339_v51, %s26952_s20 }
 0x1f8   :  { %4729 = vrot.lane.b32.xlu1 %v27342_v53, %s26952_s20  ;;  %4652 = vrot.lane.b32.xlu0 %v27349_v54, %s26952_s20 }
 0x1fc   :  { %896 = vrot.lane.b32.xlu1 %v27363_v58, %s26968_s12  ;;  %1145 = vrot.lane.b32.xlu0 %v27366_v60, %s26968_s12 }
 0x200   :  { %1062 = vrot.lane.b32.xlu1 %v27373_v61, %s26968_s12  ;;  %3882 = vrot.lane.b32.xlu0 %v27363_v58, %s26952_s20 }
 0x204   :  { %4113 = vrot.lane.b32.xlu1 %v27366_v60, %s26952_s20  ;;  %4036 = vrot.lane.b32.xlu0 %v27373_v61, %s26952_s20 }
 0x208   :  { %1892 = vrot.lane.b32.xlu1 %v27384_v63, %s26968_s12  ;;  %4806 = vrot.lane.b32.xlu0 %v27384_v63, %s26952_s20 }
 0x20c   :  { %1228 = vrot.lane.b32.xlu1 %v27395_v3, %s26968_s12  ;;  %4190 = vrot.lane.b32.xlu0 %v27395_v3, %s26952_s20 }
 0x210   :  { %4883 = vrot.lane.b32.xlu1 %v27398_v4, %s26952_s20  ;;  %2639 = vrot.lane.b32.xlu0 %v27403_v5, %s26968_s12 }
 0x214   :  { %2722 = vrot.lane.b32.xlu1 %v27415_v9, %s26968_s12  ;;  %1975 = vrot.lane.b32.xlu0 %v27398_v4, %s26968_s12 }
 0x218   :  { %2058 = vrot.lane.b32.xlu1 %v27424_v16, %s26968_s12  ;;  %2805 = vrot.lane.b32.xlu0 %v27429_v19, %s26968_s12 }
 0x21c   :  { %2888 = vrot.lane.b32.xlu1 %v27436_v20, %s26968_s12  ;;  %2971 = vrot.lane.b32.xlu0 %v27440_v24, %s26968_s12 }
 0x220   :  { %3054 = vrot.lane.b32.xlu1 %v27447_v27, %s26968_s12  ;;  %2141 = vrot.lane.b32.xlu0 %v27452_v30, %s26968_s12 }
 0x224   :  { %2224 = vrot.lane.b32.xlu1 %v27461_v36, %s26968_s12  ;;  %2307 = vrot.lane.b32.xlu0 %v27467_v46, %s26968_s12 }
 0x228   :  { %2390 = vrot.lane.b32.xlu1 %v27474_v47, %s26968_s12  ;;  %3137 = vrot.lane.b32.xlu0 %v27477_v49, %s26968_s12 }
 0x22c   :  { %5037 = vrot.lane.b32.xlu1 %v27452_v30, %s26952_s20  ;;  %2473 = vrot.lane.b32.xlu0 %v27485_v52, %s26968_s12 }
 0x230   :  { %5191 = vrot.lane.b32.xlu1 %v27467_v46, %s26952_s20  ;;  %4960 = vrot.lane.b32.xlu0 %v27424_v16, %s26952_s20 }
 0x234   :  { %5268 = vrot.lane.b32.xlu1 %v27474_v47, %s26952_s20  ;;  %5114 = vrot.lane.b32.xlu0 %v27461_v36, %s26952_s20 }
 0x238   :  { %5576 = vrot.lane.b32.xlu1 %v27415_v9, %s26952_s20  ;;  %5345 = vrot.lane.b32.xlu0 %v27485_v52, %s26952_s20 }
 0x23c   :  { %5730 = vrot.lane.b32.xlu1 %v27436_v20, %s26952_s20  ;;  %5499 = vrot.lane.b32.xlu0 %v27403_v5, %s26952_s20 }
 0x240   :  { %3220 = vrot.lane.b32.xlu1 %v27508_v56, %s26968_s12  ;;  %5653 = vrot.lane.b32.xlu0 %v27429_v19, %s26952_s20 }
 0x242   :  { %v27517_v62 = vpop.permute.xlu1 %4267  ;;  %v27519_v0 = vpop.permute.xlu0 %1311 }
 0x243   :  { %32495 = vst [vmem:[#allocation65_spill] sm:$0xff] %v27517_v62 }
 0x244   :  { %2556 = vrot.lane.b32.xlu1 %v27515_v59, %s26968_s12  ;;  %5807 = vrot.lane.b32.xlu0 %v27440_v24, %s26952_s20 }
 0x246   :  { %v27526_v2 = vpop.permute.xlu1 %3649  ;;  %v647_v6 = vpop.permute.xlu0 %646 }
 0x247   :  { %24715 = vmatpush3.xpose.msk.msra.mxu0 %vm648_vm2, %v647_v6 }
 0x248   :  { %5422 = vrot.lane.b32.xlu1 %v27515_v59, %s26952_s20  ;;  %5961 = vrot.lane.b32.xlu0 %v27477_v49, %s26952_s20 }
 0x249   :  { %24739 = vmatprep.subr.mxu0 %v32294_v11 }
 0x24a   :  { %v27535_v17 = vpop.permute.xlu1 %1394  ;;  %v27537_v8 = vpop.permute.xlu0 %1477  ;;  %24717 = vmatmul.mubr.msk.f32.vlgmr.msra.gmra.mrb[8].mxu0 %vm648_vm2, %v366_v7  ;;  %v27593_v7 = vrot.slane %v375_v57, %v27243_v13 }
 0x24b   :  { %24741 = vmatprep.mubr.msk.f32.mxu0 %vm26967_vm1, %v32294_v11 }
 0x24c   :  { %5884 = vrot.lane.b32.xlu1 %v27447_v27, %s26952_s20  ;;  %6124 = vrot.lane.b32.xlu0 %v27267_v26, %s26969_s23  ;;  %32503 = vst [vmem:[#allocation73_spill] sm:$0xff] %v27593_v7 }
 0x24e   :  { %v27546_v10 = vpop.permute.xlu1 %4421  ;;  %v27548_v14 = vpop.permute.xlu0 %1643 }
 0x24f   :  { %32496 = vst [vmem:[#allocation66_spill] sm:$0xff] %v27546_v10 }
 0x250   :  { %6038 = vrot.lane.b32.xlu1 %v27508_v56, %s26952_s20  ;;  %6122 = vrot.lane.b32.xlu0 %v27551_v18, %s26970_s3  ;;  %v390_v18 = vrot.slane %v376_v12, %v27243_v13 }
 0x252   :  { %v27557_v22 = vpop.permute.xlu1 %4575  ;;  %v27559_v25 = vpop.permute.xlu0 %4344 }
 0x253   :  { %32498 = vst [vmem:[#allocation68_spill] sm:$0xff] %v27557_v22  ;;  %32499 = vst [vmem:[#allocation69_spill] sm:$0xff] %v27559_v25 }
 0x254   :  { %6209 = vrot.lane.b32.xlu1 %v27316_v45, %s26969_s23  ;;  %6294 = vrot.lane.b32.xlu0 %v27313_v44, %s26969_s23 }
 0x256   :  { %v814_v31 = vpop.permute.xlu1 %813  ;;  %v731_v42 = vpop.permute.xlu0 %730 }
 0x257   :  { %24720 = vmatpush3.xpose.msk.msra.mxu1 %vm648_vm2, %v731_v42 }
 0x258   :  { %6207 = vrot.lane.b32.xlu1 %v27567_v37, %s26970_s3  ;;  %6292 = vrot.lane.b32.xlu0 %v27571_v50, %s26970_s3  ;;  %v391_v50 = vcombine.high %v383_v43, %v383_v43  ;;  %v27626_v37 = vrot.slane %v390_v18, %v27243_v13 }
 0x259   :  { %24724 = vmatprep.subr.mxu1 %v32294_v11 }
 0x25a   :  { %v27579_v55 = vpop.permute.xlu1 %3805  ;;  %v980_v1 = vpop.permute.xlu0 %979  ;;  %24722 = vmatmul.mubr.msk.f32.vlgmr.msra.gmra.mrb[0].mxu1 %vm648_vm2, %v374_v23  ;;  %32507 = vst [vmem:[#allocation77_spill] sm:$0xff] %v27626_v37 }
 0x25b   :  { %24725 = vmatpush3.xpose.msk.msra.mxu1 %vm648_vm2, %v814_v31  ;;  %24726 = vmatprep.mubr.msk.f32.mxu1 %vm26967_vm1, %v32294_v11  ;;  %v27600_v31 = vrot.slane %v383_v43, %v27243_v13 }
 0x25c   :  { %6379 = vrot.lane.b32.xlu1 %v27363_v58, %s26969_s23  ;;  %6464 = vrot.lane.b32.xlu0 %v27327_v48, %s26969_s23 }
 0x25d   :  { %24729 = vmatprep.subr.mxu1 %v32294_v11  ;;  %32504 = vst [vmem:[#allocation74_spill] sm:$0xff] %v27600_v31 }
 0x25e   :  { %v27590_v6 = vpop.permute.xlu1 %3959  ;;  %v27596_v23 = vpop.permute.xlu0 %3728  ;;  %24727 = vmatmul.mubr.msk.f32.vlgmr.msra.gmra.mrb[2].mxu1 %vm648_vm2, %v373_v28 }
 0x25f   :  { %32502 = vst [vmem:[#allocation72_spill] sm:$0xff] %v27590_v6  ;;  %24731 = vmatprep.mubr.msk.f32.mxu1 %vm26967_vm1, %v32294_v11  ;;  %v27620_v11 = vrot.slane %v391_v50, %v27243_v13 }
 0x260   :  { %6377 = vrot.lane.b32.xlu1 %v27593_v7, %s26970_s3  ;;  %6462 = vrot.lane.b32.xlu0 %v27600_v31, %s26970_s3  ;;  %v345_v31 = vmul.f32 0.35355338, %v27245_v15 }
 0x261   :  { %32505 = vst [vmem:[#allocation75_spill] sm:$0xff] %v27620_v11 }
 0x262   :  { %v27608_v42 = vpop.permute.xlu1 %1560  ;;  %v27610_v41 = vpop.permute.xlu0 %1809  ;;  %v400_v48 = vrot.slane %v345_v31, %v27243_v13 }
 0x264   :  { %6549 = vrot.lane.b32.xlu1 %v27373_v61, %s26969_s23  ;;  %6634 = vrot.lane.b32.xlu0 %v27366_v60, %s26969_s23  ;;  %v392_v60 = vcombine.high %v390_v18, %v390_v18 }
 0x266   :  { %v27617_v28 = vpop.permute.xlu1 %1726  ;;  %v27623_v7 = vpop.permute.xlu0 %4498 }
 0x267   :  { %32506 = vst [vmem:[#allocation76_spill] sm:$0xff] %v27623_v7  ;;  %v27642_v7 = vrot.slane %v392_v60, %v27243_v13 }
 0x268   :  { %6547 = vrot.lane.b32.xlu1 %v27620_v11, %s26970_s3  ;;  %6632 = vrot.lane.b32.xlu0 %v27626_v37, %s26970_s3  ;;  %v393_v11 = vcombine.high %v345_v31, %v345_v31  ;;  %v27646_v37 = vrot.slane %v400_v48, %v27243_v13 }
 0x269   :  { %32510 = vst [vmem:[#allocation80_spill] sm:$0xff] %v27642_v7 }
 0x26a   :  { %v27632_v12 = vpop.permute.xlu1 %4729  ;;  %v27634_v25 = vpop.permute.xlu0 %4652  ;;  %32511 = vst [vmem:[#allocation81_spill] sm:$0xff] %v27646_v37  ;;  %v407_v31 = vrot.slane %v393_v11, %v27243_v13  ;;  %v346_v11 = vmul.f32 0.35355338, %v27270_v29 }
 0x26b   :  { %32508 = vst [vmem:[#allocation78_spill] sm:$0xff] %v27632_v12  ;;  %32509 = vst [vmem:[#allocation79_spill] sm:$0xff] %v27634_v25  ;;  %v32512_v25 = vmov 0.0   ;;  %v408_v12 = vcombine.high %v400_v48, %v400_v48 }
 0x26c   :  { %6719 = vrot.lane.b32.xlu1 %v27395_v3, %s26969_s23  ;;  %6804 = vrot.lane.b32.xlu0 %v27256_v21, %s26969_s23 }
 0x26e   :  { %v897_v15 = vpop.permute.xlu1 %896  ;;  %v1146_v22 = vpop.permute.xlu0 %1145 }
 0x26f   :  { %24730 = vmatpush3.xpose.msk.msra.mxu1 %vm648_vm2, %v897_v15  ;;  %v27678_v15 = vrot.slane %v407_v31, %v27243_v13 }
 0x270   :  { %6717 = vrot.lane.b32.xlu1 %v27642_v7, %s26970_s3  ;;  %24734 = vmatprep.subr.mxu1 %v32512_v25 }
 0x271   :  { %6802 = vrot.lane.b32.xlu0 %v27646_v37, %s26970_s3  ;;  %32516 = vst [vmem:[#allocation85_spill] sm:$0xff] %v27678_v15 }
 0x272   :  { %v1063_v21 = vpop.permute.xlu1 %1062  ;;  %24732 = vmatmul.mubr.msk.f32.vlgmr.msra.gmra.mrb[4].mxu1 %vm648_vm2, %v375_v57  ;;  %v27654_v44 = vpop.permute.xlu0 %3882 }
 0x273   :  { %24735 = vmatpush3.xpose.msk.msra.mxu1 %vm648_vm2, %v980_v1  ;;  %24740 = vmatpush3.xpose.msk.msra.mxu0 %vm648_vm2, %v1063_v21  ;;  %v27671_v21 = vrot.slane %v408_v12, %v27243_v13 }
 0x274   :  { %6889 = vrot.lane.b32.xlu1 %v27279_v33, %s26969_s23  ;;  %24736 = vmatprep.mubr.msk.f32.mxu1 %vm26967_vm1, %v32512_v25 }
 0x275   :  { %6974 = vrot.lane.b32.xlu0 %v27284_v35, %s26969_s23  ;;  %24744 = vmatprep.subr.mxu1 %v32512_v25  ;;  %32514 = vst [vmem:[#allocation83_spill] sm:$0xff] %v27671_v21 }
 0x276   :  { %v27666_v57 = vpop.permute.xlu1 %4113  ;;  %24737 = vmatmul.mubr.msk.f32.vlgmr.msra.gmra.mrb[6].mxu1 %vm648_vm2, %v383_v43  ;;  %24742 = vmatmul.mubr.msk.f32.vlgmr.msra.gmra.mrb[10].mxu0 %vm648_vm2, %v391_v50  ;;  %v27674_v1 = vpop.permute.xlu0 %4036  ;;  %v417_v43 = vrot.slane %v346_v11, %v27243_v13 }
 0x277   :  { %32513 = vst [vmem:[#allocation82_spill] sm:$0xff] %v27666_v57  ;;  %32515 = vst [vmem:[#allocation84_spill] sm:$0xff] %v27674_v1  ;;  %24745 = vmatpush3.xpose.msk.msra.mxu1 %vm648_vm2, %v1146_v22  ;;  %24746 = vmatprep.mubr.msk.f32.mxu1 %vm26967_vm1, %v32512_v25  ;;  %v409_v22 = vcombine.high %v407_v31, %v407_v31 }
 0x278   :  { %6887 = vrot.lane.b32.xlu1 %v27671_v21, %s26970_s3  ;;  %24754 = vmatprep.subr.mxu1 %v32512_v25  ;;  %v27715_v21 = vrot.slane %v417_v43, %v27243_v13 }
 0x279   :  { %6972 = vrot.lane.b32.xlu0 %v27678_v15, %s26970_s3  ;;  %24749 = vmatprep.subr.mxu0 %v32512_v25  ;;  %v27707_v15 = vrot.slane %v409_v22, %v27243_v13 }
 0x27a   :  { %v27688_v29 = vpop.permute.xlu1 %1892  ;;  %24747 = vmatmul.mubr.msk.f32.vlgmr.msra.gmra.mrb[8].mxu1 %vm648_vm2, %v390_v18  ;;  %24751 = vmatprep.mubr.msk.f32.mxu0 %vm26967_vm1, %v32512_v25  ;;  %v27693_v50 = vpop.permute.xlu0 %4806  ;;  %32520 = vst [vmem:[#allocation89_spill] sm:$0xff] %v27715_v21 }
 0x27b   :  { %32517 = vst [vmem:[#allocation86_spill] sm:$0xff] %v27693_v50  ;;  %24755 = vmatpush3.xpose.msk.msra.mxu1 %vm648_vm2, %v27519_v0  ;;  %24756 = vmatprep.mubr.msk.f32.mxu1 %vm26967_vm1, %v32512_v25  ;;  %32518 = vst [vmem:[#allocation87_spill] sm:$0xff] %v27707_v15  ;;  %v410_v0 = vcombine.high %v346_v11, %v346_v11 }
 0x27c   :  { %7059 = vrot.lane.b32.xlu1 %v27339_v51, %s26969_s23  ;;  %24764 = vmatprep.subr.mxu1 %v32512_v25 }
 0x27d   :  { %7144 = vrot.lane.b32.xlu0 %v27295_v38, %s26969_s23  ;;  %v424_v11 = vrot.slane %v410_v0, %v27243_v13 }
 0x27e   :  { %v1229_v18 = vpop.permute.xlu1 %1228  ;;  %24757 = vmatmul.mubr.msk.f32.vlgmr.msra.gmra.mrb[10].mxu1 %vm648_vm2, %v400_v48  ;;  %v27709_v37 = vpop.permute.xlu0 %4190 }
 0x27f   :  { %32519 = vst [vmem:[#allocation88_spill] sm:$0xff] %v27709_v37  ;;  %24750 = vmatpush3.xpose.msk.msra.mxu0 %vm648_vm2, %v1229_v18  ;;  %24765 = vmatpush3.xpose.msk.msra.mxu1 %vm648_vm2, %v27537_v8  ;;  %v425_v18 = vcombine.high %v417_v43, %v417_v43 }
 0x280   :  { %7057 = vrot.lane.b32.xlu1 %v27707_v15, %s26970_s3  ;;  %24766 = vmatprep.mubr.msk.f32.mxu1 %vm26967_vm1, %v32512_v25 }
 0x281   :  { %7142 = vrot.lane.b32.xlu0 %v27715_v21, %s26970_s3  ;;  %24759 = vmatprep.subr.mxu0 %v32512_v25  ;;  %v27757_v0 = vrot.slane %v425_v18, %v27243_v13 }
 0x282   :  { %v27724_v48 = vpop.permute.xlu1 %4883  ;;  %24752 = vmatmul.mubr.msk.f32.vlgmr.msra.gmra.mrb[12].mxu0 %vm648_vm2, %v392_v60  ;;  %24767 = vmatmul.mubr.msk.f32.vlgmr.msra.gmra.mrb[12].mxu1 %vm648_vm2, %v407_v31  ;;  %v27728_v8 = vpop.permute.xlu0 %2639  ;;  %v347_v31 = vmul.f32 0.35355338, %v27281_v34 }
 0x283   :  { %32521 = vst [vmem:[#allocation90_spill] sm:$0xff] %v27724_v48  ;;  %24774 = vmatprep.subr.mxu1 %v32512_v25  ;;  %24760 = vmatpush3.xpose.msk.msra.mxu0 %vm648_vm2, %v27535_v17  ;;  %32523 = vst [vmem:[#allocation92_spill] sm:$0xff] %v27757_v0 }
 0x284   :  { %24775 = vmatpush3.xpose.msk.msra.mxu1 %vm648_vm2, %v27548_v14  ;;  %7229 = vrot.lane.b32.xlu1 %v27349_v54, %s26969_s23  ;;  %v27750_v14 = vrot.slane %v424_v11, %v27243_v13 }
 0x285   :  { %7314 = vrot.lane.b32.xlu0 %v27342_v53, %s26969_s23  ;;  %24761 = vmatprep.mubr.msk.f32.mxu0 %vm26967_vm1, %v32512_v25 }
 0x286   :  { %24776 = vmatprep.mubr.msk.f32.mxu1 %vm26967_vm1, %v32512_v25  ;;  %v27744_v60 = vpop.permute.xlu1 %2722  ;;  %24762 = vmatmul.mubr.msk.f32.vlgmr.msra.gmra.mrb[14].mxu0 %vm648_vm2, %v408_v12  ;;  %v1976_v17 = vpop.permute.xlu0 %1975  ;;  %32522 = vst [vmem:[#allocation91_spill] sm:$0xff] %v27750_v14  ;;  %v434_v12 = vrot.slane %v347_v31, %v27243_v13 }
 0x287   :  { %24769 = vmatprep.subr.mxu0 %v32512_v25  ;;  %24777 = vmatmul.mubr.msk.f32.vlgmr.msra.gmra.mrb[14].mxu1 %vm648_vm2, %v417_v43 }
 0x288   :  { %24784 = vmatprep.subr.mxu1 %v32512_v25  ;;  %24770 = vmatpush3.xpose.msk.msra.mxu0 %vm648_vm2, %v27608_v42 }
 0x289   :  { %24785 = vmatpush3.xpose.msk.msra.mxu1 %vm648_vm2, %v27610_v41  ;;  %7312 = vrot.lane.b32.xlu0 %v27750_v14, %s26970_s3  ;;  %v426_v41 = vcombine.high %v424_v11, %v424_v11 }
 0x28a   :  { %7227 = vrot.lane.b32.xlu1 %v27757_v0, %s26970_s3  ;;  %24771 = vmatprep.mubr.msk.f32.mxu0 %vm26967_vm1, %v32512_v25  ;;  %v2059_v34 = vpop.permute.xlu1 %2058  ;;  %v27769_v42 = vpop.permute.xlu0 %2805 }
 0x28b   :  { %24786 = vmatprep.mubr.msk.f32.mxu1 %vm26967_vm1, %v32512_v25  ;;  %24772 = vmatmul.mubr.msk.f32.vlgmr.msra.gmra.mrb[16].mxu0 %vm648_vm2, %v409_v22 }
 0x28c   :  { %24779 = vmatprep.subr.mxu0 %v32512_v25  ;;  %24787 = vmatmul.mubr.msk.f32.vlgmr.msra.gmra.mrb[16].mxu1 %vm648_vm2, %v424_v11  ;;  %v427_v11 = vcombine.high %v347_v31, %v347_v31 }
 0x28d   :  { %24794 = vmatprep.subr.mxu1 %v32512_v25  ;;  %24780 = vmatpush3.xpose.msk.msra.mxu0 %vm648_vm2, %v27617_v28  ;;  %v27793_v28 = vrot.slane %v434_v12, %v27243_v13 }
 0x28e   :  { %24795 = vmatpush3.xpose.msk.msra.mxu1 %vm648_vm2, %v1976_v17  ;;  %7484 = vrot.lane.b32.xlu0 %v27398_v4, %s26969_s23  ;;  %v27781_v43 = vpop.permute.xlu1 %2888  ;;  %v27787_v22 = vpop.permute.xlu0 %2971  ;;  %v27798_v17 = vrot.slane %v426_v41, %v27243_v13 }
 0x28f   :  { %7399 = vrot.lane.b32.xlu1 %v27384_v63, %s26969_s23  ;;  %24781 = vmatprep.mubr.msk.f32.mxu0 %vm26967_vm1, %v32512_v25  ;;  %32524 = vst [vmem:[#allocation93_spill] sm:$0xff] %v27793_v28 }
 0x290   :  { %24796 = vmatprep.mubr.msk.f32.mxu1 %vm26967_vm1, %v32512_v25  ;;  %24782 = vmatmul.mubr.msk.f32.vlgmr.msra.gmra.mrb[18].mxu0 %vm648_vm2, %v425_v18  ;;  %32525 = vst [vmem:[#allocation94_spill] sm:$0xff] %v27798_v17 }
 0x291   :  { %24789 = vmatprep.subr.mxu0 %v32512_v25  ;;  %24797 = vmatmul.mubr.msk.f32.vlgmr.msra.gmra.mrb[18].mxu1 %vm648_vm2, %v434_v12 }
 0x292   :  { %24790 = vmatpush3.xpose.msk.msra.mxu0 %vm648_vm2, %v27688_v29  ;;  %7482 = vrot.lane.b32.xlu0 %v27793_v28, %s26970_s3  ;;  %v27804_v14 = vpop.permute.xlu1 %3054  ;;  %v2142_v18 = vpop.permute.xlu0 %2141  ;;  %v441_v29 = vrot.slane %v427_v11, %v27243_v13  ;;  %v442_v28 = vcombine.high %v434_v12, %v434_v12 }
 0x293   :  { %7397 = vrot.lane.b32.xlu1 %v27798_v17, %s26970_s3  ;;  %24791 = vmatprep.mubr.msk.f32.mxu0 %vm26967_vm1, %v32512_v25 }
 0x294   :  { %24799 = vmatprep.subr.mxu0 %v32512_v25  ;;  %24804 = vmatprep.subr.mxu1 %v32512_v25  ;;  %v27834_v12 = vrot.slane %v442_v28, %v27243_v13 }
 0x295   :  { %24792 = vmatmul.mubr.msk.f32.vlgmr.msra.gmra.mrb[20].mxu0 %vm648_vm2, %v426_v41  ;;  %24805 = vmatpush3.xpose.msk.msra.mxu1 %vm648_vm2, %v2142_v18  ;;  %v348_v41 = vmul.f32 0.35355338, %v27301_v40  ;;  %v443_v18 = vcombine.high %v441_v29, %v441_v29 }
 0x296   :  { %24800 = vmatpush3.xpose.msk.msra.mxu0 %vm648_vm2, %v2059_v34  ;;  %7654 = vrot.lane.b32.xlu0 %v27452_v30, %s26969_s23  ;;  %v2225_v31 = vpop.permute.xlu1 %2224  ;;  %v2308_v17 = vpop.permute.xlu0 %2307  ;;  %v27829_v34 = vrot.slane %v441_v29, %v27243_v13  ;;  %32527 = vst [vmem:[#allocation96_spill] sm:$0xff] %v27834_v12 }
 0x297   :  { %7569 = vrot.lane.b32.xlu1 %v27424_v16, %s26969_s23  ;;  %24801 = vmatprep.mubr.msk.f32.mxu0 %vm26967_vm1, %v32512_v25  ;;  %v27840_v21 = vrot.slane %v348_v41, %v27243_v13 }
 0x298   :  { %24806 = vmatprep.mubr.msk.f32.mxu1 %vm26967_vm1, %v32512_v25  ;;  %24809 = vmatprep.subr.mxu0 %v32512_v25  ;;  %32526 = vst [vmem:[#allocation95_spill] sm:$0xff] %v27829_v34 }
 0x299   :  { %24802 = vmatmul.mubr.msk.f32.vlgmr.msra.gmra.mrb[22].mxu0 %vm648_vm2, %v442_v28  ;;  %24807 = vmatmul.mubr.msk.f32.vlgmr.msra.gmra.mrb[20].mxu1 %vm648_vm2, %v441_v29  ;;  %v444_v28 = vcombine.high %v348_v41, %v348_v41  ;;  %v349_v41 = vmul.f32 0.35355338, %v27276_v32 }
 0x29a   :  { %24814 = vmatprep.subr.mxu1 %v32512_v25  ;;  %24810 = vmatpush3.xpose.msk.msra.mxu0 %vm648_vm2, %v2225_v31  ;;  %v2391_v40 = vpop.permute.xlu1 %2390  ;;  %v3138_v11 = vpop.permute.xlu0 %3137  ;;  %v27859_v31 = vcombine.high %v27840_v21, %v27840_v21 }
 0x29b   :  { %24815 = vmatpush3.xpose.msk.msra.mxu1 %vm648_vm2, %v2308_v17  ;;  %7652 = vrot.lane.b32.xlu0 %v27829_v34, %s26970_s3  ;;  %v27874_v34 = vrot.slane %v443_v18, %v27243_v13  ;;  %v461_v32 = vcombine.high %v349_v41, %v349_v41 }
 0x29c   :  { %7567 = vrot.lane.b32.xlu1 %v27834_v12, %s26970_s3  ;;  %24811 = vmatprep.mubr.msk.f32.mxu0 %vm26967_vm1, %v32512_v25 }
 0x29d   :  { %24816 = vmatprep.mubr.msk.f32.mxu1 %vm26967_vm1, %v32512_v25  ;;  %24812 = vmatmul.mubr.msk.f32.vlgmr.msra.gmra.mrb[24].mxu0 %vm648_vm2, %v443_v18  ;;  %32529 = vst [vmem:[#allocation98_spill] sm:$0xff] %v27874_v34  ;;  %v27891_v18 = vrot.slane %v349_v41, %v27243_v13  ;;  %v27906_v41 = vrot.slane %v461_v32, %v27243_v13 }
 0x29e   :  { %24817 = vmatmul.mubr.msk.f32.vlgmr.msra.gmra.mrb[22].mxu1 %vm648_vm2, %v27840_v21  ;;  %24819 = vmatprep.subr.mxu0 %v32512_v25  ;;  %v27852_v17 = vpop.permute.xlu1 %5037  ;;  %v2474_v29 = vpop.permute.xlu0 %2473 }
 0x29f   :  { %32528 = vst [vmem:[#allocation97_spill] sm:$0xff] %v27852_v17  ;;  %24820 = vmatpush3.xpose.msk.msra.mxu0 %vm648_vm2, %v2391_v40  ;;  %24821 = vmatprep.mubr.msk.f32.mxu0 %vm26967_vm1, %v32512_v25  ;;  %v27869_v40 = vrot.slane %v444_v28, %v27243_v13 }
 0x2a0   :  { %7739 = vrot.lane.b32.xlu1 %v27461_v36, %s26969_s23  ;;  %24824 = vmatprep.subr.mxu1 %v32512_v25 }
 0x2a1   :  { %24825 = vmatpush3.xpose.msk.msra.mxu1 %vm648_vm2, %v2474_v29  ;;  %24826 = vmatprep.mubr.msk.f32.mxu1 %vm26967_vm1, %v32512_v25 }
 0x2a2   :  { %24822 = vmatmul.mubr.msk.f32.vlgmr.msra.gmra.mrb[26].mxu0 %vm648_vm2, %v27859_v31  ;;  %v27876_v12 = vpop.permute.xlu1 %5191  ;;  %24834 = vmatprep.subr.mxu1 %v32512_v25 }
 0x2a3   :  { %32530 = vst [vmem:[#allocation99_spill] sm:$0xff] %v27876_v12  ;;  %24829 = vmatprep.subr.mxu0 %v32512_v25  ;;  %24831 = vmatprep.mubr.msk.f32.mxu0 %vm26967_vm1, %v32512_v25 }
 0x2a4   :  { %7737 = vrot.lane.b32.xlu1 %v27874_v34, %s26970_s3  ;;  %24827 = vmatmul.mubr.msk.f32.vlgmr.msra.gmra.mrb[24].mxu1 %vm648_vm2, %v27869_v40 }
 0x2a5   :  { %24835 = vmatpush3.xpose.msk.msra.mxu1 %vm648_vm2, %v27728_v8  ;;  %24836 = vmatprep.mubr.msk.f32.mxu1 %vm26967_vm1, %v32512_v25  ;;  %v350_v8 = vmul.f32 0.35355338, %v27297_v39 }
 0x2a6   :  { %v27893_v28 = vpop.permute.xlu1 %5268  ;;  %24844 = vmatprep.subr.mxu1 %v32512_v25 }
 0x2a7   :  { %32531 = vst [vmem:[#allocation100_spill] sm:$0xff] %v27893_v28  ;;  %v27916_v34 = vrot.slane %v350_v8, %v27243_v13 }
 0x2a8   :  { %24837 = vmatmul.mubr.msk.f32.vlgmr.msra.gmra.mrb[26].mxu1 %vm648_vm2, %v27891_v18 }
 0x2a9   :  { %24845 = vmatpush3.xpose.msk.msra.mxu1 %vm648_vm2, %v27769_v42  ;;  %24846 = vmatprep.mubr.msk.f32.mxu1 %vm26967_vm1, %v32512_v25  ;;  %v478_v42 = vcombine.high %v350_v8, %v350_v8  ;;  %32533 = vst [vmem:[#allocation102_spill] sm:$0xff] %v27916_v34  ;;  %v27940_v8 = vcombine.high %v27869_v40, %v27869_v40 }
 0x2aa   :  { %v27903_v29 = vpop.permute.xlu1 %5576  ;;  %24854 = vmatprep.subr.mxu1 %v32512_v25 }
 0x2ab   :  { %32532 = vst [vmem:[#allocation101_spill] sm:$0xff] %v27903_v29 }
 0x2ac   :  { %24847 = vmatmul.mubr.msk.f32.vlgmr.msra.gmra.mrb[28].mxu1 %vm648_vm2, %v27906_v41 }
 0x2ad   :  { %24855 = vmatpush3.xpose.msk.msra.mxu1 %vm648_vm2, %v27787_v22  ;;  %24856 = vmatprep.mubr.msk.f32.mxu1 %vm26967_vm1, %v32512_v25  ;;  %v27927_v22 = vrot.slane %v478_v42, %v27243_v13  ;;  %v27993_v42 = vpop.permute.xlu0 %4960 }
 0x2ae   :  { %v27918_v39 = vpop.permute.xlu1 %5730  ;;  %24864 = vmatprep.subr.mxu1 %v32512_v25  ;;  %32540 = vst [vmem:[#allocation109_spill] sm:$0xff] %v27993_v42 }
 0x2af   :  { %32534 = vst [vmem:[#allocation103_spill] sm:$0xff] %v27918_v39  ;;  %32535 = vst [vmem:[#allocation104_spill] sm:$0xff] %v27927_v22 }
 0x2b0   :  { %24857 = vmatmul.mubr.msk.f32.vlgmr.msra.gmra.mrb[30].mxu1 %vm648_vm2, %v27916_v34 }
 0x2b1   :  { %24865 = vmatpush3.xpose.msk.msra.mxu1 %vm648_vm2, %v3138_v11  ;;  %24866 = vmatprep.mubr.msk.f32.mxu1 %vm26967_vm1, %v32512_v25 }
 0x2b2   :  { %v3221_v32 = vpop.permute.xlu1 %3220  ;;  %24874 = vmatprep.subr.mxu1 %v32512_v25 }
 0x2b4   :  { %24867 = vmatmul.mubr.msk.f32.vlgmr.msra.gmra.mrb[32].mxu1 %vm648_vm2, %v27927_v22 }
 0x2b5   :  { %24875 = vmatpush3.msk.msra.mxu1 %vm3655_vm3, %v27526_v2  ;;  %24876 = vmatprep.mubr.msk.f32.mxu1 %vm26967_vm1, %v32512_v25  ;;  %v27951_v2 = vcombine.high %v27891_v18, %v27891_v18 }
 0x2b6   :  { %v2557_v11 = vpop.permute.xlu1 %2556  ;;  %24884 = vmatprep.subr.mxu1 %v32512_v25 }
 0x2b7   :  { %24830 = vmatpush3.xpose.msk.msra.mxu0 %vm648_vm2, %v2557_v11  ;;  %32536 = vst [vmem:[#allocation105_spill] sm:$0xff] %v27951_v2 }
 0x2b8   :  { %24839 = vmatprep.subr.mxu0 %v32512_v25 }
 0x2ba   :  { %24832 = vmatmul.mubr.msk.f32.vlgmr.msra.gmra.mrb[28].mxu0 %vm648_vm2, %v27940_v8 }
 0x2bb   :  { %24840 = vmatpush3.xpose.msk.msra.mxu0 %vm648_vm2, %v27744_v60  ;;  %24841 = vmatprep.mubr.msk.f32.mxu0 %vm26967_vm1, %v32512_v25  ;;  %v27962_v60 = vcombine.high %v27906_v41, %v27906_v41 }
 0x2bc   :  { %24849 = vmatprep.subr.mxu0 %v32512_v25 }
 0x2bd   :  { %32537 = vst [vmem:[#allocation106_spill] sm:$0xff] %v27962_v60 }
 0x2be   :  { %24842 = vmatmul.mubr.msk.f32.vlgmr.msra.gmra.mrb[30].mxu0 %vm648_vm2, %v27951_v2 }
 0x2bf   :  { %24850 = vmatpush3.xpose.msk.msra.mxu0 %vm648_vm2, %v27781_v43  ;;  %24851 = vmatprep.mubr.msk.f32.mxu0 %vm26967_vm1, %v32512_v25  ;;  %v27973_v43 = vcombine.high %v27916_v34, %v27916_v34 }
 0x2c0   :  { %24859 = vmatprep.subr.mxu0 %v32512_v25 }
 0x2c1   :  { %32538 = vst [vmem:[#allocation107_spill] sm:$0xff] %v27973_v43 }
 0x2c2   :  { %24852 = vmatmul.mubr.msk.f32.vlgmr.msra.gmra.mrb[32].mxu0 %vm648_vm2, %v27962_v60 }
 0x2c3   :  { %24860 = vmatpush3.xpose.msk.msra.mxu0 %vm648_vm2, %v27804_v14  ;;  %24861 = vmatprep.mubr.msk.f32.mxu0 %vm26967_vm1, %v32512_v25  ;;  %v27983_v14 = vcombine.high %v27927_v22, %v27927_v22 }
 0x2c4   :  { %24869 = vmatprep.subr.mxu0 %v32512_v25 }
 0x2c5   :  { %32539 = vst [vmem:[#allocation108_spill] sm:$0xff] %v27983_v14 }
 0x2c6   :  { %24862 = vmatmul.mubr.msk.f32.vlgmr.msra.gmra.mrb[34].mxu0 %vm648_vm2, %v27973_v43 }
 0x2c7   :  { %24870 = vmatpush3.xpose.msk.msra.mxu0 %vm648_vm2, %v3221_v32  ;;  %24871 = vmatprep.mubr.msk.f32.mxu0 %vm26967_vm1, %v32512_v25  ;;  %v27995_v32 = vpop.permute.xlu0 %5114 }
 0x2c8   :  { %24879 = vmatprep.subr.mxu0 %v32512_v25  ;;  %32541 = vst [vmem:[#allocation110_spill] sm:$0xff] %v27995_v32 }
 0x2ca   :  { %24872 = vmatmul.mubr.msk.f32.vlgmr.msra.gmra.mrb[36].mxu0 %vm648_vm2, %v27983_v14 }
 0x2cb   :  { %24880 = vmatpush3.msk.msra.mxu0 %vm3655_vm3, %v27596_v23  ;;  %24881 = vmatprep.mubr.msk.f32.mxu0 %vm26967_vm1, %v32512_v25  ;;  %v27997_v11 = vpop.permute.xlu0 %5345 }
 0x2cc   :  { %24889 = vmatprep.subr.mxu0 %v32512_v25  ;;  %32542 = vst [vmem:[#allocation111_spill] sm:$0xff] %v27997_v11 }
 0x2cf   :  { %v27999_v0 = vpop.permute.xlu0 %5499 }
 0x2d0   :  { %32543 = vst [vmem:[#allocation112_spill] sm:$0xff] %v27999_v0 }
 0x2d3   :  { %v28005_v36 = vpop.permute.xlu0 %5653 }
 0x2d4   :  { %32544 = vst [vmem:[#allocation113_spill] sm:$0xff] %v28005_v36 }
 0x2d7   :  { %v28007_v30 = vpop.permute.xlu0 %5807 }
 0x2d8   :  { %32545 = vst [vmem:[#allocation114_spill] sm:$0xff] %v28007_v30 }
 0x2db   :  { %v28009_v16 = vpop.permute.xlu0 %5961 }
 0x2dc   :  { %32546 = vst [vmem:[#allocation115_spill] sm:$0xff] %v28009_v16 }
 0x2df   :  { %v28019_v32 = vpop.permute.xlu0 %6124 }
 0x2e0   :  { %32548 = vst [vmem:[#allocation117_spill] sm:$0xff] %v28019_v32 }
 0x2e3   :  { %v28023_v36 = vpop.permute.xlu0 %6122 }
 0x2e4   :  { %32550 = vst [vmem:[#allocation119_spill] sm:$0xff] %v28023_v36 }
 0x2e7   :  { %v28027_v16 = vpop.permute.xlu0 %6294 }
 0x2e8   :  { %32552 = vst [vmem:[#allocation121_spill] sm:$0xff] %v28027_v16 }
 0x31d   :  { %v28001_v15 = vpop.f32.mrb[8].mxu0 }
 0x31e   :  { %v24718_v7 = vpop.f32.mrb[9].mxu0  ;;  %v3297_v23 = vsel %vm3296_vm4, %v28001_v15, -inf }
 0x31f   :  { %3298 = vmax.xlane.f32.xlu0 %v3297_v23  ;;  %v28017_v7 = vpop.permute.xlu1 %5422 }
 0x320   :  { %32547 = vst [vmem:[#allocation116_spill] sm:$0xff] %v28017_v7 }
 0x323   :  { %v28021_v23 = vpop.permute.xlu1 %5884 }
 0x324   :  { %32549 = vst [vmem:[#allocation118_spill] sm:$0xff] %v28021_v23 }
 0x327   :  { %v28025_v30 = vpop.permute.xlu1 %6038 }
 0x328   :  { %32551 = vst [vmem:[#allocation120_spill] sm:$0xff] %v28025_v30 }
 0x32d   :  { %v28011_v4 = vpop.f32.mrb[0].mxu1 }
 0x32e   :  { %v24723_v39 = vpop.f32.mrb[1].mxu1  ;;  %v3300_v29 = vsel %vm3296_vm4, %v28011_v4, -inf }
 0x32f   :  { %3301 = vmax.xlane.f32.xlu1 %v3300_v29  ;;  %v28029_v39 = vpop.permute.xlu1 %6209  ;;  %v28033_v29 = vpop.permute.xlu0 %6292 }
 0x330   :  { %32553 = vst [vmem:[#allocation122_spill] sm:$0xff] %v28029_v39  ;;  %32554 = vst [vmem:[#allocation123_spill] sm:$0xff] %v28033_v29 }
 0x331   :  { %v28015_v28 = vpop.f32.mrb[2].mxu1 }
 0x332   :  { %v24728_v0 = vpop.f32.mrb[3].mxu1  ;;  %v3303_v23 = vsel %vm3296_vm4, %v28015_v28, -inf }
 0x333   :  { %v28043_v16 = vpop.permute.xlu1 %6207  ;;  %v28045_v39 = vpop.permute.xlu0 %6464 }
 0x334   :  { %32555 = vst [vmem:[#allocation124_spill] sm:$0xff] %v28043_v16  ;;  %32556 = vst [vmem:[#allocation125_spill] sm:$0xff] %v28045_v39 }
 0x337   :  { %v28057_v16 = vpop.permute.xlu0 %6462 }
 0x338   :  { %32558 = vst [vmem:[#allocation127_spill] sm:$0xff] %v28057_v16 }
 0x345   :  { %v28031_v53 = vpop.f32.mrb[4].mxu1 }
 0x346   :  { %v24733_v11 = vpop.f32.mrb[5].mxu1 }
 0x349   :  { %v28035_v42 = vpop.f32.mrb[6].mxu1  ;;  %v28037_v0 = vpop.f32.mrb[10].mxu0 }
 0x34a   :  { %v24738_v32 = vpop.f32.mrb[7].mxu1  ;;  %v24743_v7 = vpop.f32.mrb[11].mxu0  ;;  %v3312_v36 = vsel %vm3296_vm4, %v28037_v0, -inf  ;;  %v3309_v30 = vsel %vm3296_vm4, %v28035_v42, -inf }
 0x34b   :  { %3313 = vmax.xlane.f32.xlu0 %v3312_v36  ;;  %3310 = vmax.xlane.f32.xlu1 %v3309_v30  ;;  %v28053_v7 = vpop.permute.xlu1 %6379 }
 0x34c   :  { %32557 = vst [vmem:[#allocation126_spill] sm:$0xff] %v28053_v7 }
 0x34d   :  { %v28047_v29 = vpop.f32.mrb[8].mxu1 }
 0x34e   :  { %v24748_v11 = vpop.f32.mrb[9].mxu1  ;;  %v3315_v32 = vsel %vm3296_vm4, %v28047_v29, -inf }
 0x34f   :  { %3304 = vmax.xlane.f32.xlu0 %v3303_v23  ;;  %3316 = vmax.xlane.f32.xlu1 %v3315_v32  ;;  %v28069_v7 = vpop.permute.xlu1 %6377 }
 0x350   :  { %32559 = vst [vmem:[#allocation128_spill] sm:$0xff] %v28069_v7 }
 0x351   :  { %v28055_v38 = vpop.f32.mrb[10].mxu1 }
 0x352   :  { %v24758_v30 = vpop.f32.mrb[11].mxu1  ;;  %v3321_v36 = vsel %vm3296_vm4, %v28055_v38, -inf }
 0x353   :  { %3322 = vmax.xlane.f32.xlu1 %v3321_v36  ;;  %v28071_v30 = vpop.permute.xlu0 %6634  ;;  %v28081_v48 = vpop.permute.xlu1 %6549 }
 0x354   :  { %32560 = vst [vmem:[#allocation129_spill] sm:$0xff] %v28071_v30  ;;  %32561 = vst [vmem:[#allocation130_spill] sm:$0xff] %v28081_v48 }
 0x355   :  { %v28061_v11 = vpop.f32.mrb[12].mxu0  ;;  %v28063_v39 = vpop.f32.mrb[12].mxu1 }
 0x356   :  { %v24753_v12 = vpop.f32.mrb[13].mxu0  ;;  %v24768_v50 = vpop.f32.mrb[13].mxu1  ;;  %v3318_v23 = vsel %vm3296_vm4, %v28061_v11, -inf  ;;  %v3327_v32 = vsel %vm3296_vm4, %v28063_v39, -inf }
 0x357   :  { %3319 = vmax.xlane.f32.xlu0 %v3318_v23  ;;  %3328 = vmax.xlane.f32.xlu1 %v3327_v32  ;;  %v3306_v50 = vsel %vm3296_vm4, %v28031_v53, -inf  ;;  %v28083_v23 = vpop.permute.xlu0 %6632 }
 0x358   :  { %32562 = vst [vmem:[#allocation131_spill] sm:$0xff] %v28083_v23 }
 0x359   :  { %v28073_v16 = vpop.f32.mrb[14].mxu0 }
 0x35a   :  { %v28075_v36 = vpop.f32.mrb[14].mxu1  ;;  %v24763_v35 = vpop.f32.mrb[15].mxu0  ;;  %v3324_v30 = vsel %vm3296_vm4, %v28073_v16, -inf }
 0x35b   :  { %v24778_v12 = vpop.f32.mrb[15].mxu1  ;;  %3307 = vmax.xlane.f32.xlu0 %v3306_v50  ;;  %v3333_v17 = vsel %vm3296_vm4, %v28075_v36, -inf  ;;  %v28101_v37 = vpop.permute.xlu0 %6804 }
 0x35c   :  { %3334 = vmax.xlane.f32.xlu1 %v3333_v17  ;;  %v28095_v12 = vpop.permute.xlu1 %6547  ;;  %32564 = vst [vmem:[#allocation133_spill] sm:$0xff] %v28101_v37 }
 0x35d   :  { %32563 = vst [vmem:[#allocation132_spill] sm:$0xff] %v28095_v12 }
 0x35e   :  { %v28085_v32 = vpop.f32.mrb[16].mxu0 }
 0x35f   :  { %v28089_v7 = vpop.f32.mrb[16].mxu1  ;;  %v24773_v35 = vpop.f32.mrb[17].mxu0  ;;  %3325 = vmax.xlane.f32.xlu0 %v3324_v30  ;;  %v3330_v17 = vsel %vm3296_vm4, %v28085_v32, -inf }
 0x360   :  { %v24788_v63 = vpop.f32.mrb[17].mxu1  ;;  %v3339_v50 = vsel %vm3296_vm4, %v28089_v7, -inf  ;;  %v28109_v51 = vpop.permute.xlu1 %6719 }
 0x361   :  { %3340 = vmax.xlane.f32.xlu1 %v3339_v50  ;;  %32565 = vst [vmem:[#allocation134_spill] sm:$0xff] %v28109_v51 }
 0x363   :  { %v28097_v23 = vpop.f32.mrb[18].mxu0  ;;  %3331 = vmax.xlane.f32.xlu0 %v3330_v17 }
 0x364   :  { %v28099_v48 = vpop.f32.mrb[18].mxu1  ;;  %v24783_v54 = vpop.f32.mrb[19].mxu0  ;;  %v3336_v30 = vsel %vm3296_vm4, %v28097_v23, -inf }
 0x365   :  { %v24798_v35 = vpop.f32.mrb[19].mxu1  ;;  %v3345_v63 = vsel %vm3296_vm4, %v28099_v48, -inf  ;;  %v28113_v54 = vpop.permute.xlu0 %6802 }
 0x366   :  { %3346 = vmax.xlane.f32.xlu1 %v3345_v63  ;;  %32566 = vst [vmem:[#allocation135_spill] sm:$0xff] %v28113_v54  ;;  %v28123_v51 = vpop.permute.xlu1 %6717 }
 0x367   :  { %3337 = vmax.xlane.f32.xlu0 %v3336_v30  ;;  %32567 = vst [vmem:[#allocation136_spill] sm:$0xff] %v28123_v51 }
 0x368   :  { %v28107_v50 = vpop.f32.mrb[20].mxu0 }
 0x369   :  { %v24793_v12 = vpop.f32.mrb[21].mxu0  ;;  %v3342_v17 = vsel %vm3296_vm4, %v28107_v50, -inf  ;;  %v28133_v33 = vpop.permute.xlu0 %6974 }
 0x36a   :  { %32568 = vst [vmem:[#allocation137_spill] sm:$0xff] %v28133_v33  ;;  %v28139_v62 = vpop.permute.xlu1 %6889 }
 0x36b   :  { %3343 = vmax.xlane.f32.xlu0 %v3342_v17  ;;  %32569 = vst [vmem:[#allocation138_spill] sm:$0xff] %v28139_v62 }
 0x36c   :  { %v28115_v35 = vpop.f32.mrb[22].mxu0  ;;  %v28117_v37 = vpop.f32.mrb[20].mxu1 }
 0x36d   :  { %v24803_v63 = vpop.f32.mrb[23].mxu0  ;;  %v24808_v10 = vpop.f32.mrb[21].mxu1  ;;  %v3351_v30 = vsel %vm3296_vm4, %v28117_v37, -inf  ;;  %v3348_v12 = vsel %vm3296_vm4, %v28115_v35, -inf }
 0x36e   :  { %3352 = vmax.xlane.f32.xlu1 %v3351_v30  ;;  %v28145_v3 = vpop.permute.xlu0 %6972  ;;  %v28151_v33 = vpop.permute.xlu1 %6887 }
 0x36f   :  { %3349 = vmax.xlane.f32.xlu0 %v3348_v12  ;;  %32570 = vst [vmem:[#allocation139_spill] sm:$0xff] %v28145_v3  ;;  %32571 = vst [vmem:[#allocation140_spill] sm:$0xff] %v28151_v33 }
 0x370   :  { %v28125_v1 = vpop.f32.mrb[24].mxu0 }
 0x371   :  { %v28127_v54 = vpop.f32.mrb[22].mxu1  ;;  %v24813_v17 = vpop.f32.mrb[25].mxu0  ;;  %v3354_v10 = vsel %vm3296_vm4, %v28125_v1, -inf }
 0x372   :  { %v24818_v26 = vpop.f32.mrb[23].mxu1  ;;  %v3357_v63 = vsel %vm3296_vm4, %v28127_v54, -inf  ;;  %v28153_v62 = vpop.permute.xlu0 %7144 }
 0x373   :  { %3358 = vmax.xlane.f32.xlu1 %v3357_v63  ;;  %3355 = vmax.xlane.f32.xlu0 %v3354_v10  ;;  %32572 = vst [vmem:[#allocation141_spill] sm:$0xff] %v28153_v62  ;;  %v28159_v3 = vpop.permute.xlu1 %7059 }
 0x374   :  { %32573 = vst [vmem:[#allocation142_spill] sm:$0xff] %v28159_v3 }
 0x375   :  { %v28135_v30 = vpop.f32.mrb[26].mxu0 }
 0x376   :  { %v24823_v12 = vpop.f32.mrb[27].mxu0  ;;  %v3360_v51 = vsel %vm3296_vm4, %v28135_v30, -inf  ;;  %v28165_v61 = vpop.permute.xlu0 %7142 }
 0x377   :  { %v28141_v17 = vpop.f32.mrb[24].mxu1  ;;  %3361 = vmax.xlane.f32.xlu0 %v3360_v51  ;;  %32574 = vst [vmem:[#allocation143_spill] sm:$0xff] %v28165_v61  ;;  %v28171_v33 = vpop.permute.xlu1 %7057 }
 0x378   :  { %v24828_v26 = vpop.f32.mrb[25].mxu1  ;;  %v3363_v14 = vsel %vm3296_vm4, %v28141_v17, -inf  ;;  %32575 = vst [vmem:[#allocation144_spill] sm:$0xff] %v28171_v33 }
 0x379   :  { %3364 = vmax.xlane.f32.xlu1 %v3363_v14 }
 0x37b   :  { %v28147_v63 = vpop.f32.mrb[26].mxu1  ;;  %v28179_v43 = vpop.permute.xlu1 %7229 }
 0x37c   :  { %v24838_v10 = vpop.f32.mrb[27].mxu1  ;;  %v3369_v12 = vsel %vm3296_vm4, %v28147_v63, -inf  ;;  %32577 = vst [vmem:[#allocation146_spill] sm:$0xff] %v28179_v43 }
 0x37d   :  { %3370 = vmax.xlane.f32.xlu1 %v3369_v12 }
 0x37f   :  { %v28155_v57 = vpop.f32.mrb[28].mxu1 }
 0x380   :  { %v24848_v51 = vpop.f32.mrb[29].mxu1  ;;  %v3375_v26 = vsel %vm3296_vm4, %v28155_v57, -inf }
 0x381   :  { %3376 = vmax.xlane.f32.xlu1 %v3375_v26  ;;  %v28173_v26 = vpop.permute.xlu0 %7314 }
 0x382   :  { %32576 = vst [vmem:[#allocation145_spill] sm:$0xff] %v28173_v26 }
 0x383   :  { %v28161_v14 = vpop.f32.mrb[30].mxu1 }
 0x384   :  { %v24858_v10 = vpop.f32.mrb[31].mxu1  ;;  %v3381_v56 = vsel %vm3296_vm4, %v28161_v14, -inf }
 0x385   :  { %3382 = vmax.xlane.f32.xlu1 %v3381_v56  ;;  %v28181_v56 = vpop.permute.xlu0 %7312 }
 0x386   :  { %32578 = vst [vmem:[#allocation147_spill] sm:$0xff] %v28181_v56 }
 0x387   :  { %v28167_v12 = vpop.f32.mrb[32].mxu1 }
 0x388   :  { %v24868_v62 = vpop.f32.mrb[33].mxu1  ;;  %v3387_v51 = vsel %vm3296_vm4, %v28167_v12, -inf }
 0x389   :  { %3388 = vmax.xlane.f32.xlu1 %v3387_v51  ;;  %v28187_v51 = vpop.permute.xlu1 %7227  ;;  %v28193_v27 = vpop.permute.xlu0 %7484 }
 0x38a   :  { %32579 = vst [vmem:[#allocation148_spill] sm:$0xff] %v28187_v51  ;;  %32580 = vst [vmem:[#allocation149_spill] sm:$0xff] %v28193_v27 }
 0x38d   :  { %v28175_v3 = vpop.f32.mrb[28].mxu0  ;;  %v28199_v43 = vpop.permute.xlu1 %7399 }
 0x38e   :  { %v24833_v10 = vpop.f32.mrb[29].mxu0  ;;  %v3366_v6 = vsel %vm3296_vm4, %v28175_v3, -inf  ;;  %32581 = vst [vmem:[#allocation150_spill] sm:$0xff] %v28199_v43 }
 0x38f   :  { %3367 = vmax.xlane.f32.xlu0 %v3366_v6 }
 0x391   :  { %v28183_v62 = vpop.f32.mrb[30].mxu0  ;;  %v28207_v27 = vpop.permute.xlu1 %7397 }
 0x392   :  { %v24843_v61 = vpop.f32.mrb[31].mxu0  ;;  %v3372_v33 = vsel %vm3296_vm4, %v28183_v62, -inf  ;;  %32583 = vst [vmem:[#allocation152_spill] sm:$0xff] %v28207_v27 }
 0x393   :  { %3373 = vmax.xlane.f32.xlu0 %v3372_v33  ;;  %v28201_v33 = vpop.permute.xlu0 %7482 }
 0x394   :  { %32582 = vst [vmem:[#allocation151_spill] sm:$0xff] %v28201_v33 }
 0x395   :  { %v28189_v26 = vpop.f32.mrb[32].mxu0 }
 0x396   :  { %v24853_v10 = vpop.f32.mrb[33].mxu0  ;;  %v3378_v58 = vsel %vm3296_vm4, %v28189_v26, -inf }
 0x397   :  { %3379 = vmax.xlane.f32.xlu0 %v3378_v58  ;;  %v28209_v58 = vpop.permute.xlu0 %7654 }
 0x398   :  { %32584 = vst [vmem:[#allocation153_spill] sm:$0xff] %v28209_v58 }
 0x399   :  { %v28195_v6 = vpop.f32.mrb[34].mxu0 }
 0x39a   :  { %v24863_v56 = vpop.f32.mrb[35].mxu0  ;;  %v3384_v61 = vsel %vm3296_vm4, %v28195_v6, -inf }
 0x39b   :  { %3385 = vmax.xlane.f32.xlu0 %v3384_v61  ;;  %v28211_v56 = vpop.permute.xlu1 %7569  ;;  %v28213_v60 = vpop.permute.xlu0 %7652 }
 0x39c   :  { %32585 = vst [vmem:[#allocation154_spill] sm:$0xff] %v28211_v56  ;;  %32586 = vst [vmem:[#allocation155_spill] sm:$0xff] %v28213_v60 }
 0x39d   :  { %v28203_v51 = vpop.f32.mrb[36].mxu0 }
 0x39e   :  { %v24873_v10 = vpop.f32.mrb[37].mxu0  ;;  %v3390_v45 = vsel %vm3296_vm4, %v28203_v51, -inf }
 0x39f   :  { %3391 = vmax.xlane.f32.xlu0 %v3390_v45  ;;  %v28215_v22 = vpop.permute.xlu1 %7567 }
 0x3a0   :  { %32587 = vst [vmem:[#allocation156_spill] sm:$0xff] %v28215_v22 }
 0x3a3   :  { %v28218_v10 = vpop.permute.xlu1 %7739 }
 0x3a4   :  { %32588 = vst [vmem:[#allocation157_spill] sm:$0xff] %v28218_v10 }
 0x3a7   :  { %v28220_v20 = vpop.permute.xlu1 %7737 }
 0x3a8   :  { %32589 = vst [vmem:[#allocation158_spill] sm:$0xff] %v28220_v20 }
 0x3ac   :  { %v3299_v61 = vpop.xlane.xlu0 %3298 }
 0x3ad   :  { %v3393_v33 = vsub.f32 %v28001_v15, %v3299_v61 }
 0x3af   :  { %v3425_v43 = vmul.f32 1.442695, %v3393_v33 }
 0x3b1   :  { %26078 = vpow2.f32 %v3425_v43 }
 0x3bb   :  { %v28222_v45 = vpop.eup %26078 }
 0x3bc   :  { %v3302_v27 = vpop.xlane.xlu1 %3301  ;;  %v3489_v58 = vsel %vm3296_vm4, %v28222_v45, 0.0 }
 0x3bd   :  { %v3394_v56 = vsub.f32 %v28011_v4, %v3302_v27  ;;  %3490 = vadd.xlane.f32.xlu1 %v3489_v58 }
 0x3bf   :  { %v3427_v60 = vmul.f32 1.442695, %v3394_v56 }
 0x3c1   :  { %26080 = vpow2.f32 %v3427_v60 }
 0x3cb   :  { %v28227_v22 = vpop.eup %26080 }
 0x3cc   :  { %v3492_v15 = vsel %vm3296_vm4, %v28227_v22, 0.0 }
 0x3cd   :  { %3493 = vadd.xlane.f32.xlu0 %v3492_v15 }
 0x3d8   :  { %v3314_v43 = vpop.xlane.xlu0 %3313  ;;  %v3311_v33 = vpop.xlane.xlu1 %3310 }
 0x3d9   :  { %v3398_v61 = vsub.f32 %v28037_v0, %v3314_v43  ;;  %v3397_v10 = vsub.f32 %v28035_v42, %v3311_v33 }
 0x3db   :  { %v3435_v20 = vmul.f32 1.442695, %v3398_v61  ;;  %v3433_v27 = vmul.f32 1.442695, %v3397_v10 }
 0x3dc   :  { %v3305_v49 = vpop.xlane.xlu0 %3304  ;;  %v3317_v2 = vpop.xlane.xlu1 %3316 }
 0x3dd   :  { %26082 = vpow2.f32 %v3435_v20  ;;  %v3395_v4 = vsub.f32 %v28015_v28, %v3305_v49  ;;  %v3399_v58 = vsub.f32 %v28047_v29, %v3317_v2 }
 0x3df   :  { %v3429_v60 = vmul.f32 1.442695, %v3395_v4  ;;  %v3437_v15 = vmul.f32 1.442695, %v3399_v58 }
 0x3e0   :  { %v3323_v56 = vpop.xlane.xlu1 %3322 }
 0x3e1   :  { %26084 = vpow2.f32 %v3429_v60  ;;  %v3401_v34 = vsub.f32 %v28055_v38, %v3323_v56 }
 0x3e2   :  { %26086 = vpow2.f32 %v3433_v27 }
 0x3e3   :  { %26088 = vpow2.f32 %v3437_v15  ;;  %v3441_v20 = vmul.f32 1.442695, %v3401_v34 }
 0x3e4   :  { %v3320_v9 = vpop.xlane.xlu0 %3319  ;;  %v3329_v0 = vpop.xlane.xlu1 %3328 }
 0x3e5   :  { %v3400_v43 = vsub.f32 %v28061_v11, %v3320_v9  ;;  %v3403_v49 = vsub.f32 %v28063_v39, %v3329_v0 }
 0x3e7   :  { %v28237_v42 = vpop.eup %26082  ;;  %v3439_v33 = vmul.f32 1.442695, %v3400_v43  ;;  %v3445_v9 = vmul.f32 1.442695, %v3403_v49 }
 0x3e8   :  { %v3308_v28 = vpop.xlane.xlu0 %3307  ;;  %v3504_v2 = vsel %vm3296_vm4, %v28237_v42, 0.0 }
 0x3e9   :  { %26090 = vpow2.f32 %v3439_v33  ;;  %v3396_v29 = vsub.f32 %v28031_v53, %v3308_v28  ;;  %v3335_v10 = vpop.xlane.xlu1 %3334  ;;  %3505 = vadd.xlane.f32.xlu0 %v3504_v2 }
 0x3ea   :  { %26092 = vpow2.f32 %v3441_v20  ;;  %v3405_v61 = vsub.f32 %v28075_v36, %v3335_v10 }
 0x3eb   :  { %v28243_v38 = vpop.eup %26084  ;;  %v3431_v11 = vmul.f32 1.442695, %v3396_v29 }
 0x3ec   :  { %v3326_v34 = vpop.xlane.xlu0 %3325  ;;  %v3495_v39 = vsel %vm3296_vm4, %v28243_v38, 0.0  ;;  %v28248_v4 = vpop.eup %26086  ;;  %v3449_v60 = vmul.f32 1.442695, %v3405_v61 }
 0x3ed   :  { %26094 = vpow2.f32 %v3431_v11  ;;  %v3402_v27 = vsub.f32 %v28073_v16, %v3326_v34  ;;  %3496 = vadd.xlane.f32.xlu1 %v3495_v39  ;;  %v3501_v36 = vsel %vm3296_vm4, %v28248_v4, 0.0  ;;  %v28254_v0 = vpop.eup %26088 }
 0x3ee   :  { %v3341_v53 = vpop.xlane.xlu1 %3340  ;;  %26096 = vpow2.f32 %v3445_v9  ;;  %v3507_v29 = vsel %vm3296_vm4, %v28254_v0, 0.0 }
 0x3ef   :  { %v3443_v58 = vmul.f32 1.442695, %v3402_v27  ;;  %v3407_v56 = vsub.f32 %v28089_v7, %v3341_v53 }
 0x3f0   :  { %v3332_v15 = vpop.xlane.xlu0 %3331 }
 0x3f1   :  { %26098 = vpow2.f32 %v3443_v58  ;;  %v3404_v43 = vsub.f32 %v28085_v32, %v3332_v15  ;;  %3502 = vadd.xlane.f32.xlu1 %v3501_v36  ;;  %v3453_v16 = vmul.f32 1.442695, %v3407_v56 }
 0x3f2   :  { %26100 = vpow2.f32 %v3449_v60 }
 0x3f3   :  { %v28257_v20 = vpop.eup %26090  ;;  %v3447_v33 = vmul.f32 1.442695, %v3404_v43  ;;  %v3347_v49 = vpop.xlane.xlu1 %3346 }
 0x3f4   :  { %v3409_v28 = vsub.f32 %v28099_v48, %v3347_v49  ;;  %v3338_v2 = vpop.xlane.xlu0 %3337  ;;  %v3510_v7 = vsel %vm3296_vm4, %v28257_v20, 0.0  ;;  %v28264_v10 = vpop.eup %26092 }
 0x3f5   :  { %26102 = vpow2.f32 %v3447_v33  ;;  %v3406_v32 = vsub.f32 %v28097_v23, %v3338_v2  ;;  %3511 = vadd.xlane.f32.xlu0 %v3510_v7  ;;  %3508 = vadd.xlane.f32.xlu1 %v3507_v29  ;;  %v3513_v39 = vsel %vm3296_vm4, %v28264_v10, 0.0 }
 0x3f6   :  { %26104 = vpow2.f32 %v3453_v16  ;;  %v3457_v11 = vmul.f32 1.442695, %v3409_v28 }
 0x3f7   :  { %v28267_v9 = vpop.eup %26094  ;;  %v3451_v61 = vmul.f32 1.442695, %v3406_v32 }
 0x3f8   :  { %v3344_v48 = vpop.xlane.xlu0 %3343  ;;  %v3498_v34 = vsel %vm3296_vm4, %v28267_v9, 0.0  ;;  %v28273_v27 = vpop.eup %26096 }
 0x3f9   :  { %26106 = vpow2.f32 %v3451_v61  ;;  %v3408_v53 = vsub.f32 %v28107_v50, %v3344_v48  ;;  %3499 = vadd.xlane.f32.xlu0 %v3498_v34  ;;  %3514 = vadd.xlane.f32.xlu1 %v3513_v39  ;;  %v3519_v43 = vsel %vm3296_vm4, %v28273_v27, 0.0 }
 0x3fa   :  { %26108 = vpow2.f32 %v3457_v11 }
 0x3fb   :  { %v28276_v23 = vpop.eup %26098  ;;  %v3455_v60 = vmul.f32 1.442695, %v3408_v53  ;;  %v3353_v58 = vpop.xlane.xlu1 %3352 }
 0x3fc   :  { %v3411_v56 = vsub.f32 %v28117_v37, %v3353_v58  ;;  %v3350_v15 = vpop.xlane.xlu0 %3349  ;;  %v3516_v36 = vsel %vm3296_vm4, %v28276_v23, 0.0  ;;  %v28283_v16 = vpop.eup %26100 }
 0x3fd   :  { %26110 = vpow2.f32 %v3455_v60  ;;  %v3410_v50 = vsub.f32 %v28115_v35, %v3350_v15  ;;  %3517 = vadd.xlane.f32.xlu0 %v3516_v36  ;;  %3520 = vadd.xlane.f32.xlu1 %v3519_v43  ;;  %v3525_v29 = vsel %vm3296_vm4, %v28283_v16, 0.0 }
 0x3fe   :  { %v3461_v33 = vmul.f32 1.442695, %v3411_v56 }
 0x3ff   :  { %v28286_v49 = vpop.eup %26102  ;;  %v3459_v28 = vmul.f32 1.442695, %v3410_v50 }
 0x400   :  { %26112 = vpow2.f32 %v3461_v33  ;;  %v3359_v37 = vpop.xlane.xlu1 %3358  ;;  %v3356_v2 = vpop.xlane.xlu0 %3355  ;;  %v3522_v7 = vsel %vm3296_vm4, %v28286_v49, 0.0 }
 0x401   :  { %v28292_v32 = vpop.eup %26104  ;;  %26114 = vpow2.f32 %v3459_v28  ;;  %v3413_v35 = vsub.f32 %v28127_v54, %v3359_v37  ;;  %v3412_v11 = vsub.f32 %v28125_v1, %v3356_v2  ;;  %3523 = vadd.xlane.f32.xlu0 %v3522_v7  ;;  %3526 = vadd.xlane.f32.xlu1 %v3525_v29 }
 0x402   :  { %v3531_v60 = vsel %vm3296_vm4, %v28292_v32, 0.0 }
 0x403   :  { %v28296_v61 = vpop.eup %26106  ;;  %v3465_v48 = vmul.f32 1.442695, %v3413_v35  ;;  %v3463_v34 = vmul.f32 1.442695, %v3412_v11 }
 0x404   :  { %v3362_v39 = vpop.xlane.xlu0 %3361  ;;  %v3528_v53 = vsel %vm3296_vm4, %v28296_v61, 0.0  ;;  %v28302_v58 = vpop.eup %26108 }
 0x405   :  { %26116 = vpow2.f32 %v3465_v48  ;;  %v3414_v54 = vsub.f32 %v28135_v30, %v3362_v39  ;;  %3529 = vadd.xlane.f32.xlu0 %v3528_v53  ;;  %3532 = vadd.xlane.f32.xlu1 %v3531_v60  ;;  %v3537_v50 = vsel %vm3296_vm4, %v28302_v58, 0.0 }
 0x406   :  { %26118 = vpow2.f32 %v3463_v34  ;;  %v3365_v1 = vpop.xlane.xlu1 %3364 }
 0x407   :  { %v28305_v56 = vpop.eup %26110  ;;  %v3467_v15 = vmul.f32 1.442695, %v3414_v54  ;;  %v3415_v36 = vsub.f32 %v28141_v17, %v3365_v1 }
 0x408   :  { %v3534_v43 = vsel %vm3296_vm4, %v28305_v56, 0.0 }
 0x409   :  { %26120 = vpow2.f32 %v3467_v15  ;;  %v3469_v33 = vmul.f32 1.442695, %v3415_v36  ;;  %3535 = vadd.xlane.f32.xlu0 %v3534_v43  ;;  %3538 = vadd.xlane.f32.xlu1 %v3537_v50 }
 0x40a   :  { %v28312_v30 = vpop.eup %26112  ;;  %v3371_v28 = vpop.xlane.xlu1 %3370 }
 0x40b   :  { %v28314_v37 = vpop.eup %26114  ;;  %26122 = vpow2.f32 %v3469_v33  ;;  %v3417_v2 = vsub.f32 %v28147_v63, %v3371_v28  ;;  %v3543_v7 = vsel %vm3296_vm4, %v28312_v30, 0.0 }
 0x40c   :  { %v3540_v17 = vsel %vm3296_vm4, %v28314_v37, 0.0 }
 0x40d   :  { %v3473_v29 = vmul.f32 1.442695, %v3417_v2  ;;  %3541 = vadd.xlane.f32.xlu0 %v3540_v17  ;;  %3544 = vadd.xlane.f32.xlu1 %v3543_v7 }
 0x40f   :  { %v28321_v35 = vpop.eup %26116  ;;  %26124 = vpow2.f32 %v3473_v29 }
 0x410   :  { %v28323_v11 = vpop.eup %26118  ;;  %v3549_v48 = vsel %vm3296_vm4, %v28321_v35, 0.0 }
 0x411   :  { %v3546_v63 = vsel %vm3296_vm4, %v28323_v11, 0.0  ;;  %3550 = vadd.xlane.f32.xlu1 %v3549_v48 }
 0x412   :  { %3547 = vadd.xlane.f32.xlu0 %v3546_v63 }
 0x413   :  { %v28329_v34 = vpop.eup %26120 }
 0x414   :  { %v3552_v39 = vsel %vm3296_vm4, %v28329_v34, 0.0 }
 0x415   :  { %v28333_v53 = vpop.eup %26122 }
 0x416   :  { %3553 = vadd.xlane.f32.xlu0 %v3552_v39  ;;  %v3555_v60 = vsel %vm3296_vm4, %v28333_v53, 0.0 }
 0x417   :  { %3556 = vadd.xlane.f32.xlu1 %v3555_v60 }
 0x419   :  { %v28337_v54 = vpop.eup %26124 }
 0x41a   :  { %v3561_v1 = vsel %vm3296_vm4, %v28337_v54, 0.0 }
 0x41b   :  { %3562 = vadd.xlane.f32.xlu1 %v3561_v1 }
 0x41c   :  { %v3368_v15 = vpop.xlane.xlu0 %3367 }
 0x41d   :  { %v3416_v36 = vsub.f32 %v28175_v3, %v3368_v15 }
 0x41f   :  { %v3471_v43 = vmul.f32 1.442695, %v3416_v36 }
 0x420   :  { %v3374_v50 = vpop.xlane.xlu0 %3373 }
 0x421   :  { %26126 = vpow2.f32 %v3471_v43  ;;  %v3418_v33 = vsub.f32 %v28183_v62, %v3374_v50 }
 0x423   :  { %v3475_v28 = vmul.f32 1.442695, %v3418_v33 }
 0x424   :  { %v3380_v2 = vpop.xlane.xlu0 %3379 }
 0x425   :  { %26128 = vpow2.f32 %v3475_v28  ;;  %v3420_v17 = vsub.f32 %v28189_v26, %v3380_v2  ;;  %v28354_v26 = vrot.slane %v27859_v31, %v27243_v13  ;;  %v3377_v31 = vpop.xlane.xlu1 %3376 }
 0x427   :  { %v3479_v7 = vmul.f32 1.442695, %v3420_v17  ;;  %32590 = vst [vmem:[#allocation159_spill] sm:$0xff] %v28354_v26  ;;  %v3419_v17 = vsub.f32 %v28155_v57, %v3377_v31 }
 0x428   :  { %v3386_v29 = vpop.xlane.xlu0 %3385 }
 0x429   :  { %26130 = vpow2.f32 %v3479_v7  ;;  %v3422_v48 = vsub.f32 %v28195_v6, %v3386_v29  ;;  %v3383_v2 = vpop.xlane.xlu1 %3382  ;;  %v3477_v7 = vmul.f32 1.442695, %v3419_v17 }
 0x42a   :  { %v3421_v29 = vsub.f32 %v28161_v14, %v3383_v2  ;;  %v28387_v14 = vrot.slane %v27840_v21, %v27243_v13 }
 0x42b   :  { %v28345_v63 = vpop.eup %26126  ;;  %v3483_v39 = vmul.f32 1.442695, %v3422_v48 }
 0x42c   :  { %7909 = vrot.lane.b32.xlu1 %v27474_v47, %s26969_s23  ;;  %v3392_v3 = vpop.xlane.xlu0 %3391  ;;  %v3558_v62 = vsel %vm3296_vm4, %v28345_v63, 0.0  ;;  %32591 = vst [vmem:[#allocation160_spill] sm:$0xff] %v28387_v14 }
 0x42d   :  { %26132 = vpow2.f32 %v3483_v39  ;;  %v3424_v60 = vsub.f32 %v28203_v51, %v3392_v3  ;;  %3559 = vadd.xlane.f32.xlu0 %v3558_v62  ;;  %v3389_v48 = vpop.xlane.xlu1 %3388  ;;  %v3481_v39 = vmul.f32 1.442695, %v3421_v29 }
 0x42e   :  { %v3423_v3 = vsub.f32 %v28167_v12, %v3389_v48  ;;  %v32601_v48 = vld [vmem:[#allocation61_spill] sm:$0xff] }
 0x42f   :  { %v28356_v1 = vpop.eup %26128  ;;  %v3487_v6 = vmul.f32 1.442695, %v3424_v60 }
 0x430   :  { %7907 = vrot.lane.b32.xlu1 %v28354_v26, %s26970_s3  ;;  %v3564_v15 = vsel %vm3296_vm4, %v28356_v1, 0.0  ;;  %v3485_v62 = vmul.f32 1.442695, %v3423_v3  ;;  %v32603_v3 = vld [vmem:[#allocation104_spill] sm:$0xff] }
 0x431   :  { %26134 = vpow2.f32 %v3487_v6  ;;  %3565 = vadd.xlane.f32.xlu0 %v3564_v15 }
 0x432   :  { %26136 = vpow2.f32 %v3477_v7  ;;  %v32599_v7 = vld [vmem:[#allocation105_spill] sm:$0xff] }
 0x433   :  { %v28362_v36 = vpop.eup %26130  ;;  %26138 = vpow2.f32 %v3481_v39  ;;  %v32602_v39 = vld [vmem:[#allocation54_spill] sm:$0xff] }
 0x434   :  { %v3570_v51 = vsel %vm3296_vm4, %v28362_v36, 0.0 }
 0x435   :  { %3571 = vadd.xlane.f32.xlu0 %v3570_v51 }
 0x437   :  { %v28366_v43 = vpop.eup %26132 }
 0x438   :  { %v3576_v50 = vsel %vm3296_vm4, %v28366_v43, 0.0 }
 0x439   :  { %3577 = vadd.xlane.f32.xlu0 %v3576_v50 }
 0x43b   :  { %v28370_v33 = vpop.eup %26134 }
 0x43c   :  { %v3582_v28 = vsel %vm3296_vm4, %v28370_v33, 0.0  ;;  %v28377_v6 = vpop.eup %26136 }
 0x43d   :  { %3583 = vadd.xlane.f32.xlu0 %v3582_v28  ;;  %v3567_v15 = vsel %vm3296_vm4, %v28377_v6, 0.0  ;;  %v28383_v57 = vpop.eup %26138 }
 0x43e   :  { %v3573_v51 = vsel %vm3296_vm4, %v28383_v57, 0.0 }
 0x44a   :  { %v3491_v60 = vpop.xlane.xlu1 %3490 }
 0x44b   :  { %26140 = vrcp.f32 %v3491_v60 }
 0x44c   :  { %26142 = vpow2.f32 %v3485_v62  ;;  %v28465_v62 = vrot.slane %v32603_v3, %v27243_v13  ;;  %v32609_v3 = vld [vmem:[#allocation44_spill] sm:$0xff] }
 0x44e   :  { %32604 = vst [vmem:[#allocation104_spill] sm:$0xff] %v28465_v62 }
 0x453   :  { %7824 = vrot.lane.b32.xlu0 %v27467_v46, %s26969_s23 }
 0x454   :  { %3568 = vadd.xlane.f32.xlu1 %v3567_v15 }
 0x455   :  { %v26141_v12 = vpop.eup %26140 }
 0x456   :  { %v3617_v31 = vmul.f32 %v26141_v12, %v28222_v45  ;;  %v28394_v50 = vpop.eup %26142  ;;  %v28408_v45 = vrot.slane %v27869_v40, %v27243_v13  ;;  %v28433_v40 = vrot.slane %v27906_v41, %v27243_v13  ;;  %v32605_v12 = vld [vmem:[#allocation106_spill] sm:$0xff] }
 0x457   :  { %7822 = vrot.lane.b32.xlu0 %v28387_v14, %s26970_s3  ;;  %v3579_v28 = vsel %vm3296_vm4, %v28394_v50, 0.0 }
 0x458   :  { %3574 = vadd.xlane.f32.xlu1 %v3573_v51  ;;  %24877 = vmatmul.mubr.msk.f32.vlgmr.msra.gmra.mrb[34].mxu1 %vm3651_vm5, %v3617_v31  ;;  %32592 = vst [vmem:[#allocation161_spill] sm:$0xff] %v28408_v45  ;;  %32594 = vst [vmem:[#allocation163_spill] sm:$0xff] %v28433_v40  ;;  %v28471_v51 = vrot.slane %v32605_v12, %v27243_v13 }
 0x459   :  { %24885 = vmatpush3.msk.msra.mxu1 %vm3655_vm3, %v27579_v55  ;;  %24886 = vmatprep.mubr.msk.f32.mxu1 %vm26967_vm1, %v32512_v25  ;;  %v28416_v55 = vrot.slane %v27891_v18, %v27243_v13  ;;  %v32596_v18 = vld [vmem:[#allocation51_spill] sm:$0xff] }
 0x45a   :  { %v3494_v21 = vpop.xlane.xlu0 %3493  ;;  %24894 = vmatprep.subr.mxu1 %v32512_v25  ;;  %32606 = vst [vmem:[#allocation106_spill] sm:$0xff] %v28471_v51 }
 0x45b   :  { %7994 = vrot.lane.b32.xlu0 %v27485_v52, %s26969_s23  ;;  %26144 = vrcp.f32 %v3494_v21  ;;  %32593 = vst [vmem:[#allocation162_spill] sm:$0xff] %v28416_v55 }
 0x45c   :  { %3580 = vadd.xlane.f32.xlu1 %v3579_v28  ;;  %v32607_v28 = vld [vmem:[#allocation39_spill] sm:$0xff] }
 0x45f   :  { %7992 = vrot.lane.b32.xlu0 %v28408_v45, %s26970_s3 }
 0x463   :  { %8164 = vrot.lane.b32.xlu0 %v27403_v5, %s26969_s23 }
 0x465   :  { %v26145_v2 = vpop.eup %26144 }
 0x466   :  { %v3618_v17 = vmul.f32 %v26145_v2, %v28227_v22  ;;  %v32597_v22 = vld [vmem:[#allocation102_spill] sm:$0xff] }
 0x467   :  { %8162 = vrot.lane.b32.xlu0 %v28416_v55, %s26970_s3  ;;  %v28449_v41 = vrot.slane %v32597_v22, %v27243_v13 }
 0x468   :  { %24882 = vmatmul.mubr.msk.f32.vlgmr.msra.gmra.mrb[38].mxu0 %vm3651_vm5, %v3618_v17  ;;  %v32608_v17 = vld [vmem:[#allocation56_spill] sm:$0xff] }
 0x469   :  { %24890 = vmatpush3.msk.msra.mxu0 %vm3655_vm3, %v27654_v44  ;;  %24891 = vmatprep.mubr.msk.f32.mxu0 %vm26967_vm1, %v32512_v25  ;;  %v28439_v44 = vrot.slane %v27940_v8, %v27243_v13  ;;  %32598 = vst [vmem:[#allocation102_spill] sm:$0xff] %v28449_v41  ;;  %v28455_v8 = vrot.slane %v32599_v7, %v27243_v13 }
 0x46a   :  { %24899 = vmatprep.subr.mxu0 %v32512_v25 }
 0x46b   :  { %8334 = vrot.lane.b32.xlu0 %v27429_v19, %s26969_s23  ;;  %32595 = vst [vmem:[#allocation164_spill] sm:$0xff] %v28439_v44  ;;  %32600 = vst [vmem:[#allocation105_spill] sm:$0xff] %v28455_v8 }
 0x46d   :  { %8079 = vrot.lane.b32.xlu1 %v27515_v59, %s26969_s23 }
 0x46f   :  { %8332 = vrot.lane.b32.xlu0 %v28433_v40, %s26970_s3  ;;  %v32619_v40 = vld [vmem:[#allocation65_spill] sm:$0xff] }
 0x471   :  { %8077 = vrot.lane.b32.xlu1 %v28439_v44, %s26970_s3 }
 0x473   :  { %8504 = vrot.lane.b32.xlu0 %v27440_v24, %s26969_s23 }
 0x475   :  { %8249 = vrot.lane.b32.xlu1 %v32596_v18, %s26969_s23 }
 0x476   :  { %v3506_v60 = vpop.xlane.xlu0 %3505 }
 0x477   :  { %8502 = vrot.lane.b32.xlu0 %v28449_v41, %s26970_s3 }
 0x479   :  { %8247 = vrot.lane.b32.xlu1 %v28455_v8, %s26970_s3 }
 0x47a   :  { %v3497_v29 = vpop.xlane.xlu1 %3496 }
 0x47b   :  { %26146 = vrcp.f32 %v3497_v29  ;;  %8674 = vrot.lane.b32.xlu0 %v32601_v48, %s26969_s23 }
 0x47d   :  { %8419 = vrot.lane.b32.xlu1 %v32602_v39, %s26969_s23 }
 0x47e   :  { %v3503_v15 = vpop.xlane.xlu1 %3502 }
 0x47f   :  { %26148 = vrcp.f32 %v3503_v15  ;;  %8672 = vrot.lane.b32.xlu0 %v28465_v62, %s26970_s3  ;;  %v32610_v15 = vld [vmem:[#allocation107_spill] sm:$0xff]  ;;  %v32612_v62 = vld [vmem:[#allocation72_spill] sm:$0xff] }
 0x480   :  { %v28484_v12 = vrot.slane %v32610_v15, %v27243_v13 }
 0x481   :  { %8417 = vrot.lane.b32.xlu1 %v28471_v51, %s26970_s3 }
 0x482   :  { %v3512_v31 = vpop.xlane.xlu0 %3511  ;;  %v3509_v21 = vpop.xlane.xlu1 %3508  ;;  %32611 = vst [vmem:[#allocation107_spill] sm:$0xff] %v28484_v12 }
 0x483   :  { %9264 = vrot.lane.b32.xlu0 %v32607_v28, %s26971_s28  ;;  %26150 = vrcp.f32 %v3509_v21 }
 0x485   :  { %v26147_v2 = vpop.eup %26146  ;;  %8589 = vrot.lane.b32.xlu1 %v32608_v17, %s26969_s23 }
 0x486   :  { %v3500_v22 = vpop.xlane.xlu0 %3499  ;;  %v3515_v7 = vpop.xlane.xlu1 %3514  ;;  %v3619_v29 = vmul.f32 %v26147_v2, %v28243_v38 }
 0x487   :  { %26152 = vrcp.f32 %v3500_v22  ;;  %9418 = vrot.lane.b32.xlu0 %v32609_v3, %s26971_s28  ;;  %v32613_v22 = vld [vmem:[#allocation46_spill] sm:$0xff] }
 0x488   :  { %26154 = vrcp.f32 %v3515_v7  ;;  %24887 = vmatmul.mubr.msk.f32.vlgmr.msra.gmra.mrb[36].mxu1 %vm3651_vm5, %v3619_v29  ;;  %v32614_v7 = vld [vmem:[#allocation63_spill] sm:$0xff] }
 0x489   :  { %v26149_v21 = vpop.eup %26148  ;;  %8587 = vrot.lane.b32.xlu1 %v28484_v12, %s26970_s3  ;;  %24895 = vmatpush3.msk.msra.mxu1 %vm3655_vm3, %v32612_v62  ;;  %26156 = vrcp.f32 %v3506_v60  ;;  %v32615_v62 = vld [vmem:[#allocation82_spill] sm:$0xff]  ;;  %v32617_v60 = vld [vmem:[#allocation108_spill] sm:$0xff] }
 0x48a   :  { %v3518_v41 = vpop.xlane.xlu0 %3517  ;;  %v3521_v38 = vpop.xlane.xlu1 %3520  ;;  %24896 = vmatprep.mubr.msk.f32.mxu1 %vm26967_vm1, %v32512_v25  ;;  %24904 = vmatprep.subr.mxu1 %v32512_v25  ;;  %v3621_v2 = vmul.f32 %v26149_v21, %v28248_v4  ;;  %v32616_v4 = vld [vmem:[#allocation48_spill] sm:$0xff]  ;;  %v28509_v21 = vrot.slane %v32617_v60, %v27243_v13  ;;  %v32620_v13 = vld [vmem:[#allocation35_spill] sm:$0xff] }
 0x48b   :  { %9572 = vrot.lane.b32.xlu0 %v32613_v22, %s26971_s28  ;;  %26158 = vrcp.f32 %v3521_v38 }
 0x48c   :  { %24897 = vmatmul.mubr.msk.f32.vlgmr.msra.gmra.mrb[38].mxu1 %vm3651_vm5, %v3621_v2  ;;  %26160 = vrcp.f32 %v3512_v31  ;;  %32618 = vst [vmem:[#allocation72_spill] sm:$0xff] %v28509_v21 }
 0x48d   :  { %8759 = vrot.lane.b32.xlu1 %v32614_v7, %s26969_s23  ;;  %24905 = vmatpush3.msk.msra.mxu1 %vm3655_vm3, %v32615_v62  ;;  %v26151_v29 = vpop.eup %26150 }
 0x48e   :  { %v3524_v15 = vpop.xlane.xlu0 %3523  ;;  %v3527_v12 = vpop.xlane.xlu1 %3526  ;;  %24906 = vmatprep.mubr.msk.f32.mxu1 %vm26967_vm1, %v32512_v25  ;;  %24914 = vmatprep.subr.mxu1 %v32512_v25  ;;  %v3623_v38 = vmul.f32 %v26151_v29, %v28254_v0 }
 0x48f   :  { %9726 = vrot.lane.b32.xlu0 %v32616_v4, %s26971_s28  ;;  %26162 = vrcp.f32 %v3527_v12 }
 0x490   :  { %24907 = vmatmul.mubr.msk.f32.vlgmr.msra.gmra.mrb[40].mxu1 %vm3651_vm5, %v3623_v38  ;;  %v32622_v38 = vld [vmem:[#allocation84_spill] sm:$0xff] }
 0x491   :  { %v26153_v2 = vpop.eup %26152  ;;  %8757 = vrot.lane.b32.xlu1 %v28509_v21, %s26970_s3  ;;  %24915 = vmatpush3.msk.msra.mxu1 %vm3655_vm3, %v32619_v40  ;;  %v32621_v40 = vld [vmem:[#allocation34_spill] sm:$0xff] }
 0x492   :  { %v26155_v62 = vpop.eup %26154  ;;  %v3533_v31 = vpop.xlane.xlu1 %3532  ;;  %24916 = vmatprep.mubr.msk.f32.mxu1 %vm26967_vm1, %v32512_v25  ;;  %v3620_v60 = vmul.f32 %v26153_v2, %v28267_v9  ;;  %24924 = vmatprep.subr.mxu1 %v32512_v25 }
 0x493   :  { %9880 = vrot.lane.b32.xlu0 %v32620_v13, %s26971_s28  ;;  %v3625_v0 = vmul.f32 %v26155_v62, %v28264_v10  ;;  %v3530_v12 = vpop.xlane.xlu0 %3529  ;;  %26164 = vrcp.f32 %v3533_v31  ;;  %v26157_v29 = vpop.eup %26156  ;;  %v32623_v10 = vld [vmem:[#allocation66_spill] sm:$0xff]  ;;  %v32624_v62 = vld [vmem:[#allocation41_spill] sm:$0xff] }
 0x494   :  { %24892 = vmatmul.mubr.msk.f32.vlgmr.msra.gmra.mrb[40].mxu0 %vm3651_vm5, %v3620_v60  ;;  %26166 = vrcp.f32 %v3518_v41  ;;  %v3622_v31 = vmul.f32 %v26157_v29, %v28237_v42  ;;  %v32629_v29 = vld [vmem:[#allocation40_spill] sm:$0xff] }
 0x495   :  { %9187 = vrot.lane.b32.xlu1 %v32621_v40, %s26971_s28  ;;  %24900 = vmatpush3.msk.msra.mxu0 %vm3655_vm3, %v32622_v38  ;;  %v26159_v9 = vpop.eup %26158 }
 0x496   :  { %24917 = vmatmul.mubr.msk.f32.vlgmr.msra.gmra.mrb[42].mxu1 %vm3651_vm5, %v3625_v0  ;;  %v3539_v2 = vpop.xlane.xlu1 %3538  ;;  %24901 = vmatprep.mubr.msk.f32.mxu0 %vm26967_vm1, %v32512_v25  ;;  %v3627_v41 = vmul.f32 %v26159_v9, %v28273_v27  ;;  %v26161_v60 = vpop.eup %26160  ;;  %v32625_v0 = vld [vmem:[#allocation38_spill] sm:$0xff]  ;;  %v32626_v9 = vld [vmem:[#allocation88_spill] sm:$0xff] }
 0x497   :  { %24925 = vmatpush3.msk.msra.mxu1 %vm3655_vm3, %v32623_v10  ;;  %10034 = vrot.lane.b32.xlu0 %v32624_v62, %s26971_s28  ;;  %26168 = vrcp.f32 %v3539_v2  ;;  %v3536_v10 = vpop.xlane.xlu0 %3535  ;;  %v32627_v2 = vld [vmem:[#allocation68_spill] sm:$0xff] }
 0x498   :  { %24909 = vmatprep.subr.mxu0 %v32512_v25  ;;  %24926 = vmatprep.mubr.msk.f32.mxu1 %vm26967_vm1, %v32512_v25  ;;  %26170 = vrcp.f32 %v3524_v15  ;;  %v32628_v15 = vld [vmem:[#allocation43_spill] sm:$0xff] }
 0x499   :  { %9341 = vrot.lane.b32.xlu1 %v32625_v0, %s26971_s28  ;;  %24934 = vmatprep.subr.mxu1 %v32512_v25  ;;  %v26163_v38 = vpop.eup %26162 }
 0x49a   :  { %24902 = vmatmul.mubr.msk.f32.vlgmr.msra.gmra.mrb[42].mxu0 %vm3651_vm5, %v3622_v31  ;;  %24927 = vmatmul.mubr.msk.f32.vlgmr.msra.gmra.mrb[44].mxu1 %vm3651_vm5, %v3627_v41  ;;  %v3545_v27 = vpop.xlane.xlu1 %3544  ;;  %v3629_v42 = vmul.f32 %v26163_v38, %v28283_v16  ;;  %v3624_v41 = vmul.f32 %v26161_v60, %v28257_v20 }
 0x49b   :  { %24910 = vmatpush3.msk.msra.mxu0 %vm3655_vm3, %v32626_v9  ;;  %24935 = vmatpush3.msk.msra.mxu1 %vm3655_vm3, %v32627_v2  ;;  %26172 = vrcp.f32 %v3545_v27  ;;  %v3542_v27 = vpop.xlane.xlu0 %3541  ;;  %v32630_v9 = vld [vmem:[#allocation69_spill] sm:$0xff]  ;;  %v32631_v2 = vld [vmem:[#allocation78_spill] sm:$0xff] }
 0x49c   :  { %10188 = vrot.lane.b32.xlu0 %v32628_v15, %s26971_s28  ;;  %24911 = vmatprep.mubr.msk.f32.mxu0 %vm26967_vm1, %v32512_v25  ;;  %26174 = vrcp.f32 %v3530_v12  ;;  %v32632_v12 = vld [vmem:[#allocation47_spill] sm:$0xff] }
 0x49d   :  { %24919 = vmatprep.subr.mxu0 %v32512_v25  ;;  %9495 = vrot.lane.b32.xlu1 %v32629_v29, %s26971_s28  ;;  %v26165_v31 = vpop.eup %26164 }
 0x49e   :  { %24936 = vmatprep.mubr.msk.f32.mxu1 %vm26967_vm1, %v32512_v25  ;;  %24944 = vmatprep.subr.mxu1 %v32512_v25  ;;  %v3551_v16 = vpop.xlane.xlu1 %3550  ;;  %v26167_v38 = vpop.eup %26166  ;;  %v3631_v20 = vmul.f32 %v26165_v31, %v28292_v32  ;;  %v32634_v31 = vld [vmem:[#allocation76_spill] sm:$0xff] }
 0x49f   :  { %24912 = vmatmul.mubr.msk.f32.vlgmr.msra.gmra.mrb[44].mxu0 %vm3651_vm5, %v3624_v41  ;;  %24937 = vmatmul.mubr.msk.f32.vlgmr.msra.gmra.mrb[46].mxu1 %vm3651_vm5, %v3629_v42  ;;  %26176 = vrcp.f32 %v3551_v16  ;;  %v32633_v42 = vld [vmem:[#allocation45_spill] sm:$0xff]  ;;  %v3626_v41 = vmul.f32 %v26167_v38, %v28276_v23  ;;  %v3548_v38 = vpop.xlane.xlu0 %3547 }
 0x4a0   :  { %24920 = vmatpush3.msk.msra.mxu0 %vm3655_vm3, %v32630_v9  ;;  %24945 = vmatpush3.msk.msra.mxu1 %vm3655_vm3, %v32631_v2  ;;  %26178 = vrcp.f32 %v3536_v10  ;;  %v32635_v10 = vld [vmem:[#allocation90_spill] sm:$0xff] }
 0x4a1   :  { %10342 = vrot.lane.b32.xlu0 %v32632_v12, %s26971_s28  ;;  %24921 = vmatprep.mubr.msk.f32.mxu0 %vm26967_vm1, %v32512_v25  ;;  %v26169_v60 = vpop.eup %26168 }
 0x4a2   :  { %24929 = vmatprep.subr.mxu0 %v32512_v25  ;;  %9649 = vrot.lane.b32.xlu1 %v32633_v42, %s26971_s28  ;;  %v26171_v9 = vpop.eup %26170  ;;  %v3633_v23 = vmul.f32 %v26169_v60, %v28302_v58  ;;  %v32637_v60 = vld [vmem:[#allocation79_spill] sm:$0xff] }
 0x4a3   :  { %24946 = vmatprep.mubr.msk.f32.mxu1 %vm26967_vm1, %v32512_v25  ;;  %24954 = vmatprep.subr.mxu1 %v32512_v25  ;;  %v3628_v2 = vmul.f32 %v26171_v9, %v28286_v49 }
 0x4a4   :  { %24922 = vmatmul.mubr.msk.f32.vlgmr.msra.gmra.mrb[46].mxu0 %vm3651_vm5, %v3626_v41  ;;  %24947 = vmatmul.mubr.msk.f32.vlgmr.msra.gmra.mrb[48].mxu1 %vm3651_vm5, %v3631_v20  ;;  %v3557_v32 = vpop.xlane.xlu1 %3556  ;;  %v32636_v20 = vld [vmem:[#allocation33_spill] sm:$0xff] }
 0x4a5   :  { %24930 = vmatpush3.msk.msra.mxu0 %vm3655_vm3, %v32634_v31  ;;  %24955 = vmatpush3.msk.msra.mxu1 %vm3655_vm3, %v32635_v10  ;;  %26180 = vrcp.f32 %v3557_v32  ;;  %v26173_v16 = vpop.eup %26172  ;;  %v32639_v32 = vld [vmem:[#allocation36_spill] sm:$0xff] }
 0x4a6   :  { %24931 = vmatprep.mubr.msk.f32.mxu0 %vm26967_vm1, %v32512_v25  ;;  %24939 = vmatprep.subr.mxu0 %v32512_v25  ;;  %26182 = vrcp.f32 %v3542_v27  ;;  %v26175_v41 = vpop.eup %26174  ;;  %v3635_v49 = vmul.f32 %v26173_v16, %v28312_v30  ;;  %v32638_v27 = vld [vmem:[#allocation97_spill] sm:$0xff]  ;;  %v32640_v30 = vld [vmem:[#allocation86_spill] sm:$0xff]  ;;  %v32641_v16 = vld [vmem:[#allocation99_spill] sm:$0xff] }
 0x4a7   :  { %9803 = vrot.lane.b32.xlu1 %v32636_v20, %s26971_s28  ;;  %24956 = vmatprep.mubr.msk.f32.mxu1 %vm26967_vm1, %v32512_v25  ;;  %v3630_v31 = vmul.f32 %v26175_v41, %v28296_v61  ;;  %v32642_v41 = vld [vmem:[#allocation37_spill] sm:$0xff] }
 0x4a8   :  { %24964 = vmatprep.subr.mxu1 %v32512_v25  ;;  %24932 = vmatmul.mubr.msk.f32.vlgmr.msra.gmra.mrb[48].mxu0 %vm3651_vm5, %v3628_v2  ;;  %v3563_v58 = vpop.xlane.xlu1 %3562 }
 0x4a9   :  { %24940 = vmatpush3.msk.msra.mxu0 %vm3655_vm3, %v32637_v60  ;;  %24957 = vmatmul.mubr.msk.f32.vlgmr.msra.gmra.mrb[50].mxu1 %vm3651_vm5, %v3633_v23  ;;  %26184 = vrcp.f32 %v3563_v58  ;;  %v26177_v9 = vpop.eup %26176  ;;  %v3554_v23 = vpop.xlane.xlu0 %3553 }
 0x4aa   :  { %24965 = vmatpush3.msk.msra.mxu1 %vm3655_vm3, %v32638_v27  ;;  %24941 = vmatprep.mubr.msk.f32.mxu0 %vm26967_vm1, %v32512_v25  ;;  %26186 = vrcp.f32 %v3548_v38  ;;  %v26179_v10 = vpop.eup %26178  ;;  %v3637_v38 = vmul.f32 %v26177_v9, %v28321_v35  ;;  %v32643_v35 = vld [vmem:[#allocation109_spill] sm:$0xff]  ;;  %v32645_v27 = vld [vmem:[#allocation42_spill] sm:$0xff] }
 0x4ab   :  { %24949 = vmatprep.subr.mxu0 %v32512_v25  ;;  %9957 = vrot.lane.b32.xlu1 %v32639_v32, %s26971_s28  ;;  %26188 = vrcp.f32 %v3554_v23  ;;  %v3632_v2 = vmul.f32 %v26179_v10, %v28305_v56  ;;  %v32644_v56 = vld [vmem:[#allocation111_spill] sm:$0xff]  ;;  %v32646_v10 = vld [vmem:[#allocation110_spill] sm:$0xff]  ;;  %v32647_v23 = vld [vmem:[#allocation112_spill] sm:$0xff] }
 0x4ac   :  { %24966 = vmatprep.mubr.msk.f32.mxu1 %vm26967_vm1, %v32512_v25  ;;  %24974 = vmatprep.subr.mxu1 %v32512_v25 }
 0x4ad   :  { %24942 = vmatmul.mubr.msk.f32.vlgmr.msra.gmra.mrb[50].mxu0 %vm3651_vm5, %v3630_v31  ;;  %24967 = vmatmul.mubr.msk.f32.vlgmr.msra.gmra.mrb[52].mxu1 %vm3651_vm5, %v3635_v49 }
 0x4ae   :  { %24950 = vmatpush3.msk.msra.mxu0 %vm3655_vm3, %v32640_v30  ;;  %24975 = vmatpush3.msk.msra.mxu1 %vm3655_vm3, %v32641_v16  ;;  %v32648_v16 = vld [vmem:[#allocation100_spill] sm:$0xff] }
 0x4af   :  { %v26181_v61 = vpop.eup %26180  ;;  %24951 = vmatprep.mubr.msk.f32.mxu0 %vm26967_vm1, %v32512_v25  ;;  %24959 = vmatprep.subr.mxu0 %v32512_v25 }
 0x4b0   :  { %10111 = vrot.lane.b32.xlu1 %v32642_v41, %s26971_s28  ;;  %24976 = vmatprep.mubr.msk.f32.mxu1 %vm26967_vm1, %v32512_v25  ;;  %v26183_v58 = vpop.eup %26182  ;;  %v3639_v60 = vmul.f32 %v26181_v61, %v28333_v53 }
 0x4b1   :  { %24984 = vmatprep.subr.mxu1 %v32512_v25  ;;  %24952 = vmatmul.mubr.msk.f32.vlgmr.msra.gmra.mrb[52].mxu0 %vm3651_vm5, %v3632_v2  ;;  %v3634_v9 = vmul.f32 %v26183_v58, %v28314_v37  ;;  %v32650_v2 = vld [vmem:[#allocation116_spill] sm:$0xff] }
 0x4b2   :  { %24960 = vmatpush3.msk.msra.mxu0 %vm3655_vm3, %v32643_v35  ;;  %24977 = vmatmul.mubr.msk.f32.vlgmr.msra.gmra.mrb[54].mxu1 %vm3651_vm5, %v3637_v38  ;;  %v32649_v38 = vld [vmem:[#allocation113_spill] sm:$0xff] }
 0x4b3   :  { %v26185_v49 = vpop.eup %26184  ;;  %24985 = vmatpush3.msk.msra.mxu1 %vm3655_vm3, %v32644_v56  ;;  %24961 = vmatprep.mubr.msk.f32.mxu0 %vm26967_vm1, %v32512_v25  ;;  %v32651_v56 = vld [vmem:[#allocation101_spill] sm:$0xff] }
 0x4b4   :  { %24969 = vmatprep.subr.mxu0 %v32512_v25  ;;  %10265 = vrot.lane.b32.xlu1 %v32645_v27, %s26971_s28  ;;  %v26187_v31 = vpop.eup %26186  ;;  %v3641_v53 = vmul.f32 %v26185_v49, %v28337_v54 }
 0x4b5   :  { %24986 = vmatprep.mubr.msk.f32.mxu1 %vm26967_vm1, %v32512_v25  ;;  %24994 = vmatprep.subr.mxu1 %v32512_v25  ;;  %v3636_v37 = vmul.f32 %v26187_v31, %v28323_v11  ;;  %v26189_v30 = vpop.eup %26188 }
 0x4b6   :  { %24962 = vmatmul.mubr.msk.f32.vlgmr.msra.gmra.mrb[54].mxu0 %vm3651_vm5, %v3634_v9  ;;  %24987 = vmatmul.mubr.msk.f32.vlgmr.msra.gmra.mrb[56].mxu1 %vm3651_vm5, %v3639_v60  ;;  %v3638_v11 = vmul.f32 %v26189_v30, %v28329_v34 }
 0x4b7   :  { %24970 = vmatpush3.msk.msra.mxu0 %vm3655_vm3, %v32646_v10  ;;  %24995 = vmatpush3.msk.msra.mxu1 %vm3655_vm3, %v32647_v23 }
 0x4b8   :  { %24971 = vmatprep.mubr.msk.f32.mxu0 %vm26967_vm1, %v32512_v25  ;;  %24979 = vmatprep.subr.mxu0 %v32512_v25 }
 0x4b9   :  { %24996 = vmatprep.mubr.msk.f32.mxu1 %vm26967_vm1, %v32512_v25  ;;  %25004 = vmatprep.subr.mxu1 %v32512_v25 }
 0x4ba   :  { %24972 = vmatmul.mubr.msk.f32.vlgmr.msra.gmra.mrb[56].mxu0 %vm3651_vm5, %v3636_v37  ;;  %24997 = vmatmul.mubr.msk.f32.vlgmr.msra.gmra.mrb[58].mxu1 %vm3651_vm5, %v3641_v53  ;;  %v3560_v54 = vpop.xlane.xlu0 %3559  ;;  %v32653_v37 = vld [vmem:[#allocation118_spill] sm:$0xff] }
 0x4bb   :  { %24980 = vmatpush3.msk.msra.mxu0 %vm3655_vm3, %v32648_v16  ;;  %25005 = vmatpush3.msk.msra.mxu1 %vm3655_vm3, %v32649_v38  ;;  %26190 = vrcp.f32 %v3560_v54  ;;  %v32654_v16 = vld [vmem:[#allocation120_spill] sm:$0xff]  ;;  %v28708_v38 = vpop.permute.xlu1 %7909 }
 0x4bc   :  { %24981 = vmatprep.mubr.msk.f32.mxu0 %vm26967_vm1, %v32512_v25  ;;  %24989 = vmatprep.subr.mxu0 %v32512_v25 }
 0x4bd   :  { %25006 = vmatprep.mubr.msk.f32.mxu1 %vm26967_vm1, %v32512_v25  ;;  %25014 = vmatprep.subr.mxu1 %v32512_v25 }
 0x4be   :  { %24982 = vmatmul.mubr.msk.f32.vlgmr.msra.gmra.mrb[58].mxu0 %vm3651_vm5, %v3638_v11  ;;  %v3566_v61 = vpop.xlane.xlu0 %3565  ;;  %v32655_v11 = vld [vmem:[#allocation122_spill] sm:$0xff] }
 0x4bf   :  { %24990 = vmatpush3.msk.msra.mxu0 %vm3655_vm3, %v32650_v2  ;;  %26192 = vrcp.f32 %v3566_v61  ;;  %24991 = vmatprep.mubr.msk.f32.mxu0 %vm26967_vm1, %v32512_v25  ;;  %v28717_v61 = vpop.permute.xlu1 %7907  ;;  %v32656_v2 = vld [vmem:[#allocation124_spill] sm:$0xff] }
 0x4c0   :  { %24999 = vmatprep.subr.mxu0 %v32512_v25 }
 0x4c2   :  { %v3572_v58 = vpop.xlane.xlu0 %3571 }
 0x4c3   :  { %26194 = vrcp.f32 %v3572_v58  ;;  %v32657_v58 = vld [vmem:[#allocation126_spill] sm:$0xff] }
 0x4c5   :  { %v26191_v34 = vpop.eup %26190 }
 0x4c6   :  { %v3578_v35 = vpop.xlane.xlu0 %3577  ;;  %v3640_v60 = vmul.f32 %v26191_v34, %v28345_v63  ;;  %v32652_v63 = vld [vmem:[#allocation103_spill] sm:$0xff] }
 0x4c7   :  { %26196 = vrcp.f32 %v3578_v35  ;;  %v32658_v35 = vld [vmem:[#allocation128_spill] sm:$0xff] }
 0x4c8   :  { %24992 = vmatmul.mubr.msk.f32.vlgmr.msra.gmra.mrb[60].mxu0 %vm3651_vm5, %v3640_v60  ;;  %v32659_v60 = vld [vmem:[#allocation130_spill] sm:$0xff] }
 0x4c9   :  { %v26193_v49 = vpop.eup %26192  ;;  %25000 = vmatpush3.msk.msra.mxu0 %vm3655_vm3, %v32651_v56  ;;  %25001 = vmatprep.mubr.msk.f32.mxu0 %vm26967_vm1, %v32512_v25 }
 0x4ca   :  { %v3584_v9 = vpop.xlane.xlu0 %3583  ;;  %25009 = vmatprep.subr.mxu0 %v32512_v25  ;;  %v3642_v31 = vmul.f32 %v26193_v49, %v28356_v1 }
 0x4cb   :  { %26198 = vrcp.f32 %v3584_v9  ;;  %v32660_v9 = vld [vmem:[#allocation132_spill] sm:$0xff] }
 0x4cc   :  { %25002 = vmatmul.mubr.msk.f32.vlgmr.msra.gmra.mrb[62].mxu0 %vm3651_vm5, %v3642_v31  ;;  %v32661_v31 = vld [vmem:[#allocation134_spill] sm:$0xff] }
 0x4cd   :  { %v26195_v53 = vpop.eup %26194  ;;  %25010 = vmatpush3.msk.msra.mxu0 %vm3655_vm3, %v32652_v63  ;;  %25011 = vmatprep.mubr.msk.f32.mxu0 %vm26967_vm1, %v32512_v25  ;;  %v32662_v63 = vld [vmem:[#allocation136_spill] sm:$0xff] }
 0x4ce   :  { %25019 = vmatprep.subr.mxu0 %v32512_v25  ;;  %v3644_v10 = vmul.f32 %v26195_v53, %v28362_v36  ;;  %v28699_v30 = vpop.permute.xlu0 %7824 }
 0x4d0   :  { %25012 = vmatmul.mubr.msk.f32.vlgmr.msra.gmra.mrb[64].mxu0 %vm3651_vm5, %v3644_v10 }
 0x4d1   :  { %v26197_v23 = vpop.eup %26196  ;;  %25020 = vmatpush3.msk.msra.mxu0 %vm3655_vm3, %v32653_v37  ;;  %25021 = vmatprep.mubr.msk.f32.mxu0 %vm26967_vm1, %v32512_v25  ;;  %v32663_v37 = vld [vmem:[#allocation138_spill] sm:$0xff] }
 0x4d2   :  { %25029 = vmatprep.subr.mxu0 %v32512_v25  ;;  %v3646_v1 = vmul.f32 %v26197_v23, %v28366_v43  ;;  %v28713_v43 = vpop.permute.xlu0 %7822 }
 0x4d4   :  { %25022 = vmatmul.mubr.msk.f32.vlgmr.msra.gmra.mrb[66].mxu0 %vm3651_vm5, %v3646_v1 }
 0x4d5   :  { %v26199_v54 = vpop.eup %26198  ;;  %25030 = vmatpush3.msk.msra.mxu0 %vm3655_vm3, %v32654_v16  ;;  %25031 = vmatprep.mubr.msk.f32.mxu0 %vm26967_vm1, %v32512_v25  ;;  %v32664_v16 = vld [vmem:[#allocation140_spill] sm:$0xff] }
 0x4d6   :  { %v3648_v36 = vmul.f32 %v26199_v54, %v28370_v33  ;;  %25039 = vmatprep.subr.mxu0 %v32512_v25  ;;  %v28722_v33 = vpop.permute.xlu0 %7994 }
 0x4d8   :  { %25032 = vmatmul.mubr.msk.f32.vlgmr.msra.gmra.mrb[68].mxu0 %vm3651_vm5, %v3648_v36 }
 0x4d9   :  { %25041 = vmatprep.mubr.msk.f32.mxu0 %vm26967_vm1, %v32512_v25 }
 0x4da   :  { %v28736_v56 = vpop.permute.xlu0 %7992 }
 0x4dc   :  { %25040 = vmatpush3.xpose.msk.msra.mxu0 %vm648_vm2, %v32655_v11  ;;  %v32665_v11 = vld [vmem:[#allocation114_spill] sm:$0xff] }
 0x4dd   :  { %25049 = vmatprep.subr.mxu0 %v32512_v25 }
 0x4de   :  { %v28747_v23 = vpop.permute.xlu0 %8164 }
 0x4df   :  { %25042 = vmatmul.mubr.msk.f32.vlgmr.msra.gmra.mrb[70].mxu0 %vm648_vm2, %v32656_v2  ;;  %v32666_v2 = vld [vmem:[#allocation142_spill] sm:$0xff] }
 0x4e0   :  { %25050 = vmatpush3.xpose.msk.msra.mxu0 %vm648_vm2, %v32657_v58  ;;  %25051 = vmatprep.mubr.msk.f32.mxu0 %vm26967_vm1, %v32512_v25 }
 0x4e1   :  { %v3569_v34 = vpop.xlane.xlu1 %3568  ;;  %25059 = vmatprep.subr.mxu0 %v32512_v25 }
 0x4e2   :  { %26200 = vrcp.f32 %v3569_v34  ;;  %v28770_v34 = vpop.permute.xlu0 %8162 }
 0x4e3   :  { %25052 = vmatmul.mubr.msk.f32.vlgmr.msra.gmra.mrb[72].mxu0 %vm648_vm2, %v32658_v35  ;;  %v32667_v35 = vld [vmem:[#allocation144_spill] sm:$0xff] }
 0x4e4   :  { %25060 = vmatpush3.xpose.msk.msra.mxu0 %vm648_vm2, %v32659_v60  ;;  %25061 = vmatprep.mubr.msk.f32.mxu0 %vm26967_vm1, %v32512_v25 }
 0x4e5   :  { %v3575_v49 = vpop.xlane.xlu1 %3574  ;;  %25069 = vmatprep.subr.mxu0 %v32512_v25 }
 0x4e6   :  { %26202 = vrcp.f32 %v3575_v49  ;;  %v32668_v49 = vld [vmem:[#allocation115_spill] sm:$0xff] }
 0x4e7   :  { %25062 = vmatmul.mubr.msk.f32.vlgmr.msra.gmra.mrb[74].mxu0 %vm648_vm2, %v32660_v9  ;;  %v32669_v9 = vld [vmem:[#allocation146_spill] sm:$0xff] }
 0x4e8   :  { %25070 = vmatpush3.xpose.msk.msra.mxu0 %vm648_vm2, %v32661_v31  ;;  %25071 = vmatprep.mubr.msk.f32.mxu0 %vm26967_vm1, %v32512_v25 }
 0x4e9   :  { %v3581_v53 = vpop.xlane.xlu1 %3580  ;;  %25079 = vmatprep.subr.mxu0 %v32512_v25 }
 0x4ea   :  { %26204 = vrcp.f32 %v3581_v53  ;;  %v32670_v53 = vld [vmem:[#allocation148_spill] sm:$0xff] }
 0x4eb   :  { %25072 = vmatmul.mubr.msk.f32.vlgmr.msra.gmra.mrb[76].mxu0 %vm648_vm2, %v32662_v63  ;;  %v28792_v63 = vpop.permute.xlu0 %8334 }
 0x4ec   :  { %v26201_v10 = vpop.eup %26200  ;;  %25080 = vmatpush3.xpose.msk.msra.mxu0 %vm648_vm2, %v32663_v37  ;;  %25081 = vmatprep.mubr.msk.f32.mxu0 %vm26967_vm1, %v32512_v25  ;;  %v32672_v37 = vld [vmem:[#allocation117_spill] sm:$0xff] }
 0x4ed   :  { %v28753_v1 = vpop.permute.xlu1 %8079  ;;  %v3643_v54 = vmul.f32 %v26201_v10, %v28377_v6  ;;  %25089 = vmatprep.subr.mxu0 %v32512_v25  ;;  %v32671_v10 = vld [vmem:[#allocation150_spill] sm:$0xff] }
 0x4ef   :  { %25007 = vmatmul.mubr.msk.f32.vlgmr.msra.gmra.mrb[60].mxu1 %vm3651_vm5, %v3643_v54  ;;  %25082 = vmatmul.mubr.msk.f32.vlgmr.msra.gmra.mrb[78].mxu0 %vm648_vm2, %v32664_v16  ;;  %v32673_v54 = vld [vmem:[#allocation152_spill] sm:$0xff]  ;;  %v32674_v16 = vld [vmem:[#allocation154_spill] sm:$0xff] }
 0x4f0   :  { %v26203_v36 = vpop.eup %26202  ;;  %25015 = vmatpush3.msk.msra.mxu1 %vm3655_vm3, %v32665_v11  ;;  %25090 = vmatpush3.xpose.msk.msra.mxu0 %vm648_vm2, %v32666_v2  ;;  %v28811_v11 = vpop.permute.xlu0 %8332  ;;  %v32675_v2 = vld [vmem:[#allocation119_spill] sm:$0xff] }
 0x4f1   :  { %v28764_v58 = vpop.permute.xlu1 %8077  ;;  %25016 = vmatprep.mubr.msk.f32.mxu1 %vm26967_vm1, %v32512_v25  ;;  %25024 = vmatprep.subr.mxu1 %v32512_v25  ;;  %v3645_v6 = vmul.f32 %v26203_v36, %v28383_v57 }
 0x4f2   :  { %25091 = vmatprep.mubr.msk.f32.mxu0 %vm26967_vm1, %v32512_v25  ;;  %25099 = vmatprep.subr.mxu0 %v32512_v25 }
 0x4f3   :  { %25017 = vmatmul.mubr.msk.f32.vlgmr.msra.gmra.mrb[62].mxu1 %vm3651_vm5, %v3645_v6  ;;  %25092 = vmatmul.mubr.msk.f32.vlgmr.msra.gmra.mrb[80].mxu0 %vm648_vm2, %v32667_v35  ;;  %v32676_v6 = vld [vmem:[#allocation121_spill] sm:$0xff]  ;;  %v32677_v35 = vld [vmem:[#allocation156_spill] sm:$0xff] }
 0x4f4   :  { %v26205_v60 = vpop.eup %26204  ;;  %25025 = vmatpush3.msk.msra.mxu1 %vm3655_vm3, %v32668_v49  ;;  %25100 = vmatpush3.xpose.msk.msra.mxu0 %vm648_vm2, %v32669_v9  ;;  %v32679_v49 = vld [vmem:[#allocation123_spill] sm:$0xff] }
 0x4f5   :  { %v8250_v57 = vpop.permute.xlu1 %8249  ;;  %25026 = vmatprep.mubr.msk.f32.mxu1 %vm26967_vm1, %v32512_v25  ;;  %v3647_v31 = vmul.f32 %v26205_v60, %v28394_v50  ;;  %25101 = vmatprep.mubr.msk.f32.mxu0 %vm26967_vm1, %v32512_v25  ;;  %v32678_v60 = vld [vmem:[#allocation157_spill] sm:$0xff] }
 0x4f6   :  { %25109 = vmatprep.subr.mxu0 %v32512_v25  ;;  %25034 = vmatprep.subr.mxu1 %v32512_v25 }
 0x4f7   :  { %25027 = vmatmul.mubr.msk.f32.vlgmr.msra.gmra.mrb[64].mxu1 %vm3651_vm5, %v3647_v31  ;;  %25102 = vmatmul.mubr.msk.f32.vlgmr.msra.gmra.mrb[82].mxu0 %vm648_vm2, %v32670_v53  ;;  %v32680_v31 = vld [vmem:[#allocation125_spill] sm:$0xff]  ;;  %v28833_v53 = vpop.permute.xlu0 %8504 }
 0x4f8   :  { %25110 = vmatpush3.xpose.msk.msra.mxu0 %vm648_vm2, %v32671_v10  ;;  %25111 = vmatprep.mubr.msk.f32.mxu0 %vm26967_vm1, %v32512_v25  ;;  %v32681_v10 = vld [vmem:[#allocation158_spill] sm:$0xff] }
 0x4f9   :  { %v8248_v50 = vpop.permute.xlu1 %8247  ;;  %25119 = vmatprep.subr.mxu0 %v32512_v25  ;;  %25036 = vmatprep.mubr.msk.f32.mxu1 %vm26967_vm1, %v32512_v25 }
 0x4fb   :  { %25035 = vmatpush3.xpose.msk.msra.mxu1 %vm648_vm2, %v32672_v37  ;;  %25112 = vmatmul.mubr.msk.f32.vlgmr.msra.gmra.mrb[84].mxu0 %vm648_vm2, %v32673_v54  ;;  %v32682_v37 = vld [vmem:[#allocation127_spill] sm:$0xff]  ;;  %v32683_v54 = vld [vmem:[#allocation129_spill] sm:$0xff] }
 0x4fc   :  { %25044 = vmatprep.subr.mxu1 %v32512_v25  ;;  %25120 = vmatpush3.xpose.msk.msra.mxu0 %vm648_vm2, %v32674_v16  ;;  %v28856_v16 = vpop.permute.xlu0 %8502 }
 0x4fd   :  { %v8420_v36 = vpop.permute.xlu1 %8419  ;;  %25121 = vmatprep.mubr.msk.f32.mxu0 %vm26967_vm1, %v32512_v25  ;;  %25129 = vmatprep.subr.mxu0 %v32512_v25 }
 0x4fe   :  { %25037 = vmatmul.mubr.msk.f32.vlgmr.msra.gmra.mrb[66].mxu1 %vm648_vm2, %v32675_v2  ;;  %v32684_v2 = vld [vmem:[#allocation131_spill] sm:$0xff] }
 0x4ff   :  { %25045 = vmatpush3.xpose.msk.msra.mxu1 %vm648_vm2, %v32676_v6  ;;  %25122 = vmatmul.mubr.msk.f32.vlgmr.msra.gmra.mrb[86].mxu0 %vm648_vm2, %v32677_v35  ;;  %v32685_v6 = vld [vmem:[#allocation133_spill] sm:$0xff] }
 0x500   :  { %25046 = vmatprep.mubr.msk.f32.mxu1 %vm26967_vm1, %v32512_v25  ;;  %25054 = vmatprep.subr.mxu1 %v32512_v25  ;;  %v32687_v35 = vld [vmem:[#allocation137_spill] sm:$0xff] }
 0x501   :  { %25130 = vmatpush3.xpose.msk.msra.mxu0 %vm648_vm2, %v32678_v60  ;;  %25131 = vmatprep.mubr.msk.f32.mxu0 %vm26967_vm1, %v32512_v25  ;;  %v8418_v9 = vpop.permute.xlu1 %8417  ;;  %v32689_v60 = vld [vmem:[#allocation141_spill] sm:$0xff] }
 0x502   :  { %25047 = vmatmul.mubr.msk.f32.vlgmr.msra.gmra.mrb[68].mxu1 %vm648_vm2, %v32679_v49  ;;  %25139 = vmatprep.subr.mxu0 %v32512_v25  ;;  %v32690_v49 = vld [vmem:[#allocation143_spill] sm:$0xff] }
 0x503   :  { %25055 = vmatpush3.xpose.msk.msra.mxu1 %vm648_vm2, %v32680_v31  ;;  %25056 = vmatprep.mubr.msk.f32.mxu1 %vm26967_vm1, %v32512_v25  ;;  %v32691_v31 = vld [vmem:[#allocation145_spill] sm:$0xff] }
 0x504   :  { %25132 = vmatmul.mubr.msk.f32.vlgmr.msra.gmra.mrb[88].mxu0 %vm648_vm2, %v32681_v10  ;;  %25064 = vmatprep.subr.mxu1 %v32512_v25 }
 0x505   :  { %25140 = vmatpush3.xpose.msk.msra.mxu0 %vm648_vm2, %v28708_v38  ;;  %25141 = vmatprep.mubr.msk.f32.mxu0 %vm26967_vm1, %v32512_v25  ;;  %v8590_v38 = vpop.permute.xlu1 %8589 }
 0x506   :  { %25057 = vmatmul.mubr.msk.f32.vlgmr.msra.gmra.mrb[70].mxu1 %vm648_vm2, %v32682_v37  ;;  %25149 = vmatprep.subr.mxu0 %v32512_v25  ;;  %v32693_v37 = vld [vmem:[#allocation149_spill] sm:$0xff] }
 0x507   :  { %25065 = vmatpush3.xpose.msk.msra.mxu1 %vm648_vm2, %v32683_v54  ;;  %25066 = vmatprep.mubr.msk.f32.mxu1 %vm26967_vm1, %v32512_v25 }
 0x508   :  { %25142 = vmatmul.mubr.msk.f32.vlgmr.msra.gmra.mrb[90].mxu0 %vm648_vm2, %v28717_v61  ;;  %25074 = vmatprep.subr.mxu1 %v32512_v25  ;;  %v32686_v61 = vld [vmem:[#allocation135_spill] sm:$0xff] }
 0x509   :  { %25150 = vmatpush3.xpose.msk.msra.mxu0 %vm648_vm2, %v28753_v1  ;;  %25151 = vmatprep.mubr.msk.f32.mxu0 %vm26967_vm1, %v32512_v25  ;;  %v8588_v1 = vpop.permute.xlu1 %8587 }
 0x50a   :  { %25067 = vmatmul.mubr.msk.f32.vlgmr.msra.gmra.mrb[72].mxu1 %vm648_vm2, %v32684_v2  ;;  %25159 = vmatprep.subr.mxu0 %v32512_v25  ;;  %v32695_v2 = vld [vmem:[#allocation153_spill] sm:$0xff] }
 0x50b   :  { %25075 = vmatpush3.xpose.msk.msra.mxu1 %vm648_vm2, %v32685_v6  ;;  %25076 = vmatprep.mubr.msk.f32.mxu1 %vm26967_vm1, %v32512_v25  ;;  %v32696_v6 = vld [vmem:[#allocation155_spill] sm:$0xff] }
 0x50c   :  { %25152 = vmatmul.mubr.msk.f32.vlgmr.msra.gmra.mrb[92].mxu0 %vm648_vm2, %v28764_v58  ;;  %25084 = vmatprep.subr.mxu1 %v32512_v25  ;;  %v8675_v58 = vpop.permute.xlu0 %8674 }
 0x50d   :  { %25160 = vmatpush3.xpose.msk.msra.mxu0 %vm648_vm2, %v8250_v57  ;;  %25161 = vmatprep.mubr.msk.f32.mxu0 %vm26967_vm1, %v32512_v25  ;;  %v32688_v57 = vld [vmem:[#allocation139_spill] sm:$0xff] }
 0x50e   :  { %25077 = vmatmul.mubr.msk.f32.vlgmr.msra.gmra.mrb[74].mxu1 %vm648_vm2, %v32686_v61  ;;  %25169 = vmatprep.subr.mxu0 %v32512_v25 }
 0x50f   :  { %25085 = vmatpush3.xpose.msk.msra.mxu1 %vm648_vm2, %v32687_v35  ;;  %25086 = vmatprep.mubr.msk.f32.mxu1 %vm26967_vm1, %v32512_v25 }
 0x510   :  { %25162 = vmatmul.mubr.msk.f32.vlgmr.msra.gmra.mrb[94].mxu0 %vm648_vm2, %v8248_v50  ;;  %25094 = vmatprep.subr.mxu1 %v32512_v25  ;;  %v8760_v50 = vpop.permute.xlu1 %8759 }
 0x511   :  { %25170 = vmatpush3.xpose.msk.msra.mxu0 %vm648_vm2, %v8420_v36  ;;  %25171 = vmatprep.mubr.msk.f32.mxu0 %vm26967_vm1, %v32512_v25  ;;  %v8673_v36 = vpop.permute.xlu0 %8672 }
 0x512   :  { %25087 = vmatmul.mubr.msk.f32.vlgmr.msra.gmra.mrb[76].mxu1 %vm648_vm2, %v32688_v57  ;;  %25179 = vmatprep.subr.mxu0 %v32512_v25 }
 0x513   :  { %25095 = vmatpush3.xpose.msk.msra.mxu1 %vm648_vm2, %v32689_v60  ;;  %25096 = vmatprep.mubr.msk.f32.mxu1 %vm26967_vm1, %v32512_v25 }
 0x514   :  { %25172 = vmatmul.mubr.msk.f32.vlgmr.msra.gmra.mrb[96].mxu0 %vm648_vm2, %v8418_v9  ;;  %25104 = vmatprep.subr.mxu1 %v32512_v25  ;;  %v32692_v9 = vld [vmem:[#allocation147_spill] sm:$0xff]  ;;  %v8758_v10 = vpop.permute.xlu1 %8757 }
 0x515   :  { %25180 = vmatpush3.xpose.msk.msra.mxu0 %vm648_vm2, %v8590_v38  ;;  %25181 = vmatprep.mubr.msk.f32.mxu0 %vm26967_vm1, %v32512_v25  ;;  %v9265_v54 = vpop.permute.xlu0 %9264  ;;  %v32694_v38 = vld [vmem:[#allocation151_spill] sm:$0xff] }
 0x516   :  { %25097 = vmatmul.mubr.msk.f32.vlgmr.msra.gmra.mrb[78].mxu1 %vm648_vm2, %v32690_v49  ;;  %25189 = vmatprep.subr.mxu0 %v32512_v25 }
 0x517   :  { %25105 = vmatpush3.xpose.msk.msra.mxu1 %vm648_vm2, %v32691_v31  ;;  %25106 = vmatprep.mubr.msk.f32.mxu1 %vm26967_vm1, %v32512_v25 }
 0x518   :  { %25182 = vmatmul.mubr.msk.f32.vlgmr.msra.gmra.mrb[98].mxu0 %vm648_vm2, %v8588_v1  ;;  %25114 = vmatprep.subr.mxu1 %v32512_v25 }
 0x519   :  { %25190 = vmatpush3.xpose.msk.msra.mxu0 %vm648_vm2, %v8760_v50  ;;  %25191 = vmatprep.mubr.msk.f32.mxu0 %vm26967_vm1, %v32512_v25  ;;  %v29177_v20 = vpop.permute.xlu0 %9418 }
 0x51a   :  { %25107 = vmatmul.mubr.msk.f32.vlgmr.msra.gmra.mrb[80].mxu1 %vm648_vm2, %v32692_v9  ;;  %25199 = vmatprep.subr.mxu0 %v32512_v25 }
 0x51b   :  { %25115 = vmatpush3.xpose.msk.msra.mxu1 %vm648_vm2, %v32693_v37  ;;  %25116 = vmatprep.mubr.msk.f32.mxu1 %vm26967_vm1, %v32512_v25 }
 0x51c   :  { %25192 = vmatmul.mubr.msk.f32.vlgmr.msra.gmra.mrb[100].mxu0 %vm648_vm2, %v8758_v10  ;;  %25124 = vmatprep.subr.mxu1 %v32512_v25 }
 0x51d   :  { %25200 = vmatpush3.msk.msra.mxu0 %vm3655_vm3, %v9265_v54  ;;  %25201 = vmatprep.mubr.msk.f32.mxu0 %vm26967_vm1, %v32512_v25 }
 0x51e   :  { %25117 = vmatmul.mubr.msk.f32.vlgmr.msra.gmra.mrb[82].mxu1 %vm648_vm2, %v32694_v38  ;;  %25209 = vmatprep.subr.mxu0 %v32512_v25 }
 0x51f   :  { %25125 = vmatpush3.xpose.msk.msra.mxu1 %vm648_vm2, %v32695_v2  ;;  %25126 = vmatprep.mubr.msk.f32.mxu1 %vm26967_vm1, %v32512_v25 }
 0x520   :  { %25134 = vmatprep.subr.mxu1 %v32512_v25 }
 0x522   :  { %25127 = vmatmul.mubr.msk.f32.vlgmr.msra.gmra.mrb[84].mxu1 %vm648_vm2, %v32696_v6 }
 0x523   :  { %25135 = vmatpush3.xpose.msk.msra.mxu1 %vm648_vm2, %v28699_v30  ;;  %25136 = vmatprep.mubr.msk.f32.mxu1 %vm26967_vm1, %v32512_v25 }
 0x524   :  { %25144 = vmatprep.subr.mxu1 %v32512_v25 }
 0x526   :  { %25137 = vmatmul.mubr.msk.f32.vlgmr.msra.gmra.mrb[86].mxu1 %vm648_vm2, %v28713_v43 }
 0x527   :  { %25145 = vmatpush3.xpose.msk.msra.mxu1 %vm648_vm2, %v28722_v33  ;;  %25146 = vmatprep.mubr.msk.f32.mxu1 %vm26967_vm1, %v32512_v25  ;;  %v9188_v33 = vpop.permute.xlu1 %9187 }
 0x528   :  { %25154 = vmatprep.subr.mxu1 %v32512_v25 }
 0x52a   :  { %25147 = vmatmul.mubr.msk.f32.vlgmr.msra.gmra.mrb[88].mxu1 %vm648_vm2, %v28736_v56 }
 0x52b   :  { %25155 = vmatpush3.xpose.msk.msra.mxu1 %vm648_vm2, %v28747_v23  ;;  %25156 = vmatprep.mubr.msk.f32.mxu1 %vm26967_vm1, %v32512_v25  ;;  %v28948_v30 = vpop.f32.mrb[34].mxu1 }
 0x52c   :  { %25164 = vmatprep.subr.mxu1 %v32512_v25  ;;  %32697 = vst [vmem:[#allocation82_spill] sm:$0xff] %v28948_v30  ;;  %v24878_v43 = vpop.f32.mrb[35].mxu1 }
 0x52e   :  { %25157 = vmatmul.mubr.msk.f32.vlgmr.msra.gmra.mrb[90].mxu1 %vm648_vm2, %v28770_v34 }
 0x52f   :  { %25165 = vmatpush3.xpose.msk.msra.mxu1 %vm648_vm2, %v28792_v63  ;;  %25166 = vmatprep.mubr.msk.f32.mxu1 %vm26967_vm1, %v32512_v25 }
 0x530   :  { %25174 = vmatprep.subr.mxu1 %v32512_v25 }
 0x532   :  { %25167 = vmatmul.mubr.msk.f32.vlgmr.msra.gmra.mrb[92].mxu1 %vm648_vm2, %v28811_v11 }
 0x533   :  { %25175 = vmatpush3.xpose.msk.msra.mxu1 %vm648_vm2, %v28833_v53  ;;  %25176 = vmatprep.mubr.msk.f32.mxu1 %vm26967_vm1, %v32512_v25 }
 0x534   :  { %25184 = vmatprep.subr.mxu1 %v32512_v25 }
 0x536   :  { %25177 = vmatmul.mubr.msk.f32.vlgmr.msra.gmra.mrb[94].mxu1 %vm648_vm2, %v28856_v16 }
 0x537   :  { %25185 = vmatpush3.xpose.msk.msra.mxu1 %vm648_vm2, %v8675_v58  ;;  %25186 = vmatprep.mubr.msk.f32.mxu1 %vm26967_vm1, %v32512_v25 }
 0x538   :  { %25194 = vmatprep.subr.mxu1 %v32512_v25 }
 0x53a   :  { %25187 = vmatmul.mubr.msk.f32.vlgmr.msra.gmra.mrb[96].mxu1 %vm648_vm2, %v8673_v36 }
 0x53b   :  { %25195 = vmatpush3.msk.msra.mxu1 %vm3655_vm3, %v9188_v33  ;;  %25196 = vmatprep.mubr.msk.f32.mxu1 %vm26967_vm1, %v32512_v25  ;;  %v28974_v56 = vpop.f32.mrb[38].mxu0 }
 0x53c   :  { %32698 = vst [vmem:[#allocation108_spill] sm:$0xff] %v28974_v56  ;;  %25204 = vmatprep.subr.mxu1 %v32512_v25  ;;  %v24883_v23 = vpop.f32.mrb[39].mxu0 }
 0x55b   :  { %v28977_v34 = vpop.f32.mrb[36].mxu1 }
 0x55c   :  { %32699 = vst [vmem:[#allocation65_spill] sm:$0xff] %v28977_v34  ;;  %v24888_v63 = vpop.f32.mrb[37].mxu1 }
 0x55f   :  { %v28979_v11 = vpop.f32.mrb[38].mxu1 }
 0x560   :  { %32700 = vst [vmem:[#allocation84_spill] sm:$0xff] %v28979_v11  ;;  %v24898_v53 = vpop.f32.mrb[39].mxu1 }
 0x563   :  { %v28981_v16 = vpop.f32.mrb[40].mxu1 }
 0x564   :  { %32701 = vst [vmem:[#allocation66_spill] sm:$0xff] %v28981_v16  ;;  %v24908_v61 = vpop.f32.mrb[41].mxu1 }
 0x567   :  { %v28983_v1 = vpop.f32.mrb[40].mxu0 }
 0x568   :  { %32702 = vst [vmem:[#allocation88_spill] sm:$0xff] %v28983_v1  ;;  %v24893_v35 = vpop.f32.mrb[41].mxu0 }
 0x569   :  { %v28985_v58 = vpop.f32.mrb[42].mxu1 }
 0x56a   :  { %32703 = vst [vmem:[#allocation68_spill] sm:$0xff] %v28985_v58  ;;  %v24918_v57 = vpop.f32.mrb[43].mxu1 }
 0x56d   :  { %v28987_v60 = vpop.f32.mrb[42].mxu0  ;;  %v28989_v50 = vpop.f32.mrb[44].mxu1 }
 0x56e   :  { %32704 = vst [vmem:[#allocation69_spill] sm:$0xff] %v28987_v60  ;;  %32705 = vst [vmem:[#allocation78_spill] sm:$0xff] %v28989_v50  ;;  %v24903_v36 = vpop.f32.mrb[43].mxu0  ;;  %v24928_v49 = vpop.f32.mrb[45].mxu1 }
 0x572   :  { %v28991_v31 = vpop.f32.mrb[44].mxu0  ;;  %v28993_v9 = vpop.f32.mrb[46].mxu1 }
 0x573   :  { %32706 = vst [vmem:[#allocation76_spill] sm:$0xff] %v28991_v31  ;;  %32707 = vst [vmem:[#allocation90_spill] sm:$0xff] %v28993_v9  ;;  %v24913_v10 = vpop.f32.mrb[45].mxu0  ;;  %v24938_v37 = vpop.f32.mrb[47].mxu1 }
 0x577   :  { %v28995_v54 = vpop.f32.mrb[46].mxu0  ;;  %v28997_v38 = vpop.f32.mrb[48].mxu1 }
 0x578   :  { %32708 = vst [vmem:[#allocation79_spill] sm:$0xff] %v28995_v54  ;;  %32709 = vst [vmem:[#allocation97_spill] sm:$0xff] %v28997_v38  ;;  %v24923_v2 = vpop.f32.mrb[47].mxu0  ;;  %v24948_v6 = vpop.f32.mrb[49].mxu1 }
 0x57b   :  { %v28999_v43 = vpop.f32.mrb[48].mxu0 }
 0x57c   :  { %32710 = vst [vmem:[#allocation86_spill] sm:$0xff] %v28999_v43  ;;  %v29001_v33 = vpop.f32.mrb[50].mxu1  ;;  %v24933_v23 = vpop.f32.mrb[49].mxu0 }
 0x57d   :  { %32711 = vst [vmem:[#allocation99_spill] sm:$0xff] %v29001_v33  ;;  %v24958_v63 = vpop.f32.mrb[51].mxu1 }
 0x580   :  { %v29003_v53 = vpop.f32.mrb[50].mxu0  ;;  %v29005_v61 = vpop.f32.mrb[52].mxu1 }
 0x581   :  { %32712 = vst [vmem:[#allocation109_spill] sm:$0xff] %v29003_v53  ;;  %32713 = vst [vmem:[#allocation111_spill] sm:$0xff] %v29005_v61  ;;  %v24943_v35 = vpop.f32.mrb[51].mxu0  ;;  %v24968_v57 = vpop.f32.mrb[53].mxu1 }
 0x584   :  { %v29007_v36 = vpop.f32.mrb[52].mxu0 }
 0x585   :  { %32714 = vst [vmem:[#allocation110_spill] sm:$0xff] %v29007_v36  ;;  %v29009_v49 = vpop.f32.mrb[54].mxu1  ;;  %v24953_v10 = vpop.f32.mrb[53].mxu0 }
 0x586   :  { %32715 = vst [vmem:[#allocation112_spill] sm:$0xff] %v29009_v49  ;;  %v24978_v37 = vpop.f32.mrb[55].mxu1 }
 0x589   :  { %v29011_v2 = vpop.f32.mrb[54].mxu0  ;;  %v29013_v6 = vpop.f32.mrb[56].mxu1 }
 0x58a   :  { %32716 = vst [vmem:[#allocation100_spill] sm:$0xff] %v29011_v2  ;;  %32717 = vst [vmem:[#allocation113_spill] sm:$0xff] %v29013_v6  ;;  %v24963_v38 = vpop.f32.mrb[55].mxu0  ;;  %v24988_v33 = vpop.f32.mrb[57].mxu1 }
 0x58d   :  { %v29015_v23 = vpop.f32.mrb[56].mxu0  ;;  %v29017_v63 = vpop.f32.mrb[58].mxu1 }
 0x58e   :  { %32718 = vst [vmem:[#allocation116_spill] sm:$0xff] %v29015_v23  ;;  %32719 = vst [vmem:[#allocation101_spill] sm:$0xff] %v29017_v63  ;;  %v24973_v9 = vpop.f32.mrb[57].mxu0  ;;  %v24998_v61 = vpop.f32.mrb[59].mxu1 }
 0x591   :  { %v29019_v35 = vpop.f32.mrb[58].mxu0 }
 0x592   :  { %32720 = vst [vmem:[#allocation103_spill] sm:$0xff] %v29019_v35  ;;  %v24983_v57 = vpop.f32.mrb[59].mxu0 }
 0x59b   :  { %v29021_v43 = vpop.f32.mrb[60].mxu0 }
 0x59c   :  { %32721 = vst [vmem:[#allocation118_spill] sm:$0xff] %v29021_v43  ;;  %v24993_v49 = vpop.f32.mrb[61].mxu0 }
 0x59f   :  { %v29023_v10 = vpop.f32.mrb[62].mxu0 }
 0x5a0   :  { %32722 = vst [vmem:[#allocation120_spill] sm:$0xff] %v29023_v10  ;;  %v25003_v37 = vpop.f32.mrb[63].mxu0 }
 0x5a3   :  { %v29025_v2 = vpop.f32.mrb[64].mxu0 }
 0x5a4   :  { %32723 = vst [vmem:[#allocation122_spill] sm:$0xff] %v29025_v2  ;;  %v25013_v6 = vpop.f32.mrb[65].mxu0 }
 0x5a7   :  { %v29027_v38 = vpop.f32.mrb[66].mxu0 }
 0x5a8   :  { %32724 = vst [vmem:[#allocation124_spill] sm:$0xff] %v29027_v38  ;;  %v25023_v33 = vpop.f32.mrb[67].mxu0 }
 0x5ab   :  { %v29029_v23 = vpop.f32.mrb[68].mxu0 }
 0x5ac   :  { %32725 = vst [vmem:[#allocation126_spill] sm:$0xff] %v29029_v23  ;;  %v25033_v63 = vpop.f32.mrb[69].mxu0 }
 0x5b2   :  { %v29031_v9 = vpop.f32.mrb[70].mxu0 }
 0x5b3   :  { %v25043_v61 = vpop.f32.mrb[71].mxu0  ;;  %v8838_v57 = vsel %vm3296_vm4, %v29031_v9, -inf }
 0x5b4   :  { %8839 = vmax.xlane.f32.xlu1 %v8838_v57 }
 0x5b6   :  { %v29035_v49 = vpop.f32.mrb[72].mxu0 }
 0x5b7   :  { %v25053_v43 = vpop.f32.mrb[73].mxu0  ;;  %v8844_v60 = vsel %vm3296_vm4, %v29035_v49, -inf }
 0x5ba   :  { %v29037_v37 = vpop.f32.mrb[74].mxu0 }
 0x5bb   :  { %v25063_v2 = vpop.f32.mrb[75].mxu0 }
 0x5be   :  { %v29039_v6 = vpop.f32.mrb[76].mxu0 }
 0x5bf   :  { %v25073_v38 = vpop.f32.mrb[77].mxu0 }
 0x5c2   :  { %v29041_v33 = vpop.f32.mrb[60].mxu1  ;;  %v29043_v23 = vpop.f32.mrb[78].mxu0 }
 0x5c3   :  { %32726 = vst [vmem:[#allocation128_spill] sm:$0xff] %v29041_v33  ;;  %v25008_v63 = vpop.f32.mrb[61].mxu1  ;;  %v25083_v10 = vpop.f32.mrb[79].mxu0 }
 0x5c6   :  { %v29045_v61 = vpop.f32.mrb[62].mxu1  ;;  %v29047_v35 = vpop.f32.mrb[80].mxu0 }
 0x5c7   :  { %32727 = vst [vmem:[#allocation130_spill] sm:$0xff] %v29045_v61  ;;  %v25018_v57 = vpop.f32.mrb[63].mxu1  ;;  %v25093_v50 = vpop.f32.mrb[81].mxu0 }
 0x5ca   :  { %v29049_v54 = vpop.f32.mrb[64].mxu1  ;;  %v29051_v43 = vpop.f32.mrb[82].mxu0 }
 0x5cb   :  { %32728 = vst [vmem:[#allocation132_spill] sm:$0xff] %v29049_v54  ;;  %v25028_v2 = vpop.f32.mrb[65].mxu1  ;;  %v25103_v58 = vpop.f32.mrb[83].mxu0 }
 0x5ce   :  { %v29053_v31 = vpop.f32.mrb[84].mxu0 }
 0x5cf   :  { %v25113_v38 = vpop.f32.mrb[85].mxu0 }
 0x5d1   :  { %v29055_v33 = vpop.f32.mrb[66].mxu1 }
 0x5d2   :  { %v25038_v16 = vpop.f32.mrb[67].mxu1  ;;  %v8835_v10 = vsel %vm3296_vm4, %v29055_v33, -inf  ;;  %v29059_v63 = vpop.f32.mrb[86].mxu0 }
 0x5d3   :  { %8836 = vmax.xlane.f32.xlu0 %v8835_v10  ;;  %v25123_v57 = vpop.f32.mrb[87].mxu0 }
 0x5d5   :  { %v29061_v50 = vpop.f32.mrb[68].mxu1 }
 0x5d6   :  { %v25048_v54 = vpop.f32.mrb[69].mxu1  ;;  %v8841_v2 = vsel %vm3296_vm4, %v29061_v50, -inf }
 0x5d7   :  { %8842 = vmax.xlane.f32.xlu0 %v8841_v2  ;;  %v29065_v58 = vpop.f32.mrb[88].mxu0 }
 0x5d8   :  { %v25133_v38 = vpop.f32.mrb[89].mxu0  ;;  %v8892_v14 = vsel %vm3296_vm4, %v29065_v58, -inf }
 0x5d9   :  { %v29067_v61 = vpop.f32.mrb[70].mxu1  ;;  %v8850_v38 = vsel %vm3296_vm4, %v29037_v37, -inf }
 0x5da   :  { %v25058_v16 = vpop.f32.mrb[71].mxu1  ;;  %v8847_v10 = vsel %vm3296_vm4, %v29067_v61, -inf }
 0x5db   :  { %8845 = vmax.xlane.f32.xlu0 %v8844_v60  ;;  %8848 = vmax.xlane.f32.xlu1 %v8847_v10  ;;  %v29073_v57 = vpop.f32.mrb[90].mxu0  ;;  %v8856_v10 = vsel %vm3296_vm4, %v29039_v6, -inf }
 0x5dc   :  { %v25143_v54 = vpop.f32.mrb[91].mxu0  ;;  %v8898_v26 = vsel %vm3296_vm4, %v29073_v57, -inf }
 0x5dd   :  { %v29075_v11 = vpop.f32.mrb[72].mxu1 }
 0x5de   :  { %v25068_v2 = vpop.f32.mrb[73].mxu1  ;;  %v8853_v16 = vsel %vm3296_vm4, %v29075_v11, -inf }
 0x5df   :  { %8851 = vmax.xlane.f32.xlu0 %v8850_v38  ;;  %8854 = vmax.xlane.f32.xlu1 %v8853_v16  ;;  %v29081_v1 = vpop.f32.mrb[92].mxu0 }
 0x5e0   :  { %v25153_v34 = vpop.f32.mrb[93].mxu0  ;;  %v8904_v27 = vsel %vm3296_vm4, %v29081_v1, -inf }
 0x5e1   :  { %v29083_v56 = vpop.f32.mrb[74].mxu1  ;;  %v8862_v34 = vsel %vm3296_vm4, %v29043_v23, -inf }
 0x5e2   :  { %v25078_v60 = vpop.f32.mrb[75].mxu1  ;;  %v8859_v54 = vsel %vm3296_vm4, %v29083_v56, -inf }
 0x5e3   :  { %8857 = vmax.xlane.f32.xlu0 %v8856_v10  ;;  %8860 = vmax.xlane.f32.xlu1 %v8859_v54  ;;  %v29089_v2 = vpop.f32.mrb[94].mxu0 }
 0x5e4   :  { %v25163_v30 = vpop.f32.mrb[95].mxu0  ;;  %v8910_v12 = vsel %vm3296_vm4, %v29089_v2, -inf }
 0x5e5   :  { %v29091_v36 = vpop.f32.mrb[76].mxu1  ;;  %v8868_v30 = vsel %vm3296_vm4, %v29047_v35, -inf }
 0x5e6   :  { %v25088_v38 = vpop.f32.mrb[77].mxu1  ;;  %v8865_v16 = vsel %vm3296_vm4, %v29091_v36, -inf }
 0x5e7   :  { %8863 = vmax.xlane.f32.xlu0 %v8862_v34  ;;  %8866 = vmax.xlane.f32.xlu1 %v8865_v16  ;;  %v29097_v60 = vpop.f32.mrb[96].mxu0 }
 0x5e8   :  { %v25173_v53 = vpop.f32.mrb[97].mxu0  ;;  %v8916_v41 = vsel %vm3296_vm4, %v29097_v60, -inf }
 0x5e9   :  { %v29099_v21 = vpop.f32.mrb[78].mxu1  ;;  %v8874_v53 = vsel %vm3296_vm4, %v29051_v43, -inf }
 0x5ea   :  { %v25098_v10 = vpop.f32.mrb[79].mxu1  ;;  %v8871_v54 = vsel %vm3296_vm4, %v29099_v21, -inf }
 0x5eb   :  { %8869 = vmax.xlane.f32.xlu0 %v8868_v30  ;;  %8872 = vmax.xlane.f32.xlu1 %v8871_v54  ;;  %v29105_v38 = vpop.f32.mrb[98].mxu0 }
 0x5ec   :  { %v25183_v51 = vpop.f32.mrb[99].mxu0  ;;  %v8922_v15 = vsel %vm3296_vm4, %v29105_v38, -inf }
 0x5ed   :  { %v29107_v55 = vpop.f32.mrb[80].mxu1  ;;  %v8880_v51 = vsel %vm3296_vm4, %v29053_v31, -inf }
 0x5ee   :  { %v25108_v34 = vpop.f32.mrb[81].mxu1  ;;  %v8877_v16 = vsel %vm3296_vm4, %v29107_v55, -inf }
 0x5ef   :  { %8875 = vmax.xlane.f32.xlu0 %v8874_v53  ;;  %8878 = vmax.xlane.f32.xlu1 %v8877_v16  ;;  %v29113_v10 = vpop.f32.mrb[100].mxu0  ;;  %v8886_v53 = vsel %vm3296_vm4, %v29059_v63, -inf }
 0x5f0   :  { %v25193_v8 = vpop.f32.mrb[101].mxu0 }
 0x5f1   :  { %v29115_v45 = vpop.f32.mrb[82].mxu1 }
 0x5f2   :  { %v25118_v30 = vpop.f32.mrb[83].mxu1  ;;  %v8883_v54 = vsel %vm3296_vm4, %v29115_v45, -inf }
 0x5f3   :  { %8881 = vmax.xlane.f32.xlu0 %v8880_v51  ;;  %8884 = vmax.xlane.f32.xlu1 %v8883_v54 }
 0x5f5   :  { %v29121_v34 = vpop.f32.mrb[84].mxu1 }
 0x5f6   :  { %v25128_v44 = vpop.f32.mrb[85].mxu1  ;;  %v8889_v8 = vsel %vm3296_vm4, %v29121_v34, -inf }
 0x5f7   :  { %8887 = vmax.xlane.f32.xlu0 %v8886_v53  ;;  %8890 = vmax.xlane.f32.xlu1 %v8889_v8 }
 0x5f9   :  { %v29127_v16 = vpop.f32.mrb[86].mxu1 }
 0x5fa   :  { %v25138_v30 = vpop.f32.mrb[87].mxu1  ;;  %v8895_v51 = vsel %vm3296_vm4, %v29127_v16, -inf }
 0x5fb   :  { %8893 = vmax.xlane.f32.xlu0 %v8892_v14  ;;  %8896 = vmax.xlane.f32.xlu1 %v8895_v51 }
 0x5fd   :  { %v29133_v44 = vpop.f32.mrb[88].mxu1 }
 0x5fe   :  { %v25148_v54 = vpop.f32.mrb[89].mxu1  ;;  %v8901_v53 = vsel %vm3296_vm4, %v29133_v44, -inf }
 0x5ff   :  { %8899 = vmax.xlane.f32.xlu0 %v8898_v26  ;;  %8902 = vmax.xlane.f32.xlu1 %v8901_v53 }
 0x601   :  { %v29139_v8 = vpop.f32.mrb[90].mxu1 }
 0x602   :  { %v25158_v30 = vpop.f32.mrb[91].mxu1  ;;  %v8907_v14 = vsel %vm3296_vm4, %v29139_v8, -inf }
 0x603   :  { %8905 = vmax.xlane.f32.xlu0 %v8904_v27  ;;  %8908 = vmax.xlane.f32.xlu1 %v8907_v14 }
 0x605   :  { %v29145_v51 = vpop.f32.mrb[92].mxu1 }
 0x606   :  { %v25168_v54 = vpop.f32.mrb[93].mxu1  ;;  %v8913_v26 = vsel %vm3296_vm4, %v29145_v51, -inf }
 0x607   :  { %8911 = vmax.xlane.f32.xlu0 %v8910_v12  ;;  %8914 = vmax.xlane.f32.xlu1 %v8913_v26  ;;  %v8928_v26 = vsel %vm3296_vm4, %v29113_v10, -inf }
 0x609   :  { %v29151_v53 = vpop.f32.mrb[94].mxu1 }
 0x60a   :  { %v25178_v30 = vpop.f32.mrb[95].mxu1  ;;  %v8919_v27 = vsel %vm3296_vm4, %v29151_v53, -inf }
 0x60b   :  { %8917 = vmax.xlane.f32.xlu0 %v8916_v41  ;;  %8920 = vmax.xlane.f32.xlu1 %v8919_v27  ;;  %v29165_v30 = vpop.permute.xlu1 %9341 }
 0x60d   :  { %v29157_v14 = vpop.f32.mrb[96].mxu1 }
 0x60e   :  { %v25188_v54 = vpop.f32.mrb[97].mxu1  ;;  %v8925_v12 = vsel %vm3296_vm4, %v29157_v14, -inf }
 0x60f   :  { %8923 = vmax.xlane.f32.xlu0 %v8922_v15  ;;  %8926 = vmax.xlane.f32.xlu1 %v8925_v12  ;;  %v29167_v32 = vpop.permute.xlu1 %9495  ;;  %v29181_v12 = vpop.permute.xlu0 %9572 }
 0x610   :  { %32734 = vst [vmem:[#allocation142_spill] sm:$0xff] %v29181_v12 }
 0x613   :  { %8929 = vmax.xlane.f32.xlu0 %v8928_v26  ;;  %v29169_v41 = vpop.permute.xlu1 %9649  ;;  %v29184_v42 = vpop.permute.xlu0 %9726 }
 0x614   :  { %32729 = vst [vmem:[#allocation134_spill] sm:$0xff] %v29169_v41  ;;  %32735 = vst [vmem:[#allocation144_spill] sm:$0xff] %v29184_v42 }
 0x617   :  { %v29171_v27 = vpop.permute.xlu1 %9803  ;;  %v29186_v29 = vpop.permute.xlu0 %9880 }
 0x618   :  { %32730 = vst [vmem:[#allocation136_spill] sm:$0xff] %v29171_v27  ;;  %32736 = vst [vmem:[#allocation115_spill] sm:$0xff] %v29186_v29 }
 0x61b   :  { %v29173_v54 = vpop.permute.xlu1 %9957 }
 0x61c   :  { %32731 = vst [vmem:[#allocation138_spill] sm:$0xff] %v29173_v54  ;;  %v29190_v54 = vpop.permute.xlu0 %10034 }
 0x61d   :  { %32737 = vst [vmem:[#allocation146_spill] sm:$0xff] %v29190_v54 }
 0x61f   :  { %v29175_v62 = vpop.permute.xlu1 %10111 }
 0x620   :  { %32732 = vst [vmem:[#allocation140_spill] sm:$0xff] %v29175_v62 }
 0x623   :  { %v29179_v15 = vpop.permute.xlu1 %10265 }
 0x624   :  { %32733 = vst [vmem:[#allocation114_spill] sm:$0xff] %v29179_v15  ;;  %v29194_v15 = vpop.permute.xlu0 %10188 }
 0x625   :  { %32738 = vst [vmem:[#allocation148_spill] sm:$0xff] %v29194_v15 }
 0x628   :  { %v29196_v27 = vpop.permute.xlu0 %10342 }
 0x629   :  { %32739 = vst [vmem:[#allocation150_spill] sm:$0xff] %v29196_v27 }
 0x641   :  { %v8840_v13 = vpop.xlane.xlu1 %8839 }
 0x642   :  { %v8932_v26 = vsub.f32 %v29031_v9, %v8840_v13 }
 0x644   :  { %v8965_v4 = vmul.f32 1.442695, %v8932_v26 }
 0x646   :  { %26206 = vpow2.f32 %v8965_v4 }
 0x650   :  { %v29188_v22 = vpop.eup %26206 }
 0x651   :  { %v9030_v62 = vsel %vm3296_vm4, %v29188_v22, 0.0 }
 0x652   :  { %9031 = vadd.xlane.f32.xlu0 %v9030_v62 }
 0x660   :  { %v8837_v0 = vpop.xlane.xlu0 %8836 }
 0x661   :  { %v8931_v13 = vsub.f32 %v29055_v33, %v8837_v0 }
 0x663   :  { %v8963_v9 = vmul.f32 1.442695, %v8931_v13 }
 0x664   :  { %v8843_v26 = vpop.xlane.xlu0 %8842 }
 0x665   :  { %26208 = vpow2.f32 %v8963_v9  ;;  %v8933_v4 = vsub.f32 %v29061_v50, %v8843_v26 }
 0x667   :  { %v8967_v29 = vmul.f32 1.442695, %v8933_v4 }
 0x668   :  { %v8846_v42 = vpop.xlane.xlu0 %8845  ;;  %v8849_v3 = vpop.xlane.xlu1 %8848 }
 0x669   :  { %26210 = vpow2.f32 %v8967_v29  ;;  %v8934_v54 = vsub.f32 %v29035_v49, %v8846_v42  ;;  %v8935_v62 = vsub.f32 %v29067_v61, %v8849_v3 }
 0x66b   :  { %v8969_v41 = vmul.f32 1.442695, %v8934_v54  ;;  %v8971_v15 = vmul.f32 1.442695, %v8935_v62 }
 0x66c   :  { %v8852_v12 = vpop.xlane.xlu0 %8851  ;;  %v8855_v27 = vpop.xlane.xlu1 %8854 }
 0x66d   :  { %26212 = vpow2.f32 %v8969_v41  ;;  %v8936_v0 = vsub.f32 %v29037_v37, %v8852_v12  ;;  %v8937_v33 = vsub.f32 %v29075_v11, %v8855_v27 }
 0x66e   :  { %26214 = vpow2.f32 %v8971_v15 }
 0x66f   :  { %v29204_v13 = vpop.eup %26208  ;;  %v8973_v50 = vmul.f32 1.442695, %v8936_v0  ;;  %v8975_v9 = vmul.f32 1.442695, %v8937_v33 }
 0x670   :  { %v8858_v26 = vpop.xlane.xlu0 %8857  ;;  %v8861_v29 = vpop.xlane.xlu1 %8860  ;;  %v9027_v42 = vsel %vm3296_vm4, %v29204_v13, 0.0 }
 0x671   :  { %26216 = vpow2.f32 %v8973_v50  ;;  %v8938_v3 = vsub.f32 %v29039_v6, %v8858_v26  ;;  %v8939_v49 = vsub.f32 %v29083_v56, %v8861_v29  ;;  %9028 = vadd.xlane.f32.xlu1 %v9027_v42 }
 0x672   :  { %26218 = vpow2.f32 %v8975_v9 }
 0x673   :  { %v29210_v37 = vpop.eup %26210  ;;  %v8977_v11 = vmul.f32 1.442695, %v8938_v3  ;;  %v8979_v61 = vmul.f32 1.442695, %v8939_v49 }
 0x674   :  { %v8864_v41 = vpop.xlane.xlu0 %8863  ;;  %v8867_v27 = vpop.xlane.xlu1 %8866  ;;  %v9033_v54 = vsel %vm3296_vm4, %v29210_v37, 0.0 }
 0x675   :  { %26220 = vpow2.f32 %v8977_v11  ;;  %v8940_v15 = vsub.f32 %v29043_v23, %v8864_v41  ;;  %v8941_v12 = vsub.f32 %v29091_v36, %v8867_v27  ;;  %9034 = vadd.xlane.f32.xlu1 %v9033_v54 }
 0x676   :  { %26222 = vpow2.f32 %v8979_v61 }
 0x677   :  { %v29216_v6 = vpop.eup %26212  ;;  %v8981_v56 = vmul.f32 1.442695, %v8940_v15  ;;  %v8983_v4 = vmul.f32 1.442695, %v8941_v12 }
 0x678   :  { %v29218_v62 = vpop.eup %26214  ;;  %v8870_v0 = vpop.xlane.xlu0 %8869  ;;  %v9036_v50 = vsel %vm3296_vm4, %v29216_v6, 0.0 }
 0x679   :  { %v8873_v33 = vpop.xlane.xlu1 %8872  ;;  %26224 = vpow2.f32 %v8981_v56  ;;  %v8942_v9 = vsub.f32 %v29047_v35, %v8870_v0  ;;  %9037 = vadd.xlane.f32.xlu0 %v9036_v50  ;;  %v9039_v36 = vsel %vm3296_vm4, %v29218_v62, 0.0 }
 0x67a   :  { %v8943_v23 = vsub.f32 %v29099_v21, %v8873_v33  ;;  %26226 = vpow2.f32 %v8983_v4  ;;  %9040 = vadd.xlane.f32.xlu1 %v9039_v36 }
 0x67b   :  { %v29226_v26 = vpop.eup %26216  ;;  %v8985_v29 = vmul.f32 1.442695, %v8942_v9 }
 0x67c   :  { %v8987_v42 = vmul.f32 1.442695, %v8943_v23  ;;  %v29228_v3 = vpop.eup %26218  ;;  %v8876_v49 = vpop.xlane.xlu0 %8875  ;;  %v9042_v61 = vsel %vm3296_vm4, %v29226_v26, 0.0 }
 0x67d   :  { %v8879_v11 = vpop.xlane.xlu1 %8878  ;;  %26228 = vpow2.f32 %v8985_v29  ;;  %v8944_v21 = vsub.f32 %v29051_v43, %v8876_v49  ;;  %9043 = vadd.xlane.f32.xlu0 %v9042_v61  ;;  %v9045_v41 = vsel %vm3296_vm4, %v29228_v3, 0.0 }
 0x67e   :  { %v8945_v35 = vsub.f32 %v29107_v55, %v8879_v11  ;;  %26230 = vpow2.f32 %v8987_v42  ;;  %9046 = vadd.xlane.f32.xlu1 %v9045_v41 }
 0x67f   :  { %v29236_v27 = vpop.eup %26220  ;;  %v8989_v54 = vmul.f32 1.442695, %v8944_v21 }
 0x680   :  { %v8991_v15 = vmul.f32 1.442695, %v8945_v35  ;;  %v29238_v12 = vpop.eup %26222  ;;  %v8882_v56 = vpop.xlane.xlu0 %8881  ;;  %v9048_v0 = vsel %vm3296_vm4, %v29236_v27, 0.0 }
 0x681   :  { %v8885_v4 = vpop.xlane.xlu1 %8884  ;;  %26232 = vpow2.f32 %v8989_v54  ;;  %v8946_v55 = vsub.f32 %v29053_v31, %v8882_v56  ;;  %9049 = vadd.xlane.f32.xlu0 %v9048_v0  ;;  %v9051_v33 = vsel %vm3296_vm4, %v29238_v12, 0.0 }
 0x682   :  { %v8947_v43 = vsub.f32 %v29115_v45, %v8885_v4  ;;  %26234 = vpow2.f32 %v8991_v15  ;;  %9052 = vadd.xlane.f32.xlu1 %v9051_v33 }
 0x683   :  { %v29246_v50 = vpop.eup %26224  ;;  %v8993_v9 = vmul.f32 1.442695, %v8946_v55 }
 0x684   :  { %v8995_v23 = vmul.f32 1.442695, %v8947_v43  ;;  %v29248_v36 = vpop.eup %26226  ;;  %v8888_v29 = vpop.xlane.xlu0 %8887  ;;  %v9054_v49 = vsel %vm3296_vm4, %v29246_v50, 0.0 }
 0x685   :  { %v8891_v42 = vpop.xlane.xlu1 %8890  ;;  %26236 = vpow2.f32 %v8993_v9  ;;  %v8948_v45 = vsub.f32 %v29059_v63, %v8888_v29  ;;  %9055 = vadd.xlane.f32.xlu0 %v9054_v49  ;;  %v9057_v11 = vsel %vm3296_vm4, %v29248_v36, 0.0 }
 0x686   :  { %v8949_v31 = vsub.f32 %v29121_v34, %v8891_v42  ;;  %26238 = vpow2.f32 %v8995_v23  ;;  %9058 = vadd.xlane.f32.xlu1 %v9057_v11 }
 0x687   :  { %v29256_v61 = vpop.eup %26228  ;;  %v8997_v21 = vmul.f32 1.442695, %v8948_v45 }
 0x688   :  { %v8999_v35 = vmul.f32 1.442695, %v8949_v31  ;;  %v29258_v41 = vpop.eup %26230  ;;  %v8894_v54 = vpop.xlane.xlu0 %8893  ;;  %v9060_v56 = vsel %vm3296_vm4, %v29256_v61, 0.0 }
 0x689   :  { %v8897_v15 = vpop.xlane.xlu1 %8896  ;;  %26240 = vpow2.f32 %v8997_v21  ;;  %v8950_v63 = vsub.f32 %v29065_v58, %v8894_v54  ;;  %9061 = vadd.xlane.f32.xlu0 %v9060_v56  ;;  %v9063_v4 = vsel %vm3296_vm4, %v29258_v41, 0.0 }
 0x68a   :  { %v8951_v34 = vsub.f32 %v29127_v16, %v8897_v15  ;;  %26242 = vpow2.f32 %v8999_v35  ;;  %9064 = vadd.xlane.f32.xlu1 %v9063_v4 }
 0x68b   :  { %v29266_v0 = vpop.eup %26232  ;;  %v9001_v55 = vmul.f32 1.442695, %v8950_v63 }
 0x68c   :  { %v9003_v43 = vmul.f32 1.442695, %v8951_v34  ;;  %v29268_v33 = vpop.eup %26234  ;;  %v8900_v9 = vpop.xlane.xlu0 %8899  ;;  %v9066_v29 = vsel %vm3296_vm4, %v29266_v0, 0.0 }
 0x68d   :  { %v8903_v23 = vpop.xlane.xlu1 %8902  ;;  %26244 = vpow2.f32 %v9001_v55  ;;  %v8952_v58 = vsub.f32 %v29073_v57, %v8900_v9  ;;  %9067 = vadd.xlane.f32.xlu0 %v9066_v29  ;;  %v9069_v42 = vsel %vm3296_vm4, %v29268_v33, 0.0 }
 0x68e   :  { %v8953_v16 = vsub.f32 %v29133_v44, %v8903_v23  ;;  %26246 = vpow2.f32 %v9003_v43  ;;  %9070 = vadd.xlane.f32.xlu1 %v9069_v42 }
 0x68f   :  { %v29276_v49 = vpop.eup %26236  ;;  %v9005_v45 = vmul.f32 1.442695, %v8952_v58 }
 0x690   :  { %v9007_v31 = vmul.f32 1.442695, %v8953_v16  ;;  %v29278_v11 = vpop.eup %26238  ;;  %v8906_v21 = vpop.xlane.xlu0 %8905  ;;  %v9072_v54 = vsel %vm3296_vm4, %v29276_v49, 0.0 }
 0x691   :  { %v8909_v35 = vpop.xlane.xlu1 %8908  ;;  %26248 = vpow2.f32 %v9005_v45  ;;  %v8954_v57 = vsub.f32 %v29081_v1, %v8906_v21  ;;  %9073 = vadd.xlane.f32.xlu0 %v9072_v54  ;;  %v9075_v15 = vsel %vm3296_vm4, %v29278_v11, 0.0 }
 0x692   :  { %v8955_v44 = vsub.f32 %v29139_v8, %v8909_v35  ;;  %26250 = vpow2.f32 %v9007_v31  ;;  %9076 = vadd.xlane.f32.xlu1 %v9075_v15 }
 0x693   :  { %v29286_v56 = vpop.eup %26240  ;;  %v9009_v63 = vmul.f32 1.442695, %v8954_v57 }
 0x694   :  { %v9011_v34 = vmul.f32 1.442695, %v8955_v44  ;;  %v29288_v4 = vpop.eup %26242  ;;  %v8912_v55 = vpop.xlane.xlu0 %8911  ;;  %v9078_v9 = vsel %vm3296_vm4, %v29286_v56, 0.0 }
 0x695   :  { %v8915_v43 = vpop.xlane.xlu1 %8914  ;;  %26252 = vpow2.f32 %v9009_v63  ;;  %v8956_v1 = vsub.f32 %v29089_v2, %v8912_v55  ;;  %9079 = vadd.xlane.f32.xlu0 %v9078_v9  ;;  %v9081_v23 = vsel %vm3296_vm4, %v29288_v4, 0.0 }
 0x696   :  { %v8957_v8 = vsub.f32 %v29145_v51, %v8915_v43  ;;  %26254 = vpow2.f32 %v9011_v34  ;;  %9082 = vadd.xlane.f32.xlu1 %v9081_v23 }
 0x697   :  { %v29296_v29 = vpop.eup %26244  ;;  %v9013_v58 = vmul.f32 1.442695, %v8956_v1 }
 0x698   :  { %v9015_v16 = vmul.f32 1.442695, %v8957_v8  ;;  %v29298_v42 = vpop.eup %26246  ;;  %v8918_v45 = vpop.xlane.xlu0 %8917  ;;  %v9084_v21 = vsel %vm3296_vm4, %v29296_v29, 0.0 }
 0x699   :  { %v8921_v31 = vpop.xlane.xlu1 %8920  ;;  %26256 = vpow2.f32 %v9013_v58  ;;  %v8958_v2 = vsub.f32 %v29097_v60, %v8918_v45  ;;  %9085 = vadd.xlane.f32.xlu0 %v9084_v21  ;;  %v9087_v35 = vsel %vm3296_vm4, %v29298_v42, 0.0 }
 0x69a   :  { %v8959_v51 = vsub.f32 %v29151_v53, %v8921_v31  ;;  %26258 = vpow2.f32 %v9015_v16  ;;  %9088 = vadd.xlane.f32.xlu1 %v9087_v35 }
 0x69b   :  { %v29306_v54 = vpop.eup %26248  ;;  %v9017_v57 = vmul.f32 1.442695, %v8958_v2 }
 0x69c   :  { %v9019_v44 = vmul.f32 1.442695, %v8959_v51  ;;  %v29308_v15 = vpop.eup %26250  ;;  %v8924_v63 = vpop.xlane.xlu0 %8923  ;;  %v9090_v34 = vsel %vm3296_vm4, %v29306_v54, 0.0 }
 0x69d   :  { %26260 = vpow2.f32 %v9017_v57  ;;  %v8960_v60 = vsub.f32 %v29105_v38, %v8924_v63  ;;  %9091 = vadd.xlane.f32.xlu0 %v9090_v34  ;;  %v9093_v53 = vsel %vm3296_vm4, %v29308_v15, 0.0  ;;  %v32740_v57 = vld [vmem:[#allocation49_spill] sm:$0xff]  ;;  %v8927_v63 = vpop.xlane.xlu1 %8926 }
 0x69e   :  { %26262 = vpow2.f32 %v9019_v44  ;;  %9094 = vadd.xlane.f32.xlu1 %v9093_v53  ;;  %v32741_v44 = vld [vmem:[#allocation52_spill] sm:$0xff]  ;;  %v8961_v34 = vsub.f32 %v29157_v14, %v8927_v63 }
 0x69f   :  { %v29315_v55 = vpop.eup %26252  ;;  %v9021_v43 = vmul.f32 1.442695, %v8960_v60 }
 0x6a0   :  { %v29317_v9 = vpop.eup %26254  ;;  %v9096_v1 = vsel %vm3296_vm4, %v29315_v55, 0.0  ;;  %v8930_v60 = vpop.xlane.xlu0 %8929 }
 0x6a1   :  { %26264 = vpow2.f32 %v9021_v43  ;;  %9097 = vadd.xlane.f32.xlu0 %v9096_v1  ;;  %v9099_v8 = vsel %vm3296_vm4, %v29317_v9, 0.0  ;;  %v8962_v53 = vsub.f32 %v29113_v10, %v8930_v60  ;;  %v9023_v43 = vmul.f32 1.442695, %v8961_v34 }
 0x6a2   :  { %9100 = vadd.xlane.f32.xlu1 %v9099_v8 }
 0x6a3   :  { %v29323_v38 = vpop.eup %26256  ;;  %v9025_v1 = vmul.f32 1.442695, %v8962_v53  ;;  %26266 = vpow2.f32 %v9023_v43 }
 0x6a4   :  { %v29325_v23 = vpop.eup %26258  ;;  %v9102_v58 = vsel %vm3296_vm4, %v29323_v38, 0.0 }
 0x6a5   :  { %9103 = vadd.xlane.f32.xlu0 %v9102_v58  ;;  %v9105_v16 = vsel %vm3296_vm4, %v29325_v23, 0.0  ;;  %26268 = vpow2.f32 %v9025_v1 }
 0x6a6   :  { %9106 = vadd.xlane.f32.xlu1 %v9105_v16 }
 0x6a7   :  { %v29331_v45 = vpop.eup %26260 }
 0x6a8   :  { %v29333_v31 = vpop.eup %26262  ;;  %v9108_v21 = vsel %vm3296_vm4, %v29331_v45, 0.0 }
 0x6a9   :  { %9109 = vadd.xlane.f32.xlu0 %v9108_v21  ;;  %v9111_v2 = vsel %vm3296_vm4, %v29333_v31, 0.0 }
 0x6aa   :  { %9112 = vadd.xlane.f32.xlu1 %v9111_v2 }
 0x6ab   :  { %v29339_v51 = vpop.eup %26264 }
 0x6ac   :  { %v9114_v35 = vsel %vm3296_vm4, %v29339_v51, 0.0 }
 0x6ad   :  { %9115 = vadd.xlane.f32.xlu0 %v9114_v35  ;;  %v29349_v8 = vpop.eup %26266  ;;  %v32742_v35 = vld [vmem:[#allocation57_spill] sm:$0xff] }
 0x6ae   :  { %v9117_v16 = vsel %vm3296_vm4, %v29349_v8, 0.0 }
 0x6af   :  { %v29351_v58 = vpop.eup %26268 }
 0x6b0   :  { %v9120_v14 = vsel %vm3296_vm4, %v29351_v58, 0.0 }
 0x6bb   :  { %10419 = vrot.lane.b32.xlu1 %v32740_v57, %s26971_s28 }
 0x6c3   :  { %10496 = vrot.lane.b32.xlu0 %v32741_v44, %s26971_s28 }
 0x6df   :  { %9118 = vadd.xlane.f32.xlu1 %v9117_v16  ;;  %v9032_v21 = vpop.xlane.xlu0 %9031 }
 0x6e0   :  { %26270 = vrcp.f32 %v9032_v21 }
 0x6e2   :  { %9121 = vadd.xlane.f32.xlu0 %v9120_v14 }
 0x6ea   :  { %v26271_v2 = vpop.eup %26270 }
 0x6eb   :  { %v9156_v10 = vmul.f32 %v26271_v2, %v29188_v22  ;;  %v32743_v22 = vld [vmem:[#allocation58_spill] sm:$0xff] }
 0x6ed   :  { %25202 = vmatmul.mubr.msk.f32.vlgmr.msra.gmra.mrb[102].mxu0 %vm3651_vm5, %v9156_v10 }
 0x6ee   :  { %25210 = vmatpush3.msk.msra.mxu0 %vm3655_vm3, %v29177_v20  ;;  %25211 = vmatprep.mubr.msk.f32.mxu0 %vm26967_vm1, %v32512_v25 }
 0x6ef   :  { %25219 = vmatprep.subr.mxu0 %v32512_v25 }
 0x6f0   :  { %10573 = vrot.lane.b32.xlu1 %v32742_v35, %s26971_s28 }
 0x6f4   :  { %10727 = vrot.lane.b32.xlu1 %v27467_v46, %s26971_s28 }
 0x6f8   :  { %10804 = vrot.lane.b32.xlu1 %v27474_v47, %s26971_s28  ;;  %10650 = vrot.lane.b32.xlu0 %v32743_v22, %s26971_s28 }
 0x6fc   :  { %10958 = vrot.lane.b32.xlu1 %v27515_v59, %s26971_s28  ;;  %10881 = vrot.lane.b32.xlu0 %v27485_v52, %s26971_s28 }
 0x6fe   :  { %v9029_v20 = vpop.xlane.xlu1 %9028 }
 0x6ff   :  { %26272 = vrcp.f32 %v9029_v20 }
 0x700   :  { %11112 = vrot.lane.b32.xlu1 %v32596_v18, %s26971_s28  ;;  %11035 = vrot.lane.b32.xlu0 %v27403_v5, %s26971_s28 }
 0x702   :  { %v9035_v63 = vpop.xlane.xlu1 %9034 }
 0x703   :  { %26274 = vrcp.f32 %v9035_v63 }
 0x704   :  { %11266 = vrot.lane.b32.xlu1 %v32602_v39, %s26971_s28  ;;  %11189 = vrot.lane.b32.xlu0 %v27429_v19, %s26971_s28 }
 0x706   :  { %v9038_v34 = vpop.xlane.xlu0 %9037 }
 0x707   :  { %26276 = vrcp.f32 %v9038_v34  ;;  %v9041_v60 = vpop.xlane.xlu1 %9040 }
 0x708   :  { %26278 = vrcp.f32 %v9041_v60  ;;  %11420 = vrot.lane.b32.xlu1 %v32608_v17, %s26971_s28  ;;  %11343 = vrot.lane.b32.xlu0 %v27440_v24, %s26971_s28  ;;  %v32744_v60 = vld [vmem:[#allocation70_spill] sm:$0xff] }
 0x709   :  { %v26273_v53 = vpop.eup %26272 }
 0x70a   :  { %v9044_v43 = vpop.xlane.xlu0 %9043  ;;  %v9155_v1 = vmul.f32 %v26273_v53, %v29204_v13  ;;  %v32745_v53 = vld [vmem:[#allocation67_spill] sm:$0xff] }
 0x70b   :  { %26280 = vrcp.f32 %v9044_v43  ;;  %v9047_v16 = vpop.xlane.xlu1 %9046  ;;  %v32746_v43 = vld [vmem:[#allocation142_spill] sm:$0xff] }
 0x70c   :  { %26282 = vrcp.f32 %v9047_v16  ;;  %11574 = vrot.lane.b32.xlu1 %v32614_v7, %s26971_s28  ;;  %11497 = vrot.lane.b32.xlu0 %v32601_v48, %s26971_s28 }
 0x70d   :  { %v26275_v21 = vpop.eup %26274  ;;  %25197 = vmatmul.mubr.msk.f32.vlgmr.msra.gmra.mrb[98].mxu1 %vm3651_vm5, %v9155_v1  ;;  %v32747_v1 = vld [vmem:[#allocation134_spill] sm:$0xff] }
 0x70e   :  { %25205 = vmatpush3.msk.msra.mxu1 %vm3655_vm3, %v29165_v30  ;;  %v9050_v14 = vpop.xlane.xlu0 %9049  ;;  %25206 = vmatprep.mubr.msk.f32.mxu1 %vm26967_vm1, %v32512_v25  ;;  %v9157_v13 = vmul.f32 %v26275_v21, %v29210_v37 }
 0x70f   :  { %26284 = vrcp.f32 %v9050_v14  ;;  %v9053_v2 = vpop.xlane.xlu1 %9052  ;;  %25214 = vmatprep.subr.mxu1 %v32512_v25 }
 0x710   :  { %26286 = vrcp.f32 %v9053_v2  ;;  %11731 = vrot.lane.b32.xlu1 %v32607_v28, %s26972_s15  ;;  %11653 = vrot.lane.b32.xlu0 %v32621_v40, %s26972_s15 }
 0x711   :  { %v26277_v10 = vpop.eup %26276  ;;  %25207 = vmatmul.mubr.msk.f32.vlgmr.msra.gmra.mrb[100].mxu1 %vm3651_vm5, %v9157_v13  ;;  %v32748_v13 = vld [vmem:[#allocation44_spill] sm:$0xff] }
 0x712   :  { %v26279_v30 = vpop.eup %26278  ;;  %25215 = vmatpush3.msk.msra.mxu1 %vm3655_vm3, %v29167_v32  ;;  %v9056_v37 = vpop.xlane.xlu0 %9055  ;;  %25216 = vmatprep.mubr.msk.f32.mxu1 %vm26967_vm1, %v32512_v25  ;;  %v9158_v20 = vmul.f32 %v26277_v10, %v29216_v6 }
 0x713   :  { %26288 = vrcp.f32 %v9056_v37  ;;  %v9059_v63 = vpop.xlane.xlu1 %9058  ;;  %25224 = vmatprep.subr.mxu1 %v32512_v25  ;;  %v9159_v34 = vmul.f32 %v26279_v30, %v29218_v62  ;;  %v32751_v37 = vld [vmem:[#allocation136_spill] sm:$0xff] }
 0x714   :  { %26290 = vrcp.f32 %v9059_v63  ;;  %11729 = vrot.lane.b32.xlu1 %v32744_v60, %s26973_s9  ;;  %11651 = vrot.lane.b32.xlu0 %v32745_v53, %s26973_s9 }
 0x715   :  { %v26281_v32 = vpop.eup %26280  ;;  %25212 = vmatmul.mubr.msk.f32.vlgmr.msra.gmra.mrb[104].mxu0 %vm3651_vm5, %v9158_v20  ;;  %25217 = vmatmul.mubr.msk.f32.vlgmr.msra.gmra.mrb[102].mxu1 %vm3651_vm5, %v9159_v34 }
 0x716   :  { %v26283_v6 = vpop.eup %26282  ;;  %25220 = vmatpush3.msk.msra.mxu0 %vm3655_vm3, %v32746_v43  ;;  %25225 = vmatpush3.msk.msra.mxu1 %vm3655_vm3, %v32747_v1  ;;  %v9062_v62 = vpop.xlane.xlu0 %9061  ;;  %v9160_v16 = vmul.f32 %v26281_v32, %v29226_v26  ;;  %v32749_v26 = vld [vmem:[#allocation38_spill] sm:$0xff] }
 0x717   :  { %26292 = vrcp.f32 %v9062_v62  ;;  %v9065_v21 = vpop.xlane.xlu1 %9064  ;;  %25221 = vmatprep.mubr.msk.f32.mxu0 %vm26967_vm1, %v32512_v25  ;;  %25229 = vmatprep.subr.mxu0 %v32512_v25  ;;  %v9161_v14 = vmul.f32 %v26283_v6, %v29228_v3  ;;  %v32750_v3 = vld [vmem:[#allocation144_spill] sm:$0xff]  ;;  %v32752_v6 = vld [vmem:[#allocation73_spill] sm:$0xff]  ;;  %v32754_v62 = vld [vmem:[#allocation115_spill] sm:$0xff] }
 0x718   :  { %26294 = vrcp.f32 %v9065_v21  ;;  %11887 = vrot.lane.b32.xlu1 %v32748_v13, %s26972_s15  ;;  %25226 = vmatprep.mubr.msk.f32.mxu1 %vm26967_vm1, %v32512_v25 }
 0x719   :  { %v26285_v2 = vpop.eup %26284  ;;  %25234 = vmatprep.subr.mxu1 %v32512_v25  ;;  %11809 = vrot.lane.b32.xlu0 %v32749_v26, %s26972_s15 }
 0x71a   :  { %v26287_v10 = vpop.eup %26286  ;;  %25222 = vmatmul.mubr.msk.f32.vlgmr.msra.gmra.mrb[106].mxu0 %vm3651_vm5, %v9160_v16  ;;  %25227 = vmatmul.mubr.msk.f32.vlgmr.msra.gmra.mrb[104].mxu1 %vm3651_vm5, %v9161_v14  ;;  %v9068_v30 = vpop.xlane.xlu0 %9067  ;;  %v9162_v63 = vmul.f32 %v26285_v2, %v29236_v27  ;;  %v32753_v27 = vld [vmem:[#allocation71_spill] sm:$0xff]  ;;  %v32755_v16 = vld [vmem:[#allocation138_spill] sm:$0xff] }
 0x71b   :  { %25230 = vmatpush3.msk.msra.mxu0 %vm3655_vm3, %v32750_v3  ;;  %25235 = vmatpush3.msk.msra.mxu1 %vm3655_vm3, %v32751_v37  ;;  %v9071_v20 = vpop.xlane.xlu1 %9070  ;;  %v9163_v34 = vmul.f32 %v26287_v10, %v29238_v12  ;;  %26296 = vrcp.f32 %v9068_v30  ;;  %v32756_v30 = vld [vmem:[#allocation46_spill] sm:$0xff] }
 0x71c   :  { %25231 = vmatprep.mubr.msk.f32.mxu0 %vm26967_vm1, %v32512_v25  ;;  %25239 = vmatprep.subr.mxu0 %v32512_v25  ;;  %26298 = vrcp.f32 %v9071_v20  ;;  %v32758_v37 = vld [vmem:[#allocation146_spill] sm:$0xff]  ;;  %v32759_v20 = vld [vmem:[#allocation140_spill] sm:$0xff] }
 0x71d   :  { %v26289_v32 = vpop.eup %26288  ;;  %11885 = vrot.lane.b32.xlu1 %v32752_v6, %s26973_s9  ;;  %25236 = vmatprep.mubr.msk.f32.mxu1 %vm26967_vm1, %v32512_v25  ;;  %v32774_v6 = vld [vmem:[#allocation36_spill] sm:$0xff] }
 0x71e   :  { %v26291_v43 = vpop.eup %26290  ;;  %25244 = vmatprep.subr.mxu1 %v32512_v25  ;;  %11807 = vrot.lane.b32.xlu0 %v32753_v27, %s26973_s9  ;;  %v9074_v12 = vpop.xlane.xlu0 %9073  ;;  %v9164_v21 = vmul.f32 %v26289_v32, %v29246_v50  ;;  %v32757_v50 = vld [vmem:[#allocation40_spill] sm:$0xff] }
 0x71f   :  { %25232 = vmatmul.mubr.msk.f32.vlgmr.msra.gmra.mrb[108].mxu0 %vm3651_vm5, %v9162_v63  ;;  %25237 = vmatmul.mubr.msk.f32.vlgmr.msra.gmra.mrb[106].mxu1 %vm3651_vm5, %v9163_v34  ;;  %v9077_v1 = vpop.xlane.xlu1 %9076  ;;  %26300 = vrcp.f32 %v9074_v12  ;;  %v9165_v14 = vmul.f32 %v26291_v43, %v29248_v36 }
 0x720   :  { %25240 = vmatpush3.msk.msra.mxu0 %vm3655_vm3, %v32754_v62  ;;  %25245 = vmatpush3.msk.msra.mxu1 %vm3655_vm3, %v32755_v16  ;;  %v32760_v62 = vld [vmem:[#allocation75_spill] sm:$0xff]  ;;  %26302 = vrcp.f32 %v9077_v1 }
 0x721   :  { %v26293_v2 = vpop.eup %26292  ;;  %25241 = vmatprep.mubr.msk.f32.mxu0 %vm26967_vm1, %v32512_v25  ;;  %25249 = vmatprep.subr.mxu0 %v32512_v25 }
 0x722   :  { %v26295_v10 = vpop.eup %26294  ;;  %12043 = vrot.lane.b32.xlu1 %v32756_v30, %s26972_s15  ;;  %25246 = vmatprep.mubr.msk.f32.mxu1 %vm26967_vm1, %v32512_v25  ;;  %v9080_v3 = vpop.xlane.xlu0 %9079  ;;  %v9166_v63 = vmul.f32 %v26293_v2, %v29256_v61  ;;  %v32761_v61 = vld [vmem:[#allocation74_spill] sm:$0xff] }
 0x723   :  { %25254 = vmatprep.subr.mxu1 %v32512_v25  ;;  %11965 = vrot.lane.b32.xlu0 %v32757_v50, %s26972_s15  ;;  %v29470_v36 = vpop.xlane.xlu1 %9082  ;;  %v9167_v34 = vmul.f32 %v26295_v10, %v29258_v41  ;;  %v32763_v2 = vld [vmem:[#allocation114_spill] sm:$0xff]  ;;  %26304 = vrcp.f32 %v9080_v3 }
 0x724   :  { %25242 = vmatmul.mubr.msk.f32.vlgmr.msra.gmra.mrb[110].mxu0 %vm3651_vm5, %v9164_v21  ;;  %25247 = vmatmul.mubr.msk.f32.vlgmr.msra.gmra.mrb[108].mxu1 %vm3651_vm5, %v9165_v14  ;;  %v32762_v14 = vld [vmem:[#allocation148_spill] sm:$0xff]  ;;  %26306 = vrcp.f32 %v29470_v36 }
 0x725   :  { %25250 = vmatpush3.msk.msra.mxu0 %vm3655_vm3, %v32758_v37  ;;  %25255 = vmatpush3.msk.msra.mxu1 %vm3655_vm3, %v32759_v20  ;;  %v26297_v32 = vpop.eup %26296 }
 0x726   :  { %25251 = vmatprep.mubr.msk.f32.mxu0 %vm26967_vm1, %v32512_v25  ;;  %25259 = vmatprep.subr.mxu0 %v32512_v25  ;;  %v29483_v43 = vpop.xlane.xlu0 %9085  ;;  %v26299_v12 = vpop.eup %26298  ;;  %v9168_v41 = vmul.f32 %v26297_v32, %v29266_v0  ;;  %v32764_v0 = vld [vmem:[#allocation48_spill] sm:$0xff] }
 0x727   :  { %12041 = vrot.lane.b32.xlu1 %v32760_v62, %s26973_s9  ;;  %25256 = vmatprep.mubr.msk.f32.mxu1 %vm26967_vm1, %v32512_v25  ;;  %v29489_v16 = vpop.xlane.xlu1 %9088  ;;  %v9169_v10 = vmul.f32 %v26299_v12, %v29268_v33  ;;  %v32773_v62 = vld [vmem:[#allocation41_spill] sm:$0xff]  ;;  %26308 = vrcp.f32 %v29483_v43 }
 0x728   :  { %25264 = vmatprep.subr.mxu1 %v32512_v25  ;;  %11963 = vrot.lane.b32.xlu0 %v32761_v61, %s26973_s9  ;;  %26310 = vrcp.f32 %v29489_v16 }
 0x729   :  { %25252 = vmatmul.mubr.msk.f32.vlgmr.msra.gmra.mrb[112].mxu0 %vm3651_vm5, %v9166_v63  ;;  %25257 = vmatmul.mubr.msk.f32.vlgmr.msra.gmra.mrb[110].mxu1 %vm3651_vm5, %v9167_v34  ;;  %v26301_v21 = vpop.eup %26300  ;;  %v32765_v63 = vld [vmem:[#allocation45_spill] sm:$0xff]  ;;  %v32766_v34 = vld [vmem:[#allocation150_spill] sm:$0xff] }
 0x72a   :  { %25260 = vmatpush3.msk.msra.mxu0 %vm3655_vm3, %v32762_v14  ;;  %25265 = vmatpush3.msk.msra.mxu1 %vm3655_vm3, %v32763_v2  ;;  %v29502_v37 = vpop.xlane.xlu0 %9091  ;;  %v9170_v33 = vmul.f32 %v26301_v21, %v29276_v49  ;;  %v32767_v14 = vld [vmem:[#allocation80_spill] sm:$0xff]  ;;  %v32768_v49 = vld [vmem:[#allocation77_spill] sm:$0xff]  ;;  %v32769_v21 = vld [vmem:[#allocation35_spill] sm:$0xff] }
 0x72b   :  { %25261 = vmatprep.mubr.msk.f32.mxu0 %vm26967_vm1, %v32512_v25  ;;  %25269 = vmatprep.subr.mxu0 %v32512_v25  ;;  %v29507_v20 = vpop.xlane.xlu1 %9094  ;;  %v32770_v2 = vld [vmem:[#allocation33_spill] sm:$0xff]  ;;  %26312 = vrcp.f32 %v29502_v37 }
 0x72c   :  { %12199 = vrot.lane.b32.xlu1 %v32764_v0, %s26972_s15  ;;  %25266 = vmatprep.mubr.msk.f32.mxu1 %vm26967_vm1, %v32512_v25  ;;  %26314 = vrcp.f32 %v29507_v20  ;;  %v32792_v20 = vld [vmem:[#allocation161_spill] sm:$0xff] }
 0x72d   :  { %12121 = vrot.lane.b32.xlu0 %v32765_v63, %s26972_s15  ;;  %25262 = vmatmul.mubr.msk.f32.vlgmr.msra.gmra.mrb[114].mxu0 %vm3651_vm5, %v9168_v41 }
 0x72e   :  { %25267 = vmatmul.mubr.msk.f32.vlgmr.msra.gmra.mrb[112].mxu1 %vm3651_vm5, %v9169_v10  ;;  %25270 = vmatpush3.msk.msra.mxu0 %vm3655_vm3, %v32766_v34  ;;  %v29520_v32 = vpop.xlane.xlu0 %9097  ;;  %v32771_v34 = vld [vmem:[#allocation83_spill] sm:$0xff] }
 0x72f   :  { %25271 = vmatprep.mubr.msk.f32.mxu0 %vm26967_vm1, %v32512_v25  ;;  %v29524_v12 = vpop.xlane.xlu1 %9100  ;;  %25274 = vmatprep.subr.mxu1 %v32512_v25  ;;  %26316 = vrcp.f32 %v29520_v32 }
 0x730   :  { %12197 = vrot.lane.b32.xlu1 %v32767_v14, %s26973_s9  ;;  %25276 = vmatprep.mubr.msk.f32.mxu1 %vm26967_vm1, %v32512_v25  ;;  %26318 = vrcp.f32 %v29524_v12 }
 0x731   :  { %12119 = vrot.lane.b32.xlu0 %v32768_v49, %s26973_s9  ;;  %25272 = vmatmul.mubr.msk.f32.vlgmr.msra.gmra.mrb[116].mxu0 %vm3651_vm5, %v9170_v33  ;;  %v26303_v33 = vpop.eup %26302  ;;  %v32772_v49 = vld [vmem:[#allocation81_spill] sm:$0xff] }
 0x732   :  { %v29534_v1 = vpop.xlane.xlu0 %9103  ;;  %25279 = vmatprep.subr.mxu0 %v32512_v25  ;;  %25281 = vmatprep.mubr.msk.f32.mxu0 %vm26967_vm1, %v32512_v25  ;;  %v26305_v27 = vpop.eup %26304  ;;  %v9171_v14 = vmul.f32 %v26303_v33, %v29278_v11  ;;  %v32775_v11 = vld [vmem:[#allocation87_spill] sm:$0xff]  ;;  %v32780_v33 = vld [vmem:[#allocation89_spill] sm:$0xff] }
 0x733   :  { %v29539_v41 = vpop.xlane.xlu1 %9106  ;;  %v9172_v60 = vmul.f32 %v26305_v27, %v29286_v56  ;;  %v32777_v56 = vld [vmem:[#allocation43_spill] sm:$0xff]  ;;  %v32778_v27 = vld [vmem:[#allocation37_spill] sm:$0xff]  ;;  %26320 = vrcp.f32 %v29534_v1  ;;  %v32794_v1 = vld [vmem:[#allocation162_spill] sm:$0xff] }
 0x734   :  { %12355 = vrot.lane.b32.xlu1 %v32769_v21, %s26972_s15  ;;  %26322 = vrcp.f32 %v29539_v41 }
 0x735   :  { %12277 = vrot.lane.b32.xlu0 %v32770_v2, %s26972_s15 }
 0x736   :  { %v29545_v3 = vpop.xlane.xlu0 %9109 }
 0x737   :  { %v29547_v10 = vpop.xlane.xlu1 %9112  ;;  %26324 = vrcp.f32 %v29545_v3 }
 0x738   :  { %12353 = vrot.lane.b32.xlu1 %v32771_v34, %s26973_s9  ;;  %26326 = vrcp.f32 %v29547_v10 }
 0x739   :  { %12275 = vrot.lane.b32.xlu0 %v32772_v49, %s26973_s9  ;;  %v32784_v49 = vld [vmem:[#allocation91_spill] sm:$0xff] }
 0x73a   :  { %v29553_v61 = vpop.xlane.xlu0 %9115 }
 0x73b   :  { %v10420_v53 = vpop.permute.xlu1 %10419  ;;  %26328 = vrcp.f32 %v29553_v61 }
 0x73c   :  { %12511 = vrot.lane.b32.xlu1 %v32773_v62, %s26972_s15  ;;  %25275 = vmatpush3.msk.msra.mxu1 %vm3655_vm3, %v10420_v53  ;;  %v32776_v53 = vld [vmem:[#allocation85_spill] sm:$0xff] }
 0x73d   :  { %12433 = vrot.lane.b32.xlu0 %v32774_v6, %s26972_s15  ;;  %25277 = vmatmul.mubr.msk.f32.vlgmr.msra.gmra.mrb[114].mxu1 %vm3651_vm5, %v9171_v14  ;;  %v32779_v14 = vld [vmem:[#allocation92_spill] sm:$0xff] }
 0x73e   :  { %v10497_v34 = vpop.permute.xlu0 %10496  ;;  %25284 = vmatprep.subr.mxu1 %v32512_v25  ;;  %25286 = vmatprep.mubr.msk.f32.mxu1 %vm26967_vm1, %v32512_v25 }
 0x73f   :  { %25280 = vmatpush3.msk.msra.mxu0 %vm3655_vm3, %v10497_v34  ;;  %v32782_v34 = vld [vmem:[#allocation42_spill] sm:$0xff] }
 0x740   :  { %12509 = vrot.lane.b32.xlu1 %v32775_v11, %s26973_s9  ;;  %25282 = vmatmul.mubr.msk.f32.vlgmr.msra.gmra.mrb[118].mxu0 %vm3651_vm5, %v9172_v60  ;;  %v32781_v60 = vld [vmem:[#allocation47_spill] sm:$0xff] }
 0x741   :  { %12431 = vrot.lane.b32.xlu0 %v32776_v53, %s26973_s9  ;;  %25289 = vmatprep.subr.mxu0 %v32512_v25  ;;  %v32783_v53 = vld [vmem:[#allocation94_spill] sm:$0xff] }
 0x742   :  { %25291 = vmatprep.mubr.msk.f32.mxu0 %vm26967_vm1, %v32512_v25 }
 0x744   :  { %12667 = vrot.lane.b32.xlu1 %v32777_v56, %s26972_s15 }
 0x745   :  { %12589 = vrot.lane.b32.xlu0 %v32778_v27, %s26972_s15 }
 0x748   :  { %12665 = vrot.lane.b32.xlu1 %v32779_v14, %s26973_s9  ;;  %v32786_v14 = vld [vmem:[#allocation93_spill] sm:$0xff] }
 0x749   :  { %12587 = vrot.lane.b32.xlu0 %v32780_v33, %s26973_s9  ;;  %v32785_v33 = vld [vmem:[#allocation96_spill] sm:$0xff] }
 0x74c   :  { %12823 = vrot.lane.b32.xlu1 %v32781_v60, %s26972_s15 }
 0x74d   :  { %12745 = vrot.lane.b32.xlu0 %v32782_v34, %s26972_s15 }
 0x750   :  { %12821 = vrot.lane.b32.xlu1 %v32783_v53, %s26973_s9  ;;  %v32788_v53 = vld [vmem:[#allocation95_spill] sm:$0xff] }
 0x751   :  { %12743 = vrot.lane.b32.xlu0 %v32784_v49, %s26973_s9  ;;  %v32787_v49 = vld [vmem:[#allocation98_spill] sm:$0xff] }
 0x754   :  { %12979 = vrot.lane.b32.xlu1 %v32741_v44, %s26972_s15 }
 0x755   :  { %12901 = vrot.lane.b32.xlu0 %v32740_v57, %s26972_s15 }
 0x758   :  { %12977 = vrot.lane.b32.xlu1 %v32785_v33, %s26973_s9 }
 0x759   :  { %12899 = vrot.lane.b32.xlu0 %v32786_v14, %s26973_s9  ;;  %v32789_v14 = vld [vmem:[#allocation159_spill] sm:$0xff] }
 0x75c   :  { %13135 = vrot.lane.b32.xlu1 %v32743_v22, %s26972_s15 }
 0x75d   :  { %13057 = vrot.lane.b32.xlu0 %v32742_v35, %s26972_s15 }
 0x760   :  { %13133 = vrot.lane.b32.xlu1 %v32787_v49, %s26973_s9  ;;  %v32790_v49 = vld [vmem:[#allocation160_spill] sm:$0xff] }
 0x761   :  { %13055 = vrot.lane.b32.xlu0 %v32788_v53, %s26973_s9  ;;  %v26307_v53 = vpop.eup %26306 }
 0x762   :  { %v26309_v16 = vpop.eup %26308  ;;  %v9173_v37 = vmul.f32 %v26307_v53, %v29288_v4 }
 0x763   :  { %v26311_v33 = vpop.eup %26310  ;;  %v9174_v32 = vmul.f32 %v26309_v16, %v29296_v29 }
 0x764   :  { %13291 = vrot.lane.b32.xlu1 %v27474_v47, %s26972_s15  ;;  %v26313_v53 = vpop.eup %26312 }
 0x765   :  { %13213 = vrot.lane.b32.xlu0 %v27467_v46, %s26972_s15  ;;  %v26315_v12 = vpop.eup %26314 }
 0x766   :  { %v9177_v41 = vmul.f32 %v26315_v12, %v29308_v15  ;;  %v26317_v16 = vpop.eup %26316 }
 0x767   :  { %v9178_v15 = vmul.f32 %v26317_v16, %v29315_v55  ;;  %v32796_v55 = vld [vmem:[#allocation163_spill] sm:$0xff] }
 0x768   :  { %13289 = vrot.lane.b32.xlu1 %v32789_v14, %s26973_s9  ;;  %v32791_v14 = vld [vmem:[#allocation164_spill] sm:$0xff] }
 0x769   :  { %13211 = vrot.lane.b32.xlu0 %v32790_v49, %s26973_s9 }
 0x76c   :  { %13447 = vrot.lane.b32.xlu1 %v27515_v59, %s26972_s15  ;;  %v29622_v36 = vpop.xlane.xlu1 %9118 }
 0x76d   :  { %13369 = vrot.lane.b32.xlu0 %v27485_v52, %s26972_s15  ;;  %26330 = vrcp.f32 %v29622_v36 }
 0x76f   :  { %v29626_v43 = vpop.xlane.xlu0 %9121 }
 0x770   :  { %13445 = vrot.lane.b32.xlu1 %v32791_v14, %s26973_s9  ;;  %v10574_v49 = vpop.permute.xlu1 %10573  ;;  %26332 = vrcp.f32 %v29626_v43 }
 0x771   :  { %13367 = vrot.lane.b32.xlu0 %v32792_v20, %s26973_s9  ;;  %25285 = vmatpush3.msk.msra.mxu1 %vm3655_vm3, %v10574_v49  ;;  %v9175_v49 = vmul.f32 %v26311_v33, %v29298_v42  ;;  %v32793_v42 = vld [vmem:[#allocation105_spill] sm:$0xff]  ;;  %v9176_v33 = vmul.f32 %v26313_v53, %v29306_v54 }
 0x772   :  { %25287 = vmatmul.mubr.msk.f32.vlgmr.msra.gmra.mrb[116].mxu1 %vm3651_vm5, %v9173_v37  ;;  %25294 = vmatprep.subr.mxu1 %v32512_v25 }
 0x773   :  { %v10651_v11 = vpop.permute.xlu0 %10650  ;;  %25296 = vmatprep.mubr.msk.f32.mxu1 %vm26967_vm1, %v32512_v25 }
 0x774   :  { %13603 = vrot.lane.b32.xlu1 %v32596_v18, %s26972_s15  ;;  %v10728_v4 = vpop.permute.xlu1 %10727  ;;  %25290 = vmatpush3.msk.msra.mxu0 %vm3655_vm3, %v10651_v11 }
 0x775   :  { %13525 = vrot.lane.b32.xlu0 %v27403_v5, %s26972_s15  ;;  %25295 = vmatpush3.msk.msra.mxu1 %vm3655_vm3, %v10728_v4  ;;  %v26319_v4 = vpop.eup %26318 }
 0x776   :  { %25292 = vmatmul.mubr.msk.f32.vlgmr.msra.gmra.mrb[120].mxu0 %vm3651_vm5, %v9174_v32  ;;  %25297 = vmatmul.mubr.msk.f32.vlgmr.msra.gmra.mrb[118].mxu1 %vm3651_vm5, %v9175_v49  ;;  %v9179_v3 = vmul.f32 %v26319_v4, %v29317_v9  ;;  %v26321_v32 = vpop.eup %26320  ;;  %v32795_v49 = vld [vmem:[#allocation106_spill] sm:$0xff] }
 0x777   :  { %25299 = vmatprep.subr.mxu0 %v32512_v25  ;;  %v10882_v29 = vpop.permute.xlu0 %10881  ;;  %25304 = vmatprep.subr.mxu1 %v32512_v25  ;;  %v26323_v12 = vpop.eup %26322  ;;  %v9180_v61 = vmul.f32 %v26321_v32, %v29323_v38 }
 0x778   :  { %13601 = vrot.lane.b32.xlu1 %v32793_v42, %s26973_s9  ;;  %v10805_v11 = vpop.permute.xlu1 %10804  ;;  %25301 = vmatprep.mubr.msk.f32.mxu0 %vm26967_vm1, %v32512_v25  ;;  %v9181_v36 = vmul.f32 %v26323_v12, %v29325_v23  ;;  %v32797_v23 = vld [vmem:[#allocation107_spill] sm:$0xff]  ;;  %v32799_v12 = vld [vmem:[#allocation72_spill] sm:$0xff] }
 0x779   :  { %13523 = vrot.lane.b32.xlu0 %v32794_v1, %s26973_s9  ;;  %25300 = vmatpush3.msk.msra.mxu0 %vm3655_vm3, %v10805_v11  ;;  %v26325_v11 = vpop.eup %26324 }
 0x77a   :  { %25305 = vmatpush3.msk.msra.mxu1 %vm3655_vm3, %v10882_v29  ;;  %25306 = vmatprep.mubr.msk.f32.mxu1 %vm26967_vm1, %v32512_v25  ;;  %v9182_v16 = vmul.f32 %v26325_v11, %v29331_v45 }
 0x77b   :  { %25302 = vmatmul.mubr.msk.f32.vlgmr.msra.gmra.mrb[122].mxu0 %vm3651_vm5, %v9176_v33  ;;  %25307 = vmatmul.mubr.msk.f32.vlgmr.msra.gmra.mrb[120].mxu1 %vm3651_vm5, %v9177_v41  ;;  %v11036_v37 = vpop.permute.xlu0 %11035  ;;  %v26327_v33 = vpop.eup %26326  ;;  %v32798_v41 = vld [vmem:[#allocation102_spill] sm:$0xff] }
 0x77c   :  { %13759 = vrot.lane.b32.xlu1 %v32602_v39, %s26972_s15  ;;  %25309 = vmatprep.subr.mxu0 %v32512_v25  ;;  %v10959_v54 = vpop.permute.xlu1 %10958  ;;  %v26329_v4 = vpop.eup %26328 }
 0x77d   :  { %13681 = vrot.lane.b32.xlu0 %v27429_v19, %s26972_s15  ;;  %25314 = vmatprep.subr.mxu1 %v32512_v25 }
 0x77e   :  { %25310 = vmatpush3.msk.msra.mxu0 %vm3655_vm3, %v10959_v54  ;;  %25311 = vmatprep.mubr.msk.f32.mxu0 %vm26967_vm1, %v32512_v25  ;;  %v26331_v54 = vpop.eup %26330 }
 0x77f   :  { %25315 = vmatpush3.msk.msra.mxu1 %vm3655_vm3, %v11036_v37  ;;  %25316 = vmatprep.mubr.msk.f32.mxu1 %vm26967_vm1, %v32512_v25  ;;  %v11190_v10 = vpop.permute.xlu0 %11189  ;;  %v9183_v37 = vmul.f32 %v26327_v33, %v29333_v31  ;;  %v9184_v31 = vmul.f32 %v26329_v4, %v29339_v51  ;;  %v32800_v51 = vld [vmem:[#allocation104_spill] sm:$0xff] }
 0x780   :  { %13757 = vrot.lane.b32.xlu1 %v32795_v49, %s26973_s9  ;;  %25312 = vmatmul.mubr.msk.f32.vlgmr.msra.gmra.mrb[124].mxu0 %vm3651_vm5, %v9178_v15  ;;  %v11113_v53 = vpop.permute.xlu1 %11112 }
 0x781   :  { %13679 = vrot.lane.b32.xlu0 %v32796_v55, %s26973_s9  ;;  %25317 = vmatmul.mubr.msk.f32.vlgmr.msra.gmra.mrb[122].mxu1 %vm3651_vm5, %v9179_v3  ;;  %v9185_v3 = vmul.f32 %v26331_v54, %v29349_v8 }
 0x782   :  { %25319 = vmatprep.subr.mxu0 %v32512_v25  ;;  %25324 = vmatprep.subr.mxu1 %v32512_v25 }
 0x783   :  { %25320 = vmatpush3.msk.msra.mxu0 %vm3655_vm3, %v11113_v53  ;;  %25321 = vmatprep.mubr.msk.f32.mxu0 %vm26967_vm1, %v32512_v25  ;;  %v11344_v9 = vpop.permute.xlu0 %11343 }
 0x784   :  { %13915 = vrot.lane.b32.xlu1 %v32608_v17, %s26972_s15  ;;  %25325 = vmatpush3.msk.msra.mxu1 %vm3655_vm3, %v11190_v10  ;;  %v11267_v29 = vpop.permute.xlu1 %11266  ;;  %v26333_v10 = vpop.eup %26332 }
 0x785   :  { %13837 = vrot.lane.b32.xlu0 %v27440_v24, %s26972_s15  ;;  %25326 = vmatprep.mubr.msk.f32.mxu1 %vm26967_vm1, %v32512_v25  ;;  %v9186_v8 = vmul.f32 %v26333_v10, %v29351_v58 }
 0x786   :  { %25322 = vmatmul.mubr.msk.f32.vlgmr.msra.gmra.mrb[126].mxu0 %vm3651_vm5, %v9180_v61  ;;  %25327 = vmatmul.mubr.msk.f32.vlgmr.msra.gmra.mrb[124].mxu1 %vm3651_vm5, %v9181_v36 }
 0x787   :  { %25329 = vmatprep.subr.mxu0 %v32512_v25  ;;  %25334 = vmatprep.subr.mxu1 %v32512_v25  ;;  %v11498_v38 = vpop.permute.xlu0 %11497 }
 0x788   :  { %13913 = vrot.lane.b32.xlu1 %v32797_v23, %s26973_s9  ;;  %25330 = vmatpush3.msk.msra.mxu0 %vm3655_vm3, %v11267_v29  ;;  %v11421_v43 = vpop.permute.xlu1 %11420 }
 0x789   :  { %13835 = vrot.lane.b32.xlu0 %v32798_v41, %s26973_s9  ;;  %25331 = vmatprep.mubr.msk.f32.mxu0 %vm26967_vm1, %v32512_v25 }
 0x78a   :  { %25335 = vmatpush3.msk.msra.mxu1 %vm3655_vm3, %v11344_v9  ;;  %25336 = vmatprep.mubr.msk.f32.mxu1 %vm26967_vm1, %v32512_v25 }
 0x78b   :  { %25332 = vmatmul.mubr.msk.f32.vlgmr.msra.gmra.mrb[128].mxu0 %vm3651_vm5, %v9182_v16  ;;  %25337 = vmatmul.mubr.msk.f32.vlgmr.msra.gmra.mrb[126].mxu1 %vm3651_vm5, %v9183_v37  ;;  %v11654_v15 = vpop.permute.xlu0 %11653 }
 0x78c   :  { %14071 = vrot.lane.b32.xlu1 %v32614_v7, %s26972_s15  ;;  %25339 = vmatprep.subr.mxu0 %v32512_v25  ;;  %v11575_v45 = vpop.permute.xlu1 %11574 }
 0x78d   :  { %25344 = vmatprep.subr.mxu1 %v32512_v25  ;;  %13993 = vrot.lane.b32.xlu0 %v32601_v48, %s26972_s15 }
 0x78e   :  { %25340 = vmatpush3.msk.msra.mxu0 %vm3655_vm3, %v11421_v43  ;;  %25341 = vmatprep.mubr.msk.f32.mxu0 %vm26967_vm1, %v32512_v25 }
 0x78f   :  { %25345 = vmatpush3.msk.msra.mxu1 %vm3655_vm3, %v11498_v38  ;;  %25346 = vmatprep.mubr.msk.f32.mxu1 %vm26967_vm1, %v32512_v25  ;;  %v11652_v32 = vpop.permute.xlu0 %11651 }
 0x790   :  { %25342 = vmatmul.mubr.msk.f32.vlgmr.msra.gmra.mrb[130].mxu0 %vm3651_vm5, %v9184_v31  ;;  %25347 = vmatmul.mubr.msk.f32.vlgmr.msra.gmra.mrb[128].mxu1 %vm3651_vm5, %v9185_v3  ;;  %v11732_v53 = vpop.permute.xlu1 %11731 }
 0x791   :  { %14069 = vrot.lane.b32.xlu1 %v32799_v12, %s26973_s9  ;;  %25349 = vmatprep.subr.mxu0 %v32512_v25 }
 0x792   :  { %13991 = vrot.lane.b32.xlu0 %v32800_v51, %s26973_s9  ;;  %25350 = vmatpush3.msk.msra.mxu0 %vm3655_vm3, %v11575_v45 }
 0x793   :  { %25351 = vmatprep.mubr.msk.f32.mxu0 %vm26967_vm1, %v32512_v25  ;;  %25354 = vmatprep.subr.mxu1 %v32512_v25  ;;  %v11810_v9 = vpop.permute.xlu0 %11809 }
 0x794   :  { %25352 = vmatmul.mubr.msk.f32.vlgmr.msra.gmra.mrb[132].mxu0 %vm3651_vm5, %v9186_v8  ;;  %25356 = vmatprep.mubr.msk.f32.mxu1 %vm26967_vm1, %v32512_v25  ;;  %v11730_v61 = vpop.permute.xlu1 %11729 }
 0x795   :  { %14499 = vrot.lane.b32.xlu1 %v32621_v40, %s26974_s29  ;;  %25359 = vmatprep.subr.mxu0 %v32512_v25 }
 0x796   :  { %25355 = vmatpush3.xpose.msk.msra.mxu1 %vm648_vm2, %v11654_v15  ;;  %14576 = vrot.lane.b32.xlu0 %v32607_v28, %s26974_s29 }
 0x797   :  { %25364 = vmatprep.subr.mxu1 %v32512_v25  ;;  %25361 = vmatprep.mubr.msk.f32.mxu0 %vm26967_vm1, %v32512_v25  ;;  %v11808_v58 = vpop.permute.xlu0 %11807 }
 0x798   :  { %v11888_v36 = vpop.permute.xlu1 %11887 }
 0x799   :  { %25357 = vmatmul.mubr.msk.f32.vlgmr.msra.gmra.mrb[130].mxu1 %vm648_vm2, %v11652_v32  ;;  %14653 = vrot.lane.b32.xlu1 %v32749_v26, %s26974_s29 }
 0x79a   :  { %25360 = vmatpush3.xpose.msk.msra.mxu0 %vm648_vm2, %v11732_v53  ;;  %14730 = vrot.lane.b32.xlu0 %v32748_v13, %s26974_s29 }
 0x79b   :  { %25365 = vmatpush3.xpose.msk.msra.mxu1 %vm648_vm2, %v11810_v9  ;;  %25366 = vmatprep.mubr.msk.f32.mxu1 %vm26967_vm1, %v32512_v25  ;;  %v11966_v29 = vpop.permute.xlu0 %11965 }
 0x79c   :  { %25369 = vmatprep.subr.mxu0 %v32512_v25  ;;  %25374 = vmatprep.subr.mxu1 %v32512_v25  ;;  %v11886_v11 = vpop.permute.xlu1 %11885 }
 0x79d   :  { %25362 = vmatmul.mubr.msk.f32.vlgmr.msra.gmra.mrb[134].mxu0 %vm648_vm2, %v11730_v61  ;;  %14807 = vrot.lane.b32.xlu1 %v32757_v50, %s26974_s29 }
 0x79e   :  { %14884 = vrot.lane.b32.xlu0 %v32756_v30, %s26974_s29  ;;  %25367 = vmatmul.mubr.msk.f32.vlgmr.msra.gmra.mrb[132].mxu1 %vm648_vm2, %v11808_v58 }
 0x79f   :  { %25370 = vmatpush3.xpose.msk.msra.mxu0 %vm648_vm2, %v11888_v36  ;;  %25371 = vmatprep.mubr.msk.f32.mxu0 %vm26967_vm1, %v32512_v25  ;;  %v11964_v33 = vpop.permute.xlu0 %11963 }
 0x7a0   :  { %25375 = vmatpush3.xpose.msk.msra.mxu1 %vm648_vm2, %v11966_v29  ;;  %25376 = vmatprep.mubr.msk.f32.mxu1 %vm26967_vm1, %v32512_v25  ;;  %v12044_v38 = vpop.permute.xlu1 %12043 }
 0x7a1   :  { %14961 = vrot.lane.b32.xlu1 %v32765_v63, %s26974_s29  ;;  %25379 = vmatprep.subr.mxu0 %v32512_v25 }
 0x7a2   :  { %15038 = vrot.lane.b32.xlu0 %v32764_v0, %s26974_s29  ;;  %25372 = vmatmul.mubr.msk.f32.vlgmr.msra.gmra.mrb[136].mxu0 %vm648_vm2, %v11886_v11 }
 0x7a3   :  { %25377 = vmatmul.mubr.msk.f32.vlgmr.msra.gmra.mrb[134].mxu1 %vm648_vm2, %v11964_v33  ;;  %25380 = vmatpush3.xpose.msk.msra.mxu0 %vm648_vm2, %v12044_v38  ;;  %v12122_v43 = vpop.permute.xlu0 %12121 }
 0x7a4   :  { %25381 = vmatprep.mubr.msk.f32.mxu0 %vm26967_vm1, %v32512_v25  ;;  %25384 = vmatprep.subr.mxu1 %v32512_v25  ;;  %v12042_v16 = vpop.permute.xlu1 %12041 }
 0x7a5   :  { %15115 = vrot.lane.b32.xlu1 %v32770_v2, %s26974_s29  ;;  %25385 = vmatpush3.xpose.msk.msra.mxu1 %vm648_vm2, %v12122_v43 }
 0x7a6   :  { %25382 = vmatmul.mubr.msk.f32.vlgmr.msra.gmra.mrb[138].mxu0 %vm648_vm2, %v12042_v16  ;;  %25386 = vmatprep.mubr.msk.f32.mxu1 %vm26967_vm1, %v32512_v25 }
 0x7a7   :  { %v12120_v37 = vpop.permute.xlu0 %12119  ;;  %25389 = vmatprep.subr.mxu0 %v32512_v25  ;;  %25391 = vmatprep.mubr.msk.f32.mxu0 %vm26967_vm1, %v32512_v25 }
 0x7a8   :  { %v12200_v4 = vpop.permute.xlu1 %12199  ;;  %25387 = vmatmul.mubr.msk.f32.vlgmr.msra.gmra.mrb[136].mxu1 %vm648_vm2, %v12120_v37  ;;  %25394 = vmatprep.subr.mxu1 %v32512_v25 }
 0x7a9   :  { %25390 = vmatpush3.xpose.msk.msra.mxu0 %vm648_vm2, %v12200_v4  ;;  %25396 = vmatprep.mubr.msk.f32.mxu1 %vm26967_vm1, %v32512_v25 }
 0x7aa   :  { %25399 = vmatprep.subr.mxu0 %v32512_v25 }
 0x7ab   :  { %v12278_v54 = vpop.permute.xlu0 %12277 }
 0x7ac   :  { %v12198_v15 = vpop.permute.xlu1 %12197  ;;  %25395 = vmatpush3.xpose.msk.msra.mxu1 %vm648_vm2, %v12278_v54 }
 0x7ad   :  { %25392 = vmatmul.mubr.msk.f32.vlgmr.msra.gmra.mrb[140].mxu0 %vm648_vm2, %v12198_v15  ;;  %25404 = vmatprep.subr.mxu1 %v32512_v25 }
 0x7ae   :  { %25401 = vmatprep.mubr.msk.f32.mxu0 %vm26967_vm1, %v32512_v25 }
 0x7af   :  { %v12276_v45 = vpop.permute.xlu0 %12275 }
 0x7b0   :  { %v12356_v31 = vpop.permute.xlu1 %12355  ;;  %25397 = vmatmul.mubr.msk.f32.vlgmr.msra.gmra.mrb[138].mxu1 %vm648_vm2, %v12276_v45 }
 0x7b1   :  { %25400 = vmatpush3.xpose.msk.msra.mxu0 %vm648_vm2, %v12356_v31  ;;  %25406 = vmatprep.mubr.msk.f32.mxu1 %vm26967_vm1, %v32512_v25 }
 0x7b2   :  { %25409 = vmatprep.subr.mxu0 %v32512_v25 }
 0x7b3   :  { %v12434_v3 = vpop.permute.xlu0 %12433 }
 0x7b4   :  { %v12354_v10 = vpop.permute.xlu1 %12353  ;;  %25405 = vmatpush3.xpose.msk.msra.mxu1 %vm648_vm2, %v12434_v3 }
 0x7b5   :  { %25402 = vmatmul.mubr.msk.f32.vlgmr.msra.gmra.mrb[142].mxu0 %vm648_vm2, %v12354_v10  ;;  %25414 = vmatprep.subr.mxu1 %v32512_v25 }
 0x7b6   :  { %25411 = vmatprep.mubr.msk.f32.mxu0 %vm26967_vm1, %v32512_v25 }
 0x7b7   :  { %v12432_v32 = vpop.permute.xlu0 %12431 }
 0x7b8   :  { %v12512_v53 = vpop.permute.xlu1 %12511  ;;  %25407 = vmatmul.mubr.msk.f32.vlgmr.msra.gmra.mrb[140].mxu1 %vm648_vm2, %v12432_v32 }
 0x7b9   :  { %25410 = vmatpush3.xpose.msk.msra.mxu0 %vm648_vm2, %v12512_v53  ;;  %25416 = vmatprep.mubr.msk.f32.mxu1 %vm26967_vm1, %v32512_v25 }
 0x7ba   :  { %25419 = vmatprep.subr.mxu0 %v32512_v25 }
 0x7bb   :  { %v12590_v8 = vpop.permute.xlu0 %12589 }
 0x7bc   :  { %v12510_v9 = vpop.permute.xlu1 %12509  ;;  %25415 = vmatpush3.xpose.msk.msra.mxu1 %vm648_vm2, %v12590_v8 }
 0x7bd   :  { %25412 = vmatmul.mubr.msk.f32.vlgmr.msra.gmra.mrb[144].mxu0 %vm648_vm2, %v12510_v9  ;;  %25424 = vmatprep.subr.mxu1 %v32512_v25 }
 0x7be   :  { %25421 = vmatprep.mubr.msk.f32.mxu0 %vm26967_vm1, %v32512_v25 }
 0x7bf   :  { %v12588_v61 = vpop.permute.xlu0 %12587 }
 0x7c0   :  { %v12668_v58 = vpop.permute.xlu1 %12667  ;;  %25417 = vmatmul.mubr.msk.f32.vlgmr.msra.gmra.mrb[142].mxu1 %vm648_vm2, %v12588_v61  ;;  %v29838_v36 = vpop.f32.mrb[102].mxu0 }
 0x7c1   :  { %32801 = vst [vmem:[#allocation117_spill] sm:$0xff] %v29838_v36  ;;  %25420 = vmatpush3.xpose.msk.msra.mxu0 %vm648_vm2, %v12668_v58  ;;  %v25203_v29 = vpop.f32.mrb[103].mxu0  ;;  %25426 = vmatprep.mubr.msk.f32.mxu1 %vm26967_vm1, %v32512_v25 }
 0x7c2   :  { %25429 = vmatprep.subr.mxu0 %v32512_v25 }
 0x7c3   :  { %v12746_v11 = vpop.permute.xlu0 %12745 }
 0x7c4   :  { %v12666_v33 = vpop.permute.xlu1 %12665  ;;  %25425 = vmatpush3.xpose.msk.msra.mxu1 %vm648_vm2, %v12746_v11 }
 0x7c5   :  { %25422 = vmatmul.mubr.msk.f32.vlgmr.msra.gmra.mrb[146].mxu0 %vm648_vm2, %v12666_v33  ;;  %25434 = vmatprep.subr.mxu1 %v32512_v25 }
 0x7c6   :  { %25431 = vmatprep.mubr.msk.f32.mxu0 %vm26967_vm1, %v32512_v25 }
 0x7c7   :  { %v12744_v38 = vpop.permute.xlu0 %12743 }
 0x7c8   :  { %v12824_v43 = vpop.permute.xlu1 %12823  ;;  %25427 = vmatmul.mubr.msk.f32.vlgmr.msra.gmra.mrb[144].mxu1 %vm648_vm2, %v12744_v38 }
 0x7c9   :  { %25430 = vmatpush3.xpose.msk.msra.mxu0 %vm648_vm2, %v12824_v43  ;;  %25436 = vmatprep.mubr.msk.f32.mxu1 %vm26967_vm1, %v32512_v25 }
 0x7ca   :  { %25439 = vmatprep.subr.mxu0 %v32512_v25 }
 0x7cb   :  { %v12902_v16 = vpop.permute.xlu0 %12901 }
 0x7cc   :  { %v12822_v37 = vpop.permute.xlu1 %12821  ;;  %25435 = vmatpush3.xpose.msk.msra.mxu1 %vm648_vm2, %v12902_v16 }
 0x7cd   :  { %25432 = vmatmul.mubr.msk.f32.vlgmr.msra.gmra.mrb[148].mxu0 %vm648_vm2, %v12822_v37  ;;  %25444 = vmatprep.subr.mxu1 %v32512_v25 }
 0x7ce   :  { %25441 = vmatprep.mubr.msk.f32.mxu0 %vm26967_vm1, %v32512_v25 }
 0x7cf   :  { %v12900_v4 = vpop.permute.xlu0 %12899 }
 0x7d0   :  { %v12980_v54 = vpop.permute.xlu1 %12979  ;;  %25437 = vmatmul.mubr.msk.f32.vlgmr.msra.gmra.mrb[146].mxu1 %vm648_vm2, %v12900_v4 }
 0x7d1   :  { %25440 = vmatpush3.xpose.msk.msra.mxu0 %vm648_vm2, %v12980_v54  ;;  %25446 = vmatprep.mubr.msk.f32.mxu1 %vm26967_vm1, %v32512_v25 }
 0x7d2   :  { %25449 = vmatprep.subr.mxu0 %v32512_v25 }
 0x7d3   :  { %v13058_v15 = vpop.permute.xlu0 %13057 }
 0x7d4   :  { %v12978_v45 = vpop.permute.xlu1 %12977  ;;  %25445 = vmatpush3.xpose.msk.msra.mxu1 %vm648_vm2, %v13058_v15 }
 0x7d5   :  { %25442 = vmatmul.mubr.msk.f32.vlgmr.msra.gmra.mrb[150].mxu0 %vm648_vm2, %v12978_v45  ;;  %25454 = vmatprep.subr.mxu1 %v32512_v25 }
 0x7d6   :  { %25451 = vmatprep.mubr.msk.f32.mxu0 %vm26967_vm1, %v32512_v25 }
 0x7d7   :  { %v13056_v31 = vpop.permute.xlu0 %13055 }
 0x7d8   :  { %v13136_v3 = vpop.permute.xlu1 %13135  ;;  %25447 = vmatmul.mubr.msk.f32.vlgmr.msra.gmra.mrb[148].mxu1 %vm648_vm2, %v13056_v31 }
 0x7d9   :  { %25450 = vmatpush3.xpose.msk.msra.mxu0 %vm648_vm2, %v13136_v3  ;;  %25456 = vmatprep.mubr.msk.f32.mxu1 %vm26967_vm1, %v32512_v25 }
 0x7da   :  { %25459 = vmatprep.subr.mxu0 %v32512_v25 }
 0x7db   :  { %v13214_v10 = vpop.permute.xlu0 %13213 }
 0x7dc   :  { %v13134_v32 = vpop.permute.xlu1 %13133  ;;  %25455 = vmatpush3.xpose.msk.msra.mxu1 %vm648_vm2, %v13214_v10 }
 0x7dd   :  { %25452 = vmatmul.mubr.msk.f32.vlgmr.msra.gmra.mrb[152].mxu0 %vm648_vm2, %v13134_v32  ;;  %25464 = vmatprep.subr.mxu1 %v32512_v25 }
 0x7de   :  { %25461 = vmatprep.mubr.msk.f32.mxu0 %vm26967_vm1, %v32512_v25 }
 0x7df   :  { %v13212_v53 = vpop.permute.xlu0 %13211 }
 0x7e0   :  { %v13292_v8 = vpop.permute.xlu1 %13291  ;;  %v29879_v9 = vpop.f32.mrb[98].mxu1  ;;  %25457 = vmatmul.mubr.msk.f32.vlgmr.msra.gmra.mrb[150].mxu1 %vm648_vm2, %v13212_v53 }
 0x7e1   :  { %32802 = vst [vmem:[#allocation152_spill] sm:$0xff] %v29879_v9  ;;  %v25198_v61 = vpop.f32.mrb[99].mxu1  ;;  %25460 = vmatpush3.xpose.msk.msra.mxu0 %vm648_vm2, %v13292_v8  ;;  %25466 = vmatprep.mubr.msk.f32.mxu1 %vm26967_vm1, %v32512_v25 }
 0x7e2   :  { %25469 = vmatprep.subr.mxu0 %v32512_v25 }
 0x7e3   :  { %v13370_v58 = vpop.permute.xlu0 %13369 }
 0x7e4   :  { %v13290_v29 = vpop.permute.xlu1 %13289  ;;  %v29886_v11 = vpop.f32.mrb[100].mxu1  ;;  %25465 = vmatpush3.xpose.msk.msra.mxu1 %vm648_vm2, %v13370_v58 }
 0x7e5   :  { %32803 = vst [vmem:[#allocation154_spill] sm:$0xff] %v29886_v11  ;;  %v25208_v33 = vpop.f32.mrb[101].mxu1  ;;  %25462 = vmatmul.mubr.msk.f32.vlgmr.msra.gmra.mrb[154].mxu0 %vm648_vm2, %v13290_v29  ;;  %25474 = vmatprep.subr.mxu1 %v32512_v25 }
 0x7e6   :  { %25471 = vmatprep.mubr.msk.f32.mxu0 %vm26967_vm1, %v32512_v25 }
 0x7e7   :  { %v13368_v38 = vpop.permute.xlu0 %13367 }
 0x7e8   :  { %v29893_v43 = vpop.f32.mrb[104].mxu0  ;;  %v13448_v16 = vpop.permute.xlu1 %13447  ;;  %25467 = vmatmul.mubr.msk.f32.vlgmr.msra.gmra.mrb[152].mxu1 %vm648_vm2, %v13368_v38 }
 0x7e9   :  { %32804 = vst [vmem:[#allocation119_spill] sm:$0xff] %v29893_v43  ;;  %v29896_v37 = vpop.f32.mrb[102].mxu1  ;;  %v25213_v4 = vpop.f32.mrb[105].mxu0  ;;  %25470 = vmatpush3.xpose.msk.msra.mxu0 %vm648_vm2, %v13448_v16  ;;  %25476 = vmatprep.mubr.msk.f32.mxu1 %vm26967_vm1, %v32512_v25 }
 0x7ea   :  { %32805 = vst [vmem:[#allocation121_spill] sm:$0xff] %v29896_v37  ;;  %v25218_v54 = vpop.f32.mrb[103].mxu1  ;;  %25479 = vmatprep.subr.mxu0 %v32512_v25 }
 0x7eb   :  { %v13526_v15 = vpop.permute.xlu0 %13525 }
 0x7ec   :  { %v13446_v45 = vpop.permute.xlu1 %13445  ;;  %25475 = vmatpush3.xpose.msk.msra.mxu1 %vm648_vm2, %v13526_v15 }
 0x7ed   :  { %v29903_v31 = vpop.f32.mrb[106].mxu0  ;;  %v29905_v3 = vpop.f32.mrb[104].mxu1  ;;  %25472 = vmatmul.mubr.msk.f32.vlgmr.msra.gmra.mrb[156].mxu0 %vm648_vm2, %v13446_v45  ;;  %25484 = vmatprep.subr.mxu1 %v32512_v25 }
 0x7ee   :  { %32806 = vst [vmem:[#allocation156_spill] sm:$0xff] %v29903_v31  ;;  %32807 = vst [vmem:[#allocation157_spill] sm:$0xff] %v29905_v3  ;;  %v25223_v10 = vpop.f32.mrb[107].mxu0  ;;  %v25228_v32 = vpop.f32.mrb[105].mxu1  ;;  %25481 = vmatprep.mubr.msk.f32.mxu0 %vm26967_vm1, %v32512_v25 }
 0x7ef   :  { %v13524_v53 = vpop.permute.xlu0 %13523 }
 0x7f0   :  { %v13604_v8 = vpop.permute.xlu1 %13603  ;;  %25477 = vmatmul.mubr.msk.f32.vlgmr.msra.gmra.mrb[154].mxu1 %vm648_vm2, %v13524_v53 }
 0x7f1   :  { %25480 = vmatpush3.xpose.msk.msra.mxu0 %vm648_vm2, %v13604_v8  ;;  %25486 = vmatprep.mubr.msk.f32.mxu1 %vm26967_vm1, %v32512_v25 }
 0x7f2   :  { %v29915_v61 = vpop.f32.mrb[108].mxu0  ;;  %v29917_v58 = vpop.f32.mrb[106].mxu1  ;;  %25489 = vmatprep.subr.mxu0 %v32512_v25 }
 0x7f3   :  { %32808 = vst [vmem:[#allocation123_spill] sm:$0xff] %v29915_v61  ;;  %32809 = vst [vmem:[#allocation125_spill] sm:$0xff] %v29917_v58  ;;  %v25233_v29 = vpop.f32.mrb[109].mxu0  ;;  %v25238_v33 = vpop.f32.mrb[107].mxu1 }
 0x7f4   :  { %v13682_v38 = vpop.permute.xlu0 %13681  ;;  %v13602_v16 = vpop.permute.xlu1 %13601 }
 0x7f5   :  { %25482 = vmatmul.mubr.msk.f32.vlgmr.msra.gmra.mrb[158].mxu0 %vm648_vm2, %v13602_v16  ;;  %25485 = vmatpush3.xpose.msk.msra.mxu1 %vm648_vm2, %v13682_v38 }
 0x7f6   :  { %25491 = vmatprep.mubr.msk.f32.mxu0 %vm26967_vm1, %v32512_v25  ;;  %25494 = vmatprep.subr.mxu1 %v32512_v25 }
 0x7f7   :  { %v29925_v4 = vpop.f32.mrb[110].mxu0  ;;  %v29927_v54 = vpop.f32.mrb[108].mxu1 }
 0x7f8   :  { %32810 = vst [vmem:[#allocation158_spill] sm:$0xff] %v29925_v4  ;;  %32811 = vst [vmem:[#allocation127_spill] sm:$0xff] %v29927_v54  ;;  %v25243_v15 = vpop.f32.mrb[111].mxu0  ;;  %v25248_v45 = vpop.f32.mrb[109].mxu1 }
 0x7f9   :  { %v13680_v10 = vpop.permute.xlu0 %13679  ;;  %v13760_v32 = vpop.permute.xlu1 %13759 }
 0x7fa   :  { %25487 = vmatmul.mubr.msk.f32.vlgmr.msra.gmra.mrb[156].mxu1 %vm648_vm2, %v13680_v10  ;;  %25490 = vmatpush3.xpose.msk.msra.mxu0 %vm648_vm2, %v13760_v32 }
 0x7fb   :  { %25496 = vmatprep.mubr.msk.f32.mxu1 %vm26967_vm1, %v32512_v25  ;;  %25499 = vmatprep.subr.mxu0 %v32512_v25 }
 0x7fc   :  { %v29934_v53 = vpop.f32.mrb[112].mxu0  ;;  %v29936_v8 = vpop.f32.mrb[110].mxu1 }
 0x7fd   :  { %32812 = vst [vmem:[#allocation129_spill] sm:$0xff] %v29934_v53  ;;  %32813 = vst [vmem:[#allocation131_spill] sm:$0xff] %v29936_v8  ;;  %v25253_v29 = vpop.f32.mrb[113].mxu0  ;;  %v25258_v33 = vpop.f32.mrb[111].mxu1 }
 0x7fe   :  { %v13838_v38 = vpop.permute.xlu0 %13837  ;;  %v13758_v16 = vpop.permute.xlu1 %13757 }
 0x7ff   :  { %25492 = vmatmul.mubr.msk.f32.vlgmr.msra.gmra.mrb[160].mxu0 %vm648_vm2, %v13758_v16  ;;  %25495 = vmatpush3.xpose.msk.msra.mxu1 %vm648_vm2, %v13838_v38 }
 0x800   :  { %v29940_v15 = vpop.f32.mrb[114].mxu0  ;;  %25501 = vmatprep.mubr.msk.f32.mxu0 %vm26967_vm1, %v32512_v25  ;;  %25504 = vmatprep.subr.mxu1 %v32512_v25 }
 0x801   :  { %32814 = vst [vmem:[#allocation133_spill] sm:$0xff] %v29940_v15  ;;  %v29945_v45 = vpop.f32.mrb[112].mxu1  ;;  %v25263_v10 = vpop.f32.mrb[115].mxu0 }
 0x802   :  { %32815 = vst [vmem:[#allocation135_spill] sm:$0xff] %v29945_v45  ;;  %v25268_v32 = vpop.f32.mrb[113].mxu1  ;;  %v13836_v53 = vpop.permute.xlu0 %13835 }
 0x803   :  { %v13916_v29 = vpop.permute.xlu1 %13915  ;;  %25497 = vmatmul.mubr.msk.f32.vlgmr.msra.gmra.mrb[158].mxu1 %vm648_vm2, %v13836_v53 }
 0x804   :  { %v29948_v33 = vpop.f32.mrb[116].mxu0  ;;  %25500 = vmatpush3.xpose.msk.msra.mxu0 %vm648_vm2, %v13916_v29  ;;  %25506 = vmatprep.mubr.msk.f32.mxu1 %vm26967_vm1, %v32512_v25 }
 0x805   :  { %32816 = vst [vmem:[#allocation137_spill] sm:$0xff] %v29948_v33  ;;  %v25273_v38 = vpop.f32.mrb[117].mxu0  ;;  %25509 = vmatprep.subr.mxu0 %v32512_v25 }
 0x806   :  { %v13994_v16 = vpop.permute.xlu0 %13993 }
 0x807   :  { %v13914_v15 = vpop.permute.xlu1 %13913  ;;  %25505 = vmatpush3.xpose.msk.msra.mxu1 %vm648_vm2, %v13994_v16 }
 0x808   :  { %25502 = vmatmul.mubr.msk.f32.vlgmr.msra.gmra.mrb[162].mxu0 %vm648_vm2, %v13914_v15  ;;  %25514 = vmatprep.subr.mxu1 %v32512_v25 }
 0x809   :  { %25511 = vmatprep.mubr.msk.f32.mxu0 %vm26967_vm1, %v32512_v25 }
 0x80a   :  { %v13992_v53 = vpop.permute.xlu0 %13991 }
 0x80b   :  { %v14072_v10 = vpop.permute.xlu1 %14071  ;;  %25507 = vmatmul.mubr.msk.f32.vlgmr.msra.gmra.mrb[160].mxu1 %vm648_vm2, %v13992_v53 }
 0x80c   :  { %25510 = vmatpush3.xpose.msk.msra.mxu0 %vm648_vm2, %v14072_v10  ;;  %25516 = vmatprep.mubr.msk.f32.mxu1 %vm26967_vm1, %v32512_v25 }
 0x80d   :  { %25519 = vmatprep.subr.mxu0 %v32512_v25 }
 0x80e   :  { %v14577_v32 = vpop.permute.xlu0 %14576 }
 0x80f   :  { %v14070_v29 = vpop.permute.xlu1 %14069 }
 0x810   :  { %25512 = vmatmul.mubr.msk.f32.vlgmr.msra.gmra.mrb[164].mxu0 %vm648_vm2, %v14070_v29  ;;  %v29965_v15 = vpop.f32.mrb[114].mxu1 }
 0x811   :  { %32817 = vst [vmem:[#allocation139_spill] sm:$0xff] %v29965_v15  ;;  %25520 = vmatpush3.msk.msra.mxu0 %vm3655_vm3, %v14577_v32  ;;  %v25278_v38 = vpop.f32.mrb[115].mxu1  ;;  %25521 = vmatprep.mubr.msk.f32.mxu0 %vm26967_vm1, %v32512_v25 }
 0x812   :  { %25529 = vmatprep.subr.mxu0 %v32512_v25 }
 0x813   :  { %v14500_v16 = vpop.permute.xlu1 %14499  ;;  %v29971_v53 = vpop.f32.mrb[118].mxu0 }
 0x814   :  { %32818 = vst [vmem:[#allocation141_spill] sm:$0xff] %v29971_v53  ;;  %25515 = vmatpush3.msk.msra.mxu1 %vm3655_vm3, %v14500_v16  ;;  %v25283_v10 = vpop.f32.mrb[119].mxu0 }
 0x815   :  { %25524 = vmatprep.subr.mxu1 %v32512_v25 }
 0x817   :  { %v30131_v19 = vpop.permute.xlu1 %14653 }
 0x81b   :  { %v30135_v5 = vpop.permute.xlu1 %14807 }
 0x845   :  { %v29975_v33 = vpop.f32.mrb[116].mxu1 }
 0x846   :  { %32819 = vst [vmem:[#allocation143_spill] sm:$0xff] %v29975_v33  ;;  %v25288_v29 = vpop.f32.mrb[117].mxu1 }
 0x849   :  { %v29977_v15 = vpop.f32.mrb[120].mxu0  ;;  %v29979_v32 = vpop.f32.mrb[118].mxu1 }
 0x84a   :  { %32820 = vst [vmem:[#allocation145_spill] sm:$0xff] %v29977_v15  ;;  %32821 = vst [vmem:[#allocation147_spill] sm:$0xff] %v29979_v32  ;;  %v25293_v38 = vpop.f32.mrb[121].mxu0  ;;  %v25298_v4 = vpop.f32.mrb[119].mxu1 }
 0x84e   :  { %v29981_v61 = vpop.f32.mrb[122].mxu0  ;;  %v29983_v31 = vpop.f32.mrb[120].mxu1 }
 0x84f   :  { %32822 = vst [vmem:[#allocation149_spill] sm:$0xff] %v29981_v61  ;;  %32823 = vst [vmem:[#allocation151_spill] sm:$0xff] %v29983_v31  ;;  %v25303_v45 = vpop.f32.mrb[123].mxu0  ;;  %v25308_v53 = vpop.f32.mrb[121].mxu1 }
 0x853   :  { %v29985_v43 = vpop.f32.mrb[124].mxu0 }
 0x854   :  { %32824 = vst [vmem:[#allocation153_spill] sm:$0xff] %v29985_v43  ;;  %v29987_v16 = vpop.f32.mrb[122].mxu1  ;;  %v25313_v10 = vpop.f32.mrb[125].mxu0 }
 0x855   :  { %32825 = vst [vmem:[#allocation155_spill] sm:$0xff] %v29987_v16  ;;  %v25318_v8 = vpop.f32.mrb[123].mxu1 }
 0x859   :  { %v29989_v33 = vpop.f32.mrb[126].mxu0  ;;  %v29991_v29 = vpop.f32.mrb[124].mxu1 }
 0x85a   :  { %32826 = vst [vmem:[#allocation49_spill] sm:$0xff] %v29989_v33  ;;  %32827 = vst [vmem:[#allocation52_spill] sm:$0xff] %v29991_v29  ;;  %v25323_v15 = vpop.f32.mrb[127].mxu0  ;;  %v25328_v32 = vpop.f32.mrb[125].mxu1 }
 0x85e   :  { %v29993_v38 = vpop.f32.mrb[128].mxu0  ;;  %v29995_v4 = vpop.f32.mrb[126].mxu1 }
 0x85f   :  { %32828 = vst [vmem:[#allocation142_spill] sm:$0xff] %v29993_v38  ;;  %32829 = vst [vmem:[#allocation134_spill] sm:$0xff] %v29995_v4  ;;  %v25333_v61 = vpop.f32.mrb[129].mxu0  ;;  %v25338_v31 = vpop.f32.mrb[127].mxu1 }
 0x863   :  { %v29997_v45 = vpop.f32.mrb[130].mxu0  ;;  %v29999_v53 = vpop.f32.mrb[128].mxu1 }
 0x864   :  { %32830 = vst [vmem:[#allocation144_spill] sm:$0xff] %v29997_v45  ;;  %32831 = vst [vmem:[#allocation136_spill] sm:$0xff] %v29999_v53  ;;  %v25343_v43 = vpop.f32.mrb[131].mxu0  ;;  %v25348_v16 = vpop.f32.mrb[129].mxu1 }
 0x867   :  { %v30001_v10 = vpop.f32.mrb[132].mxu0 }
 0x868   :  { %32832 = vst [vmem:[#allocation115_spill] sm:$0xff] %v30001_v10  ;;  %v25353_v8 = vpop.f32.mrb[133].mxu0 }
 0x86c   :  { %v30003_v33 = vpop.f32.mrb[130].mxu1 }
 0x86d   :  { %v25358_v29 = vpop.f32.mrb[131].mxu1  ;;  %v14147_v15 = vsel %vm3296_vm4, %v30003_v33, -inf }
 0x86e   :  { %14148 = vmax.xlane.f32.xlu0 %v14147_v15 }
 0x870   :  { %v30007_v32 = vpop.f32.mrb[134].mxu0 }
 0x871   :  { %v25363_v61 = vpop.f32.mrb[135].mxu0  ;;  %v14150_v31 = vsel %vm3296_vm4, %v30007_v32, -inf  ;;  %v30011_v4 = vpop.f32.mrb[132].mxu1 }
 0x872   :  { %14151 = vmax.xlane.f32.xlu1 %v14150_v31  ;;  %v25368_v43 = vpop.f32.mrb[133].mxu1  ;;  %v14153_v16 = vsel %vm3296_vm4, %v30011_v4, -inf }
 0x873   :  { %14154 = vmax.xlane.f32.xlu0 %v14153_v16 }
 0x875   :  { %v30015_v8 = vpop.f32.mrb[136].mxu0 }
 0x876   :  { %v25373_v29 = vpop.f32.mrb[137].mxu0  ;;  %v14156_v15 = vsel %vm3296_vm4, %v30015_v8, -inf  ;;  %v30019_v53 = vpop.f32.mrb[134].mxu1 }
 0x877   :  { %14157 = vmax.xlane.f32.xlu0 %v14156_v15  ;;  %v25378_v61 = vpop.f32.mrb[135].mxu1  ;;  %v14159_v10 = vsel %vm3296_vm4, %v30019_v53, -inf }
 0x878   :  { %14160 = vmax.xlane.f32.xlu1 %v14159_v10 }
 0x879   :  { %v30023_v31 = vpop.f32.mrb[138].mxu0 }
 0x87a   :  { %v25383_v43 = vpop.f32.mrb[139].mxu0  ;;  %v14162_v16 = vsel %vm3296_vm4, %v30023_v31, -inf }
 0x87b   :  { %14163 = vmax.xlane.f32.xlu0 %v14162_v16  ;;  %v30027_v45 = vpop.f32.mrb[136].mxu1 }
 0x87c   :  { %v25388_v29 = vpop.f32.mrb[137].mxu1  ;;  %v14165_v38 = vsel %vm3296_vm4, %v30027_v45, -inf }
 0x87d   :  { %14166 = vmax.xlane.f32.xlu1 %v14165_v38 }
 0x880   :  { %v30031_v15 = vpop.f32.mrb[140].mxu0 }
 0x881   :  { %v25393_v61 = vpop.f32.mrb[141].mxu0  ;;  %v14168_v10 = vsel %vm3296_vm4, %v30031_v15, -inf }
 0x882   :  { %14169 = vmax.xlane.f32.xlu0 %v14168_v10 }
 0x883   :  { %v30035_v36 = vpop.f32.mrb[138].mxu1 }
 0x884   :  { %v25398_v43 = vpop.f32.mrb[139].mxu1  ;;  %v14171_v16 = vsel %vm3296_vm4, %v30035_v36, -inf }
 0x885   :  { %14172 = vmax.xlane.f32.xlu1 %v14171_v16 }
 0x888   :  { %v30039_v54 = vpop.f32.mrb[142].mxu0 }
 0x889   :  { %v25403_v29 = vpop.f32.mrb[143].mxu0  ;;  %v14174_v38 = vsel %vm3296_vm4, %v30039_v54, -inf }
 0x88a   :  { %14175 = vmax.xlane.f32.xlu0 %v14174_v38 }
 0x88b   :  { %v30043_v58 = vpop.f32.mrb[140].mxu1 }
 0x88c   :  { %v25408_v61 = vpop.f32.mrb[141].mxu1  ;;  %v14177_v10 = vsel %vm3296_vm4, %v30043_v58, -inf }
 0x88d   :  { %14178 = vmax.xlane.f32.xlu1 %v14177_v10 }
 0x890   :  { %v30047_v3 = vpop.f32.mrb[144].mxu0 }
 0x891   :  { %v25413_v43 = vpop.f32.mrb[145].mxu0  ;;  %v14180_v16 = vsel %vm3296_vm4, %v30047_v3, -inf }
 0x892   :  { %14181 = vmax.xlane.f32.xlu0 %v14180_v16 }
 0x893   :  { %v30051_v37 = vpop.f32.mrb[142].mxu1 }
 0x894   :  { %v25418_v29 = vpop.f32.mrb[143].mxu1  ;;  %v14183_v38 = vsel %vm3296_vm4, %v30051_v37, -inf }
 0x895   :  { %14184 = vmax.xlane.f32.xlu1 %v14183_v38 }
 0x898   :  { %v30055_v11 = vpop.f32.mrb[146].mxu0 }
 0x899   :  { %v25423_v61 = vpop.f32.mrb[147].mxu0  ;;  %v14186_v10 = vsel %vm3296_vm4, %v30055_v11, -inf }
 0x89a   :  { %14187 = vmax.xlane.f32.xlu0 %v14186_v10 }
 0x89b   :  { %v30059_v9 = vpop.f32.mrb[144].mxu1 }
 0x89c   :  { %v25428_v43 = vpop.f32.mrb[145].mxu1  ;;  %v14189_v16 = vsel %vm3296_vm4, %v30059_v9, -inf }
 0x89d   :  { %14190 = vmax.xlane.f32.xlu1 %v14189_v16 }
 0x8a0   :  { %v30063_v51 = vpop.f32.mrb[148].mxu0 }
 0x8a1   :  { %v25433_v29 = vpop.f32.mrb[149].mxu0  ;;  %v14192_v38 = vsel %vm3296_vm4, %v30063_v51, -inf }
 0x8a2   :  { %14193 = vmax.xlane.f32.xlu0 %v14192_v38 }
 0x8a3   :  { %v30067_v41 = vpop.f32.mrb[146].mxu1 }
 0x8a4   :  { %v25438_v61 = vpop.f32.mrb[147].mxu1  ;;  %v14195_v10 = vsel %vm3296_vm4, %v30067_v41, -inf }
 0x8a5   :  { %14196 = vmax.xlane.f32.xlu1 %v14195_v10 }
 0x8a8   :  { %v30071_v55 = vpop.f32.mrb[150].mxu0 }
 0x8a9   :  { %v25443_v43 = vpop.f32.mrb[151].mxu0  ;;  %v14198_v16 = vsel %vm3296_vm4, %v30071_v55, -inf }
 0x8aa   :  { %14199 = vmax.xlane.f32.xlu0 %v14198_v16 }
 0x8ab   :  { %v30075_v1 = vpop.f32.mrb[148].mxu1 }
 0x8ac   :  { %v25448_v29 = vpop.f32.mrb[149].mxu1  ;;  %v14201_v38 = vsel %vm3296_vm4, %v30075_v1, -inf }
 0x8ad   :  { %14202 = vmax.xlane.f32.xlu1 %v14201_v38 }
 0x8b0   :  { %v30079_v20 = vpop.f32.mrb[152].mxu0 }
 0x8b1   :  { %v25453_v61 = vpop.f32.mrb[153].mxu0  ;;  %v14204_v10 = vsel %vm3296_vm4, %v30079_v20, -inf }
 0x8b2   :  { %14205 = vmax.xlane.f32.xlu0 %v14204_v10 }
 0x8b3   :  { %v30083_v12 = vpop.f32.mrb[150].mxu1 }
 0x8b4   :  { %v25458_v43 = vpop.f32.mrb[151].mxu1  ;;  %v14207_v16 = vsel %vm3296_vm4, %v30083_v12, -inf }
 0x8b5   :  { %14208 = vmax.xlane.f32.xlu1 %v14207_v16 }
 0x8b8   :  { %v30087_v23 = vpop.f32.mrb[154].mxu0 }
 0x8b9   :  { %v25463_v29 = vpop.f32.mrb[155].mxu0  ;;  %v14210_v38 = vsel %vm3296_vm4, %v30087_v23, -inf }
 0x8ba   :  { %14211 = vmax.xlane.f32.xlu0 %v14210_v38 }
 0x8bb   :  { %v30091_v49 = vpop.f32.mrb[152].mxu1 }
 0x8bc   :  { %v25468_v61 = vpop.f32.mrb[153].mxu1  ;;  %v14213_v10 = vsel %vm3296_vm4, %v30091_v49, -inf }
 0x8bd   :  { %14214 = vmax.xlane.f32.xlu1 %v14213_v10 }
 0x8c0   :  { %v30095_v42 = vpop.f32.mrb[156].mxu0 }
 0x8c1   :  { %v25473_v43 = vpop.f32.mrb[157].mxu0  ;;  %v14216_v16 = vsel %vm3296_vm4, %v30095_v42, -inf }
 0x8c2   :  { %14217 = vmax.xlane.f32.xlu0 %v14216_v16 }
 0x8c3   :  { %v30099_v14 = vpop.f32.mrb[154].mxu1 }
 0x8c4   :  { %v25478_v29 = vpop.f32.mrb[155].mxu1  ;;  %v14219_v38 = vsel %vm3296_vm4, %v30099_v14, -inf }
 0x8c5   :  { %14220 = vmax.xlane.f32.xlu1 %v14219_v38 }
 0x8c8   :  { %v30103_v2 = vpop.f32.mrb[158].mxu0 }
 0x8c9   :  { %v25483_v61 = vpop.f32.mrb[159].mxu0  ;;  %v14222_v10 = vsel %vm3296_vm4, %v30103_v2, -inf }
 0x8ca   :  { %14223 = vmax.xlane.f32.xlu0 %v14222_v10 }
 0x8cd   :  { %v30107_v63 = vpop.f32.mrb[156].mxu1 }
 0x8ce   :  { %v25488_v43 = vpop.f32.mrb[157].mxu1  ;;  %v14225_v16 = vsel %vm3296_vm4, %v30107_v63, -inf }
 0x8cf   :  { %14226 = vmax.xlane.f32.xlu1 %v14225_v16 }
 0x8d2   :  { %v30111_v50 = vpop.f32.mrb[160].mxu0 }
 0x8d3   :  { %v25493_v29 = vpop.f32.mrb[161].mxu0  ;;  %v14228_v38 = vsel %vm3296_vm4, %v30111_v50, -inf }
 0x8d4   :  { %14229 = vmax.xlane.f32.xlu0 %v14228_v38 }
 0x8d6   :  { %v30115_v26 = vpop.f32.mrb[158].mxu1 }
 0x8d7   :  { %v25498_v61 = vpop.f32.mrb[159].mxu1  ;;  %v14231_v10 = vsel %vm3296_vm4, %v30115_v26, -inf }
 0x8d8   :  { %14232 = vmax.xlane.f32.xlu1 %v14231_v10 }
 0x8db   :  { %v30119_v40 = vpop.f32.mrb[162].mxu0 }
 0x8dc   :  { %v25503_v43 = vpop.f32.mrb[163].mxu0  ;;  %v14234_v16 = vsel %vm3296_vm4, %v30119_v40, -inf }
 0x8dd   :  { %14235 = vmax.xlane.f32.xlu0 %v14234_v16  ;;  %v30133_v43 = vpop.permute.xlu0 %14730 }
 0x8de   :  { %v30123_v48 = vpop.f32.mrb[160].mxu1 }
 0x8df   :  { %v25508_v29 = vpop.f32.mrb[161].mxu1  ;;  %v14237_v38 = vsel %vm3296_vm4, %v30123_v48, -inf }
 0x8e0   :  { %14238 = vmax.xlane.f32.xlu1 %v14237_v38  ;;  %v30139_v29 = vpop.permute.xlu1 %14961 }
 0x8e1   :  { %v30137_v16 = vpop.permute.xlu0 %14884 }
 0x8e3   :  { %v30127_v24 = vpop.f32.mrb[164].mxu0 }
 0x8e4   :  { %32833 = vst [vmem:[#allocation138_spill] sm:$0xff] %v30127_v24  ;;  %v25513_v61 = vpop.f32.mrb[165].mxu0  ;;  %v14240_v10 = vsel %vm3296_vm4, %v30127_v24, -inf  ;;  %v30143_v38 = vpop.permute.xlu1 %15115 }
 0x8e5   :  { %14241 = vmax.xlane.f32.xlu0 %v14240_v10  ;;  %v30141_v52 = vpop.permute.xlu0 %15038 }
 0x8fb   :  { %v14149_v0 = vpop.xlane.xlu0 %14148 }
 0x8fc   :  { %v14243_v61 = vsub.f32 %v30003_v33, %v14149_v0 }
 0x8fe   :  { %v14275_v22 = vmul.f32 1.442695, %v14243_v61 }
 0x8ff   :  { %v14152_v30 = vpop.xlane.xlu1 %14151 }
 0x900   :  { %26334 = vpow2.f32 %v14275_v22  ;;  %v14244_v10 = vsub.f32 %v30007_v32, %v14152_v30  ;;  %v14155_v13 = vpop.xlane.xlu0 %14154 }
 0x901   :  { %v14245_v28 = vsub.f32 %v30011_v4, %v14155_v13 }
 0x902   :  { %v14277_v7 = vmul.f32 1.442695, %v14244_v10 }
 0x903   :  { %v14279_v17 = vmul.f32 1.442695, %v14245_v28 }
 0x904   :  { %26336 = vpow2.f32 %v14277_v7  ;;  %v14158_v39 = vpop.xlane.xlu0 %14157 }
 0x905   :  { %26338 = vpow2.f32 %v14279_v17  ;;  %v14246_v18 = vsub.f32 %v30015_v8, %v14158_v39  ;;  %v14161_v59 = vpop.xlane.xlu1 %14160 }
 0x906   :  { %v14247_v24 = vsub.f32 %v30019_v53, %v14161_v59 }
 0x907   :  { %v14281_v47 = vmul.f32 1.442695, %v14246_v18 }
 0x908   :  { %v14283_v0 = vmul.f32 1.442695, %v14247_v24  ;;  %v14164_v33 = vpop.xlane.xlu0 %14163 }
 0x909   :  { %26340 = vpow2.f32 %v14281_v47  ;;  %v14248_v22 = vsub.f32 %v30023_v31, %v14164_v33 }
 0x90a   :  { %v30151_v30 = vpop.eup %26334  ;;  %26342 = vpow2.f32 %v14283_v0  ;;  %v14167_v13 = vpop.xlane.xlu1 %14166 }
 0x90b   :  { %v14339_v28 = vsel %vm3296_vm4, %v30151_v30, 0.0  ;;  %v14285_v7 = vmul.f32 1.442695, %v14248_v22  ;;  %v14249_v17 = vsub.f32 %v30027_v45, %v14167_v13 }
 0x90c   :  { %14340 = vadd.xlane.f32.xlu1 %v14339_v28 }
 0x90d   :  { %26344 = vpow2.f32 %v14285_v7  ;;  %v14287_v39 = vmul.f32 1.442695, %v14249_v17 }
 0x90e   :  { %v30156_v59 = vpop.eup %26336 }
 0x90f   :  { %v30158_v24 = vpop.eup %26338  ;;  %v14342_v47 = vsel %vm3296_vm4, %v30156_v59, 0.0  ;;  %26346 = vpow2.f32 %v14287_v39  ;;  %v14170_v18 = vpop.xlane.xlu0 %14169 }
 0x910   :  { %14343 = vadd.xlane.f32.xlu0 %v14342_v47  ;;  %v14345_v4 = vsel %vm3296_vm4, %v30158_v24, 0.0  ;;  %v14250_v53 = vsub.f32 %v30031_v15, %v14170_v18 }
 0x911   :  { %14346 = vadd.xlane.f32.xlu1 %v14345_v4 }
 0x912   :  { %v14289_v45 = vmul.f32 1.442695, %v14250_v53  ;;  %v14173_v32 = vpop.xlane.xlu1 %14172 }
 0x913   :  { %v30165_v8 = vpop.eup %26340  ;;  %v14251_v31 = vsub.f32 %v30035_v36, %v14173_v32 }
 0x914   :  { %v30168_v61 = vpop.eup %26342  ;;  %26348 = vpow2.f32 %v14289_v45  ;;  %v14348_v10 = vsel %vm3296_vm4, %v30165_v8, 0.0 }
 0x915   :  { %14349 = vadd.xlane.f32.xlu0 %v14348_v10  ;;  %v14291_v0 = vmul.f32 1.442695, %v14251_v31  ;;  %v14351_v33 = vsel %vm3296_vm4, %v30168_v61, 0.0 }
 0x916   :  { %14352 = vadd.xlane.f32.xlu1 %v14351_v33 }
 0x917   :  { %v30174_v15 = vpop.eup %26344  ;;  %26350 = vpow2.f32 %v14291_v0  ;;  %v14176_v22 = vpop.xlane.xlu0 %14175 }
 0x918   :  { %v14252_v13 = vsub.f32 %v30039_v54, %v14176_v22  ;;  %v14354_v36 = vsel %vm3296_vm4, %v30174_v15, 0.0 }
 0x919   :  { %v30179_v28 = vpop.eup %26346  ;;  %14355 = vadd.xlane.f32.xlu0 %v14354_v36 }
 0x91a   :  { %v14293_v7 = vmul.f32 1.442695, %v14252_v13  ;;  %v14179_v17 = vpop.xlane.xlu1 %14178  ;;  %v14357_v39 = vsel %vm3296_vm4, %v30179_v28, 0.0 }
 0x91b   :  { %v14253_v47 = vsub.f32 %v30043_v58, %v14179_v17  ;;  %14358 = vadd.xlane.f32.xlu1 %v14357_v39 }
 0x91c   :  { %26352 = vpow2.f32 %v14293_v7 }
 0x91d   :  { %v14295_v18 = vmul.f32 1.442695, %v14253_v47 }
 0x91e   :  { %v30184_v4 = vpop.eup %26348 }
 0x91f   :  { %26354 = vpow2.f32 %v14295_v18  ;;  %v14182_v54 = vpop.xlane.xlu0 %14181  ;;  %v14360_v53 = vsel %vm3296_vm4, %v30184_v4, 0.0 }
 0x920   :  { %v14254_v45 = vsub.f32 %v30047_v3, %v14182_v54  ;;  %14361 = vadd.xlane.f32.xlu0 %v14360_v53 }
 0x921   :  { %v30189_v32 = vpop.eup %26350 }
 0x922   :  { %v14297_v31 = vmul.f32 1.442695, %v14254_v45  ;;  %v14185_v10 = vpop.xlane.xlu1 %14184  ;;  %v14363_v58 = vsel %vm3296_vm4, %v30189_v32, 0.0 }
 0x923   :  { %v14255_v0 = vsub.f32 %v30051_v37, %v14185_v10  ;;  %14364 = vadd.xlane.f32.xlu1 %v14363_v58 }
 0x924   :  { %26356 = vpow2.f32 %v14297_v31 }
 0x925   :  { %v14299_v33 = vmul.f32 1.442695, %v14255_v0 }
 0x926   :  { %v30194_v22 = vpop.eup %26352 }
 0x927   :  { %26358 = vpow2.f32 %v14299_v33  ;;  %v14188_v13 = vpop.xlane.xlu0 %14187  ;;  %v14366_v3 = vsel %vm3296_vm4, %v30194_v22, 0.0 }
 0x928   :  { %v14256_v36 = vsub.f32 %v30055_v11, %v14188_v13  ;;  %14367 = vadd.xlane.f32.xlu0 %v14366_v3 }
 0x929   :  { %v30199_v7 = vpop.eup %26354 }
 0x92a   :  { %v14301_v17 = vmul.f32 1.442695, %v14256_v36  ;;  %v14191_v39 = vpop.xlane.xlu1 %14190  ;;  %v14369_v37 = vsel %vm3296_vm4, %v30199_v7, 0.0 }
 0x92b   :  { %v14257_v47 = vsub.f32 %v30059_v9, %v14191_v39  ;;  %14370 = vadd.xlane.f32.xlu1 %v14369_v37 }
 0x92c   :  { %26360 = vpow2.f32 %v14301_v17 }
 0x92d   :  { %v14303_v18 = vmul.f32 1.442695, %v14257_v47 }
 0x92e   :  { %v30204_v54 = vpop.eup %26356 }
 0x92f   :  { %26362 = vpow2.f32 %v14303_v18  ;;  %v14194_v53 = vpop.xlane.xlu0 %14193  ;;  %v14372_v11 = vsel %vm3296_vm4, %v30204_v54, 0.0 }
 0x930   :  { %v14258_v45 = vsub.f32 %v30063_v51, %v14194_v53  ;;  %14373 = vadd.xlane.f32.xlu0 %v14372_v11 }
 0x931   :  { %v30209_v31 = vpop.eup %26358 }
 0x932   :  { %v14305_v10 = vmul.f32 1.442695, %v14258_v45  ;;  %v14197_v58 = vpop.xlane.xlu1 %14196  ;;  %v14375_v9 = vsel %vm3296_vm4, %v30209_v31, 0.0 }
 0x933   :  { %v14259_v0 = vsub.f32 %v30067_v41, %v14197_v58  ;;  %14376 = vadd.xlane.f32.xlu1 %v14375_v9 }
 0x934   :  { %26364 = vpow2.f32 %v14305_v10 }
 0x935   :  { %v14307_v33 = vmul.f32 1.442695, %v14259_v0 }
 0x936   :  { %v30214_v13 = vpop.eup %26360 }
 0x937   :  { %26366 = vpow2.f32 %v14307_v33  ;;  %v14200_v3 = vpop.xlane.xlu0 %14199  ;;  %v14378_v51 = vsel %vm3296_vm4, %v30214_v13, 0.0 }
 0x938   :  { %v14260_v36 = vsub.f32 %v30071_v55, %v14200_v3  ;;  %14379 = vadd.xlane.f32.xlu0 %v14378_v51 }
 0x939   :  { %v30219_v17 = vpop.eup %26362 }
 0x93a   :  { %v14309_v39 = vmul.f32 1.442695, %v14260_v36  ;;  %v14203_v37 = vpop.xlane.xlu1 %14202  ;;  %v14381_v41 = vsel %vm3296_vm4, %v30219_v17, 0.0 }
 0x93b   :  { %v14261_v47 = vsub.f32 %v30075_v1, %v14203_v37  ;;  %14382 = vadd.xlane.f32.xlu1 %v14381_v41 }
 0x93c   :  { %26368 = vpow2.f32 %v14309_v39 }
 0x93d   :  { %v14311_v18 = vmul.f32 1.442695, %v14261_v47 }
 0x93e   :  { %v30224_v53 = vpop.eup %26364 }
 0x93f   :  { %26370 = vpow2.f32 %v14311_v18  ;;  %v14206_v11 = vpop.xlane.xlu0 %14205  ;;  %v14384_v55 = vsel %vm3296_vm4, %v30224_v53, 0.0 }
 0x940   :  { %v14262_v45 = vsub.f32 %v30079_v20, %v14206_v11  ;;  %14385 = vadd.xlane.f32.xlu0 %v14384_v55 }
 0x941   :  { %v30229_v10 = vpop.eup %26366 }
 0x942   :  { %v14313_v58 = vmul.f32 1.442695, %v14262_v45  ;;  %v14209_v9 = vpop.xlane.xlu1 %14208  ;;  %v14387_v1 = vsel %vm3296_vm4, %v30229_v10, 0.0 }
 0x943   :  { %v14263_v0 = vsub.f32 %v30083_v12, %v14209_v9  ;;  %14388 = vadd.xlane.f32.xlu1 %v14387_v1 }
 0x944   :  { %26372 = vpow2.f32 %v14313_v58 }
 0x945   :  { %v14315_v33 = vmul.f32 1.442695, %v14263_v0 }
 0x946   :  { %v30234_v3 = vpop.eup %26368 }
 0x947   :  { %26374 = vpow2.f32 %v14315_v33  ;;  %v14212_v51 = vpop.xlane.xlu0 %14211  ;;  %v14390_v20 = vsel %vm3296_vm4, %v30234_v3, 0.0 }
 0x948   :  { %v14264_v36 = vsub.f32 %v30087_v23, %v14212_v51  ;;  %14391 = vadd.xlane.f32.xlu0 %v14390_v20 }
 0x949   :  { %v30239_v39 = vpop.eup %26370 }
 0x94a   :  { %v14317_v37 = vmul.f32 1.442695, %v14264_v36  ;;  %v14215_v41 = vpop.xlane.xlu1 %14214  ;;  %v14393_v12 = vsel %vm3296_vm4, %v30239_v39, 0.0 }
 0x94b   :  { %v14265_v47 = vsub.f32 %v30091_v49, %v14215_v41  ;;  %14394 = vadd.xlane.f32.xlu1 %v14393_v12 }
 0x94c   :  { %26376 = vpow2.f32 %v14317_v37 }
 0x94d   :  { %v14319_v18 = vmul.f32 1.442695, %v14265_v47 }
 0x94e   :  { %v30244_v11 = vpop.eup %26372 }
 0x94f   :  { %26378 = vpow2.f32 %v14319_v18  ;;  %v14396_v55 = vsel %vm3296_vm4, %v30244_v11, 0.0  ;;  %v14218_v0 = vpop.xlane.xlu0 %14217 }
 0x950   :  { %14397 = vadd.xlane.f32.xlu0 %v14396_v55  ;;  %v14266_v33 = vsub.f32 %v30095_v42, %v14218_v0 }
 0x951   :  { %v30248_v23 = vpop.eup %26374 }
 0x952   :  { %v14399_v45 = vsel %vm3296_vm4, %v30248_v23, 0.0  ;;  %v14221_v51 = vpop.xlane.xlu1 %14220  ;;  %v14321_v36 = vmul.f32 1.442695, %v14266_v33 }
 0x953   :  { %14400 = vadd.xlane.f32.xlu1 %v14399_v45  ;;  %v14267_v20 = vsub.f32 %v30099_v14, %v14221_v51 }
 0x954   :  { %26380 = vpow2.f32 %v14321_v36 }
 0x955   :  { %v14323_v37 = vmul.f32 1.442695, %v14267_v20 }
 0x956   :  { %v30252_v58 = vpop.eup %26376 }
 0x957   :  { %v14402_v49 = vsel %vm3296_vm4, %v30252_v58, 0.0  ;;  %26382 = vpow2.f32 %v14323_v37  ;;  %v14224_v18 = vpop.xlane.xlu0 %14223 }
 0x958   :  { %14403 = vadd.xlane.f32.xlu0 %v14402_v49 }
 0x959   :  { %v30256_v9 = vpop.eup %26378 }
 0x95a   :  { %v14405_v1 = vsel %vm3296_vm4, %v30256_v9, 0.0 }
 0x95b   :  { %14406 = vadd.xlane.f32.xlu1 %v14405_v1 }
 0x95c   :  { %v14227_v55 = vpop.xlane.xlu1 %14226 }
 0x95e   :  { %v30266_v41 = vpop.eup %26380 }
 0x95f   :  { %v14408_v47 = vsel %vm3296_vm4, %v30266_v41, 0.0 }
 0x961   :  { %v30268_v12 = vpop.eup %26382  ;;  %v30274_v45 = vpop.xlane.xlu0 %14229 }
 0x962   :  { %32834 = vst [vmem:[#allocation146_spill] sm:$0xff] %v30268_v12  ;;  %v14411_v42 = vsel %vm3296_vm4, %v30268_v12, 0.0 }
 0x965   :  { %v30276_v14 = vpop.xlane.xlu1 %14232 }
 0x96a   :  { %v30278_v49 = vpop.xlane.xlu0 %14235 }
 0x96c   :  { %15269 = vrot.lane.b32.xlu1 %v32774_v6, %s26974_s29 }
 0x96d   :  { %v30280_v1 = vpop.xlane.xlu1 %14238 }
 0x96e   :  { %15192 = vrot.lane.b32.xlu0 %v32769_v21, %s26974_s29 }
 0x972   :  { %v30282_v0 = vpop.xlane.xlu0 %14241 }
 0x98d   :  { %14409 = vadd.xlane.f32.xlu0 %v14408_v47 }
 0x990   :  { %14412 = vadd.xlane.f32.xlu1 %v14411_v42 }
 0x999   :  { %v14341_v33 = vpop.xlane.xlu1 %14340 }
 0x99a   :  { %26384 = vrcp.f32 %v14341_v33 }
 0x99d   :  { %v14344_v51 = vpop.xlane.xlu0 %14343 }
 0x99e   :  { %26386 = vrcp.f32 %v14344_v51  ;;  %v14347_v20 = vpop.xlane.xlu1 %14346 }
 0x99f   :  { %26388 = vrcp.f32 %v14347_v20 }
 0x9a1   :  { %15423 = vrot.lane.b32.xlu1 %v32778_v27, %s26974_s29 }
 0x9a2   :  { %v14350_v36 = vpop.xlane.xlu0 %14349 }
 0x9a3   :  { %26390 = vrcp.f32 %v14350_v36  ;;  %v14353_v37 = vpop.xlane.xlu1 %14352  ;;  %15346 = vrot.lane.b32.xlu0 %v32773_v62, %s26974_s29 }
 0x9a4   :  { %v26385_v47 = vpop.eup %26384  ;;  %26392 = vrcp.f32 %v14353_v37 }
 0x9a5   :  { %v14467_v42 = vmul.f32 %v26385_v47, %v30151_v30 }
 0x9a6   :  { %v14356_v12 = vpop.xlane.xlu0 %14355 }
 0x9a7   :  { %25517 = vmatmul.mubr.msk.f32.vlgmr.msra.gmra.mrb[162].mxu1 %vm3651_vm5, %v14467_v42  ;;  %26394 = vrcp.f32 %v14356_v12  ;;  %v14268_v12 = vsub.f32 %v30103_v2, %v14224_v18  ;;  %v14269_v2 = vsub.f32 %v30107_v63, %v14227_v55 }
 0x9a8   :  { %v26387_v33 = vpop.eup %26386  ;;  %25525 = vmatpush3.msk.msra.mxu1 %vm3655_vm3, %v30131_v19  ;;  %25526 = vmatprep.mubr.msk.f32.mxu1 %vm26967_vm1, %v32512_v25  ;;  %v14359_v51 = vpop.xlane.xlu1 %14358 }
 0x9a9   :  { %v26389_v20 = vpop.eup %26388  ;;  %v14468_v36 = vmul.f32 %v26387_v33, %v30156_v59  ;;  %25534 = vmatprep.subr.mxu1 %v32512_v25  ;;  %26396 = vrcp.f32 %v14359_v51 }
 0x9aa   :  { %v14469_v30 = vmul.f32 %v26389_v20, %v30158_v24 }
 0x9ab   :  { %25522 = vmatmul.mubr.msk.f32.vlgmr.msra.gmra.mrb[166].mxu0 %vm3651_vm5, %v14468_v36 }
 0x9ac   :  { %25530 = vmatpush3.msk.msra.mxu0 %vm3655_vm3, %v30133_v43  ;;  %25527 = vmatmul.mubr.msk.f32.vlgmr.msra.gmra.mrb[164].mxu1 %vm3651_vm5, %v14469_v30 }
 0x9ad   :  { %v26391_v19 = vpop.eup %26390  ;;  %25535 = vmatpush3.msk.msra.mxu1 %vm3655_vm3, %v30135_v5  ;;  %25531 = vmatprep.mubr.msk.f32.mxu0 %vm26967_vm1, %v32512_v25  ;;  %v14362_v59 = vpop.xlane.xlu0 %14361  ;;  %v14325_v5 = vmul.f32 1.442695, %v14268_v12 }
 0x9ae   :  { %v26393_v37 = vpop.eup %26392  ;;  %25539 = vmatprep.subr.mxu0 %v32512_v25  ;;  %v14470_v24 = vmul.f32 %v26391_v19, %v30165_v8  ;;  %26398 = vrcp.f32 %v14362_v59  ;;  %25536 = vmatprep.mubr.msk.f32.mxu1 %vm26967_vm1, %v32512_v25 }
 0x9af   :  { %25544 = vmatprep.subr.mxu1 %v32512_v25  ;;  %v14471_v43 = vmul.f32 %v26393_v37, %v30168_v61  ;;  %v14327_v61 = vmul.f32 1.442695, %v14269_v2 }
 0x9b0   :  { %25532 = vmatmul.mubr.msk.f32.vlgmr.msra.gmra.mrb[168].mxu0 %vm3651_vm5, %v14470_v24  ;;  %v14365_v18 = vpop.xlane.xlu1 %14364  ;;  %v14270_v24 = vsub.f32 %v30111_v50, %v30274_v45 }
 0x9b1   :  { %v26395_v47 = vpop.eup %26394  ;;  %25540 = vmatpush3.msk.msra.mxu0 %vm3655_vm3, %v30137_v16  ;;  %25537 = vmatmul.mubr.msk.f32.vlgmr.msra.gmra.mrb[166].mxu1 %vm3651_vm5, %v14471_v43  ;;  %26400 = vrcp.f32 %v14365_v18  ;;  %v14271_v43 = vsub.f32 %v30115_v26, %v30276_v14 }
 0x9b2   :  { %25545 = vmatpush3.msk.msra.mxu1 %vm3655_vm3, %v30139_v29  ;;  %25541 = vmatprep.mubr.msk.f32.mxu0 %vm26967_vm1, %v32512_v25  ;;  %v14472_v63 = vmul.f32 %v26395_v47, %v30174_v15  ;;  %26402 = vpow2.f32 %v14325_v5  ;;  %v14329_v18 = vmul.f32 1.442695, %v14270_v24 }
 0x9b3   :  { %v26397_v8 = vpop.eup %26396  ;;  %25549 = vmatprep.subr.mxu0 %v32512_v25  ;;  %25546 = vmatprep.mubr.msk.f32.mxu1 %vm26967_vm1, %v32512_v25  ;;  %26404 = vpow2.f32 %v14327_v61 }
 0x9b4   :  { %25542 = vmatmul.mubr.msk.f32.vlgmr.msra.gmra.mrb[170].mxu0 %vm3651_vm5, %v14472_v63  ;;  %25554 = vmatprep.subr.mxu1 %v32512_v25  ;;  %v14473_v16 = vmul.f32 %v26397_v8, %v30179_v28  ;;  %v14331_v8 = vmul.f32 1.442695, %v14271_v43 }
 0x9b5   :  { %25550 = vmatpush3.msk.msra.mxu0 %vm3655_vm3, %v30141_v52  ;;  %25551 = vmatprep.mubr.msk.f32.mxu0 %vm26967_vm1, %v32512_v25 }
 0x9b6   :  { %25547 = vmatmul.mubr.msk.f32.vlgmr.msra.gmra.mrb[168].mxu1 %vm3651_vm5, %v14473_v16  ;;  %25559 = vmatprep.subr.mxu0 %v32512_v25 }
 0x9b7   :  { %25555 = vmatpush3.msk.msra.mxu1 %vm3655_vm3, %v30143_v38  ;;  %25556 = vmatprep.mubr.msk.f32.mxu1 %vm26967_vm1, %v32512_v25 }
 0x9b8   :  { %v26399_v29 = vpop.eup %26398  ;;  %25564 = vmatprep.subr.mxu1 %v32512_v25  ;;  %v14371_v33 = vpop.xlane.xlu1 %14370 }
 0x9b9   :  { %v14474_v15 = vmul.f32 %v26399_v29, %v30184_v4 }
 0x9bb   :  { %v26401_v52 = vpop.eup %26400  ;;  %25552 = vmatmul.mubr.msk.f32.vlgmr.msra.gmra.mrb[172].mxu0 %vm3651_vm5, %v14474_v15 }
 0x9bc   :  { %v14475_v28 = vmul.f32 %v26401_v52, %v30189_v32  ;;  %25561 = vmatprep.mubr.msk.f32.mxu0 %vm26967_vm1, %v32512_v25  ;;  %v30344_v55 = vpop.eup %26402  ;;  %v14368_v32 = vpop.xlane.xlu0 %14367  ;;  %v14272_v52 = vsub.f32 %v30119_v40, %v30278_v49 }
 0x9bd   :  { %v30349_v38 = vpop.eup %26404  ;;  %v14414_v4 = vsel %vm3296_vm4, %v30344_v55, 0.0  ;;  %26406 = vrcp.f32 %v14368_v32 }
 0x9be   :  { %25557 = vmatmul.mubr.msk.f32.vlgmr.msra.gmra.mrb[170].mxu1 %vm3651_vm5, %v14475_v28  ;;  %v14417_v42 = vsel %vm3296_vm4, %v30349_v38, 0.0  ;;  %26408 = vrcp.f32 %v14371_v33  ;;  %v14273_v28 = vsub.f32 %v30123_v48, %v30280_v1 }
 0x9bf   :  { %25566 = vmatprep.mubr.msk.f32.mxu1 %vm26967_vm1, %v32512_v25  ;;  %26410 = vpow2.f32 %v14329_v18 }
 0x9c0   :  { %v14374_v51 = vpop.xlane.xlu0 %14373  ;;  %v14377_v20 = vpop.xlane.xlu1 %14376  ;;  %26412 = vpow2.f32 %v14331_v8  ;;  %v14335_v33 = vmul.f32 1.442695, %v14273_v28 }
 0x9c1   :  { %26414 = vrcp.f32 %v14374_v51  ;;  %v32835_v51 = vld [vmem:[#allocation60_spill] sm:$0xff] }
 0x9c2   :  { %14415 = vadd.xlane.f32.xlu0 %v14414_v4  ;;  %26416 = vrcp.f32 %v14377_v20  ;;  %v14333_v4 = vmul.f32 1.442695, %v14272_v52  ;;  %v32836_v20 = vld [vmem:[#allocation138_spill] sm:$0xff] }
 0x9c3   :  { %v14274_v8 = vsub.f32 %v32836_v20, %v30282_v0  ;;  %v32839_v0 = vld [vmem:[#allocation54_spill] sm:$0xff] }
 0x9c4   :  { %26418 = vpow2.f32 %v14333_v4  ;;  %v32840_v4 = vld [vmem:[#allocation56_spill] sm:$0xff] }
 0x9c5   :  { %14418 = vadd.xlane.f32.xlu1 %v14417_v42  ;;  %v30355_v36 = vpop.xlane.xlu0 %14379  ;;  %26420 = vpow2.f32 %v14335_v33  ;;  %v32842_v33 = vld [vmem:[#allocation39_spill] sm:$0xff] }
 0x9c6   :  { %26422 = vrcp.f32 %v30355_v36 }
 0x9c7   :  { %v26407_v63 = vpop.eup %26406 }
 0x9c8   :  { %v30359_v30 = vpop.xlane.xlu1 %14382  ;;  %v26409_v16 = vpop.eup %26408  ;;  %v14476_v15 = vmul.f32 %v26407_v63, %v30194_v22 }
 0x9c9   :  { %v14477_v50 = vmul.f32 %v26409_v16, %v30199_v7  ;;  %v30395_v22 = vpop.eup %26410  ;;  %26424 = vrcp.f32 %v30359_v30  ;;  %v32837_v16 = vld [vmem:[#allocation64_spill] sm:$0xff] }
 0x9ca   :  { %v30397_v45 = vpop.eup %26412  ;;  %v14420_v14 = vsel %vm3296_vm4, %v30395_v22, 0.0 }
 0x9cb   :  { %v14423_v7 = vsel %vm3296_vm4, %v30397_v45, 0.0  ;;  %v26415_v32 = vpop.eup %26414 }
 0x9cc   :  { %v26417_v43 = vpop.eup %26416  ;;  %v14478_v63 = vmul.f32 %v26415_v32, %v30204_v54 }
 0x9cd   :  { %v30363_v12 = vpop.xlane.xlu0 %14385  ;;  %v14479_v40 = vmul.f32 %v26417_v43, %v30209_v31  ;;  %v32843_v43 = vld [vmem:[#allocation70_spill] sm:$0xff] }
 0x9ce   :  { %v30427_v54 = vpop.eup %26418 }
 0x9cf   :  { %v30429_v49 = vpop.eup %26420  ;;  %v14426_v1 = vsel %vm3296_vm4, %v30427_v54, 0.0 }
 0x9d0   :  { %v30365_v19 = vpop.xlane.xlu1 %14388  ;;  %v14429_v31 = vsel %vm3296_vm4, %v30429_v49, 0.0 }
 0x9d5   :  { %v30367_v59 = vpop.xlane.xlu0 %14391 }
 0x9d6   :  { %15577 = vrot.lane.b32.xlu1 %v32782_v34, %s26974_s29 }
 0x9d8   :  { %15500 = vrot.lane.b32.xlu0 %v32777_v56, %s26974_s29  ;;  %v30369_v37 = vpop.xlane.xlu1 %14394 }
 0x9dd   :  { %v30373_v2 = vpop.xlane.xlu0 %14397 }
 0x9e0   :  { %v30377_v5 = vpop.xlane.xlu1 %14400 }
 0x9e5   :  { %v30379_v47 = vpop.xlane.xlu0 %14403 }
 0x9e8   :  { %v30381_v61 = vpop.xlane.xlu1 %14406 }
 0x9e9   :  { %v15193_v29 = vpop.permute.xlu0 %15192 }
 0x9ea   :  { %25560 = vmatpush3.msk.msra.mxu0 %vm3655_vm3, %v15193_v29  ;;  %v14337_v29 = vmul.f32 1.442695, %v14274_v8 }
 0x9eb   :  { %25562 = vmatmul.mubr.msk.f32.vlgmr.msra.gmra.mrb[174].mxu0 %vm3651_vm5, %v14476_v15  ;;  %25569 = vmatprep.subr.mxu0 %v32512_v25 }
 0x9ec   :  { %v15270_v26 = vpop.permute.xlu1 %15269  ;;  %25571 = vmatprep.mubr.msk.f32.mxu0 %vm26967_vm1, %v32512_v25  ;;  %26426 = vpow2.f32 %v14337_v29  ;;  %v32851_v29 = vld [vmem:[#allocation62_spill] sm:$0xff] }
 0x9ed   :  { %25565 = vmatpush3.msk.msra.mxu1 %vm3655_vm3, %v15270_v26  ;;  %v26423_v26 = vpop.eup %26422  ;;  %26428 = vrcp.f32 %v30363_v12  ;;  %v32857_v12 = vld [vmem:[#allocation53_spill] sm:$0xff] }
 0x9ee   :  { %25567 = vmatmul.mubr.msk.f32.vlgmr.msra.gmra.mrb[172].mxu1 %vm3651_vm5, %v14477_v50  ;;  %25574 = vmatprep.subr.mxu1 %v32512_v25  ;;  %v32838_v50 = vld [vmem:[#allocation51_spill] sm:$0xff]  ;;  %v26425_v36 = vpop.eup %26424  ;;  %v14480_v30 = vmul.f32 %v26423_v26, %v30214_v13  ;;  %v32852_v26 = vld [vmem:[#allocation80_spill] sm:$0xff]  ;;  %26430 = vrcp.f32 %v30365_v19 }
 0x9ef   :  { %25576 = vmatprep.mubr.msk.f32.mxu1 %vm26967_vm1, %v32512_v25  ;;  %v14481_v28 = vmul.f32 %v26425_v36, %v30219_v17  ;;  %v32841_v13 = vld [vmem:[#allocation63_spill] sm:$0xff]  ;;  %26432 = vrcp.f32 %v30367_v59 }
 0x9f0   :  { %v32859_v19 = vld [vmem:[#allocation83_spill] sm:$0xff]  ;;  %26434 = vrcp.f32 %v30369_v37  ;;  %v32883_v37 = vld [vmem:[#allocation164_spill] sm:$0xff] }
 0x9f1   :  { %26436 = vrcp.f32 %v30377_v5 }
 0x9f2   :  { %26438 = vrcp.f32 %v30373_v2 }
 0x9f3   :  { %26440 = vrcp.f32 %v30379_v47 }
 0x9f4   :  { %26442 = vrcp.f32 %v30381_v61 }
 0x9f6   :  { %v30473_v32 = vpop.eup %26426 }
 0x9f7   :  { %14421 = vadd.xlane.f32.xlu0 %v14420_v14  ;;  %v14432_v17 = vsel %vm3296_vm4, %v30473_v32, 0.0 }
 0x9fa   :  { %14424 = vadd.xlane.f32.xlu1 %v14423_v7 }
 0xa0b   :  { %15731 = vrot.lane.b32.xlu1 %v32740_v57, %s26974_s29 }
 0xa0d   :  { %15654 = vrot.lane.b32.xlu0 %v32781_v60, %s26974_s29 }
 0xa1a   :  { %v30411_v42 = vpop.xlane.xlu0 %14409 }
 0xa1b   :  { %26444 = vrcp.f32 %v30411_v42  ;;  %v32896_v42 = vld [vmem:[#allocation162_spill] sm:$0xff] }
 0xa1d   :  { %v30413_v24 = vpop.xlane.xlu1 %14412 }
 0xa1e   :  { %v15347_v18 = vpop.permute.xlu0 %15346  ;;  %26446 = vrcp.f32 %v30413_v24 }
 0xa1f   :  { %25570 = vmatpush3.msk.msra.mxu0 %vm3655_vm3, %v15347_v18  ;;  %v32844_v18 = vld [vmem:[#allocation44_spill] sm:$0xff] }
 0xa20   :  { %25572 = vmatmul.mubr.msk.f32.vlgmr.msra.gmra.mrb[176].mxu0 %vm3651_vm5, %v14478_v63  ;;  %25579 = vmatprep.subr.mxu0 %v32512_v25  ;;  %v32845_v63 = vld [vmem:[#allocation73_spill] sm:$0xff] }
 0xa21   :  { %v15424_v48 = vpop.permute.xlu1 %15423  ;;  %25581 = vmatprep.mubr.msk.f32.mxu0 %vm26967_vm1, %v32512_v25 }
 0xa22   :  { %25575 = vmatpush3.msk.msra.mxu1 %vm3655_vm3, %v15424_v48  ;;  %v32846_v48 = vld [vmem:[#allocation46_spill] sm:$0xff] }
 0xa23   :  { %25577 = vmatmul.mubr.msk.f32.vlgmr.msra.gmra.mrb[174].mxu1 %vm3651_vm5, %v14479_v40  ;;  %25584 = vmatprep.subr.mxu1 %v32512_v25  ;;  %v32847_v40 = vld [vmem:[#allocation75_spill] sm:$0xff] }
 0xa24   :  { %25586 = vmatprep.mubr.msk.f32.mxu1 %vm26967_vm1, %v32512_v25 }
 0xa2c   :  { %14427 = vadd.xlane.f32.xlu0 %v14426_v1  ;;  %v32848_v1 = vld [vmem:[#allocation58_spill] sm:$0xff] }
 0xa2f   :  { %14430 = vadd.xlane.f32.xlu1 %v14429_v31  ;;  %v32849_v31 = vld [vmem:[#allocation48_spill] sm:$0xff] }
 0xa40   :  { %15885 = vrot.lane.b32.xlu1 %v32742_v35, %s26974_s29 }
 0xa42   :  { %15808 = vrot.lane.b32.xlu0 %v32741_v44, %s26974_s29 }
 0xa44   :  { %16039 = vrot.lane.b32.xlu1 %v27467_v46, %s26974_s29 }
 0xa48   :  { %16116 = vrot.lane.b32.xlu1 %v32835_v51, %s26974_s29 }
 0xa4c   :  { %16270 = vrot.lane.b32.xlu1 %v32837_v16, %s26974_s29 }
 0xa4f   :  { %v30449_v15 = vpop.xlane.xlu0 %14415 }
 0xa50   :  { %16424 = vrot.lane.b32.xlu1 %v32838_v50, %s26974_s29  ;;  %26448 = vrcp.f32 %v30449_v15 }
 0xa52   :  { %v30453_v14 = vpop.xlane.xlu1 %14418 }
 0xa53   :  { %v15501_v7 = vpop.permute.xlu0 %15500  ;;  %26450 = vrcp.f32 %v30453_v14 }
 0xa54   :  { %25580 = vmatpush3.msk.msra.mxu0 %vm3655_vm3, %v15501_v7  ;;  %16578 = vrot.lane.b32.xlu1 %v32839_v0, %s26974_s29 }
 0xa55   :  { %25582 = vmatmul.mubr.msk.f32.vlgmr.msra.gmra.mrb[178].mxu0 %vm3651_vm5, %v14480_v30  ;;  %25589 = vmatprep.subr.mxu0 %v32512_v25 }
 0xa56   :  { %v15578_v52 = vpop.permute.xlu1 %15577  ;;  %25591 = vmatprep.mubr.msk.f32.mxu0 %vm26967_vm1, %v32512_v25 }
 0xa57   :  { %25585 = vmatpush3.msk.msra.mxu1 %vm3655_vm3, %v15578_v52  ;;  %v32855_v52 = vld [vmem:[#allocation50_spill] sm:$0xff] }
 0xa58   :  { %16732 = vrot.lane.b32.xlu1 %v32840_v4, %s26974_s29  ;;  %25587 = vmatmul.mubr.msk.f32.vlgmr.msra.gmra.mrb[176].mxu1 %vm3651_vm5, %v14481_v28 }
 0xa59   :  { %25594 = vmatprep.subr.mxu1 %v32512_v25  ;;  %25596 = vmatprep.mubr.msk.f32.mxu1 %vm26967_vm1, %v32512_v25 }
 0xa5c   :  { %16886 = vrot.lane.b32.xlu1 %v32841_v13, %s26974_s29 }
 0xa60   :  { %17043 = vrot.lane.b32.xlu1 %v32842_v33, %s26975_s16 }
 0xa61   :  { %14433 = vadd.xlane.f32.xlu0 %v14432_v17 }
 0xa64   :  { %17041 = vrot.lane.b32.xlu1 %v32843_v43, %s26976_s26 }
 0xa68   :  { %17199 = vrot.lane.b32.xlu1 %v32844_v18, %s26975_s16 }
 0xa6c   :  { %17197 = vrot.lane.b32.xlu1 %v32845_v63, %s26976_s26 }
 0xa70   :  { %17355 = vrot.lane.b32.xlu1 %v32846_v48, %s26975_s16 }
 0xa74   :  { %17353 = vrot.lane.b32.xlu1 %v32847_v40, %s26976_s26 }
 0xa77   :  { %15962 = vrot.lane.b32.xlu0 %v32848_v1, %s26974_s29 }
 0xa78   :  { %17511 = vrot.lane.b32.xlu1 %v32849_v31, %s26975_s16 }
 0xa7a   :  { %v30493_v20 = vpop.f32.mrb[162].mxu1 }
 0xa7b   :  { %32850 = vst [vmem:[#allocation140_spill] sm:$0xff] %v30493_v20  ;;  %v25518_v8 = vpop.f32.mrb[163].mxu1  ;;  %16193 = vrot.lane.b32.xlu0 %v32851_v29, %s26974_s29 }
 0xa7c   :  { %17509 = vrot.lane.b32.xlu1 %v32852_v26, %s26976_s26  ;;  %v26429_v26 = vpop.eup %26428 }
 0xa7e   :  { %v30501_v36 = vpop.f32.mrb[166].mxu0 }
 0xa7f   :  { %32853 = vst [vmem:[#allocation148_spill] sm:$0xff] %v30501_v36  ;;  %v25523_v7 = vpop.f32.mrb[167].mxu0  ;;  %v30503_v30 = vpop.f32.mrb[164].mxu1  ;;  %16347 = vrot.lane.b32.xlu0 %v32855_v52, %s26974_s29 }
 0xa80   :  { %32854 = vst [vmem:[#allocation114_spill] sm:$0xff] %v30503_v30  ;;  %v25528_v28 = vpop.f32.mrb[165].mxu1  ;;  %17667 = vrot.lane.b32.xlu1 %v32769_v21, %s26975_s16 }
 0xa81   :  { %v32861_v28 = vld [vmem:[#allocation55_spill] sm:$0xff] }
 0xa83   :  { %v30509_v17 = vpop.f32.mrb[168].mxu0  ;;  %16501 = vrot.lane.b32.xlu0 %v32857_v12, %s26974_s29 }
 0xa84   :  { %32856 = vst [vmem:[#allocation150_spill] sm:$0xff] %v30509_v17  ;;  %v25533_v43 = vpop.f32.mrb[169].mxu0  ;;  %v30513_v63 = vpop.f32.mrb[166].mxu1  ;;  %17665 = vrot.lane.b32.xlu1 %v32859_v19, %s26976_s26  ;;  %v14482_v19 = vmul.f32 %v26429_v26, %v30224_v53  ;;  %v32866_v26 = vld [vmem:[#allocation34_spill] sm:$0xff] }
 0xa85   :  { %32858 = vst [vmem:[#allocation41_spill] sm:$0xff] %v30513_v63  ;;  %v25538_v40 = vpop.f32.mrb[167].mxu1  ;;  %v30517_v8 = vpop.xlane.xlu0 %14421 }
 0xa86   :  { %v26431_v17 = vpop.eup %26430  ;;  %26452 = vrcp.f32 %v30517_v8 }
 0xa87   :  { %v30519_v7 = vpop.f32.mrb[170].mxu0  ;;  %16655 = vrot.lane.b32.xlu0 %v32861_v28, %s26974_s29  ;;  %v30523_v36 = vpop.xlane.xlu1 %14424  ;;  %v14483_v21 = vmul.f32 %v26431_v17, %v30229_v10  ;;  %v32868_v17 = vld [vmem:[#allocation67_spill] sm:$0xff] }
 0xa88   :  { %32860 = vst [vmem:[#allocation36_spill] sm:$0xff] %v30519_v7  ;;  %v25543_v30 = vpop.f32.mrb[171].mxu0  ;;  %17823 = vrot.lane.b32.xlu1 %v32773_v62, %s26975_s16  ;;  %v32863_v7 = vld [vmem:[#allocation61_spill] sm:$0xff]  ;;  %26454 = vrcp.f32 %v30523_v36  ;;  %v32899_v36 = vld [vmem:[#allocation163_spill] sm:$0xff] }
 0xa89   :  { %v15655_v43 = vpop.permute.xlu0 %15654  ;;  %v30527_v63 = vpop.f32.mrb[168].mxu1  ;;  %v32864_v30 = vld [vmem:[#allocation87_spill] sm:$0xff] }
 0xa8a   :  { %32862 = vst [vmem:[#allocation43_spill] sm:$0xff] %v30527_v63  ;;  %25590 = vmatpush3.msk.msra.mxu0 %vm3655_vm3, %v15655_v43  ;;  %v25548_v40 = vpop.f32.mrb[169].mxu1  ;;  %v32869_v43 = vld [vmem:[#allocation92_spill] sm:$0xff] }
 0xa8b   :  { %25592 = vmatmul.mubr.msk.f32.vlgmr.msra.gmra.mrb[180].mxu0 %vm3651_vm5, %v14482_v19  ;;  %16809 = vrot.lane.b32.xlu0 %v32863_v7, %s26974_s29  ;;  %v15732_v20 = vpop.permute.xlu1 %15731  ;;  %v32870_v19 = vld [vmem:[#allocation38_spill] sm:$0xff]  ;;  %v32871_v40 = vld [vmem:[#allocation71_spill] sm:$0xff] }
 0xa8c   :  { %17821 = vrot.lane.b32.xlu1 %v32864_v30, %s26976_s26  ;;  %25595 = vmatpush3.msk.msra.mxu1 %vm3655_vm3, %v15732_v20  ;;  %v32872_v30 = vld [vmem:[#allocation94_spill] sm:$0xff] }
 0xa8d   :  { %25597 = vmatmul.mubr.msk.f32.vlgmr.msra.gmra.mrb[178].mxu1 %vm3651_vm5, %v14483_v21  ;;  %25599 = vmatprep.subr.mxu0 %v32512_v25 }
 0xa8e   :  { %v30540_v53 = vpop.f32.mrb[172].mxu0  ;;  %25601 = vmatprep.mubr.msk.f32.mxu0 %vm26967_vm1, %v32512_v25  ;;  %25604 = vmatprep.subr.mxu1 %v32512_v25 }
 0xa8f   :  { %32865 = vst [vmem:[#allocation37_spill] sm:$0xff] %v30540_v53  ;;  %16965 = vrot.lane.b32.xlu0 %v32866_v26, %s26975_s16  ;;  %v25553_v10 = vpop.f32.mrb[173].mxu0  ;;  %25606 = vmatprep.mubr.msk.f32.mxu1 %vm26967_vm1, %v32512_v25  ;;  %v32879_v53 = vld [vmem:[#allocation33_spill] sm:$0xff] }
 0xa90   :  { %17979 = vrot.lane.b32.xlu1 %v32777_v56, %s26975_s16  ;;  %v32873_v10 = vld [vmem:[#allocation40_spill] sm:$0xff] }
 0xa91   :  { %v30551_v21 = vpop.f32.mrb[170].mxu1 }
 0xa92   :  { %32867 = vst [vmem:[#allocation47_spill] sm:$0xff] %v30551_v21  ;;  %v25558_v20 = vpop.f32.mrb[171].mxu1 }
 0xa93   :  { %16963 = vrot.lane.b32.xlu0 %v32868_v17, %s26976_s26  ;;  %v32874_v20 = vld [vmem:[#allocation74_spill] sm:$0xff]  ;;  %v32875_v17 = vld [vmem:[#allocation96_spill] sm:$0xff] }
 0xa94   :  { %17977 = vrot.lane.b32.xlu1 %v32869_v43, %s26976_s26  ;;  %v32876_v43 = vld [vmem:[#allocation45_spill] sm:$0xff] }
 0xa97   :  { %17121 = vrot.lane.b32.xlu0 %v32870_v19, %s26975_s16 }
 0xa98   :  { %18135 = vrot.lane.b32.xlu1 %v32781_v60, %s26975_s16 }
 0xa9b   :  { %17119 = vrot.lane.b32.xlu0 %v32871_v40, %s26976_s26  ;;  %v32877_v40 = vld [vmem:[#allocation77_spill] sm:$0xff] }
 0xa9c   :  { %18133 = vrot.lane.b32.xlu1 %v32872_v30, %s26976_s26  ;;  %v32878_v30 = vld [vmem:[#allocation98_spill] sm:$0xff] }
 0xa9f   :  { %17277 = vrot.lane.b32.xlu0 %v32873_v10, %s26975_s16 }
 0xaa0   :  { %18291 = vrot.lane.b32.xlu1 %v32741_v44, %s26975_s16 }
 0xaa3   :  { %17275 = vrot.lane.b32.xlu0 %v32874_v20, %s26976_s26  ;;  %v32880_v20 = vld [vmem:[#allocation81_spill] sm:$0xff] }
 0xaa4   :  { %18289 = vrot.lane.b32.xlu1 %v32875_v17, %s26976_s26  ;;  %v32881_v17 = vld [vmem:[#allocation159_spill] sm:$0xff] }
 0xaa7   :  { %17433 = vrot.lane.b32.xlu0 %v32876_v43, %s26975_s16 }
 0xaa8   :  { %18447 = vrot.lane.b32.xlu1 %v32848_v1, %s26975_s16 }
 0xaab   :  { %17431 = vrot.lane.b32.xlu0 %v32877_v40, %s26976_s26  ;;  %v26433_v40 = vpop.eup %26432 }
 0xaac   :  { %18445 = vrot.lane.b32.xlu1 %v32878_v30, %s26976_s26  ;;  %v32882_v30 = vld [vmem:[#allocation85_spill] sm:$0xff]  ;;  %v14484_v5 = vmul.f32 %v26433_v40, %v30234_v3 }
 0xaaf   :  { %17589 = vrot.lane.b32.xlu0 %v32879_v53, %s26975_s16 }
 0xab0   :  { %18603 = vrot.lane.b32.xlu1 %v32835_v51, %s26975_s16 }
 0xab3   :  { %17587 = vrot.lane.b32.xlu0 %v32880_v20, %s26976_s26 }
 0xab4   :  { %18601 = vrot.lane.b32.xlu1 %v32881_v17, %s26976_s26  ;;  %v26435_v17 = vpop.eup %26434 }
 0xab5   :  { %v26437_v51 = vpop.eup %26436 }
 0xab6   :  { %v26439_v2 = vpop.eup %26438 }
 0xab7   :  { %17745 = vrot.lane.b32.xlu0 %v32774_v6, %s26975_s16  ;;  %v26441_v47 = vpop.eup %26440 }
 0xab8   :  { %18759 = vrot.lane.b32.xlu1 %v32837_v16, %s26975_s16 }
 0xab9   :  { %v30596_v59 = vpop.xlane.xlu0 %14427 }
 0xaba   :  { %26456 = vrcp.f32 %v30596_v59 }
 0xabb   :  { %17743 = vrot.lane.b32.xlu0 %v32882_v30, %s26976_s26 }
 0xabc   :  { %18757 = vrot.lane.b32.xlu1 %v32883_v37, %s26976_s26  ;;  %v30602_v20 = vpop.xlane.xlu1 %14430  ;;  %v14485_v37 = vmul.f32 %v26435_v17, %v30239_v39  ;;  %v32887_v39 = vld [vmem:[#allocation105_spill] sm:$0xff]  ;;  %v14487_v17 = vmul.f32 %v26437_v51, %v30248_v23  ;;  %v32889_v23 = vld [vmem:[#allocation106_spill] sm:$0xff] }
 0xabd   :  { %v15809_v21 = vpop.permute.xlu0 %15808  ;;  %26458 = vrcp.f32 %v30602_v20 }
 0xabe   :  { %v30605_v63 = vpop.f32.mrb[174].mxu0  ;;  %25600 = vmatpush3.msk.msra.mxu0 %vm3655_vm3, %v15809_v21 }
 0xabf   :  { %32884 = vst [vmem:[#allocation42_spill] sm:$0xff] %v30605_v63  ;;  %17901 = vrot.lane.b32.xlu0 %v32778_v27, %s26975_s16  ;;  %v25563_v16 = vpop.f32.mrb[175].mxu0  ;;  %25602 = vmatmul.mubr.msk.f32.vlgmr.msra.gmra.mrb[182].mxu0 %vm3651_vm5, %v14484_v5 }
 0xac0   :  { %18915 = vrot.lane.b32.xlu1 %v32838_v50, %s26975_s16  ;;  %v15886_v30 = vpop.permute.xlu1 %15885  ;;  %25609 = vmatprep.subr.mxu0 %v32512_v25  ;;  %v32886_v16 = vld [vmem:[#allocation89_spill] sm:$0xff] }
 0xac1   :  { %v30615_v3 = vpop.f32.mrb[172].mxu1  ;;  %25605 = vmatpush3.msk.msra.mxu1 %vm3655_vm3, %v15886_v30  ;;  %25611 = vmatprep.mubr.msk.f32.mxu0 %vm26967_vm1, %v32512_v25  ;;  %v32888_v30 = vld [vmem:[#allocation91_spill] sm:$0xff] }
 0xac2   :  { %32885 = vst [vmem:[#allocation138_spill] sm:$0xff] %v30615_v3  ;;  %v25568_v21 = vpop.f32.mrb[173].mxu1  ;;  %25607 = vmatmul.mubr.msk.f32.vlgmr.msra.gmra.mrb[180].mxu1 %vm3651_vm5, %v14485_v37  ;;  %25614 = vmatprep.subr.mxu1 %v32512_v25 }
 0xac3   :  { %17899 = vrot.lane.b32.xlu0 %v32886_v16, %s26976_s26  ;;  %25616 = vmatprep.mubr.msk.f32.mxu1 %vm26967_vm1, %v32512_v25  ;;  %v32890_v21 = vld [vmem:[#allocation93_spill] sm:$0xff]  ;;  %v32891_v16 = vld [vmem:[#allocation107_spill] sm:$0xff] }
 0xac4   :  { %18913 = vrot.lane.b32.xlu1 %v32887_v39, %s26976_s26  ;;  %v16040_v40 = vpop.permute.xlu1 %16039 }
 0xac5   :  { %25615 = vmatpush3.msk.msra.mxu1 %vm3655_vm3, %v16040_v40 }
 0xac6   :  { %25617 = vmatmul.mubr.msk.f32.vlgmr.msra.gmra.mrb[182].mxu1 %vm3651_vm5, %v14487_v17  ;;  %25624 = vmatprep.subr.mxu1 %v32512_v25  ;;  %v32892_v17 = vld [vmem:[#allocation95_spill] sm:$0xff] }
 0xac7   :  { %18057 = vrot.lane.b32.xlu0 %v32782_v34, %s26975_s16  ;;  %25626 = vmatprep.mubr.msk.f32.mxu1 %vm26967_vm1, %v32512_v25 }
 0xac8   :  { %19071 = vrot.lane.b32.xlu1 %v32839_v0, %s26975_s16  ;;  %v16117_v5 = vpop.permute.xlu1 %16116 }
 0xacb   :  { %18055 = vrot.lane.b32.xlu0 %v32888_v30, %s26976_s26  ;;  %v32893_v30 = vld [vmem:[#allocation72_spill] sm:$0xff] }
 0xacc   :  { %19069 = vrot.lane.b32.xlu1 %v32889_v23, %s26976_s26  ;;  %v16271_v51 = vpop.permute.xlu1 %16270 }
 0xacf   :  { %18213 = vrot.lane.b32.xlu0 %v32740_v57, %s26975_s16 }
 0xad0   :  { %19227 = vrot.lane.b32.xlu1 %v32840_v4, %s26975_s16  ;;  %v30646_v37 = vpop.permute.xlu1 %16424  ;;  %v26443_v4 = vpop.eup %26442 }
 0xad3   :  { %18211 = vrot.lane.b32.xlu0 %v32890_v21, %s26976_s26 }
 0xad4   :  { %19225 = vrot.lane.b32.xlu1 %v32891_v16, %s26976_s26  ;;  %v30652_v39 = vpop.permute.xlu1 %16578  ;;  %v32894_v16 = vld [vmem:[#allocation160_spill] sm:$0xff] }
 0xad7   :  { %18369 = vrot.lane.b32.xlu0 %v32742_v35, %s26975_s16 }
 0xad8   :  { %19383 = vrot.lane.b32.xlu1 %v32841_v13, %s26975_s16  ;;  %v30658_v40 = vpop.permute.xlu1 %16732 }
 0xadb   :  { %18367 = vrot.lane.b32.xlu0 %v32892_v17, %s26976_s26 }
 0xadc   :  { %19381 = vrot.lane.b32.xlu1 %v32893_v30, %s26976_s26  ;;  %v30664_v23 = vpop.permute.xlu1 %16886  ;;  %v32895_v30 = vld [vmem:[#allocation161_spill] sm:$0xff] }
 0xadf   :  { %18525 = vrot.lane.b32.xlu0 %v27467_v46, %s26975_s16 }
 0xae0   :  { %v30668_v21 = vpop.permute.xlu1 %17043 }
 0xae3   :  { %18523 = vrot.lane.b32.xlu0 %v32894_v16, %s26976_s26 }
 0xae4   :  { %v30672_v63 = vpop.permute.xlu1 %17041 }
 0xae7   :  { %18681 = vrot.lane.b32.xlu0 %v32851_v29, %s26975_s16 }
 0xae8   :  { %v30678_v17 = vpop.permute.xlu1 %17199 }
 0xaeb   :  { %18679 = vrot.lane.b32.xlu0 %v32895_v30, %s26976_s26  ;;  %v14486_v30 = vmul.f32 %v26439_v2, %v30244_v11  ;;  %v14489_v2 = vmul.f32 %v26443_v4, %v30256_v9 }
 0xaec   :  { %v30683_v3 = vpop.permute.xlu1 %17197 }
 0xaee   :  { %v14434_v16 = vpop.xlane.xlu0 %14433 }
 0xaef   :  { %18837 = vrot.lane.b32.xlu0 %v32855_v52, %s26975_s16  ;;  %26460 = vrcp.f32 %v14434_v16 }
 0xaf0   :  { %v30689_v13 = vpop.permute.xlu1 %17355 }
 0xaf2   :  { %v15963_v61 = vpop.permute.xlu0 %15962 }
 0xaf3   :  { %18835 = vrot.lane.b32.xlu0 %v32896_v42, %s26976_s26  ;;  %v30696_v24 = vpop.f32.mrb[176].mxu0  ;;  %25610 = vmatpush3.msk.msra.mxu0 %vm3655_vm3, %v15963_v61  ;;  %v26445_v61 = vpop.eup %26444 }
 0xaf4   :  { %32897 = vst [vmem:[#allocation39_spill] sm:$0xff] %v30696_v24  ;;  %v25573_v0 = vpop.f32.mrb[177].mxu0  ;;  %25612 = vmatmul.mubr.msk.f32.vlgmr.msra.gmra.mrb[184].mxu0 %vm3651_vm5, %v14486_v30  ;;  %25619 = vmatprep.subr.mxu0 %v32512_v25  ;;  %v30701_v15 = vpop.permute.xlu1 %17353  ;;  %v14490_v9 = vmul.f32 %v26445_v61, %v30266_v41 }
 0xaf5   :  { %25620 = vmatpush3.msk.msra.mxu0 %vm3655_vm3, %v16117_v5  ;;  %25621 = vmatprep.mubr.msk.f32.mxu0 %vm26967_vm1, %v32512_v25  ;;  %v14488_v0 = vmul.f32 %v26441_v47, %v30252_v58  ;;  %v26447_v30 = vpop.eup %26446 }
 0xaf6   :  { %v16194_v11 = vpop.permute.xlu0 %16193  ;;  %v30707_v14 = vpop.f32.mrb[174].mxu1  ;;  %25629 = vmatprep.subr.mxu0 %v32512_v25 }
 0xaf7   :  { %32898 = vst [vmem:[#allocation70_spill] sm:$0xff] %v30707_v14  ;;  %18993 = vrot.lane.b32.xlu0 %v32857_v12, %s26975_s16  ;;  %25625 = vmatpush3.msk.msra.mxu1 %vm3655_vm3, %v16194_v11  ;;  %v25578_v5 = vpop.f32.mrb[175].mxu1  ;;  %v26449_v4 = vpop.eup %26448 }
 0xaf8   :  { %25622 = vmatmul.mubr.msk.f32.vlgmr.msra.gmra.mrb[186].mxu0 %vm3651_vm5, %v14488_v0  ;;  %25627 = vmatmul.mubr.msk.f32.vlgmr.msra.gmra.mrb[184].mxu1 %vm3651_vm5, %v14489_v2  ;;  %v30718_v8 = vpop.permute.xlu1 %17511  ;;  %v26451_v59 = vpop.eup %26450  ;;  %v14492_v20 = vmul.f32 %v26449_v4, %v30344_v55  ;;  %v32901_v55 = vld [vmem:[#allocation102_spill] sm:$0xff] }
 0xaf9   :  { %25630 = vmatpush3.msk.msra.mxu0 %vm3655_vm3, %v16271_v51  ;;  %25634 = vmatprep.subr.mxu1 %v32512_v25  ;;  %v32900_v51 = vld [vmem:[#allocation146_spill] sm:$0xff]  ;;  %v14493_v11 = vmul.f32 %v26451_v59, %v30349_v38  ;;  %v26453_v0 = vpop.eup %26452 }
 0xafa   :  { %v16348_v58 = vpop.permute.xlu0 %16347  ;;  %25631 = vmatprep.mubr.msk.f32.mxu0 %vm26967_vm1, %v32512_v25  ;;  %25636 = vmatprep.mubr.msk.f32.mxu1 %vm26967_vm1, %v32512_v25  ;;  %v14491_v47 = vmul.f32 %v26447_v30, %v32900_v51  ;;  %v26455_v2 = vpop.eup %26454  ;;  %v14494_v38 = vmul.f32 %v26453_v0, %v30395_v22 }
 0xafb   :  { %18991 = vrot.lane.b32.xlu0 %v32899_v36, %s26976_s26  ;;  %25635 = vmatpush3.msk.msra.mxu1 %vm3655_vm3, %v16348_v58  ;;  %v26457_v61 = vpop.eup %26456  ;;  %v14495_v5 = vmul.f32 %v26455_v2, %v30397_v45  ;;  %v32902_v36 = vld [vmem:[#allocation104_spill] sm:$0xff] }
 0xafc   :  { %25639 = vmatprep.subr.mxu0 %v32512_v25  ;;  %25632 = vmatmul.mubr.msk.f32.vlgmr.msra.gmra.mrb[188].mxu0 %vm3651_vm5, %v14490_v9  ;;  %v30735_v42 = vpop.permute.xlu1 %17509  ;;  %v26459_v30 = vpop.eup %26458  ;;  %v14496_v45 = vmul.f32 %v26457_v61, %v30427_v54 }
 0xafd   :  { %25637 = vmatmul.mubr.msk.f32.vlgmr.msra.gmra.mrb[186].mxu1 %vm3651_vm5, %v14491_v47  ;;  %25640 = vmatpush3.msk.msra.mxu0 %vm3655_vm3, %v30646_v37  ;;  %v14497_v58 = vmul.f32 %v26459_v30, %v30429_v49  ;;  %v26461_v4 = vpop.eup %26460 }
 0xafe   :  { %v16502_v41 = vpop.permute.xlu0 %16501  ;;  %25644 = vmatprep.subr.mxu1 %v32512_v25  ;;  %25641 = vmatprep.mubr.msk.f32.mxu0 %vm26967_vm1, %v32512_v25  ;;  %v14498_v54 = vmul.f32 %v26461_v4, %v30473_v32 }
 0xaff   :  { %19149 = vrot.lane.b32.xlu0 %v32861_v28, %s26975_s16  ;;  %25645 = vmatpush3.msk.msra.mxu1 %vm3655_vm3, %v16502_v41 }
 0xb00   :  { %25646 = vmatprep.mubr.msk.f32.mxu1 %vm26967_vm1, %v32512_v25  ;;  %25649 = vmatprep.subr.mxu0 %v32512_v25  ;;  %v30751_v37 = vpop.permute.xlu1 %17667 }
 0xb01   :  { %25642 = vmatmul.mubr.msk.f32.vlgmr.msra.gmra.mrb[190].mxu0 %vm3651_vm5, %v14492_v20  ;;  %25647 = vmatmul.mubr.msk.f32.vlgmr.msra.gmra.mrb[188].mxu1 %vm3651_vm5, %v14493_v11 }
 0xb02   :  { %25650 = vmatpush3.msk.msra.mxu0 %vm3655_vm3, %v30652_v39  ;;  %v16656_v16 = vpop.permute.xlu0 %16655  ;;  %25654 = vmatprep.subr.mxu1 %v32512_v25 }
 0xb03   :  { %19147 = vrot.lane.b32.xlu0 %v32901_v55, %s26976_s26  ;;  %25651 = vmatprep.mubr.msk.f32.mxu0 %vm26967_vm1, %v32512_v25 }
 0xb04   :  { %25655 = vmatpush3.msk.msra.mxu1 %vm3655_vm3, %v16656_v16  ;;  %25656 = vmatprep.mubr.msk.f32.mxu1 %vm26967_vm1, %v32512_v25  ;;  %v30767_v39 = vpop.permute.xlu1 %17665 }
 0xb05   :  { %25659 = vmatprep.subr.mxu0 %v32512_v25  ;;  %25652 = vmatmul.mubr.msk.f32.vlgmr.msra.gmra.mrb[192].mxu0 %vm3651_vm5, %v14494_v38 }
 0xb06   :  { %25657 = vmatmul.mubr.msk.f32.vlgmr.msra.gmra.mrb[190].mxu1 %vm3651_vm5, %v14495_v5  ;;  %25660 = vmatpush3.msk.msra.mxu0 %vm3655_vm3, %v30658_v40  ;;  %v16810_v22 = vpop.permute.xlu0 %16809 }
 0xb07   :  { %25664 = vmatprep.subr.mxu1 %v32512_v25  ;;  %19305 = vrot.lane.b32.xlu0 %v32863_v7, %s26975_s16 }
 0xb08   :  { %25661 = vmatprep.mubr.msk.f32.mxu0 %vm26967_vm1, %v32512_v25  ;;  %25665 = vmatpush3.msk.msra.mxu1 %vm3655_vm3, %v16810_v22  ;;  %v17824_v9 = vpop.permute.xlu1 %17823 }
 0xb09   :  { %25666 = vmatprep.mubr.msk.f32.mxu1 %vm26967_vm1, %v32512_v25  ;;  %25669 = vmatprep.subr.mxu0 %v32512_v25 }
 0xb0a   :  { %25662 = vmatmul.mubr.msk.f32.vlgmr.msra.gmra.mrb[194].mxu0 %vm3651_vm5, %v14496_v45  ;;  %25667 = vmatmul.mubr.msk.f32.vlgmr.msra.gmra.mrb[192].mxu1 %vm3651_vm5, %v14497_v58  ;;  %v16966_v40 = vpop.permute.xlu0 %16965 }
 0xb0b   :  { %25670 = vmatpush3.msk.msra.mxu0 %vm3655_vm3, %v30664_v23  ;;  %19303 = vrot.lane.b32.xlu0 %v32902_v36, %s26976_s26 }
 0xb0c   :  { %25671 = vmatprep.mubr.msk.f32.mxu0 %vm26967_vm1, %v32512_v25  ;;  %25674 = vmatprep.subr.mxu1 %v32512_v25  ;;  %v17822_v49 = vpop.permute.xlu1 %17821 }
 0xb0d   :  { %25679 = vmatprep.subr.mxu0 %v32512_v25  ;;  %25676 = vmatprep.mubr.msk.f32.mxu1 %vm26967_vm1, %v32512_v25 }
 0xb0e   :  { %25672 = vmatmul.mubr.msk.f32.vlgmr.msra.gmra.mrb[196].mxu0 %vm3651_vm5, %v14498_v54  ;;  %v16964_v51 = vpop.permute.xlu0 %16963 }
 0xb0f   :  { %25675 = vmatpush3.xpose.msk.msra.mxu1 %vm648_vm2, %v16966_v40  ;;  %25681 = vmatprep.mubr.msk.f32.mxu0 %vm26967_vm1, %v32512_v25 }
 0xb10   :  { %v17980_v23 = vpop.permute.xlu1 %17979  ;;  %25684 = vmatprep.subr.mxu1 %v32512_v25 }
 0xb12   :  { %25680 = vmatpush3.xpose.msk.msra.mxu0 %vm648_vm2, %v30668_v21  ;;  %25677 = vmatmul.mubr.msk.f32.vlgmr.msra.gmra.mrb[194].mxu1 %vm648_vm2, %v16964_v51  ;;  %v17122_v32 = vpop.permute.xlu0 %17121 }
 0xb13   :  { %25689 = vmatprep.subr.mxu0 %v32512_v25  ;;  %25685 = vmatpush3.xpose.msk.msra.mxu1 %vm648_vm2, %v17122_v32 }
 0xb14   :  { %v17978_v47 = vpop.permute.xlu1 %17977  ;;  %25686 = vmatprep.mubr.msk.f32.mxu1 %vm26967_vm1, %v32512_v25  ;;  %25694 = vmatprep.subr.mxu1 %v32512_v25 }
 0xb15   :  { %25682 = vmatmul.mubr.msk.f32.vlgmr.msra.gmra.mrb[198].mxu0 %vm648_vm2, %v30672_v63 }
 0xb16   :  { %25690 = vmatpush3.xpose.msk.msra.mxu0 %vm648_vm2, %v30678_v17  ;;  %25691 = vmatprep.mubr.msk.f32.mxu0 %vm26967_vm1, %v32512_v25  ;;  %v17120_v21 = vpop.permute.xlu0 %17119 }
 0xb17   :  { %25699 = vmatprep.subr.mxu0 %v32512_v25  ;;  %25687 = vmatmul.mubr.msk.f32.vlgmr.msra.gmra.mrb[196].mxu1 %vm648_vm2, %v17120_v21 }
 0xb18   :  { %v18136_v59 = vpop.permute.xlu1 %18135  ;;  %25696 = vmatprep.mubr.msk.f32.mxu1 %vm26967_vm1, %v32512_v25 }
 0xb19   :  { %25692 = vmatmul.mubr.msk.f32.vlgmr.msra.gmra.mrb[200].mxu0 %vm648_vm2, %v30683_v3 }
 0xb1a   :  { %25700 = vmatpush3.xpose.msk.msra.mxu0 %vm648_vm2, %v30689_v13  ;;  %25701 = vmatprep.mubr.msk.f32.mxu0 %vm26967_vm1, %v32512_v25  ;;  %v17278_v63 = vpop.permute.xlu0 %17277 }
 0xb1b   :  { %25709 = vmatprep.subr.mxu0 %v32512_v25  ;;  %25695 = vmatpush3.xpose.msk.msra.mxu1 %vm648_vm2, %v17278_v63 }
 0xb1c   :  { %v18134_v17 = vpop.permute.xlu1 %18133  ;;  %25704 = vmatprep.subr.mxu1 %v32512_v25 }
 0xb1d   :  { %25702 = vmatmul.mubr.msk.f32.vlgmr.msra.gmra.mrb[202].mxu0 %vm648_vm2, %v30701_v15 }
 0xb1e   :  { %25710 = vmatpush3.xpose.msk.msra.mxu0 %vm648_vm2, %v30718_v8  ;;  %25711 = vmatprep.mubr.msk.f32.mxu0 %vm26967_vm1, %v32512_v25  ;;  %v17276_v13 = vpop.permute.xlu0 %17275 }
 0xb1f   :  { %25719 = vmatprep.subr.mxu0 %v32512_v25  ;;  %25697 = vmatmul.mubr.msk.f32.vlgmr.msra.gmra.mrb[198].mxu1 %vm648_vm2, %v17276_v13 }
 0xb20   :  { %v18292_v3 = vpop.permute.xlu1 %18291  ;;  %25706 = vmatprep.mubr.msk.f32.mxu1 %vm26967_vm1, %v32512_v25 }
 0xb21   :  { %25712 = vmatmul.mubr.msk.f32.vlgmr.msra.gmra.mrb[204].mxu0 %vm648_vm2, %v30735_v42 }
 0xb22   :  { %25720 = vmatpush3.xpose.msk.msra.mxu0 %vm648_vm2, %v30751_v37  ;;  %25721 = vmatprep.mubr.msk.f32.mxu0 %vm26967_vm1, %v32512_v25  ;;  %v17434_v15 = vpop.permute.xlu0 %17433 }
 0xb23   :  { %25729 = vmatprep.subr.mxu0 %v32512_v25  ;;  %25705 = vmatpush3.xpose.msk.msra.mxu1 %vm648_vm2, %v17434_v15 }
 0xb24   :  { %v18290_v8 = vpop.permute.xlu1 %18289  ;;  %25714 = vmatprep.subr.mxu1 %v32512_v25 }
 0xb25   :  { %25722 = vmatmul.mubr.msk.f32.vlgmr.msra.gmra.mrb[206].mxu0 %vm648_vm2, %v30767_v39 }
 0xb26   :  { %25730 = vmatpush3.xpose.msk.msra.mxu0 %vm648_vm2, %v17824_v9  ;;  %25731 = vmatprep.mubr.msk.f32.mxu0 %vm26967_vm1, %v32512_v25  ;;  %v17432_v42 = vpop.permute.xlu0 %17431 }
 0xb27   :  { %25739 = vmatprep.subr.mxu0 %v32512_v25  ;;  %25707 = vmatmul.mubr.msk.f32.vlgmr.msra.gmra.mrb[200].mxu1 %vm648_vm2, %v17432_v42 }
 0xb28   :  { %v30856_v41 = vpop.f32.mrb[178].mxu0  ;;  %v18448_v20 = vpop.permute.xlu1 %18447  ;;  %25716 = vmatprep.mubr.msk.f32.mxu1 %vm26967_vm1, %v32512_v25 }
 0xb29   :  { %32903 = vst [vmem:[#allocation44_spill] sm:$0xff] %v30856_v41  ;;  %25732 = vmatmul.mubr.msk.f32.vlgmr.msra.gmra.mrb[208].mxu0 %vm648_vm2, %v17822_v49  ;;  %v25583_v11 = vpop.f32.mrb[179].mxu0 }
 0xb2a   :  { %25740 = vmatpush3.xpose.msk.msra.mxu0 %vm648_vm2, %v17980_v23  ;;  %25741 = vmatprep.mubr.msk.f32.mxu0 %vm26967_vm1, %v32512_v25  ;;  %v17590_v0 = vpop.permute.xlu0 %17589 }
 0xb2b   :  { %25749 = vmatprep.subr.mxu0 %v32512_v25  ;;  %25715 = vmatpush3.xpose.msk.msra.mxu1 %vm648_vm2, %v17590_v0  ;;  %v30866_v37 = vpop.f32.mrb[176].mxu1 }
 0xb2c   :  { %32904 = vst [vmem:[#allocation73_spill] sm:$0xff] %v30866_v37  ;;  %v18446_v2 = vpop.permute.xlu1 %18445  ;;  %v25588_v16 = vpop.f32.mrb[177].mxu1  ;;  %25724 = vmatprep.subr.mxu1 %v32512_v25 }
 0xb2d   :  { %25742 = vmatmul.mubr.msk.f32.vlgmr.msra.gmra.mrb[210].mxu0 %vm648_vm2, %v17978_v47 }
 0xb2e   :  { %25750 = vmatpush3.xpose.msk.msra.mxu0 %vm648_vm2, %v18136_v59  ;;  %25751 = vmatprep.mubr.msk.f32.mxu0 %vm26967_vm1, %v32512_v25  ;;  %v17588_v55 = vpop.permute.xlu0 %17587 }
 0xb2f   :  { %25759 = vmatprep.subr.mxu0 %v32512_v25  ;;  %25717 = vmatmul.mubr.msk.f32.vlgmr.msra.gmra.mrb[202].mxu1 %vm648_vm2, %v17588_v55 }
 0xb30   :  { %v18604_v38 = vpop.permute.xlu1 %18603  ;;  %25726 = vmatprep.mubr.msk.f32.mxu1 %vm26967_vm1, %v32512_v25 }
 0xb31   :  { %25752 = vmatmul.mubr.msk.f32.vlgmr.msra.gmra.mrb[212].mxu0 %vm648_vm2, %v18134_v17 }
 0xb32   :  { %25760 = vmatpush3.xpose.msk.msra.mxu0 %vm648_vm2, %v18292_v3  ;;  %25761 = vmatprep.mubr.msk.f32.mxu0 %vm26967_vm1, %v32512_v25  ;;  %v17746_v61 = vpop.permute.xlu0 %17745 }
 0xb33   :  { %25769 = vmatprep.subr.mxu0 %v32512_v25  ;;  %25725 = vmatpush3.xpose.msk.msra.mxu1 %vm648_vm2, %v17746_v61 }
 0xb34   :  { %v18602_v5 = vpop.permute.xlu1 %18601  ;;  %25734 = vmatprep.subr.mxu1 %v32512_v25 }
 0xb35   :  { %25762 = vmatmul.mubr.msk.f32.vlgmr.msra.gmra.mrb[214].mxu0 %vm648_vm2, %v18290_v8 }
 0xb36   :  { %25770 = vmatpush3.xpose.msk.msra.mxu0 %vm648_vm2, %v18448_v20  ;;  %25771 = vmatprep.mubr.msk.f32.mxu0 %vm26967_vm1, %v32512_v25  ;;  %v17744_v39 = vpop.permute.xlu0 %17743 }
 0xb37   :  { %25779 = vmatprep.subr.mxu0 %v32512_v25  ;;  %25727 = vmatmul.mubr.msk.f32.vlgmr.msra.gmra.mrb[204].mxu1 %vm648_vm2, %v17744_v39 }
 0xb38   :  { %v18760_v30 = vpop.permute.xlu1 %18759  ;;  %25736 = vmatprep.mubr.msk.f32.mxu1 %vm26967_vm1, %v32512_v25 }
 0xb39   :  { %25772 = vmatmul.mubr.msk.f32.vlgmr.msra.gmra.mrb[216].mxu0 %vm648_vm2, %v18446_v2 }
 0xb3a   :  { %25780 = vmatpush3.xpose.msk.msra.mxu0 %vm648_vm2, %v18604_v38  ;;  %25781 = vmatprep.mubr.msk.f32.mxu0 %vm26967_vm1, %v32512_v25  ;;  %v17902_v22 = vpop.permute.xlu0 %17901 }
 0xb3b   :  { %25789 = vmatprep.subr.mxu0 %v32512_v25  ;;  %25735 = vmatpush3.xpose.msk.msra.mxu1 %vm648_vm2, %v17902_v22 }
 0xb3c   :  { %v18758_v45 = vpop.permute.xlu1 %18757  ;;  %25744 = vmatprep.subr.mxu1 %v32512_v25 }
 0xb3d   :  { %25782 = vmatmul.mubr.msk.f32.vlgmr.msra.gmra.mrb[218].mxu0 %vm648_vm2, %v18602_v5 }
 0xb3e   :  { %25790 = vmatpush3.xpose.msk.msra.mxu0 %vm648_vm2, %v18760_v30  ;;  %25791 = vmatprep.mubr.msk.f32.mxu0 %vm26967_vm1, %v32512_v25  ;;  %v17900_v58 = vpop.permute.xlu0 %17899 }
 0xb3f   :  { %25737 = vmatmul.mubr.msk.f32.vlgmr.msra.gmra.mrb[206].mxu1 %vm648_vm2, %v17900_v58  ;;  %25799 = vmatprep.subr.mxu0 %v32512_v25 }
 0xb40   :  { %v18916_v9 = vpop.permute.xlu1 %18915  ;;  %25746 = vmatprep.mubr.msk.f32.mxu1 %vm26967_vm1, %v32512_v25 }
 0xb41   :  { %25792 = vmatmul.mubr.msk.f32.vlgmr.msra.gmra.mrb[220].mxu0 %vm648_vm2, %v18758_v45 }
 0xb42   :  { %v18058_v4 = vpop.permute.xlu0 %18057  ;;  %25800 = vmatpush3.xpose.msk.msra.mxu0 %vm648_vm2, %v18916_v9  ;;  %25801 = vmatprep.mubr.msk.f32.mxu0 %vm26967_vm1, %v32512_v25 }
 0xb43   :  { %25745 = vmatpush3.xpose.msk.msra.mxu1 %vm648_vm2, %v18058_v4  ;;  %25809 = vmatprep.subr.mxu0 %v32512_v25 }
 0xb44   :  { %v18914_v40 = vpop.permute.xlu1 %18913  ;;  %25754 = vmatprep.subr.mxu1 %v32512_v25 }
 0xb45   :  { %25802 = vmatmul.mubr.msk.f32.vlgmr.msra.gmra.mrb[222].mxu0 %vm648_vm2, %v18914_v40 }
 0xb46   :  { %v18056_v36 = vpop.permute.xlu0 %18055  ;;  %25811 = vmatprep.mubr.msk.f32.mxu0 %vm26967_vm1, %v32512_v25 }
 0xb47   :  { %25747 = vmatmul.mubr.msk.f32.vlgmr.msra.gmra.mrb[208].mxu1 %vm648_vm2, %v18056_v36 }
 0xb48   :  { %v19072_v54 = vpop.permute.xlu1 %19071  ;;  %25756 = vmatprep.mubr.msk.f32.mxu1 %vm26967_vm1, %v32512_v25 }
 0xb49   :  { %25810 = vmatpush3.xpose.msk.msra.mxu0 %vm648_vm2, %v19072_v54 }
 0xb4a   :  { %v18214_v49 = vpop.permute.xlu0 %18213  ;;  %25819 = vmatprep.subr.mxu0 %v32512_v25 }
 0xb4b   :  { %25755 = vmatpush3.xpose.msk.msra.mxu1 %vm648_vm2, %v18214_v49 }
 0xb4c   :  { %v19070_v51 = vpop.permute.xlu1 %19069  ;;  %25764 = vmatprep.subr.mxu1 %v32512_v25 }
 0xb4d   :  { %25812 = vmatmul.mubr.msk.f32.vlgmr.msra.gmra.mrb[224].mxu0 %vm648_vm2, %v19070_v51 }
 0xb4e   :  { %v18212_v23 = vpop.permute.xlu0 %18211  ;;  %25821 = vmatprep.mubr.msk.f32.mxu0 %vm26967_vm1, %v32512_v25 }
 0xb4f   :  { %25757 = vmatmul.mubr.msk.f32.vlgmr.msra.gmra.mrb[210].mxu1 %vm648_vm2, %v18212_v23 }
 0xb50   :  { %v19228_v32 = vpop.permute.xlu1 %19227  ;;  %25766 = vmatprep.mubr.msk.f32.mxu1 %vm26967_vm1, %v32512_v25 }
 0xb51   :  { %25820 = vmatpush3.xpose.msk.msra.mxu0 %vm648_vm2, %v19228_v32 }
 0xb52   :  { %v18370_v47 = vpop.permute.xlu0 %18369  ;;  %25829 = vmatprep.subr.mxu0 %v32512_v25 }
 0xb53   :  { %25765 = vmatpush3.xpose.msk.msra.mxu1 %vm648_vm2, %v18370_v47 }
 0xb54   :  { %v19226_v21 = vpop.permute.xlu1 %19225  ;;  %25774 = vmatprep.subr.mxu1 %v32512_v25 }
 0xb55   :  { %25822 = vmatmul.mubr.msk.f32.vlgmr.msra.gmra.mrb[226].mxu0 %vm648_vm2, %v19226_v21 }
 0xb56   :  { %v18368_v59 = vpop.permute.xlu0 %18367  ;;  %25831 = vmatprep.mubr.msk.f32.mxu0 %vm26967_vm1, %v32512_v25 }
 0xb57   :  { %25767 = vmatmul.mubr.msk.f32.vlgmr.msra.gmra.mrb[212].mxu1 %vm648_vm2, %v18368_v59 }
 0xb58   :  { %v19384_v63 = vpop.permute.xlu1 %19383  ;;  %25776 = vmatprep.mubr.msk.f32.mxu1 %vm26967_vm1, %v32512_v25 }
 0xb59   :  { %25830 = vmatpush3.xpose.msk.msra.mxu0 %vm648_vm2, %v19384_v63 }
 0xb5a   :  { %v18526_v17 = vpop.permute.xlu0 %18525  ;;  %25839 = vmatprep.subr.mxu0 %v32512_v25 }
 0xb5b   :  { %25775 = vmatpush3.xpose.msk.msra.mxu1 %vm648_vm2, %v18526_v17 }
 0xb5c   :  { %v19382_v13 = vpop.permute.xlu1 %19381  ;;  %25784 = vmatprep.subr.mxu1 %v32512_v25 }
 0xb5d   :  { %25832 = vmatmul.mubr.msk.f32.vlgmr.msra.gmra.mrb[228].mxu0 %vm648_vm2, %v19382_v13 }
 0xb5e   :  { %v30945_v3 = vpop.f32.mrb[180].mxu0  ;;  %v18524_v15 = vpop.permute.xlu0 %18523  ;;  %25841 = vmatprep.mubr.msk.f32.mxu0 %vm26967_vm1, %v32512_v25 }
 0xb5f   :  { %32905 = vst [vmem:[#allocation46_spill] sm:$0xff] %v30945_v3  ;;  %v25593_v8 = vpop.f32.mrb[181].mxu0  ;;  %25777 = vmatmul.mubr.msk.f32.vlgmr.msra.gmra.mrb[214].mxu1 %vm648_vm2, %v18524_v15 }
 0xb60   :  { %v30950_v42 = vpop.f32.mrb[178].mxu1  ;;  %25786 = vmatprep.mubr.msk.f32.mxu1 %vm26967_vm1, %v32512_v25 }
 0xb61   :  { %32906 = vst [vmem:[#allocation75_spill] sm:$0xff] %v30950_v42  ;;  %v25598_v20 = vpop.f32.mrb[179].mxu1 }
 0xb62   :  { %v18682_v11 = vpop.permute.xlu0 %18681 }
 0xb63   :  { %25785 = vmatpush3.xpose.msk.msra.mxu1 %vm648_vm2, %v18682_v11 }
 0xb64   :  { %25794 = vmatprep.subr.mxu1 %v32512_v25 }
 0xb66   :  { %v18680_v0 = vpop.permute.xlu0 %18679 }
 0xb67   :  { %25787 = vmatmul.mubr.msk.f32.vlgmr.msra.gmra.mrb[216].mxu1 %vm648_vm2, %v18680_v0 }
 0xb68   :  { %25796 = vmatprep.mubr.msk.f32.mxu1 %vm26967_vm1, %v32512_v25 }
 0xb6a   :  { %v18838_v2 = vpop.permute.xlu0 %18837 }
 0xb6b   :  { %25795 = vmatpush3.xpose.msk.msra.mxu1 %vm648_vm2, %v18838_v2 }
 0xb6c   :  { %25804 = vmatprep.subr.mxu1 %v32512_v25 }
 0xb6e   :  { %v18836_v16 = vpop.permute.xlu0 %18835 }
 0xb6f   :  { %25797 = vmatmul.mubr.msk.f32.vlgmr.msra.gmra.mrb[218].mxu1 %vm648_vm2, %v18836_v16 }
 0xb70   :  { %25806 = vmatprep.mubr.msk.f32.mxu1 %vm26967_vm1, %v32512_v25 }
 0xb72   :  { %v18994_v55 = vpop.permute.xlu0 %18993 }
 0xb73   :  { %25805 = vmatpush3.xpose.msk.msra.mxu1 %vm648_vm2, %v18994_v55 }
 0xb74   :  { %25814 = vmatprep.subr.mxu1 %v32512_v25 }
 0xb76   :  { %v18992_v38 = vpop.permute.xlu0 %18991 }
 0xb77   :  { %25807 = vmatmul.mubr.msk.f32.vlgmr.msra.gmra.mrb[220].mxu1 %vm648_vm2, %v18992_v38 }
 0xb78   :  { %25816 = vmatprep.mubr.msk.f32.mxu1 %vm26967_vm1, %v32512_v25 }
 0xb7a   :  { %v19150_v61 = vpop.permute.xlu0 %19149 }
 0xb7b   :  { %25815 = vmatpush3.xpose.msk.msra.mxu1 %vm648_vm2, %v19150_v61 }
 0xb7c   :  { %25824 = vmatprep.subr.mxu1 %v32512_v25 }
 0xb7e   :  { %v19148_v5 = vpop.permute.xlu0 %19147 }
 0xb7f   :  { %25817 = vmatmul.mubr.msk.f32.vlgmr.msra.gmra.mrb[222].mxu1 %vm648_vm2, %v19148_v5 }
 0xb80   :  { %25826 = vmatprep.mubr.msk.f32.mxu1 %vm26967_vm1, %v32512_v25 }
 0xb82   :  { %v19306_v39 = vpop.permute.xlu0 %19305 }
 0xb83   :  { %25825 = vmatpush3.xpose.msk.msra.mxu1 %vm648_vm2, %v19306_v39 }
 0xb84   :  { %25834 = vmatprep.subr.mxu1 %v32512_v25 }
 0xb86   :  { %v19304_v30 = vpop.permute.xlu0 %19303 }
 0xb87   :  { %25827 = vmatmul.mubr.msk.f32.vlgmr.msra.gmra.mrb[224].mxu1 %vm648_vm2, %v19304_v30 }
 0xb88   :  { %25836 = vmatprep.mubr.msk.f32.mxu1 %vm26967_vm1, %v32512_v25 }
 0xb92   :  { %v30979_v22 = vpop.f32.mrb[182].mxu0 }
 0xb93   :  { %32907 = vst [vmem:[#allocation48_spill] sm:$0xff] %v30979_v22  ;;  %v25603_v45 = vpop.f32.mrb[183].mxu0 }
 0xb95   :  { %v30981_v58 = vpop.f32.mrb[180].mxu1 }
 0xb96   :  { %32908 = vst [vmem:[#allocation80_spill] sm:$0xff] %v30981_v58  ;;  %v25608_v9 = vpop.f32.mrb[181].mxu1 }
 0xb99   :  { %v30983_v4 = vpop.f32.mrb[182].mxu1 }
 0xb9a   :  { %32909 = vst [vmem:[#allocation83_spill] sm:$0xff] %v30983_v4  ;;  %v25618_v40 = vpop.f32.mrb[183].mxu1 }
 0xbc7   :  { %v30985_v36 = vpop.f32.mrb[184].mxu0 }
 0xbc8   :  { %32910 = vst [vmem:[#allocation87_spill] sm:$0xff] %v30985_v36  ;;  %v25613_v54 = vpop.f32.mrb[185].mxu0 }
 0xbcb   :  { %v30987_v49 = vpop.f32.mrb[186].mxu0  ;;  %v30989_v51 = vpop.f32.mrb[184].mxu1 }
 0xbcc   :  { %32911 = vst [vmem:[#allocation34_spill] sm:$0xff] %v30987_v49  ;;  %32912 = vst [vmem:[#allocation67_spill] sm:$0xff] %v30989_v51  ;;  %v25623_v23 = vpop.f32.mrb[187].mxu0  ;;  %v25628_v32 = vpop.f32.mrb[185].mxu1 }
 0xbcf   :  { %v30991_v47 = vpop.f32.mrb[188].mxu0 }
 0xbd0   :  { %32913 = vst [vmem:[#allocation92_spill] sm:$0xff] %v30991_v47  ;;  %v30993_v21 = vpop.f32.mrb[186].mxu1  ;;  %v25633_v59 = vpop.f32.mrb[189].mxu0 }
 0xbd1   :  { %32914 = vst [vmem:[#allocation38_spill] sm:$0xff] %v30993_v21  ;;  %v25638_v63 = vpop.f32.mrb[187].mxu1 }
 0xbd4   :  { %v30995_v17 = vpop.f32.mrb[190].mxu0  ;;  %v30997_v13 = vpop.f32.mrb[188].mxu1 }
 0xbd5   :  { %32915 = vst [vmem:[#allocation71_spill] sm:$0xff] %v30995_v17  ;;  %32916 = vst [vmem:[#allocation94_spill] sm:$0xff] %v30997_v13  ;;  %v25643_v15 = vpop.f32.mrb[191].mxu0  ;;  %v25648_v8 = vpop.f32.mrb[189].mxu1 }
 0xbd8   :  { %v30999_v20 = vpop.f32.mrb[192].mxu0 }
 0xbd9   :  { %32917 = vst [vmem:[#allocation40_spill] sm:$0xff] %v30999_v20  ;;  %v31001_v11 = vpop.f32.mrb[190].mxu1  ;;  %v25653_v0 = vpop.f32.mrb[193].mxu0 }
 0xbda   :  { %32918 = vst [vmem:[#allocation74_spill] sm:$0xff] %v31001_v11  ;;  %v25658_v2 = vpop.f32.mrb[191].mxu1 }
 0xbdd   :  { %v31003_v16 = vpop.f32.mrb[194].mxu0  ;;  %v31005_v55 = vpop.f32.mrb[192].mxu1 }
 0xbde   :  { %32919 = vst [vmem:[#allocation96_spill] sm:$0xff] %v31003_v16  ;;  %32920 = vst [vmem:[#allocation45_spill] sm:$0xff] %v31005_v55  ;;  %v25663_v38 = vpop.f32.mrb[195].mxu0  ;;  %v25668_v61 = vpop.f32.mrb[193].mxu1 }
 0xbe1   :  { %v31007_v5 = vpop.f32.mrb[196].mxu0 }
 0xbe2   :  { %32921 = vst [vmem:[#allocation77_spill] sm:$0xff] %v31007_v5  ;;  %v25673_v39 = vpop.f32.mrb[197].mxu0 }
 0xbe5   :  { %v31009_v30 = vpop.f32.mrb[194].mxu1 }
 0xbe6   :  { %v25678_v45 = vpop.f32.mrb[195].mxu1  ;;  %v19459_v9 = vsel %vm3296_vm4, %v31009_v30, -inf }
 0xbe7   :  { %19460 = vmax.xlane.f32.xlu0 %v19459_v9 }
 0xbe8   :  { %v31013_v40 = vpop.f32.mrb[198].mxu0 }
 0xbe9   :  { %v25683_v54 = vpop.f32.mrb[199].mxu0  ;;  %v19462_v23 = vsel %vm3296_vm4, %v31013_v40, -inf }
 0xbea   :  { %19463 = vmax.xlane.f32.xlu1 %v19462_v23  ;;  %v31017_v32 = vpop.f32.mrb[196].mxu1 }
 0xbeb   :  { %v25688_v59 = vpop.f32.mrb[197].mxu1  ;;  %v19465_v63 = vsel %vm3296_vm4, %v31017_v32, -inf }
 0xbec   :  { %v31021_v15 = vpop.f32.mrb[200].mxu0  ;;  %19466 = vmax.xlane.f32.xlu0 %v19465_v63 }
 0xbed   :  { %v25693_v8 = vpop.f32.mrb[201].mxu0  ;;  %v19468_v0 = vsel %vm3296_vm4, %v31021_v15, -inf }
 0xbf0   :  { %v31025_v2 = vpop.f32.mrb[202].mxu0  ;;  %19469 = vmax.xlane.f32.xlu0 %v19468_v0 }
 0xbf1   :  { %v25703_v38 = vpop.f32.mrb[203].mxu0  ;;  %v19474_v45 = vsel %vm3296_vm4, %v31025_v2, -inf }
 0xbf2   :  { %v31027_v61 = vpop.f32.mrb[198].mxu1 }
 0xbf3   :  { %v25698_v39 = vpop.f32.mrb[199].mxu1  ;;  %v19471_v9 = vsel %vm3296_vm4, %v31027_v61, -inf }
 0xbf4   :  { %v31033_v54 = vpop.f32.mrb[204].mxu0  ;;  %19475 = vmax.xlane.f32.xlu0 %v19474_v45  ;;  %19472 = vmax.xlane.f32.xlu1 %v19471_v9 }
 0xbf5   :  { %v25713_v23 = vpop.f32.mrb[205].mxu0  ;;  %v19480_v59 = vsel %vm3296_vm4, %v31033_v54, -inf }
 0xbf8   :  { %v31037_v63 = vpop.f32.mrb[206].mxu0  ;;  %19481 = vmax.xlane.f32.xlu0 %v19480_v59 }
 0xbf9   :  { %v25723_v8 = vpop.f32.mrb[207].mxu0  ;;  %v19486_v39 = vsel %vm3296_vm4, %v31037_v63, -inf }
 0xbfa   :  { %v31039_v0 = vpop.f32.mrb[200].mxu1 }
 0xbfb   :  { %v25708_v38 = vpop.f32.mrb[201].mxu1  ;;  %v19477_v55 = vsel %vm3296_vm4, %v31039_v0, -inf }
 0xbfc   :  { %v31045_v11 = vpop.f32.mrb[208].mxu0  ;;  %19487 = vmax.xlane.f32.xlu0 %v19486_v39  ;;  %19478 = vmax.xlane.f32.xlu1 %v19477_v55 }
 0xbfd   :  { %v25733_v45 = vpop.f32.mrb[209].mxu0  ;;  %v19492_v9 = vsel %vm3296_vm4, %v31045_v11, -inf }
 0xc00   :  { %v31049_v23 = vpop.f32.mrb[210].mxu0  ;;  %19493 = vmax.xlane.f32.xlu0 %v19492_v9 }
 0xc01   :  { %v25743_v59 = vpop.f32.mrb[211].mxu0  ;;  %v19498_v13 = vsel %vm3296_vm4, %v31049_v23, -inf }
 0xc02   :  { %v31051_v8 = vpop.f32.mrb[202].mxu1 }
 0xc03   :  { %v25718_v38 = vpop.f32.mrb[203].mxu1  ;;  %v19483_v21 = vsel %vm3296_vm4, %v31051_v8, -inf }
 0xc04   :  { %v31057_v51 = vpop.f32.mrb[212].mxu0  ;;  %19499 = vmax.xlane.f32.xlu0 %v19498_v13  ;;  %19484 = vmax.xlane.f32.xlu1 %v19483_v21 }
 0xc05   :  { %v25753_v55 = vpop.f32.mrb[213].mxu0  ;;  %v19504_v39 = vsel %vm3296_vm4, %v31057_v51, -inf }
 0xc08   :  { %v31061_v45 = vpop.f32.mrb[214].mxu0  ;;  %19505 = vmax.xlane.f32.xlu0 %v19504_v39 }
 0xc09   :  { %v25763_v9 = vpop.f32.mrb[215].mxu0  ;;  %v19510_v4 = vsel %vm3296_vm4, %v31061_v45, -inf }
 0xc0a   :  { %v31063_v59 = vpop.f32.mrb[204].mxu1 }
 0xc0b   :  { %v25728_v38 = vpop.f32.mrb[205].mxu1  ;;  %v19489_v5 = vsel %vm3296_vm4, %v31063_v59, -inf }
 0xc0c   :  { %v31069_v58 = vpop.f32.mrb[216].mxu0  ;;  %19511 = vmax.xlane.f32.xlu0 %v19510_v4  ;;  %19490 = vmax.xlane.f32.xlu1 %v19489_v5 }
 0xc0d   :  { %v25773_v21 = vpop.f32.mrb[217].mxu0  ;;  %v19516_v13 = vsel %vm3296_vm4, %v31069_v58, -inf }
 0xc10   :  { %v31073_v55 = vpop.f32.mrb[218].mxu0  ;;  %19517 = vmax.xlane.f32.xlu0 %v19516_v13 }
 0xc11   :  { %v25783_v39 = vpop.f32.mrb[219].mxu0  ;;  %v19522_v16 = vsel %vm3296_vm4, %v31073_v55, -inf }
 0xc12   :  { %v31075_v9 = vpop.f32.mrb[206].mxu1 }
 0xc13   :  { %v25738_v38 = vpop.f32.mrb[207].mxu1  ;;  %v19495_v42 = vsel %vm3296_vm4, %v31075_v9, -inf }
 0xc14   :  { %v31081_v20 = vpop.f32.mrb[220].mxu0  ;;  %19523 = vmax.xlane.f32.xlu0 %v19522_v16  ;;  %19496 = vmax.xlane.f32.xlu1 %v19495_v42 }
 0xc15   :  { %v25793_v4 = vpop.f32.mrb[221].mxu0  ;;  %v19528_v5 = vsel %vm3296_vm4, %v31081_v20, -inf }
 0xc18   :  { %19529 = vmax.xlane.f32.xlu0 %v19528_v5  ;;  %v31085_v21 = vpop.f32.mrb[222].mxu0 }
 0xc19   :  { %v25803_v13 = vpop.f32.mrb[223].mxu0  ;;  %v19534_v39 = vsel %vm3296_vm4, %v31085_v21, -inf }
 0xc1a   :  { %v31089_v38 = vpop.f32.mrb[208].mxu1 }
 0xc1b   :  { %v25748_v17 = vpop.f32.mrb[209].mxu1  ;;  %v19501_v47 = vsel %vm3296_vm4, %v31089_v38, -inf }
 0xc1c   :  { %19535 = vmax.xlane.f32.xlu0 %v19534_v39  ;;  %19502 = vmax.xlane.f32.xlu1 %v19501_v47 }
 0xc20   :  { %v31093_v42 = vpop.f32.mrb[224].mxu0 }
 0xc21   :  { %v25813_v16 = vpop.f32.mrb[225].mxu0  ;;  %v19540_v4 = vsel %vm3296_vm4, %v31093_v42, -inf }
 0xc22   :  { %v31097_v5 = vpop.f32.mrb[210].mxu1  ;;  %19541 = vmax.xlane.f32.xlu0 %v19540_v4 }
 0xc23   :  { %v25758_v13 = vpop.f32.mrb[211].mxu1  ;;  %v19507_v49 = vsel %vm3296_vm4, %v31097_v5, -inf }
 0xc24   :  { %19508 = vmax.xlane.f32.xlu1 %v19507_v49 }
 0xc28   :  { %v31101_v17 = vpop.f32.mrb[226].mxu0 }
 0xc29   :  { %v25823_v36 = vpop.f32.mrb[227].mxu0  ;;  %v19546_v47 = vsel %vm3296_vm4, %v31101_v17, -inf }
 0xc2a   :  { %v31105_v39 = vpop.f32.mrb[212].mxu1  ;;  %19547 = vmax.xlane.f32.xlu0 %v19546_v47 }
 0xc2b   :  { %v25768_v16 = vpop.f32.mrb[213].mxu1  ;;  %v19513_v22 = vsel %vm3296_vm4, %v31105_v39, -inf }
 0xc2c   :  { %19514 = vmax.xlane.f32.xlu1 %v19513_v22 }
 0xc30   :  { %v31109_v4 = vpop.f32.mrb[228].mxu0 }
 0xc31   :  { %v25833_v13 = vpop.f32.mrb[229].mxu0  ;;  %v19552_v49 = vsel %vm3296_vm4, %v31109_v4, -inf }
 0xc32   :  { %v31113_v3 = vpop.f32.mrb[214].mxu1  ;;  %19553 = vmax.xlane.f32.xlu0 %v19552_v49 }
 0xc33   :  { %v25778_v36 = vpop.f32.mrb[215].mxu1  ;;  %v19519_v41 = vsel %vm3296_vm4, %v31113_v3, -inf }
 0xc34   :  { %19520 = vmax.xlane.f32.xlu1 %v19519_v41 }
 0xc3a   :  { %v31117_v47 = vpop.f32.mrb[216].mxu1 }
 0xc3b   :  { %v25788_v16 = vpop.f32.mrb[217].mxu1  ;;  %v19525_v22 = vsel %vm3296_vm4, %v31117_v47, -inf }
 0xc3c   :  { %19526 = vmax.xlane.f32.xlu1 %v19525_v22 }
 0xc42   :  { %v31121_v24 = vpop.f32.mrb[218].mxu1 }
 0xc43   :  { %v25798_v13 = vpop.f32.mrb[219].mxu1  ;;  %v19531_v37 = vsel %vm3296_vm4, %v31121_v24, -inf }
 0xc44   :  { %19532 = vmax.xlane.f32.xlu1 %v19531_v37 }
 0xc48   :  { %19888 = vrot.lane.b32.xlu0 %v32842_v33, %s26977_s0 }
 0xc4a   :  { %v31127_v49 = vpop.f32.mrb[220].mxu1 }
 0xc4b   :  { %v25808_v41 = vpop.f32.mrb[221].mxu1  ;;  %v19537_v36 = vsel %vm3296_vm4, %v31127_v49, -inf }
 0xc4c   :  { %19538 = vmax.xlane.f32.xlu1 %v19537_v36 }
 0xc52   :  { %v31131_v16 = vpop.f32.mrb[222].mxu1 }
 0xc53   :  { %v25818_v22 = vpop.f32.mrb[223].mxu1  ;;  %v19543_v13 = vsel %vm3296_vm4, %v31131_v16, -inf }
 0xc54   :  { %19544 = vmax.xlane.f32.xlu1 %v19543_v13 }
 0xc5a   :  { %v31135_v14 = vpop.f32.mrb[224].mxu1 }
 0xc5b   :  { %v25828_v37 = vpop.f32.mrb[225].mxu1  ;;  %v19549_v33 = vsel %vm3296_vm4, %v31135_v14, -inf }
 0xc5c   :  { %19550 = vmax.xlane.f32.xlu1 %v19549_v33 }
 0xc6d   :  { %19811 = vrot.lane.b32.xlu1 %v32866_v26, %s26977_s0 }
 0xc74   :  { %v19461_v41 = vpop.xlane.xlu0 %19460 }
 0xc75   :  { %v19555_v46 = vsub.f32 %v31009_v30, %v19461_v41 }
 0xc77   :  { %v19464_v50 = vpop.xlane.xlu1 %19463  ;;  %v19587_v37 = vmul.f32 1.442695, %v19555_v46 }
 0xc78   :  { %v19556_v36 = vsub.f32 %v31013_v40, %v19464_v50 }
 0xc79   :  { %v19467_v7 = vpop.xlane.xlu0 %19466 }
 0xc7a   :  { %v19589_v22 = vmul.f32 1.442695, %v19556_v36  ;;  %v19557_v35 = vsub.f32 %v31017_v32, %v19467_v7 }
 0xc7c   :  { %26462 = vpow2.f32 %v19589_v22  ;;  %v19591_v29 = vmul.f32 1.442695, %v19557_v35 }
 0xc7d   :  { %v19470_v13 = vpop.xlane.xlu0 %19469 }
 0xc7e   :  { %v19558_v28 = vsub.f32 %v31021_v15, %v19470_v13 }
 0xc80   :  { %v19593_v12 = vmul.f32 1.442695, %v19558_v28 }
 0xc81   :  { %v19476_v33 = vpop.xlane.xlu0 %19475  ;;  %v19473_v52 = vpop.xlane.xlu1 %19472 }
 0xc82   :  { %26464 = vpow2.f32 %v19593_v12  ;;  %v19560_v26 = vsub.f32 %v31025_v2, %v19476_v33  ;;  %v19559_v50 = vsub.f32 %v31027_v61, %v19473_v52 }
 0xc83   :  { %26466 = vpow2.f32 %v19587_v37 }
 0xc84   :  { %v19597_v40 = vmul.f32 1.442695, %v19560_v26  ;;  %v19595_v46 = vmul.f32 1.442695, %v19559_v50 }
 0xc85   :  { %v19482_v36 = vpop.xlane.xlu0 %19481 }
 0xc86   :  { %v31147_v30 = vpop.eup %26462  ;;  %26468 = vpow2.f32 %v19597_v40  ;;  %v19562_v15 = vsub.f32 %v31033_v54, %v19482_v36 }
 0xc87   :  { %26470 = vpow2.f32 %v19591_v29  ;;  %v19654_v7 = vsel %vm3296_vm4, %v31147_v30, 0.0 }
 0xc88   :  { %19655 = vadd.xlane.f32.xlu0 %v19654_v7  ;;  %v19601_v12 = vmul.f32 1.442695, %v19562_v15 }
 0xc89   :  { %v19488_v28 = vpop.xlane.xlu0 %19487  ;;  %v19479_v32 = vpop.xlane.xlu1 %19478 }
 0xc8a   :  { %26472 = vpow2.f32 %v19601_v12  ;;  %v19564_v35 = vsub.f32 %v31037_v63, %v19488_v28  ;;  %v19561_v52 = vsub.f32 %v31039_v0, %v19479_v32 }
 0xc8b   :  { %26474 = vpow2.f32 %v19595_v46 }
 0xc8c   :  { %v31154_v2 = vpop.eup %26464  ;;  %v19605_v61 = vmul.f32 1.442695, %v19564_v35  ;;  %v19599_v41 = vmul.f32 1.442695, %v19561_v52 }
 0xc8d   :  { %v31156_v54 = vpop.eup %26466  ;;  %v19494_v29 = vpop.xlane.xlu0 %19493  ;;  %v19660_v22 = vsel %vm3296_vm4, %v31154_v2, 0.0 }
 0xc8e   :  { %26476 = vpow2.f32 %v19605_v61  ;;  %v19566_v13 = vsub.f32 %v31045_v11, %v19494_v29  ;;  %19661 = vadd.xlane.f32.xlu0 %v19660_v22  ;;  %v19651_v0 = vsel %vm3296_vm4, %v31156_v54, 0.0 }
 0xc8f   :  { %26478 = vpow2.f32 %v19599_v41 }
 0xc90   :  { %v31161_v37 = vpop.eup %26468  ;;  %v19609_v63 = vmul.f32 1.442695, %v19566_v13 }
 0xc91   :  { %v31165_v33 = vpop.eup %26470  ;;  %v19500_v26 = vpop.xlane.xlu0 %19499  ;;  %19652 = vadd.xlane.f32.xlu1 %v19651_v0  ;;  %v19666_v40 = vsel %vm3296_vm4, %v31161_v37, 0.0 }
 0xc92   :  { %v19485_v50 = vpop.xlane.xlu1 %19484  ;;  %26480 = vpow2.f32 %v19609_v63  ;;  %v19568_v36 = vsub.f32 %v31049_v23, %v19500_v26  ;;  %19667 = vadd.xlane.f32.xlu0 %v19666_v40  ;;  %v19657_v12 = vsel %vm3296_vm4, %v31165_v33, 0.0 }
 0xc93   :  { %v19563_v11 = vsub.f32 %v31051_v8, %v19485_v50 }
 0xc94   :  { %v31171_v15 = vpop.eup %26472  ;;  %v19613_v46 = vmul.f32 1.442695, %v19568_v36 }
 0xc95   :  { %v19603_v7 = vmul.f32 1.442695, %v19563_v11  ;;  %v31175_v28 = vpop.eup %26474  ;;  %v19506_v32 = vpop.xlane.xlu0 %19505  ;;  %19658 = vadd.xlane.f32.xlu1 %v19657_v12  ;;  %v19672_v35 = vsel %vm3296_vm4, %v31171_v15, 0.0 }
 0xc96   :  { %26482 = vpow2.f32 %v19613_v46  ;;  %v19570_v23 = vsub.f32 %v31057_v51, %v19506_v32  ;;  %19673 = vadd.xlane.f32.xlu0 %v19672_v35  ;;  %v19663_v61 = vsel %vm3296_vm4, %v31175_v28, 0.0 }
 0xc97   :  { %26484 = vpow2.f32 %v19603_v7 }
 0xc98   :  { %v31180_v8 = vpop.eup %26476  ;;  %v19617_v52 = vmul.f32 1.442695, %v19570_v23 }
 0xc99   :  { %v31184_v41 = vpop.eup %26478  ;;  %v19491_v29 = vpop.xlane.xlu1 %19490  ;;  %19664 = vadd.xlane.f32.xlu1 %v19663_v61  ;;  %v19678_v22 = vsel %vm3296_vm4, %v31180_v8, 0.0 }
 0xc9a   :  { %26486 = vpow2.f32 %v19617_v52  ;;  %v19565_v13 = vsub.f32 %v31063_v59, %v19491_v29  ;;  %19679 = vadd.xlane.f32.xlu0 %v19678_v22  ;;  %v19512_v51 = vpop.xlane.xlu0 %19511  ;;  %v19669_v26 = vsel %vm3296_vm4, %v31184_v41, 0.0 }
 0xc9c   :  { %v31189_v63 = vpop.eup %26480  ;;  %v19607_v0 = vmul.f32 1.442695, %v19565_v13 }
 0xc9d   :  { %19670 = vadd.xlane.f32.xlu1 %v19669_v26  ;;  %v19684_v50 = vsel %vm3296_vm4, %v31189_v63, 0.0 }
 0xc9e   :  { %19685 = vadd.xlane.f32.xlu0 %v19684_v50  ;;  %26488 = vpow2.f32 %v19607_v0  ;;  %v19518_v11 = vpop.xlane.xlu0 %19517 }
 0xca0   :  { %v31195_v40 = vpop.eup %26482 }
 0xca1   :  { %v31197_v36 = vpop.eup %26484  ;;  %v19497_v59 = vpop.xlane.xlu1 %19496  ;;  %v19690_v46 = vsel %vm3296_vm4, %v31195_v40, 0.0 }
 0xca2   :  { %v19567_v7 = vsub.f32 %v31075_v9, %v19497_v59  ;;  %19691 = vadd.xlane.f32.xlu0 %v19690_v46  ;;  %v19675_v12 = vsel %vm3296_vm4, %v31197_v36, 0.0  ;;  %v31208_v52 = vpop.xlane.xlu0 %19523 }
 0xca3   :  { %19676 = vadd.xlane.f32.xlu1 %v19675_v12 }
 0xca4   :  { %v31204_v32 = vpop.eup %26486  ;;  %v19611_v35 = vmul.f32 1.442695, %v19567_v7 }
 0xca5   :  { %32922 = vst [vmem:[#allocation98_spill] sm:$0xff] %v31204_v32  ;;  %v19696_v23 = vsel %vm3296_vm4, %v31204_v32, 0.0 }
 0xca6   :  { %19697 = vadd.xlane.f32.xlu0 %v19696_v23  ;;  %26490 = vpow2.f32 %v19611_v35  ;;  %v31215_v0 = vpop.xlane.xlu0 %19529 }
 0xca8   :  { %v31210_v61 = vpop.eup %26488 }
 0xca9   :  { %v19503_v29 = vpop.xlane.xlu1 %19502  ;;  %v19681_v22 = vsel %vm3296_vm4, %v31210_v61, 0.0 }
 0xcaa   :  { %v19569_v9 = vsub.f32 %v31089_v38, %v19503_v29  ;;  %19682 = vadd.xlane.f32.xlu1 %v19681_v22  ;;  %v31221_v59 = vpop.xlane.xlu0 %19535  ;;  %v19572_v29 = vsub.f32 %v31061_v45, %v19512_v51 }
 0xcac   :  { %v19615_v13 = vmul.f32 1.442695, %v19569_v9  ;;  %v19621_v9 = vmul.f32 1.442695, %v19572_v29 }
 0xcae   :  { %26492 = vpow2.f32 %v19615_v13 }
 0xcaf   :  { %v31223_v46 = vpop.xlane.xlu0 %19541  ;;  %26494 = vpow2.f32 %v19621_v9 }
 0xcb0   :  { %v31217_v26 = vpop.eup %26490 }
 0xcb1   :  { %v19687_v50 = vsel %vm3296_vm4, %v31217_v26, 0.0  ;;  %v19509_v22 = vpop.xlane.xlu1 %19508 }
 0xcb2   :  { %19688 = vadd.xlane.f32.xlu1 %v19687_v50 }
 0xcb7   :  { %v31229_v12 = vpop.xlane.xlu0 %19547 }
 0xcb8   :  { %v31225_v7 = vpop.eup %26492 }
 0xcb9   :  { %32923 = vst [vmem:[#allocation33_spill] sm:$0xff] %v31225_v7  ;;  %v19693_v38 = vsel %vm3296_vm4, %v31225_v7, 0.0  ;;  %v19515_v13 = vpop.xlane.xlu1 %19514  ;;  %v19571_v7 = vsub.f32 %v31097_v5, %v19509_v22 }
 0xcba   :  { %19694 = vadd.xlane.f32.xlu1 %v19693_v38  ;;  %v31242_v38 = vpop.eup %26494 }
 0xcbb   :  { %32924 = vst [vmem:[#allocation81_spill] sm:$0xff] %v31242_v38  ;;  %v19702_v45 = vsel %vm3296_vm4, %v31242_v38, 0.0 }
 0xcbc   :  { %20042 = vrot.lane.b32.xlu0 %v32844_v18, %s26977_s0 }
 0xcbf   :  { %v31233_v35 = vpop.xlane.xlu0 %19553 }
 0xcc1   :  { %v31240_v50 = vpop.xlane.xlu1 %19520 }
 0xcc3   :  { %v19889_v23 = vpop.permute.xlu0 %19888 }
 0xcc4   :  { %25840 = vmatpush3.msk.msra.mxu0 %vm3655_vm3, %v19889_v23  ;;  %v19619_v23 = vmul.f32 1.442695, %v19571_v7  ;;  %v19574_v7 = vsub.f32 %v31069_v58, %v19518_v11 }
 0xcc5   :  { %25849 = vmatprep.subr.mxu0 %v32512_v25 }
 0xcc6   :  { %26496 = vpow2.f32 %v19619_v23  ;;  %v19625_v22 = vmul.f32 1.442695, %v19574_v7 }
 0xcc8   :  { %26498 = vpow2.f32 %v19625_v22 }
 0xcc9   :  { %v31244_v18 = vpop.xlane.xlu1 %19526 }
 0xccb   :  { %19965 = vrot.lane.b32.xlu1 %v32870_v19, %s26977_s0 }
 0xcd0   :  { %v31257_v32 = vpop.eup %26496 }
 0xcd1   :  { %v31249_v51 = vpop.xlane.xlu1 %19532  ;;  %32925 = vst [vmem:[#allocation159_spill] sm:$0xff] %v31257_v32  ;;  %v19699_v5 = vsel %vm3296_vm4, %v31257_v32, 0.0 }
 0xcd9   :  { %v31251_v29 = vpop.xlane.xlu1 %19538 }
 0xcdb   :  { %19703 = vadd.xlane.f32.xlu0 %v19702_v45  ;;  %v31268_v45 = vpop.eup %26498 }
 0xcdc   :  { %v19708_v23 = vsel %vm3296_vm4, %v31268_v45, 0.0 }
 0xce1   :  { %v31253_v19 = vpop.xlane.xlu1 %19544 }
 0xce9   :  { %v31255_v9 = vpop.xlane.xlu1 %19550 }
 0xced   :  { %v19812_v1 = vpop.permute.xlu1 %19811 }
 0xcee   :  { %25835 = vmatpush3.msk.msra.mxu1 %vm3655_vm3, %v19812_v1  ;;  %v19573_v1 = vsub.f32 %v31105_v39, %v19515_v13 }
 0xcef   :  { %25844 = vmatprep.subr.mxu1 %v32512_v25  ;;  %19700 = vadd.xlane.f32.xlu1 %v19699_v5 }
 0xcf0   :  { %v19623_v32 = vmul.f32 1.442695, %v19573_v1 }
 0xcf1   :  { %20196 = vrot.lane.b32.xlu0 %v32846_v48, %s26977_s0 }
 0xd00   :  { %20119 = vrot.lane.b32.xlu1 %v32873_v10, %s26977_s0 }
 0xd10   :  { %19709 = vadd.xlane.f32.xlu0 %v19708_v23  ;;  %v19576_v23 = vsub.f32 %v31073_v55, %v31208_v52 }
 0xd15   :  { %v19656_v5 = vpop.xlane.xlu0 %19655 }
 0xd16   :  { %26500 = vrcp.f32 %v19656_v5 }
 0xd17   :  { %26502 = vpow2.f32 %v19623_v32 }
 0xd1b   :  { %v19662_v48 = vpop.xlane.xlu0 %19661 }
 0xd1e   :  { %v19653_v38 = vpop.xlane.xlu1 %19652 }
 0xd1f   :  { %26504 = vrcp.f32 %v19653_v38  ;;  %v19668_v58 = vpop.xlane.xlu0 %19667 }
 0xd20   :  { %v26501_v11 = vpop.eup %26500  ;;  %26506 = vrcp.f32 %v19662_v48 }
 0xd21   :  { %v31273_v7 = vpop.eup %26502  ;;  %v19780_v10 = vmul.f32 %v26501_v11, %v31147_v30  ;;  %v19629_v11 = vmul.f32 1.442695, %v19576_v23 }
 0xd22   :  { %v19705_v13 = vsel %vm3296_vm4, %v31273_v7, 0.0  ;;  %v19659_v22 = vpop.xlane.xlu1 %19658 }
 0xd23   :  { %25842 = vmatmul.mubr.msk.f32.vlgmr.msra.gmra.mrb[230].mxu0 %vm3651_vm5, %v19780_v10  ;;  %v31277_v39 = vpop.xlane.xlu0 %19673  ;;  %26508 = vpow2.f32 %v19629_v11 }
 0xd24   :  { %25851 = vmatprep.mubr.msk.f32.mxu0 %vm26967_vm1, %v32512_v25  ;;  %19706 = vadd.xlane.f32.xlu1 %v19705_v13  ;;  %26510 = vrcp.f32 %v19659_v22 }
 0xd26   :  { %20350 = vrot.lane.b32.xlu0 %v32849_v31, %s26977_s0  ;;  %v19665_v31 = vpop.xlane.xlu1 %19664 }
 0xd27   :  { %v31285_v32 = vpop.xlane.xlu0 %19679 }
 0xd29   :  { %v26505_v38 = vpop.eup %26504 }
 0xd2a   :  { %v19779_v30 = vmul.f32 %v26505_v38, %v31156_v54  ;;  %v26507_v48 = vpop.eup %26506  ;;  %v31299_v13 = vpop.xlane.xlu1 %19670 }
 0xd2b   :  { %v31288_v1 = vpop.xlane.xlu0 %19685  ;;  %v19782_v38 = vmul.f32 %v26507_v48, %v31154_v2 }
 0xd2c   :  { %25837 = vmatmul.mubr.msk.f32.vlgmr.msra.gmra.mrb[226].mxu1 %vm3651_vm5, %v19779_v30 }
 0xd2d   :  { %25846 = vmatprep.mubr.msk.f32.mxu1 %vm26967_vm1, %v32512_v25  ;;  %v31313_v30 = vpop.eup %26508 }
 0xd2e   :  { %v19714_v23 = vsel %vm3296_vm4, %v31313_v30, 0.0 }
 0xd2f   :  { %v31295_v5 = vpop.xlane.xlu0 %19691 }
 0xd30   :  { %v31309_v55 = vpop.xlane.xlu1 %19676 }
 0xd33   :  { %v31297_v10 = vpop.xlane.xlu0 %19697 }
 0xd35   :  { %20273 = vrot.lane.b32.xlu1 %v32876_v43, %s26977_s0  ;;  %v19575_v43 = vsub.f32 %v31113_v3, %v31240_v50 }
 0xd37   :  { %v20043_v54 = vpop.permute.xlu0 %20042  ;;  %v31311_v52 = vpop.xlane.xlu1 %19682  ;;  %v19627_v11 = vmul.f32 1.442695, %v19575_v43  ;;  %v32926_v43 = vld [vmem:[#allocation35_spill] sm:$0xff] }
 0xd38   :  { %25850 = vmatpush3.msk.msra.mxu0 %vm3655_vm3, %v20043_v54  ;;  %v26511_v54 = vpop.eup %26510 }
 0xd39   :  { %25852 = vmatmul.mubr.msk.f32.vlgmr.msra.gmra.mrb[232].mxu0 %vm3651_vm5, %v19782_v38  ;;  %25859 = vmatprep.subr.mxu0 %v32512_v25  ;;  %26512 = vpow2.f32 %v19627_v11  ;;  %v19781_v22 = vmul.f32 %v26511_v54, %v31165_v33  ;;  %v19578_v33 = vsub.f32 %v31081_v20, %v31215_v0  ;;  %v19577_v0 = vsub.f32 %v31117_v47, %v31244_v18 }
 0xd3a   :  { %25861 = vmatprep.mubr.msk.f32.mxu0 %vm26967_vm1, %v32512_v25  ;;  %26514 = vrcp.f32 %v19668_v58 }
 0xd3f   :  { %v31317_v2 = vpop.xlane.xlu1 %19688 }
 0xd43   :  { %v31329_v3 = vpop.eup %26512 }
 0xd44   :  { %v19711_v50 = vsel %vm3296_vm4, %v31329_v3, 0.0  ;;  %v26515_v54 = vpop.eup %26514 }
 0xd45   :  { %19715 = vadd.xlane.f32.xlu0 %v19714_v23  ;;  %v19633_v23 = vmul.f32 1.442695, %v19578_v33 }
 0xd47   :  { %v31321_v48 = vpop.xlane.xlu1 %19694  ;;  %26516 = vpow2.f32 %v19633_v23 }
 0xd48   :  { %26518 = vrcp.f32 %v19665_v31 }
 0xd4b   :  { %v19966_v38 = vpop.permute.xlu1 %19965 }
 0xd4c   :  { %25845 = vmatpush3.msk.msra.mxu1 %vm3655_vm3, %v19966_v38 }
 0xd4d   :  { %25847 = vmatmul.mubr.msk.f32.vlgmr.msra.gmra.mrb[228].mxu1 %vm3651_vm5, %v19781_v22  ;;  %25854 = vmatprep.subr.mxu1 %v32512_v25  ;;  %v19784_v22 = vmul.f32 %v26515_v54, %v31161_v37  ;;  %v19631_v37 = vmul.f32 1.442695, %v19577_v0 }
 0xd4e   :  { %25856 = vmatprep.mubr.msk.f32.mxu1 %vm26967_vm1, %v32512_v25 }
 0xd4f   :  { %26520 = vpow2.f32 %v19631_v37 }
 0xd50   :  { %26522 = vrcp.f32 %v31277_v39 }
 0xd51   :  { %v31347_v20 = vpop.eup %26516 }
 0xd59   :  { %19712 = vadd.xlane.f32.xlu1 %v19711_v50  ;;  %v26519_v50 = vpop.eup %26518 }
 0xd5a   :  { %v19783_v33 = vmul.f32 %v26519_v50, %v31175_v28  ;;  %v31361_v47 = vpop.eup %26520  ;;  %v19580_v28 = vsub.f32 %v31085_v21, %v31221_v59 }
 0xd5b   :  { %20504 = vrot.lane.b32.xlu0 %v32926_v43, %s26977_s0  ;;  %v19717_v18 = vsel %vm3296_vm4, %v31361_v47, 0.0  ;;  %v26523_v54 = vpop.eup %26522 }
 0xd5c   :  { %v19637_v31 = vmul.f32 1.442695, %v19580_v28 }
 0xd5e   :  { %26524 = vpow2.f32 %v19637_v31 }
 0xd5f   :  { %26526 = vrcp.f32 %v31299_v13 }
 0xd68   :  { %v31337_v11 = vpop.xlane.xlu0 %19703 }
 0xd6a   :  { %20427 = vrot.lane.b32.xlu1 %v32879_v53, %s26977_s0  ;;  %v19720_v53 = vsel %vm3296_vm4, %v31347_v20, 0.0 }
 0xd6c   :  { %v20197_v38 = vpop.permute.xlu0 %20196 }
 0xd6d   :  { %25860 = vmatpush3.msk.msra.mxu0 %vm3655_vm3, %v20197_v38 }
 0xd6e   :  { %25862 = vmatmul.mubr.msk.f32.vlgmr.msra.gmra.mrb[234].mxu0 %vm3651_vm5, %v19784_v22  ;;  %25869 = vmatprep.subr.mxu0 %v32512_v25  ;;  %v19786_v22 = vmul.f32 %v26523_v54, %v31171_v15 }
 0xd6f   :  { %25871 = vmatprep.mubr.msk.f32.mxu0 %vm26967_vm1, %v32512_v25 }
 0xd7a   :  { %19721 = vadd.xlane.f32.xlu0 %v19720_v53 }
 0xd7c   :  { %v31353_v58 = vpop.xlane.xlu1 %19700 }
 0xd80   :  { %v20120_v43 = vpop.permute.xlu1 %20119 }
 0xd81   :  { %25855 = vmatpush3.msk.msra.mxu1 %vm3655_vm3, %v20120_v43 }
 0xd82   :  { %25857 = vmatmul.mubr.msk.f32.vlgmr.msra.gmra.mrb[230].mxu1 %vm3651_vm5, %v19783_v33  ;;  %25864 = vmatprep.subr.mxu1 %v32512_v25 }
 0xd83   :  { %25866 = vmatprep.mubr.msk.f32.mxu1 %vm26967_vm1, %v32512_v25 }
 0xd8e   :  { %19718 = vadd.xlane.f32.xlu1 %v19717_v18 }
 0xd90   :  { %20658 = vrot.lane.b32.xlu0 %v32773_v62, %s26977_s0  ;;  %v31381_v62 = vpop.eup %26524 }
 0xd91   :  { %v19726_v21 = vsel %vm3296_vm4, %v31381_v62, 0.0  ;;  %v26527_v39 = vpop.eup %26526 }
 0xd92   :  { %v19785_v53 = vmul.f32 %v26527_v39, %v31184_v41  ;;  %v19582_v41 = vsub.f32 %v31093_v42, %v31223_v46 }
 0xd94   :  { %v19641_v13 = vmul.f32 1.442695, %v19582_v41 }
 0xd9d   :  { %v31370_v23 = vpop.xlane.xlu0 %19709 }
 0xd9f   :  { %20581 = vrot.lane.b32.xlu1 %v32774_v6, %s26977_s0  ;;  %v19579_v6 = vsub.f32 %v31121_v24, %v31249_v51 }
 0xda1   :  { %v20351_v38 = vpop.permute.xlu0 %20350  ;;  %v19635_v15 = vmul.f32 1.442695, %v19579_v6 }
 0xda2   :  { %25870 = vmatpush3.msk.msra.mxu0 %vm3655_vm3, %v20351_v38  ;;  %v19584_v38 = vsub.f32 %v31101_v17, %v31229_v12 }
 0xda3   :  { %25872 = vmatmul.mubr.msk.f32.vlgmr.msra.gmra.mrb[236].mxu0 %vm3651_vm5, %v19786_v22  ;;  %25879 = vmatprep.subr.mxu0 %v32512_v25  ;;  %26528 = vpow2.f32 %v19635_v15 }
 0xda4   :  { %25881 = vmatprep.mubr.msk.f32.mxu0 %vm26967_vm1, %v32512_v25  ;;  %26530 = vrcp.f32 %v31285_v32  ;;  %v19645_v22 = vmul.f32 1.442695, %v19584_v38  ;;  %v32930_v38 = vld [vmem:[#allocation53_spill] sm:$0xff] }
 0xda5   :  { %26532 = vpow2.f32 %v19641_v13 }
 0xda6   :  { %26534 = vrcp.f32 %v31309_v55 }
 0xdad   :  { %v31395_v24 = vpop.eup %26528 }
 0xdae   :  { %v19723_v51 = vsel %vm3296_vm4, %v31395_v24, 0.0  ;;  %v26531_v50 = vpop.eup %26530 }
 0xdaf   :  { %19727 = vadd.xlane.f32.xlu0 %v19726_v21  ;;  %v19788_v33 = vmul.f32 %v26531_v50, %v31180_v8 }
 0xdb1   :  { %v31387_v59 = vpop.xlane.xlu1 %19706 }
 0xdb5   :  { %v20274_v0 = vpop.permute.xlu1 %20273 }
 0xdb6   :  { %25865 = vmatpush3.msk.msra.mxu1 %vm3655_vm3, %v20274_v0 }
 0xdb7   :  { %25867 = vmatmul.mubr.msk.f32.vlgmr.msra.gmra.mrb[232].mxu1 %vm3651_vm5, %v19785_v53  ;;  %25874 = vmatprep.subr.mxu1 %v32512_v25 }
 0xdb8   :  { %25876 = vmatprep.mubr.msk.f32.mxu1 %vm26967_vm1, %v32512_v25 }
 0xdc3   :  { %19724 = vadd.xlane.f32.xlu1 %v19723_v51 }
 0xdc5   :  { %20812 = vrot.lane.b32.xlu0 %v32777_v56, %s26977_s0  ;;  %v31415_v56 = vpop.eup %26532 }
 0xdc6   :  { %v19732_v42 = vsel %vm3296_vm4, %v31415_v56, 0.0  ;;  %v26535_v32 = vpop.eup %26534 }
 0xdc7   :  { %v19787_v28 = vmul.f32 %v26535_v32, %v31197_v36 }
 0xdd2   :  { %v31404_v37 = vpop.xlane.xlu0 %19715 }
 0xdd4   :  { %20735 = vrot.lane.b32.xlu1 %v32778_v27, %s26977_s0  ;;  %v19581_v27 = vsub.f32 %v31127_v49, %v31251_v29 }
 0xdd6   :  { %v20505_v43 = vpop.permute.xlu0 %20504  ;;  %v19639_v8 = vmul.f32 1.442695, %v19581_v27 }
 0xdd7   :  { %25880 = vmatpush3.msk.msra.mxu0 %vm3655_vm3, %v20505_v43 }
 0xdd8   :  { %25882 = vmatmul.mubr.msk.f32.vlgmr.msra.gmra.mrb[238].mxu0 %vm3651_vm5, %v19788_v33  ;;  %25889 = vmatprep.subr.mxu0 %v32512_v25  ;;  %26536 = vpow2.f32 %v19639_v8 }
 0xdd9   :  { %25891 = vmatprep.mubr.msk.f32.mxu0 %vm26967_vm1, %v32512_v25  ;;  %26538 = vrcp.f32 %v31288_v1 }
 0xdda   :  { %26540 = vpow2.f32 %v19645_v22 }
 0xddb   :  { %26542 = vrcp.f32 %v31311_v52 }
 0xde2   :  { %v31429_v49 = vpop.eup %26536 }
 0xde3   :  { %v19729_v31 = vsel %vm3296_vm4, %v31429_v49, 0.0  ;;  %v26539_v21 = vpop.eup %26538 }
 0xde4   :  { %19733 = vadd.xlane.f32.xlu0 %v19732_v42  ;;  %v19790_v39 = vmul.f32 %v26539_v21, %v31189_v63  ;;  %v31455_v17 = vpop.eup %26540 }
 0xde5   :  { %v19738_v63 = vsel %vm3296_vm4, %v31455_v17, 0.0  ;;  %v26543_v53 = vpop.eup %26542 }
 0xde6   :  { %v31421_v46 = vpop.xlane.xlu1 %19712  ;;  %v19789_v41 = vmul.f32 %v26543_v53, %v31210_v61  ;;  %v19586_v61 = vsub.f32 %v31109_v4, %v31233_v35  ;;  %v32934_v53 = vld [vmem:[#allocation59_spill] sm:$0xff] }
 0xde8   :  { %v19649_v50 = vmul.f32 1.442695, %v19586_v61  ;;  %v32939_v61 = vld [vmem:[#allocation154_spill] sm:$0xff] }
 0xdea   :  { %v20428_v18 = vpop.permute.xlu1 %20427 }
 0xdeb   :  { %25875 = vmatpush3.msk.msra.mxu1 %vm3655_vm3, %v20428_v18 }
 0xdec   :  { %25877 = vmatmul.mubr.msk.f32.vlgmr.msra.gmra.mrb[234].mxu1 %vm3651_vm5, %v19787_v28  ;;  %25884 = vmatprep.subr.mxu1 %v32512_v25 }
 0xded   :  { %25886 = vmatprep.mubr.msk.f32.mxu1 %vm26967_vm1, %v32512_v25 }
 0xdf6   :  { %v31431_v29 = vpop.f32.mrb[230].mxu0 }
 0xdf7   :  { %v25843_v55 = vpop.f32.mrb[231].mxu0 }
 0xdf8   :  { %19730 = vadd.xlane.f32.xlu1 %v19729_v31  ;;  %v32928_v31 = vld [vmem:[#allocation62_spill] sm:$0xff] }
 0xdfa   :  { %20966 = vrot.lane.b32.xlu0 %v32781_v60, %s26977_s0 }
 0xdff   :  { %v31438_v36 = vpop.f32.mrb[226].mxu1 }
 0xe00   :  { %v25838_v54 = vpop.f32.mrb[227].mxu1 }
 0xe01   :  { %v32929_v54 = vld [vmem:[#allocation50_spill] sm:$0xff] }
 0xe07   :  { %v31442_v6 = vpop.xlane.xlu0 %19721 }
 0xe09   :  { %20889 = vrot.lane.b32.xlu1 %v32782_v34, %s26977_s0  ;;  %v19583_v34 = vsub.f32 %v31131_v16, %v31253_v19 }
 0xe0b   :  { %v20659_v15 = vpop.permute.xlu0 %20658  ;;  %v19643_v12 = vmul.f32 1.442695, %v19583_v34 }
 0xe0c   :  { %v31447_v60 = vpop.f32.mrb[232].mxu0  ;;  %25890 = vmatpush3.msk.msra.mxu0 %vm3655_vm3, %v20659_v15  ;;  %v32931_v15 = vld [vmem:[#allocation57_spill] sm:$0xff] }
 0xe0d   :  { %v25853_v1 = vpop.f32.mrb[233].mxu0  ;;  %25892 = vmatmul.mubr.msk.f32.vlgmr.msra.gmra.mrb[240].mxu0 %vm3651_vm5, %v19790_v39  ;;  %25899 = vmatprep.subr.mxu0 %v32512_v25  ;;  %26544 = vpow2.f32 %v19643_v12  ;;  %v32932_v39 = vld [vmem:[#allocation55_spill] sm:$0xff] }
 0xe0e   :  { %25901 = vmatprep.mubr.msk.f32.mxu0 %vm26967_vm1, %v32512_v25  ;;  %26546 = vrcp.f32 %v31295_v5 }
 0xe0f   :  { %26548 = vpow2.f32 %v19649_v50  ;;  %v32940_v50 = vld [vmem:[#allocation51_spill] sm:$0xff] }
 0xe10   :  { %26550 = vrcp.f32 %v31317_v2 }
 0xe17   :  { %v31471_v16 = vpop.eup %26544 }
 0xe18   :  { %v19735_v19 = vsel %vm3296_vm4, %v31471_v16, 0.0  ;;  %v26547_v33 = vpop.eup %26546 }
 0xe19   :  { %19739 = vadd.xlane.f32.xlu0 %v19738_v63  ;;  %v19792_v42 = vmul.f32 %v26547_v33, %v31195_v40  ;;  %v31493_v4 = vpop.eup %26548  ;;  %v32941_v33 = vld [vmem:[#allocation121_spill] sm:$0xff] }
 0xe1a   :  { %v19744_v40 = vsel %vm3296_vm4, %v31493_v4, 0.0  ;;  %v26551_v32 = vpop.eup %26550 }
 0xe1b   :  { %v31461_v0 = vpop.xlane.xlu1 %19718  ;;  %v19791_v28 = vmul.f32 %v26551_v32, %v31217_v26  ;;  %v32927_v26 = vld [vmem:[#allocation58_spill] sm:$0xff] }
 0xe1f   :  { %v20582_v51 = vpop.permute.xlu1 %20581 }
 0xe20   :  { %v31464_v13 = vpop.f32.mrb[228].mxu1  ;;  %25885 = vmatpush3.msk.msra.mxu1 %vm3655_vm3, %v20582_v51  ;;  %v32935_v51 = vld [vmem:[#allocation61_spill] sm:$0xff] }
 0xe21   :  { %v25848_v52 = vpop.f32.mrb[229].mxu1  ;;  %25887 = vmatmul.mubr.msk.f32.vlgmr.msra.gmra.mrb[236].mxu1 %vm3651_vm5, %v19789_v41  ;;  %25894 = vmatprep.subr.mxu1 %v32512_v25  ;;  %v32936_v41 = vld [vmem:[#allocation60_spill] sm:$0xff] }
 0xe22   :  { %25896 = vmatprep.mubr.msk.f32.mxu1 %vm26967_vm1, %v32512_v25  ;;  %v32937_v52 = vld [vmem:[#allocation152_spill] sm:$0xff] }
 0xe2d   :  { %19736 = vadd.xlane.f32.xlu1 %v19735_v19  ;;  %v32938_v19 = vld [vmem:[#allocation64_spill] sm:$0xff] }
 0xe2f   :  { %21120 = vrot.lane.b32.xlu0 %v32741_v44, %s26977_s0 }
 0xe3c   :  { %v31480_v43 = vpop.xlane.xlu0 %19727 }
 0xe3e   :  { %21043 = vrot.lane.b32.xlu1 %v32740_v57, %s26977_s0  ;;  %v19585_v57 = vsub.f32 %v31135_v14, %v31255_v9 }
 0xe40   :  { %v20813_v27 = vpop.permute.xlu0 %20812  ;;  %v19647_v35 = vmul.f32 1.442695, %v19585_v57 }
 0xe41   :  { %v31485_v8 = vpop.f32.mrb[234].mxu0  ;;  %25900 = vmatpush3.msk.msra.mxu0 %vm3655_vm3, %v20813_v27 }
 0xe42   :  { %v25863_v44 = vpop.f32.mrb[235].mxu0  ;;  %25902 = vmatmul.mubr.msk.f32.vlgmr.msra.gmra.mrb[242].mxu0 %vm3651_vm5, %v19792_v42  ;;  %25909 = vmatprep.subr.mxu0 %v32512_v25  ;;  %26552 = vpow2.f32 %v19647_v35 }
 0xe43   :  { %25911 = vmatprep.mubr.msk.f32.mxu0 %vm26967_vm1, %v32512_v25  ;;  %26554 = vrcp.f32 %v31297_v10  ;;  %v32933_v10 = vld [vmem:[#allocation98_spill] sm:$0xff] }
 0xe44   :  { %26556 = vrcp.f32 %v31321_v48  ;;  %v32942_v44 = vld [vmem:[#allocation54_spill] sm:$0xff]  ;;  %v32943_v48 = vld [vmem:[#allocation157_spill] sm:$0xff] }
 0xe45   :  { %26558 = vrcp.f32 %v31337_v11  ;;  %v32959_v11 = vld [vmem:[#allocation129_spill] sm:$0xff] }
 0xe46   :  { %26560 = vrcp.f32 %v31353_v58 }
 0xe47   :  { %26562 = vrcp.f32 %v31370_v23 }
 0xe48   :  { %26564 = vrcp.f32 %v31387_v59 }
 0xe49   :  { %26566 = vrcp.f32 %v31421_v46 }
 0xe4a   :  { %26568 = vrcp.f32 %v31404_v37 }
 0xe4b   :  { %26570 = vrcp.f32 %v31461_v0 }
 0xe4c   :  { %v31509_v14 = vpop.eup %26552  ;;  %26572 = vrcp.f32 %v31442_v6 }
 0xe4d   :  { %v19741_v9 = vsel %vm3296_vm4, %v31509_v14, 0.0  ;;  %v26555_v21 = vpop.eup %26554 }
 0xe4e   :  { %19745 = vadd.xlane.f32.xlu0 %v19744_v40  ;;  %v19794_v34 = vmul.f32 %v26555_v21, %v32933_v10  ;;  %v26557_v42 = vpop.eup %26556  ;;  %v32944_v40 = vld [vmem:[#allocation33_spill] sm:$0xff]  ;;  %v32952_v21 = vld [vmem:[#allocation135_spill] sm:$0xff]  ;;  %v32956_v10 = vld [vmem:[#allocation114_spill] sm:$0xff] }
 0xe4f   :  { %v19793_v35 = vmul.f32 %v26557_v42, %v32944_v40  ;;  %v32966_v40 = vld [vmem:[#allocation148_spill] sm:$0xff] }
 0xe50   :  { %v31499_v5 = vpop.xlane.xlu1 %19724 }
 0xe51   :  { %26574 = vrcp.f32 %v31499_v5 }
 0xe52   :  { %26576 = vrcp.f32 %v31480_v43 }
 0xe54   :  { %v20736_v18 = vpop.permute.xlu1 %20735 }
 0xe55   :  { %v31502_v55 = vpop.f32.mrb[230].mxu1  ;;  %25895 = vmatpush3.msk.msra.mxu1 %vm3655_vm3, %v20736_v18  ;;  %v32945_v18 = vld [vmem:[#allocation56_spill] sm:$0xff] }
 0xe56   :  { %v25858_v2 = vpop.f32.mrb[231].mxu1  ;;  %25897 = vmatmul.mubr.msk.f32.vlgmr.msra.gmra.mrb[238].mxu1 %vm3651_vm5, %v19791_v28  ;;  %25904 = vmatprep.subr.mxu1 %v32512_v25 }
 0xe57   :  { %25906 = vmatprep.mubr.msk.f32.mxu1 %vm26967_vm1, %v32512_v25  ;;  %v32946_v2 = vld [vmem:[#allocation125_spill] sm:$0xff] }
 0xe62   :  { %19742 = vadd.xlane.f32.xlu1 %v19741_v9  ;;  %v32947_v9 = vld [vmem:[#allocation63_spill] sm:$0xff] }
 0xe64   :  { %21274 = vrot.lane.b32.xlu0 %v32927_v26, %s26977_s0  ;;  %v32948_v26 = vld [vmem:[#allocation127_spill] sm:$0xff] }
 0xe68   :  { %21505 = vrot.lane.b32.xlu0 %v32928_v31, %s26977_s0  ;;  %v32949_v31 = vld [vmem:[#allocation117_spill] sm:$0xff] }
 0xe6c   :  { %21659 = vrot.lane.b32.xlu0 %v32929_v54, %s26977_s0  ;;  %v32950_v54 = vld [vmem:[#allocation131_spill] sm:$0xff] }
 0xe70   :  { %21813 = vrot.lane.b32.xlu0 %v32930_v38, %s26977_s0  ;;  %v32951_v38 = vld [vmem:[#allocation119_spill] sm:$0xff] }
 0xe71   :  { %v31522_v22 = vpop.xlane.xlu0 %19733 }
 0xe73   :  { %21197 = vrot.lane.b32.xlu1 %v32931_v15, %s26977_s0  ;;  %v32953_v15 = vld [vmem:[#allocation156_spill] sm:$0xff] }
 0xe74   :  { %21967 = vrot.lane.b32.xlu0 %v32932_v39, %s26977_s0  ;;  %v32954_v39 = vld [vmem:[#allocation140_spill] sm:$0xff] }
 0xe75   :  { %v20967_v1 = vpop.permute.xlu0 %20966 }
 0xe76   :  { %v31529_v63 = vpop.f32.mrb[236].mxu0  ;;  %25910 = vmatpush3.msk.msra.mxu0 %vm3655_vm3, %v20967_v1  ;;  %v32955_v1 = vld [vmem:[#allocation123_spill] sm:$0xff] }
 0xe77   :  { %v25873_v12 = vpop.f32.mrb[237].mxu0  ;;  %25912 = vmatmul.mubr.msk.f32.vlgmr.msra.gmra.mrb[244].mxu0 %vm3651_vm5, %v19794_v34  ;;  %25919 = vmatprep.subr.mxu0 %v32512_v25  ;;  %v32957_v34 = vld [vmem:[#allocation158_spill] sm:$0xff] }
 0xe78   :  { %21351 = vrot.lane.b32.xlu1 %v32934_v53, %s26977_s0  ;;  %22121 = vrot.lane.b32.xlu0 %v32935_v51, %s26977_s0  ;;  %v32958_v12 = vld [vmem:[#allocation41_spill] sm:$0xff]  ;;  %v26559_v51 = vpop.eup %26558 }
 0xe79   :  { %25921 = vmatprep.mubr.msk.f32.mxu0 %vm26967_vm1, %v32512_v25 }
 0xe7c   :  { %21428 = vrot.lane.b32.xlu1 %v32936_v41, %s26977_s0  ;;  %22307 = vrot.lane.b32.xlu0 %v32937_v52, %s26978_s1  ;;  %v32960_v41 = vld [vmem:[#allocation43_spill] sm:$0xff] }
 0xe80   :  { %21582 = vrot.lane.b32.xlu1 %v32938_v19, %s26977_s0  ;;  %22311 = vrot.lane.b32.xlu0 %v32939_v61, %s26978_s1  ;;  %v32961_v19 = vld [vmem:[#allocation81_spill] sm:$0xff] }
 0xe81   :  { %v19796_v61 = vmul.f32 %v26559_v51, %v32961_v19 }
 0xe84   :  { %21736 = vrot.lane.b32.xlu1 %v32940_v50, %s26977_s0  ;;  %22315 = vrot.lane.b32.xlu0 %v32941_v33, %s26978_s1  ;;  %v32962_v33 = vld [vmem:[#allocation133_spill] sm:$0xff] }
 0xe85   :  { %v31553_v27 = vpop.xlane.xlu1 %19730 }
 0xe86   :  { %26578 = vrcp.f32 %v31553_v27 }
 0xe87   :  { %26580 = vrcp.f32 %v31522_v22 }
 0xe88   :  { %21890 = vrot.lane.b32.xlu1 %v32942_v44, %s26977_s0  ;;  %22319 = vrot.lane.b32.xlu0 %v32943_v48, %s26978_s1  ;;  %v32963_v44 = vld [vmem:[#allocation47_spill] sm:$0xff]  ;;  %v32964_v48 = vld [vmem:[#allocation137_spill] sm:$0xff] }
 0xe89   :  { %v20890_v57 = vpop.permute.xlu1 %20889 }
 0xe8a   :  { %v20346_v32 = vpop.f32.mrb[232].mxu1  ;;  %25905 = vmatpush3.msk.msra.mxu1 %vm3655_vm3, %v20890_v57  ;;  %v32965_v57 = vld [vmem:[#allocation138_spill] sm:$0xff] }
 0xe8b   :  { %v25868_v28 = vpop.f32.mrb[233].mxu1  ;;  %25907 = vmatmul.mubr.msk.f32.vlgmr.msra.gmra.mrb[240].mxu1 %vm3651_vm5, %v19793_v35  ;;  %25914 = vmatprep.subr.mxu1 %v32512_v25  ;;  %v32967_v35 = vld [vmem:[#allocation70_spill] sm:$0xff] }
 0xe8c   :  { %22044 = vrot.lane.b32.xlu1 %v32945_v18, %s26977_s0  ;;  %22323 = vrot.lane.b32.xlu0 %v32946_v2, %s26978_s1  ;;  %v32968_v18 = vld [vmem:[#allocation150_spill] sm:$0xff]  ;;  %v32969_v28 = vld [vmem:[#allocation73_spill] sm:$0xff] }
 0xe8d   :  { %25916 = vmatprep.mubr.msk.f32.mxu1 %vm26967_vm1, %v32512_v25 }
 0xe90   :  { %22198 = vrot.lane.b32.xlu1 %v32947_v9, %s26977_s0  ;;  %22327 = vrot.lane.b32.xlu0 %v32948_v26, %s26978_s1  ;;  %v26561_v9 = vpop.eup %26560  ;;  %v32970_v26 = vld [vmem:[#allocation36_spill] sm:$0xff] }
 0xe94   :  { %22309 = vrot.lane.b32.xlu1 %v32949_v31, %s26978_s1  ;;  %22331 = vrot.lane.b32.xlu0 %v32950_v54, %s26978_s1  ;;  %v32971_v31 = vld [vmem:[#allocation159_spill] sm:$0xff] }
 0xe95   :  { %v19795_v54 = vmul.f32 %v26561_v9, %v32971_v31 }
 0xe98   :  { %22313 = vrot.lane.b32.xlu1 %v32951_v38, %s26978_s1  ;;  %22335 = vrot.lane.b32.xlu0 %v32952_v21, %s26978_s1  ;;  %v32972_v38 = vld [vmem:[#allocation37_spill] sm:$0xff] }
 0xe9c   :  { %22317 = vrot.lane.b32.xlu1 %v32953_v15, %s26978_s1  ;;  %22435 = vrot.lane.b32.xlu0 %v32954_v39, %s26979_s7  ;;  %v32974_v39 = vld [vmem:[#allocation39_spill] sm:$0xff] }
 0xea0   :  { %22321 = vrot.lane.b32.xlu1 %v32955_v1, %s26978_s1  ;;  %22439 = vrot.lane.b32.xlu0 %v32956_v10, %s26979_s7  ;;  %v32975_v1 = vld [vmem:[#allocation44_spill] sm:$0xff]  ;;  %v26563_v10 = vpop.eup %26562 }
 0xea1   :  { %v26565_v51 = vpop.eup %26564 }
 0xea4   :  { %22325 = vrot.lane.b32.xlu1 %v32957_v34, %s26978_s1  ;;  %22443 = vrot.lane.b32.xlu0 %v32958_v12, %s26979_s7  ;;  %v19798_v34 = vmul.f32 %v26563_v10, %v31268_v45 }
 0xea6   :  { %v31594_v53 = vpop.xlane.xlu0 %19739 }
 0xea8   :  { %22329 = vrot.lane.b32.xlu1 %v32959_v11, %s26978_s1  ;;  %22447 = vrot.lane.b32.xlu0 %v32960_v41, %s26979_s7  ;;  %v19797_v41 = vmul.f32 %v26565_v51, %v31273_v7 }
 0xeaa   :  { %v21121_v52 = vpop.permute.xlu0 %21120 }
 0xeab   :  { %v20577_v50 = vpop.f32.mrb[238].mxu0  ;;  %25920 = vmatpush3.msk.msra.mxu0 %vm3655_vm3, %v21121_v52  ;;  %v26567_v52 = vpop.eup %26566 }
 0xeac   :  { %22333 = vrot.lane.b32.xlu1 %v32962_v33, %s26978_s1  ;;  %v25883_v42 = vpop.f32.mrb[239].mxu0  ;;  %25922 = vmatmul.mubr.msk.f32.vlgmr.msra.gmra.mrb[246].mxu0 %vm3651_vm5, %v19796_v61  ;;  %v26569_v7 = vpop.eup %26568  ;;  %v19799_v5 = vmul.f32 %v26567_v52, %v31329_v3 }
 0xead   :  { %22451 = vrot.lane.b32.xlu0 %v32963_v44, %s26979_s7  ;;  %25929 = vmatprep.subr.mxu0 %v32512_v25  ;;  %v26571_v19 = vpop.eup %26570  ;;  %v19800_v61 = vmul.f32 %v26569_v7, %v31313_v30 }
 0xeae   :  { %25931 = vmatprep.mubr.msk.f32.mxu0 %vm26967_vm1, %v32512_v25  ;;  %v26573_v27 = vpop.eup %26572  ;;  %v19801_v22 = vmul.f32 %v26571_v19, %v31361_v47  ;;  %v32977_v19 = vld [vmem:[#allocation109_spill] sm:$0xff] }
 0xeaf   :  { %v19802_v47 = vmul.f32 %v26573_v27, %v31347_v20 }
 0xeb0   :  { %22337 = vrot.lane.b32.xlu1 %v32964_v48, %s26978_s1 }
 0xeb1   :  { %22455 = vrot.lane.b32.xlu0 %v32965_v57, %s26979_s7 }
 0xeb4   :  { %22437 = vrot.lane.b32.xlu1 %v32966_v40, %s26979_s7 }
 0xeb5   :  { %22459 = vrot.lane.b32.xlu0 %v32967_v35, %s26979_s7 }
 0xeb8   :  { %22441 = vrot.lane.b32.xlu1 %v32968_v18, %s26979_s7 }
 0xeb9   :  { %22463 = vrot.lane.b32.xlu0 %v32969_v28, %s26979_s7 }
 0xeba   :  { %v31623_v2 = vpop.xlane.xlu1 %19736 }
 0xebb   :  { %26582 = vrcp.f32 %v31623_v2 }
 0xebc   :  { %22445 = vrot.lane.b32.xlu1 %v32970_v26, %s26979_s7  ;;  %26584 = vrcp.f32 %v31594_v53 }
 0xebd   :  { %22563 = vrot.lane.b32.xlu0 %v31438_v36, %s26980_s4  ;;  %v32973_v36 = vld [vmem:[#allocation42_spill] sm:$0xff] }
 0xebe   :  { %v21044_v58 = vpop.permute.xlu1 %21043 }
 0xebf   :  { %v20500_v21 = vpop.f32.mrb[234].mxu1  ;;  %25915 = vmatpush3.msk.msra.mxu1 %vm3655_vm3, %v21044_v58 }
 0xec0   :  { %22449 = vrot.lane.b32.xlu1 %v32972_v38, %s26979_s7  ;;  %25917 = vmatmul.mubr.msk.f32.vlgmr.msra.gmra.mrb[242].mxu1 %vm3651_vm5, %v19795_v54  ;;  %v25878_v15 = vpop.f32.mrb[235].mxu1 }
 0xec1   :  { %22567 = vrot.lane.b32.xlu0 %v31464_v13, %s26980_s4  ;;  %25924 = vmatprep.subr.mxu1 %v32512_v25  ;;  %v32976_v13 = vld [vmem:[#allocation46_spill] sm:$0xff] }
 0xec2   :  { %25926 = vmatprep.mubr.msk.f32.mxu1 %vm26967_vm1, %v32512_v25 }
 0xec4   :  { %22453 = vrot.lane.b32.xlu1 %v32973_v36, %s26979_s7 }
 0xec5   :  { %22571 = vrot.lane.b32.xlu0 %v31502_v55, %s26980_s4 }
 0xec8   :  { %22457 = vrot.lane.b32.xlu1 %v32974_v39, %s26979_s7 }
 0xec9   :  { %22575 = vrot.lane.b32.xlu0 %v20346_v32, %s26980_s4 }
 0xecc   :  { %22461 = vrot.lane.b32.xlu1 %v32975_v1, %s26979_s7 }
 0xecd   :  { %22579 = vrot.lane.b32.xlu0 %v20500_v21, %s26980_s4 }
 0xed0   :  { %22465 = vrot.lane.b32.xlu1 %v32976_v13, %s26979_s7 }
 0xed4   :  { %22565 = vrot.lane.b32.xlu1 %v31431_v29, %s26980_s4 }
 0xed8   :  { %22569 = vrot.lane.b32.xlu1 %v31447_v60, %s26980_s4 }
 0xedb   :  { %v31656_v55 = vpop.xlane.xlu0 %19745 }
 0xedc   :  { %22573 = vrot.lane.b32.xlu1 %v31485_v8, %s26980_s4 }
 0xedf   :  { %v21275_v32 = vpop.permute.xlu0 %21274 }
 0xee0   :  { %22577 = vrot.lane.b32.xlu1 %v31529_v63, %s26980_s4  ;;  %v20731_v12 = vpop.f32.mrb[240].mxu0  ;;  %25930 = vmatpush3.msk.msra.mxu0 %vm3655_vm3, %v21275_v32 }
 0xee1   :  { %v25893_v23 = vpop.f32.mrb[241].mxu0  ;;  %25932 = vmatmul.mubr.msk.f32.vlgmr.msra.gmra.mrb[248].mxu0 %vm3651_vm5, %v19798_v34  ;;  %25939 = vmatprep.subr.mxu0 %v32512_v25 }
 0xee2   :  { %25941 = vmatprep.mubr.msk.f32.mxu0 %vm26967_vm1, %v32512_v25 }
 0xee3   :  { %v21506_v29 = vpop.permute.xlu0 %21505 }
 0xee4   :  { %22581 = vrot.lane.b32.xlu1 %v20577_v50, %s26980_s4  ;;  %v26575_v50 = vpop.eup %26574 }
 0xee5   :  { %v26577_v42 = vpop.eup %26576  ;;  %v19803_v53 = vmul.f32 %v26575_v50, %v31395_v24  ;;  %v32979_v50 = vld [vmem:[#allocation110_spill] sm:$0xff] }
 0xee6   :  { %v26579_v44 = vpop.eup %26578  ;;  %v19804_v24 = vmul.f32 %v26577_v42, %v31381_v62 }
 0xee7   :  { %v21660_v45 = vpop.permute.xlu0 %21659  ;;  %v26581_v20 = vpop.eup %26580  ;;  %v19805_v40 = vmul.f32 %v26579_v44, %v31429_v49  ;;  %v32980_v44 = vld [vmem:[#allocation82_spill] sm:$0xff] }
 0xee8   :  { %22585 = vrot.lane.b32.xlu1 %v20731_v12, %s26980_s4  ;;  %v26583_v35 = vpop.eup %26582  ;;  %v19806_v62 = vmul.f32 %v26581_v20, %v31415_v56 }
 0xee9   :  { %v26585_v28 = vpop.eup %26584  ;;  %v19807_v2 = vmul.f32 %v26583_v35, %v31471_v16 }
 0xeea   :  { %v19808_v26 = vmul.f32 %v26585_v28, %v31455_v17 }
 0xeeb   :  { %v21814_v60 = vpop.permute.xlu0 %21813 }
 0xeef   :  { %v31674_v8 = vpop.permute.xlu0 %21967  ;;  %v19743_v63 = vpop.xlane.xlu1 %19742 }
 0xef0   :  { %26586 = vrcp.f32 %v19743_v63 }
 0xef1   :  { %26588 = vrcp.f32 %v31656_v55 }
 0xef3   :  { %v31678_v11 = vpop.permute.xlu0 %22121  ;;  %v21198_v59 = vpop.permute.xlu1 %21197 }
 0xef4   :  { %v20654_v46 = vpop.f32.mrb[236].mxu1  ;;  %25925 = vmatpush3.msk.msra.mxu1 %vm3655_vm3, %v21198_v59 }
 0xef5   :  { %25927 = vmatmul.mubr.msk.f32.vlgmr.msra.gmra.mrb[244].mxu1 %vm3651_vm5, %v19797_v41  ;;  %22583 = vrot.lane.b32.xlu0 %v20654_v46, %s26980_s4  ;;  %v25888_v37 = vpop.f32.mrb[237].mxu1 }
 0xef6   :  { %25934 = vmatprep.subr.mxu1 %v32512_v25  ;;  %25936 = vmatprep.mubr.msk.f32.mxu1 %vm26967_vm1, %v32512_v25 }
 0xef7   :  { %v31686_v6 = vpop.permute.xlu0 %22307  ;;  %v21352_v0 = vpop.permute.xlu1 %21351 }
 0xef8   :  { %25935 = vmatpush3.msk.msra.mxu1 %vm3655_vm3, %v21352_v0  ;;  %v22659_v20 = vsel %vm648_vm2, %v32980_v44, %v31686_v6  ;;  %v32992_v44 = vld [vmem:[#allocation49_spill] sm:$0xff] }
 0xef9   :  { %25937 = vmatmul.mubr.msk.f32.vlgmr.msra.gmra.mrb[246].mxu1 %vm3651_vm5, %v19799_v5  ;;  %25944 = vmatprep.subr.mxu1 %v32512_v25 }
 0xefa   :  { %25945 = vmatpush3.msk.msra.mxu1 %vm3655_vm3, %v21506_v29  ;;  %25946 = vmatprep.mubr.msk.f32.mxu1 %vm26967_vm1, %v32512_v25  ;;  %v26587_v9 = vpop.eup %26586 }
 0xefb   :  { %v31698_v43 = vpop.permute.xlu0 %22311  ;;  %v21429_v3 = vpop.permute.xlu1 %21428  ;;  %25954 = vmatprep.subr.mxu1 %v32512_v25  ;;  %v19809_v16 = vmul.f32 %v26587_v9, %v31509_v14 }
 0xefc   :  { %25940 = vmatpush3.msk.msra.mxu0 %vm3655_vm3, %v21429_v3  ;;  %v26589_v31 = vpop.eup %26588 }
 0xefd   :  { %25942 = vmatmul.mubr.msk.f32.vlgmr.msra.gmra.mrb[250].mxu0 %vm3651_vm5, %v19800_v61  ;;  %25947 = vmatmul.mubr.msk.f32.vlgmr.msra.gmra.mrb[248].mxu1 %vm3651_vm5, %v19801_v22  ;;  %v19810_v17 = vmul.f32 %v26589_v31, %v31493_v4  ;;  %v32978_v22 = vld [vmem:[#allocation141_spill] sm:$0xff] }
 0xefe   :  { %25955 = vmatpush3.msk.msra.mxu1 %vm3655_vm3, %v21660_v45  ;;  %25949 = vmatprep.subr.mxu0 %v32512_v25 }
 0xeff   :  { %v31710_v33 = vpop.permute.xlu0 %22315  ;;  %v21583_v30 = vpop.permute.xlu1 %21582  ;;  %25951 = vmatprep.mubr.msk.f32.mxu0 %vm26967_vm1, %v32512_v25  ;;  %25956 = vmatprep.mubr.msk.f32.mxu1 %vm26967_vm1, %v32512_v25 }
 0xf00   :  { %25950 = vmatpush3.msk.msra.mxu0 %vm3655_vm3, %v21583_v30  ;;  %25964 = vmatprep.subr.mxu1 %v32512_v25 }
 0xf01   :  { %25952 = vmatmul.mubr.msk.f32.vlgmr.msra.gmra.mrb[252].mxu0 %vm3651_vm5, %v19802_v47  ;;  %25957 = vmatmul.mubr.msk.f32.vlgmr.msra.gmra.mrb[250].mxu1 %vm3651_vm5, %v19803_v53 }
 0xf02   :  { %25965 = vmatpush3.msk.msra.mxu1 %vm3655_vm3, %v21814_v60  ;;  %25959 = vmatprep.subr.mxu0 %v32512_v25 }
 0xf03   :  { %v31725_v48 = vpop.permute.xlu0 %22319  ;;  %v21737_v57 = vpop.permute.xlu1 %21736  ;;  %25961 = vmatprep.mubr.msk.f32.mxu0 %vm26967_vm1, %v32512_v25  ;;  %25966 = vmatprep.mubr.msk.f32.mxu1 %vm26967_vm1, %v32512_v25 }
 0xf04   :  { %25960 = vmatpush3.msk.msra.mxu0 %vm3655_vm3, %v21737_v57  ;;  %25974 = vmatprep.subr.mxu1 %v32512_v25  ;;  %v32981_v57 = vld [vmem:[#allocation108_spill] sm:$0xff] }
 0xf05   :  { %25962 = vmatmul.mubr.msk.f32.vlgmr.msra.gmra.mrb[254].mxu0 %vm3651_vm5, %v19804_v24  ;;  %25967 = vmatmul.mubr.msk.f32.vlgmr.msra.gmra.mrb[252].mxu1 %vm3651_vm5, %v19805_v40  ;;  %v32982_v40 = vld [vmem:[#allocation145_spill] sm:$0xff] }
 0xf06   :  { %25975 = vmatpush3.msk.msra.mxu1 %vm3655_vm3, %v31674_v8  ;;  %25969 = vmatprep.subr.mxu0 %v32512_v25 }
 0xf07   :  { %v31740_v18 = vpop.permute.xlu0 %22323  ;;  %v21891_v49 = vpop.permute.xlu1 %21890  ;;  %25971 = vmatprep.mubr.msk.f32.mxu0 %vm26967_vm1, %v32512_v25  ;;  %25976 = vmatprep.mubr.msk.f32.mxu1 %vm26967_vm1, %v32512_v25 }
 0xf08   :  { %25970 = vmatpush3.msk.msra.mxu0 %vm3655_vm3, %v21891_v49  ;;  %25984 = vmatprep.subr.mxu1 %v32512_v25 }
 0xf09   :  { %25972 = vmatmul.mubr.msk.f32.vlgmr.msra.gmra.mrb[0].mxu0 %vm3651_vm5, %v19806_v62  ;;  %25977 = vmatmul.mubr.msk.f32.vlgmr.msra.gmra.mrb[254].mxu1 %vm3651_vm5, %v19807_v2 }
 0xf0a   :  { %25985 = vmatpush3.msk.msra.mxu1 %vm3655_vm3, %v31678_v11  ;;  %25979 = vmatprep.subr.mxu0 %v32512_v25 }
 0xf0b   :  { %v31755_v56 = vpop.permute.xlu0 %22327  ;;  %v22045_v58 = vpop.permute.xlu1 %22044  ;;  %25981 = vmatprep.mubr.msk.f32.mxu0 %vm26967_vm1, %v32512_v25  ;;  %25986 = vmatprep.mubr.msk.f32.mxu1 %vm26967_vm1, %v32512_v25 }
 0xf0c   :  { %25980 = vmatpush3.msk.msra.mxu0 %vm3655_vm3, %v22045_v58  ;;  %v32984_v58 = vld [vmem:[#allocation88_spill] sm:$0xff] }
 0xf0d   :  { %25982 = vmatmul.mubr.msk.f32.vlgmr.msra.gmra.mrb[2].mxu0 %vm3651_vm5, %v19808_v26  ;;  %25987 = vmatmul.mubr.msk.f32.vlgmr.msra.gmra.mrb[0].mxu1 %vm3651_vm5, %v19809_v16  ;;  %v32983_v16 = vld [vmem:[#allocation65_spill] sm:$0xff] }
 0xf0e   :  { %25989 = vmatprep.subr.mxu0 %v32512_v25  ;;  %25991 = vmatprep.mubr.msk.f32.mxu0 %vm26967_vm1, %v32512_v25  ;;  %v22661_v6 = vsel %vm648_vm2, %v32983_v16, %v31698_v43 }
 0xf0f   :  { %v31767_v54 = vpop.permute.xlu0 %22331  ;;  %v22199_v14 = vpop.permute.xlu1 %22198 }
 0xf10   :  { %25990 = vmatpush3.msk.msra.mxu0 %vm3655_vm3, %v22199_v14 }
 0xf11   :  { %25992 = vmatmul.mubr.msk.f32.vlgmr.msra.gmra.mrb[4].mxu0 %vm3651_vm5, %v19810_v17  ;;  %v32985_v17 = vld [vmem:[#allocation149_spill] sm:$0xff] }
 0xf13   :  { %v31775_v38 = vpop.permute.xlu0 %22335  ;;  %v22310_v21 = vpop.permute.xlu1 %22309 }
 0xf14   :  { %v22660_v24 = vsel %vm648_vm2, %v32981_v57, %v22310_v21 }
 0xf15   :  { %v20885_v15 = vpop.f32.mrb[242].mxu0 }
 0xf16   :  { %v25903_v36 = vpop.f32.mrb[243].mxu0  ;;  %22589 = vrot.lane.b32.xlu1 %v20885_v15, %s26980_s4 }
 0xf17   :  { %v22314_v39 = vpop.permute.xlu1 %22313  ;;  %v22436_v1 = vpop.permute.xlu0 %22435 }
 0xf18   :  { %v22692_v35 = vsel %vm22691_vm6, %v22659_v20, %v22436_v1  ;;  %v22662_v31 = vsel %vm648_vm2, %v32984_v58, %v22314_v39 }
 0xf1b   :  { %v22318_v13 = vpop.permute.xlu1 %22317  ;;  %v22440_v55 = vpop.permute.xlu0 %22439 }
 0xf1c   :  { %v22694_v14 = vsel %vm22691_vm6, %v22661_v6, %v22440_v55  ;;  %v26069_v55 = vld [vmem:[#allocation8 + $0x8] sm:$0xff]  }
 0xf1f   :  { %v31778_v10 = vpop.permute.xlu1 %22321  ;;  %v22444_v4 = vpop.permute.xlu0 %22443 }
 0xf23   :  { %v31780_v25 = vpop.permute.xlu1 %22325  ;;  %v31785_v23 = vpop.permute.xlu0 %22447 }
 0xf27   :  { %v31782_v32 = vpop.permute.xlu1 %22329  ;;  %v31787_v60 = vpop.permute.xlu0 %22451 }
 0xf29   :  { %v20808_v34 = vpop.f32.mrb[238].mxu1 }
 0xf2a   :  { %22587 = vrot.lane.b32.xlu0 %v20808_v34, %s26980_s4  ;;  %v25898_v12 = vpop.f32.mrb[239].mxu1 }
 0xf2b   :  { %v22334_v29 = vpop.permute.xlu1 %22333  ;;  %v31789_v63 = vpop.permute.xlu0 %22455  ;;  %v32986_v12 = vld [vmem:[#allocation84_spill] sm:$0xff] }
 0xf2c   :  { %v22672_v27 = vsel %vm648_vm2, %v32977_v19, %v22334_v29  ;;  %v22663_v43 = vsel %vm648_vm2, %v32986_v12, %v31710_v33  ;;  %v32987_v29 = vld [vmem:[#allocation69_spill] sm:$0xff] }
 0xf2d   :  { %v22664_v39 = vsel %vm648_vm2, %v32987_v29, %v22318_v13  ;;  %v33000_v29 = vld [vmem:[#allocation143_spill] sm:$0xff] }
 0xf2f   :  { %v22338_v45 = vpop.permute.xlu1 %22337  ;;  %v31791_v59 = vpop.permute.xlu0 %22459 }
 0xf30   :  { %v22674_v42 = vsel %vm648_vm2, %v32979_v50, %v22338_v45  ;;  %v32988_v45 = vld [vmem:[#allocation153_spill] sm:$0xff] }
 0xf33   :  { %v22438_v8 = vpop.permute.xlu1 %22437  ;;  %v31793_v52 = vpop.permute.xlu0 %22463 }
 0xf34   :  { %v22693_v28 = vsel %vm22691_vm6, %v22660_v24, %v22438_v8  ;;  %v26068_v8 = vld [vmem:[#allocation8] sm:$0xff]  }
 0xf35   :  { %25994 = vmatprep.subr.bf16.mxu1 %v26068_v8 }
 0xf36   :  { %25995 = vmatpush3.bf16.msra.mxu1 %v26068_v8  ;;  %v33001_v8 = vld [vmem:[#allocation115_spill] sm:$0xff] }
 0xf37   :  { %v22442_v51 = vpop.permute.xlu1 %22441  ;;  %v22564_v7 = vpop.permute.xlu0 %22563  ;;  %25996 = vmatprep.subr.bf16.mxu1 %v26069_v55 }
 0xf38   :  { %v22725_v49 = vsel %vm22724_vm7, %v22692_v35, %v22564_v7  ;;  %v22695_v21 = vsel %vm22691_vm6, %v22662_v31, %v22442_v51  ;;  %v22696_v51 = vsel %vm22691_vm6, %v22663_v43, %v22444_v4 }
 0xf3a   :  { %25997 = vmatpush3.bf16.msra.mxu1 %v26069_v55  ;;  %v33002_v55 = vld [vmem:[#allocation147_spill] sm:$0xff] }
 0xf3b   :  { %v22446_v11 = vpop.permute.xlu1 %22445  ;;  %v22568_v30 = vpop.permute.xlu0 %22567 }
 0xf3c   :  { %v22727_v36 = vsel %vm22724_vm7, %v22694_v14, %v22568_v30  ;;  %v22697_v7 = vsel %vm22691_vm6, %v22664_v39, %v22446_v11  ;;  %v32991_v11 = vld [vmem:[#allocation76_spill] sm:$0xff] }
 0xf3d   :  { %v22666_v30 = vsel %vm648_vm2, %v32991_v11, %v31778_v10 }
 0xf3f   :  { %v22450_v41 = vpop.permute.xlu1 %22449  ;;  %v22572_v9 = vpop.permute.xlu0 %22571 }
 0xf40   :  { %v22729_v33 = vsel %vm22724_vm7, %v22696_v51, %v22572_v9  ;;  %v22699_v57 = vsel %vm22691_vm6, %v22666_v30, %v22450_v41  ;;  %v32995_v41 = vld [vmem:[#allocation142_spill] sm:$0xff]  ;;  %v33013_v30 = vld [vmem:[#allocation40_spill] sm:$0xff] }
 0xf43   :  { %v31795_v46 = vpop.permute.xlu1 %22453 }
 0xf47   :  { %v31797_v37 = vpop.permute.xlu1 %22457 }
 0xf4a   :  { %v21039_v0 = vpop.f32.mrb[244].mxu0 }
 0xf4b   :  { %v25913_v5 = vpop.f32.mrb[245].mxu0  ;;  %22593 = vrot.lane.b32.xlu1 %v21039_v0, %s26980_s4  ;;  %v22462_v3 = vpop.permute.xlu1 %22461 }
 0xf4c   :  { %v31803_v61 = vsel %vm22691_vm6, %v22672_v27, %v22462_v3  ;;  %v22576_v0 = vpop.permute.xlu0 %22575  ;;  %v32989_v5 = vld [vmem:[#allocation32_spill] sm:$0xff] }
 0xf4f   :  { %22341 = vrot.lane.b32.xlu1 %v32978_v22, %s26978_s1  ;;  %v22466_v47 = vpop.permute.xlu1 %22465 }
 0xf50   :  { %v31810_v53 = vsel %vm22691_vm6, %v22674_v42, %v22466_v47  ;;  %v32990_v42 = vld [vmem:[#allocation66_spill] sm:$0xff] }
 0xf51   :  { %v22665_v4 = vsel %vm648_vm2, %v32990_v42, %v31725_v48  ;;  %v33011_v42 = vld [vmem:[#allocation71_spill] sm:$0xff] }
 0xf52   :  { %v22698_v20 = vsel %vm22691_vm6, %v22665_v4, %v31785_v23  ;;  %v33012_v4 = vld [vmem:[#allocation136_spill] sm:$0xff] }
 0xf53   :  { %22345 = vrot.lane.b32.xlu1 %v32982_v40, %s26978_s1  ;;  %v22566_v62 = vpop.permute.xlu1 %22565  ;;  %v22731_v48 = vsel %vm22724_vm7, %v22698_v20, %v22576_v0  ;;  %v33004_v0 = vld [vmem:[#allocation151_spill] sm:$0xff]  ;;  %v33016_v20 = vld [vmem:[#allocation80_spill] sm:$0xff] }
 0xf54   :  { %v22726_v2 = vsel %vm22724_vm7, %v22693_v28, %v22566_v62  ;;  %v22580_v28 = vpop.permute.xlu0 %22579  ;;  %v32993_v62 = vld [vmem:[#allocation68_spill] sm:$0xff] }
 0xf55   :  { %v22789_v26 = vcombine.low %v22725_v49, %v22726_v2  ;;  %v22667_v49 = vsel %vm648_vm2, %v32993_v62, %v31740_v18  ;;  %v32994_v2 = vld [vmem:[#allocation79_spill] sm:$0xff] }
 0xf56   :  { %v22668_v23 = vsel %vm648_vm2, %v32994_v2, %v31780_v25  ;;  %v22700_v9 = vsel %vm22691_vm6, %v22667_v49, %v31787_v60  ;;  %v32996_v18 = vld [vmem:[#allocation139_spill] sm:$0xff]  ;;  %v33022_v49 = vld [vmem:[#allocation90_spill] sm:$0xff] }
 0xf57   :  { %22349 = vrot.lane.b32.xlu1 %v32985_v17, %s26978_s1  ;;  %v22570_v15 = vpop.permute.xlu1 %22569  ;;  %v22797_v19 = vrot.slane %v22789_v26, %v32989_v5  ;;  %v22701_v26 = vsel %vm22691_vm6, %v22668_v23, %v31795_v46  ;;  %v22733_v31 = vsel %vm22724_vm7, %v22700_v9, %v22580_v28  ;;  %v32998_v46 = vld [vmem:[#allocation86_spill] sm:$0xff]  ;;  %v22671_v2 = vsel %vm648_vm2, %v33022_v49, %v31767_v54 }
 0xf58   :  { %v22728_v1 = vsel %vm22724_vm7, %v22695_v21, %v22570_v15  ;;  %v32997_v21 = vld [vmem:[#allocation78_spill] sm:$0xff]  ;;  %v22670_v15 = vsel %vm648_vm2, %v32998_v46, %v31782_v32 }
 0xf59   :  { %v22790_v34 = vcombine.low %v22727_v36, %v22728_v1  ;;  %v22669_v60 = vsel %vm648_vm2, %v32997_v21, %v31755_v56  ;;  %v32999_v36 = vld [vmem:[#allocation144_spill] sm:$0xff]  ;;  %v33023_v23 = vld [vmem:[#allocation74_spill] sm:$0xff] }
 0xf5a   :  { %v22702_v1 = vsel %vm22691_vm6, %v22669_v60, %v31789_v63 }
 0xf5b   :  { %22353 = vrot.lane.b32.xlu1 %v32988_v45, %s26978_s1  ;;  %v22804_v27 = vrot.slane %v22790_v34, %v32989_v5  ;;  %v22574_v3 = vpop.permute.xlu1 %22573  ;;  %v22703_v34 = vsel %vm22691_vm6, %v22670_v15, %v31797_v37  ;;  %v33027_v15 = vld [vmem:[#allocation103_spill] sm:$0xff] }
 0xf5c   :  { %v22730_v22 = vsel %vm22724_vm7, %v22697_v7, %v22574_v3  ;;  %v33003_v7 = vld [vmem:[#allocation48_spill] sm:$0xff]  ;;  %v33007_v3 = vld [vmem:[#allocation34_spill] sm:$0xff] }
 0xf5d   :  { %v22805_v13 = vcombine.low %v22797_v19, %v22804_v27  ;;  %v22806_v50 = vcombine.low %v22729_v33, %v22730_v22  ;;  %v33005_v19 = vld [vmem:[#allocation87_spill] sm:$0xff]  ;;  %v33008_v33 = vld [vmem:[#allocation52_spill] sm:$0xff] }
 0xf5e   :  { %v20962_v47 = vpop.f32.mrb[240].mxu1  ;;  %v33006_v27 = vld [vmem:[#allocation155_spill] sm:$0xff]  ;;  %v33009_v22 = vld [vmem:[#allocation92_spill] sm:$0xff] }
 0xf5f   :  { %22357 = vrot.lane.b32.xlu1 %v32992_v44, %s26978_s1  ;;  %v22578_v24 = vpop.permute.xlu1 %22577  ;;  %22591 = vrot.lane.b32.xlu0 %v20962_v47, %s26980_s4  ;;  %v25908_v40 = vpop.f32.mrb[241].mxu1  ;;  %v22814_v16 = vrot.slane %v22806_v50, %v32989_v5  ;;  %v33014_v47 = vld [vmem:[#allocation75_spill] sm:$0xff]  ;;  %v33015_v44 = vld [vmem:[#allocation96_spill] sm:$0xff] }
 0xf60   :  { %v22732_v35 = vsel %vm22724_vm7, %v22699_v57, %v22578_v24  ;;  %v33017_v57 = vld [vmem:[#allocation77_spill] sm:$0xff]  ;;  %v33018_v24 = vld [vmem:[#allocation83_spill] sm:$0xff] }
 0xf61   :  { %v22807_v10 = vcombine.low %v22731_v48, %v22732_v35  ;;  %v33019_v40 = vld [vmem:[#allocation67_spill] sm:$0xff]  ;;  %v33020_v48 = vld [vmem:[#allocation38_spill] sm:$0xff] }
 0xf63   :  { %22361 = vrot.lane.b32.xlu1 %v32995_v41, %s26978_s1  ;;  %v22821_v6 = vrot.slane %v22807_v10, %v32989_v5  ;;  %v22582_v58 = vpop.permute.xlu1 %22581  ;;  %22339 = vrot.lane.b32.xlu0 %v32996_v18, %s26978_s1  ;;  %v33021_v10 = vld [vmem:[#allocation94_spill] sm:$0xff]  ;;  %v22704_v41 = vsel %vm22691_vm6, %v22671_v2, %v31791_v59 }
 0xf64   :  { %v22734_v25 = vsel %vm22724_vm7, %v22701_v26, %v22582_v58  ;;  %v33024_v58 = vld [vmem:[#allocation45_spill] sm:$0xff] }
 0xf65   :  { %v22822_v17 = vcombine.low %v22814_v16, %v22821_v6  ;;  %v22823_v14 = vcombine.low %v22733_v31, %v22734_v25 }
 0xf67   :  { %22365 = vrot.lane.b32.xlu1 %v32999_v36, %s26978_s1  ;;  %v22586_v12 = vpop.permute.xlu1 %22585  ;;  %v22584_v43 = vpop.permute.xlu0 %22583  ;;  %22343 = vrot.lane.b32.xlu0 %v33000_v29, %s26978_s1  ;;  %v22933_v39 = vpack.c.bf16 %v22822_v17, %v22805_v13  ;;  %v31899_v63 = vrot.slane %v22823_v14, %v32989_v5  ;;  %v33010_v13 = vld [vmem:[#allocation134_spill] sm:$0xff]  ;;  %v33025_v17 = vld [vmem:[#allocation100_spill] sm:$0xff] }
 0xf68   :  { %v22736_v56 = vsel %vm22724_vm7, %v22703_v34, %v22586_v12  ;;  %v22735_v45 = vsel %vm22724_vm7, %v22702_v1, %v22584_v43 }
 0xf69   :  { %v22824_v32 = vcombine.low %v22735_v45, %v22736_v56  ;;  %25998 = vmatprep.mubr.msk.bf16.mxu1 %vm265_vm0, %v22933_v39  ;;  %v33028_v56 = vld [vmem:[#allocation97_spill] sm:$0xff] }
 0xf6a   :  { %v22673_v45 = vsel %vm648_vm2, %v33028_v56, %v31775_v38 }
 0xf6b   :  { %22369 = vrot.lane.b32.xlu1 %v33001_v8, %s26978_s1  ;;  %v31902_v37 = vrot.slane %v22824_v32, %v32989_v5  ;;  %22347 = vrot.lane.b32.xlu0 %v33002_v55, %s26978_s1  ;;  %v22706_v55 = vsel %vm22691_vm6, %v22673_v45, %v31793_v52  ;;  %v33037_v45 = vld [vmem:[#allocation130_spill] sm:$0xff] }
 0xf6d   :  { %v22839_v51 = vcombine.low %v31899_v63, %v31902_v37 }
 0xf6f   :  { %22469 = vrot.lane.b32.xlu1 %v33003_v7, %s26979_s7  ;;  %22351 = vrot.lane.b32.xlu0 %v33004_v0, %s26978_s1  ;;  %v33029_v7 = vld [vmem:[#allocation120_spill] sm:$0xff] }
 0xf73   :  { %22473 = vrot.lane.b32.xlu1 %v33005_v19, %s26979_s7  ;;  %22355 = vrot.lane.b32.xlu0 %v33006_v27, %s26978_s1 }
 0xf77   :  { %22477 = vrot.lane.b32.xlu1 %v33007_v3, %s26979_s7  ;;  %22359 = vrot.lane.b32.xlu0 %v33008_v33, %s26978_s1 }
 0xf7b   :  { %22481 = vrot.lane.b32.xlu1 %v33009_v22, %s26979_s7  ;;  %22363 = vrot.lane.b32.xlu0 %v33010_v13, %s26978_s1 }
 0xf7f   :  { %v21193_v50 = vpop.f32.mrb[246].mxu0  ;;  %22485 = vrot.lane.b32.xlu1 %v33011_v42, %s26979_s7  ;;  %22367 = vrot.lane.b32.xlu0 %v33012_v4, %s26978_s1 }
 0xf80   :  { %v25923_v11 = vpop.f32.mrb[247].mxu0 }
 0xf81   :  { %v33030_v11 = vld [vmem:[#allocation122_spill] sm:$0xff] }
 0xf83   :  { %22489 = vrot.lane.b32.xlu1 %v33013_v30, %s26979_s7  ;;  %22467 = vrot.lane.b32.xlu0 %v33014_v47, %s26979_s7 }
 0xf87   :  { %22493 = vrot.lane.b32.xlu1 %v33015_v44, %s26979_s7  ;;  %22471 = vrot.lane.b32.xlu0 %v33016_v20, %s26979_s7  ;;  %v33031_v44 = vld [vmem:[#allocation99_spill] sm:$0xff] }
 0xf88   :  { %v22590_v62 = vpop.permute.xlu1 %22589 }
 0xf89   :  { %v22738_v26 = vsel %vm22724_vm7, %v31803_v61, %v22590_v62  ;;  %v33026_v61 = vld [vmem:[#allocation116_spill] sm:$0xff] }
 0xf8b   :  { %22497 = vrot.lane.b32.xlu1 %v33017_v57, %s26979_s7  ;;  %22475 = vrot.lane.b32.xlu0 %v33018_v24, %s26979_s7 }
 0xf8f   :  { %22597 = vrot.lane.b32.xlu1 %v21193_v50, %s26980_s4  ;;  %22479 = vrot.lane.b32.xlu0 %v33019_v40, %s26979_s7 }
 0xf93   :  { %22483 = vrot.lane.b32.xlu0 %v33020_v48, %s26979_s7  ;;  %v21116_v35 = vpop.f32.mrb[242].mxu1 }
 0xf94   :  { %v25918_v28 = vpop.f32.mrb[243].mxu1 }
 0xf97   :  { %22487 = vrot.lane.b32.xlu0 %v33021_v10, %s26979_s7  ;;  %v33032_v10 = vld [vmem:[#allocation124_spill] sm:$0xff] }
 0xf9b   :  { %22491 = vrot.lane.b32.xlu0 %v33023_v23, %s26979_s7  ;;  %v33033_v23 = vld [vmem:[#allocation111_spill] sm:$0xff] }
 0xf9c   :  { %v22588_v9 = vpop.permute.xlu0 %22587 }
 0xf9d   :  { %v22737_v16 = vsel %vm22724_vm7, %v22704_v41, %v22588_v9 }
 0xf9e   :  { %v22840_v6 = vcombine.low %v22737_v16, %v22738_v26 }
 0xf9f   :  { %22495 = vrot.lane.b32.xlu0 %v33024_v58, %s26979_s7 }
 0xfa0   :  { %v22848_v52 = vrot.slane %v22840_v6, %v32989_v5 }
 0xfa3   :  { %22595 = vrot.lane.b32.xlu0 %v21116_v35, %s26980_s4 }
 0xfb4   :  { %v21347_v18 = vpop.f32.mrb[248].mxu0 }
 0xfb5   :  { %v25933_v54 = vpop.f32.mrb[249].mxu0  ;;  %22601 = vrot.lane.b32.xlu1 %v21347_v18, %s26980_s4 }
 0xfbd   :  { %v22594_v31 = vpop.permute.xlu1 %22593 }
 0xfbe   :  { %v22740_v3 = vsel %vm22724_vm7, %v31810_v53, %v22594_v31 }
 0xfc1   :  { %v22342_v25 = vpop.permute.xlu1 %22341 }
 0xfc2   :  { %v31963_v59 = vsel %vm648_vm2, %v33025_v17, %v22342_v25 }
 0xfc5   :  { %v22346_v14 = vpop.permute.xlu1 %22345 }
 0xfc6   :  { %v31967_v21 = vsel %vm648_vm2, %v33026_v61, %v22346_v14 }
 0xfc8   :  { %v21270_v60 = vpop.f32.mrb[244].mxu1 }
 0xfc9   :  { %v22350_v46 = vpop.permute.xlu1 %22349  ;;  %22599 = vrot.lane.b32.xlu0 %v21270_v60, %s26980_s4  ;;  %v25928_v1 = vpop.f32.mrb[245].mxu1 }
 0xfca   :  { %v31971_v36 = vsel %vm648_vm2, %v33027_v15, %v22350_v46  ;;  %v33035_v15 = vld [vmem:[#allocation101_spill] sm:$0xff] }
 0xfcc   :  { %v21424_v34 = vpop.f32.mrb[246].mxu1 }
 0xfcd   :  { %v31974_v12 = vpop.permute.xlu1 %22353  ;;  %22603 = vrot.lane.b32.xlu0 %v21424_v34, %s26980_s4  ;;  %v25938_v43 = vpop.f32.mrb[247].mxu1 }
 0xfd0   :  { %v21501_v29 = vpop.f32.mrb[250].mxu0  ;;  %v21578_v39 = vpop.f32.mrb[248].mxu1 }
 0xfd1   :  { %22605 = vrot.lane.b32.xlu1 %v21501_v29, %s26980_s4  ;;  %v25943_v32 = vpop.f32.mrb[251].mxu0  ;;  %v22358_v8 = vpop.permute.xlu1 %22357  ;;  %22607 = vrot.lane.b32.xlu0 %v21578_v39, %s26980_s4  ;;  %v33036_v29 = vld [vmem:[#allocation128_spill] sm:$0xff] }
 0xfd2   :  { %v31986_v0 = vsel %vm648_vm2, %v33029_v7, %v22358_v8  ;;  %v22592_v19 = vpop.permute.xlu0 %22591  ;;  %v25948_v27 = vpop.f32.mrb[249].mxu1 }
 0xfd3   :  { %v22739_v38 = vsel %vm22724_vm7, %v22706_v55, %v22592_v19 }
 0xfd4   :  { %v22841_v33 = vcombine.low %v22739_v38, %v22740_v3  ;;  %v21655_v22 = vpop.f32.mrb[252].mxu0  ;;  %v21732_v13 = vpop.f32.mrb[250].mxu1 }
 0xfd5   :  { %22609 = vrot.lane.b32.xlu1 %v21655_v22, %s26980_s4  ;;  %v25953_v50 = vpop.f32.mrb[253].mxu0  ;;  %v22362_v42 = vpop.permute.xlu1 %22361  ;;  %22611 = vrot.lane.b32.xlu0 %v21732_v13, %s26980_s4 }
 0xfd6   :  { %v22855_v4 = vrot.slane %v22841_v33, %v32989_v5  ;;  %v31997_v30 = vsel %vm648_vm2, %v33030_v11, %v22362_v42  ;;  %v22340_v53 = vpop.permute.xlu0 %22339  ;;  %v25958_v47 = vpop.f32.mrb[251].mxu1 }
 0xfd7   :  { %v22675_v20 = vsel %vm648_vm2, %v33031_v44, %v22340_v53 }
 0xfd8   :  { %v22856_v57 = vcombine.low %v22848_v52, %v22855_v4  ;;  %v21809_v24 = vpop.f32.mrb[254].mxu0  ;;  %v21886_v40 = vpop.f32.mrb[252].mxu1 }
 0xfd9   :  { %22613 = vrot.lane.b32.xlu1 %v21809_v24, %s26980_s4  ;;  %v25963_v48 = vpop.f32.mrb[255].mxu0  ;;  %v22366_v35 = vpop.permute.xlu1 %22365  ;;  %22615 = vrot.lane.b32.xlu0 %v21886_v40, %s26980_s4 }
 0xfda   :  { %v22934_v28 = vpack.c.bf16 %v22856_v57, %v22839_v51  ;;  %v32008_v62 = vsel %vm648_vm2, %v33032_v10, %v22366_v35  ;;  %v22344_v49 = vpop.permute.xlu0 %22343  ;;  %v25968_v2 = vpop.f32.mrb[253].mxu1  ;;  %v33034_v51 = vld [vmem:[#allocation112_spill] sm:$0xff] }
 0xfdb   :  { %v22677_v41 = vsel %vm648_vm2, %v33033_v23, %v22344_v49 }
 0xfdc   :  { %25999 = vmatmul.mubr.msk.bf16.vlgmr.msra.gmra.mrb[4].mxu1 %vm265_vm0, %v22934_v28  ;;  %v21963_v9 = vpop.f32.mrb[0].mxu0  ;;  %v22040_v26 = vpop.f32.mrb[254].mxu1 }
 0xfdd   :  { %22617 = vrot.lane.b32.xlu1 %v21963_v9, %s26980_s4  ;;  %v25973_v16 = vpop.f32.mrb[1].mxu0  ;;  %v32014_v6 = vpop.permute.xlu1 %22369  ;;  %22619 = vrot.lane.b32.xlu0 %v22040_v26, %s26980_s4 }
 0xfde   :  { %v22348_v63 = vpop.permute.xlu0 %22347  ;;  %v25978_v37 = vpop.f32.mrb[255].mxu1 }
 0xfdf   :  { %v22679_v58 = vsel %vm648_vm2, %v33034_v51, %v22348_v63 }
 0xfe0   :  { %v22117_v18 = vpop.f32.mrb[2].mxu0  ;;  %v22194_v54 = vpop.f32.mrb[0].mxu1 }
 0xfe1   :  { %22621 = vrot.lane.b32.xlu1 %v22117_v18, %s26980_s4  ;;  %v25983_v31 = vpop.f32.mrb[3].mxu0  ;;  %22623 = vrot.lane.b32.xlu0 %v22194_v54, %s26980_s4  ;;  %v25988_v17 = vpop.f32.mrb[1].mxu1 }
 0xfe2   :  { %v22352_v25 = vpop.permute.xlu0 %22351  ;;  %v22470_v14 = vpop.permute.xlu1 %22469  ;;  %v33038_v31 = vld [vmem:[#allocation118_spill] sm:$0xff] }
 0xfe3   :  { %v22709_v47 = vsel %vm22691_vm6, %v31963_v59, %v22470_v14  ;;  %v22682_v17 = vsel %vm648_vm2, %v33038_v31, %v31974_v12  ;;  %v33039_v14 = vld [vmem:[#allocation113_spill] sm:$0xff] }
 0xfe4   :  { %v22271_v61 = vpop.f32.mrb[4].mxu0 }
 0xfe5   :  { %22625 = vrot.lane.b32.xlu1 %v22271_v61, %s26980_s4  ;;  %v25993_v60 = vpop.f32.mrb[5].mxu0  ;;  %v22681_v61 = vsel %vm648_vm2, %v33039_v14, %v22352_v25 }
 0xfe6   :  { %v22356_v46 = vpop.permute.xlu0 %22355  ;;  %v22474_v34 = vpop.permute.xlu1 %22473 }
 0xfe7   :  { %v22683_v1 = vsel %vm648_vm2, %v33035_v15, %v22356_v46  ;;  %v22711_v28 = vsel %vm22691_vm6, %v31967_v21, %v22474_v34 }
 0xfea   :  { %v22360_v43 = vpop.permute.xlu0 %22359  ;;  %v22478_v8 = vpop.permute.xlu1 %22477 }
 0xfeb   :  { %v32026_v39 = vsel %vm648_vm2, %v33036_v29, %v22360_v43  ;;  %v22713_v63 = vsel %vm22691_vm6, %v31971_v36, %v22478_v8 }
 0xfee   :  { %v22364_v56 = vpop.permute.xlu0 %22363  ;;  %v22482_v7 = vpop.permute.xlu1 %22481 }
 0xfef   :  { %v32030_v32 = vsel %vm648_vm2, %v33037_v45, %v22364_v56  ;;  %v22715_v60 = vsel %vm22691_vm6, %v22682_v17, %v22482_v7 }
 0xff2   :  { %v32032_v55 = vpop.permute.xlu0 %22367  ;;  %v22486_v3 = vpop.permute.xlu1 %22485 }
 0xff3   :  { %v22717_v29 = vsel %vm22691_vm6, %v31986_v0, %v22486_v3 }
 0xff6   :  { %v22468_v19 = vpop.permute.xlu0 %22467  ;;  %v22490_v33 = vpop.permute.xlu1 %22489 }
 0xff7   :  { %v22708_v44 = vsel %vm22691_vm6, %v22675_v20, %v22468_v19 }
 0xffa   :  { %v22472_v27 = vpop.permute.xlu0 %22471  ;;  %v22494_v50 = vpop.permute.xlu1 %22493 }
 0xffb   :  { %v22710_v10 = vsel %vm22691_vm6, %v22677_v41, %v22472_v27 }
 0xffe   :  { %v22476_v38 = vpop.permute.xlu0 %22475  ;;  %v32034_v52 = vpop.permute.xlu1 %22497 }
 0xfff   :  { %v22712_v37 = vsel %vm22691_vm6, %v22679_v58, %v22476_v38 }
0x1002   :  { %v22480_v22 = vpop.permute.xlu0 %22479  ;;  %v22598_v53 = vpop.permute.xlu1 %22597 }
0x1003   :  { %v22742_v24 = vsel %vm22724_vm7, %v22709_v47, %v22598_v53  ;;  %v22714_v36 = vsel %vm22691_vm6, %v22681_v61, %v22480_v22  ;;  %v22719_v22 = vsel %vm22691_vm6, %v31997_v30, %v22490_v33 }
0x1006   :  { %v22484_v13 = vpop.permute.xlu0 %22483 }
0x1007   :  { %v22716_v56 = vsel %vm22691_vm6, %v22683_v1, %v22484_v13 }
0x100a   :  { %v22488_v42 = vpop.permute.xlu0 %22487 }
0x100b   :  { %v22718_v0 = vsel %vm22691_vm6, %v32026_v39, %v22488_v42 }
0x100e   :  { %v22492_v4 = vpop.permute.xlu0 %22491 }
0x1012   :  { %v32036_v11 = vpop.permute.xlu0 %22495 }
0x1016   :  { %v22596_v57 = vpop.permute.xlu0 %22595 }
0x1017   :  { %v22741_v40 = vsel %vm22724_vm7, %v22708_v44, %v22596_v57  ;;  %v22721_v57 = vsel %vm22691_vm6, %v32008_v62, %v22494_v50  ;;  %v33041_v62 = vld [vmem:[#allocation132_spill] sm:$0xff] }
0x1018   :  { %v22857_v48 = vcombine.low %v22741_v40, %v22742_v24  ;;  %v22720_v24 = vsel %vm22691_vm6, %v32030_v32, %v22492_v4  ;;  %v22689_v32 = vsel %vm648_vm2, %v33041_v62, %v32032_v55  ;;  %v24125_v55 = vld [vmem:[#allocation10] ss:$0 sm:$0xff] }
0x1019   :  { %v22722_v4 = vsel %vm22691_vm6, %v22689_v32, %v32036_v11 }
0x101a   :  { %v22865_v20 = vrot.slane %v22857_v48, %v32989_v5 }
0x1027   :  { %v22602_v35 = vpop.permute.xlu1 %22601 }
0x1028   :  { %v22744_v2 = vsel %vm22724_vm7, %v22711_v28, %v22602_v35 }
0x103b   :  { %v22600_v49 = vpop.permute.xlu0 %22599 }
0x103c   :  { %v22743_v23 = vsel %vm22724_vm7, %v22710_v10, %v22600_v49  ;;  %v33040_v10 = vld [vmem:[#allocation126_spill] sm:$0xff] }
0x103d   :  { %v22858_v59 = vcombine.low %v22743_v23, %v22744_v2  ;;  %v22690_v49 = vsel %vm648_vm2, %v33040_v10, %v32014_v6 }
0x103e   :  { %v22723_v50 = vsel %vm22691_vm6, %v22690_v49, %v32034_v52 }
0x103f   :  { %v22872_v9 = vrot.slane %v22858_v59, %v32989_v5  ;;  %v22604_v26 = vpop.permute.xlu0 %22603 }
0x1040   :  { %v22745_v41 = vsel %vm22724_vm7, %v22712_v37, %v22604_v26 }
0x1041   :  { %v22873_v16 = vcombine.low %v22865_v20, %v22872_v9 }
0x1043   :  { %v22606_v21 = vpop.permute.xlu1 %22605  ;;  %v22608_v51 = vpop.permute.xlu0 %22607 }
0x1044   :  { %v22746_v18 = vsel %vm22724_vm7, %v22713_v63, %v22606_v21  ;;  %v22747_v15 = vsel %vm22724_vm7, %v22714_v36, %v22608_v51  ;;  %v26622_v63 = vld [vmem:[#allocation2] sm:$0xff]   ;;  %v26623_v51 = vld [vmem:[#allocation2 + $0x8] sm:$0xff]  }
0x1045   :  { %v22874_v54 = vcombine.low %v22745_v41, %v22746_v18  ;;  %v214_v52 = vunpack.c.l.bf16 %v26622_v63  ;;  %v215_v11 = vunpack.c.h.bf16 %v26622_v63  ;;  %v216_v41 = vunpack.c.l.bf16 %v26623_v51  ;;  %v26070_v63 = vld [vmem:[#allocation11] sm:$0xff]  }
0x1046   :  { %26006 = vmatprep.subr.bf16.mxu0 %v26070_v63 }
0x1047   :  { %v22610_v46 = vpop.permute.xlu1 %22609  ;;  %v22612_v58 = vpop.permute.xlu0 %22611  ;;  %v22882_v12 = vrot.slane %v22874_v54, %v32989_v5  ;;  %26007 = vmatpush3.bf16.msra.mxu0 %v26070_v63 }
0x1048   :  { %v22748_v34 = vsel %vm22724_vm7, %v22715_v60, %v22610_v46  ;;  %v22749_v7 = vsel %vm22724_vm7, %v22716_v56, %v22612_v58  ;;  %v217_v60 = vunpack.c.h.bf16 %v26623_v51 }
0x1049   :  { %v22875_v43 = vcombine.low %v22747_v15, %v22748_v34 }
0x104b   :  { %v22889_v25 = vrot.slane %v22875_v43, %v32989_v5  ;;  %v22614_v45 = vpop.permute.xlu1 %22613  ;;  %v22616_v8 = vpop.permute.xlu0 %22615 }
0x104c   :  { %v22750_v19 = vsel %vm22724_vm7, %v22717_v29, %v22614_v45  ;;  %v22751_v53 = vsel %vm22724_vm7, %v22718_v0, %v22616_v8  ;;  %v26625_v8 = vld [vmem:[#allocation2 + $0x18] sm:$0xff]  }
0x104d   :  { %v22890_v27 = vcombine.low %v22882_v12, %v22889_v25  ;;  %v22891_v38 = vcombine.low %v22749_v7, %v22750_v19  ;;  %v26624_v12 = vld [vmem:[#allocation2 + $0x10] sm:$0xff]   ;;  %v220_v7 = vunpack.c.l.bf16 %v26625_v8 }
0x104e   :  { %v218_v25 = vunpack.c.l.bf16 %v26624_v12 }
0x104f   :  { %v22618_v3 = vpop.permute.xlu1 %22617  ;;  %v22620_v1 = vpop.permute.xlu0 %22619  ;;  %v22935_v13 = vpack.c.bf16 %v22890_v27, %v22873_v16  ;;  %v22899_v30 = vrot.slane %v22891_v38, %v32989_v5 }
0x1050   :  { %v22752_v47 = vsel %vm22724_vm7, %v22719_v22, %v22618_v3  ;;  %v22753_v42 = vsel %vm22724_vm7, %v22720_v24, %v22620_v1  ;;  %v219_v22 = vunpack.c.h.bf16 %v26624_v12  ;;  %v221_v1 = vunpack.c.h.bf16 %v26625_v8 }
0x1051   :  { %v22892_v44 = vcombine.low %v22751_v53, %v22752_v47  ;;  %26002 = vmatprep.mubr.msk.bf16.mxu1 %vm265_vm0, %v22935_v13 }
0x1053   :  { %v22906_v39 = vrot.slane %v22892_v44, %v32989_v5  ;;  %v22622_v33 = vpop.permute.xlu1 %22621  ;;  %v22624_v28 = vpop.permute.xlu0 %22623 }
0x1054   :  { %v22754_v40 = vsel %vm22724_vm7, %v22721_v57, %v22622_v33  ;;  %v22755_v23 = vsel %vm22724_vm7, %v22722_v4, %v22624_v28 }
0x1055   :  { %v22907_v48 = vcombine.low %v22899_v30, %v22906_v39  ;;  %v22908_v35 = vcombine.low %v22753_v42, %v22754_v40 }
0x1057   :  { %v22626_v2 = vpop.permute.xlu1 %22625  ;;  %v22916_v9 = vrot.slane %v22908_v35, %v32989_v5 }
0x1058   :  { %v22756_v59 = vsel %vm22724_vm7, %v22723_v50, %v22626_v2 }
0x1059   :  { %v22909_v20 = vcombine.low %v22755_v23, %v22756_v59 }
0x105b   :  { %v22923_v6 = vrot.slane %v22909_v20, %v32989_v5 }
0x105d   :  { %v22924_v26 = vcombine.low %v22916_v9, %v22923_v6 }
0x105f   :  { %v22936_v16 = vpack.c.bf16 %v22924_v26, %v22907_v48 }
0x1061   :  { %26003 = vmatmul.mubr.msk.bf16.gmra.mrb[8].mxu1 %vm265_vm0, %v22936_v16 }
0x10af   :  { %v26000_v37 = vpop.f32.mrb[4].mxu1 }
0x10b0   :  { %v23006_v21 = vpop.f32.mrb[5].mxu1  ;;  %v23015_v18 = vadd.f32 %v26000_v37, %v24125_v55 }
0x10b1   :  { %v23007_v54 = vadd.f32 %v24125_v55, %v23006_v21  ;;  %v26001_v31 = vpop.f32.mrb[6].mxu1 }
0x10b2   :  { %v23009_v17 = vpop.f32.mrb[7].mxu1  ;;  %v23039_v5 = vadd.f32 %v23015_v18, %v216_v41  ;;  %v23018_v36 = vadd.f32 %v26001_v31, %v24125_v55 }
0x10b3   :  { %v23037_v14 = vadd.f32 %v23007_v54, %v214_v52  ;;  %v23010_v61 = vadd.f32 %v24125_v55, %v23009_v17  ;;  %v26071_v52 = vld [vmem:[#allocation11 + $0x8] sm:$0xff]  }
0x10b4   :  { %v23040_v34 = vadd.f32 %v23018_v36, %v217_v60  ;;  %v23051_v43 = vsel %vm265_vm0, %v23039_v5, 0.0  ;;  %26008 = vmatprep.subr.bf16.mxu0 %v26071_v52 }
0x10b5   :  { %v23038_v46 = vadd.f32 %v23010_v61, %v215_v11  ;;  %v23045_v58 = vsel %vm265_vm0, %v23037_v14, 0.0  ;;  %26009 = vmatpush3.bf16.msra.mxu0 %v26071_v52 }
0x10b6   :  { %23046 = vadd.xlane.f32.xlu0 %v23045_v58  ;;  %v23054_v29 = vsel %vm265_vm0, %v23040_v34, 0.0 }
0x10b7   :  { %v23048_v15 = vsel %vm265_vm0, %v23038_v46, 0.0 }
0x10b8   :  { %23049 = vadd.xlane.f32.xlu1 %v23048_v15 }
0x10ba   :  { %23052 = vadd.xlane.f32.xlu0 %v23051_v43 }
0x10be   :  { %23055 = vadd.xlane.f32.xlu0 %v23054_v29 }
0x1134   :  { %v26004_v56 = vpop.f32.mrb[8].mxu1 }
0x1135   :  { %v23022_v45 = vpop.f32.mrb[9].mxu1  ;;  %v23031_v19 = vadd.f32 %v26004_v56, %v24125_v55 }
0x1136   :  { %v23023_v27 = vadd.f32 %v24125_v55, %v23022_v45  ;;  %v26005_v38 = vpop.f32.mrb[10].mxu1 }
0x1137   :  { %v23025_v0 = vpop.f32.mrb[11].mxu1  ;;  %v23034_v13 = vadd.f32 %v26005_v38, %v24125_v55  ;;  %v23043_v47 = vadd.f32 %v23031_v19, %v220_v7 }
0x1138   :  { %v23041_v3 = vadd.f32 %v23023_v27, %v218_v25  ;;  %v23026_v53 = vadd.f32 %v24125_v55, %v23025_v0 }
0x1139   :  { %v23044_v24 = vadd.f32 %v23034_v13, %v221_v1  ;;  %v23063_v39 = vsel %vm265_vm0, %v23043_v47, 0.0  ;;  %v24132_v13 = vld [vmem:[#allocation17] ss:$0 sm:$0xff] }
0x113a   :  { %v23042_v44 = vadd.f32 %v23026_v53, %v219_v22  ;;  %v23057_v57 = vsel %vm265_vm0, %v23041_v3, 0.0 }
0x113b   :  { %23058 = vadd.xlane.f32.xlu1 %v23057_v57  ;;  %v23066_v33 = vsel %vm265_vm0, %v23044_v24, 0.0 }
0x113c   :  { %v23060_v30 = vsel %vm265_vm0, %v23042_v44, 0.0 }
0x113d   :  { %23061 = vadd.xlane.f32.xlu0 %v23060_v30  ;;  %v24133_v30 = vld [vmem:[#allocation19] ss:$0 sm:$0xff] }
0x113f   :  { %23064 = vadd.xlane.f32.xlu1 %v23063_v39 }
0x1141   :  { %23067 = vadd.xlane.f32.xlu0 %v23066_v33 }
0x1143   :  { %v23047_v42 = vpop.xlane.xlu0 %23046 }
0x1144   :  { %v23070_v40 = vmul.f32 0.03125, %v23047_v42 }
0x1145   :  { %v23050_v48 = vpop.xlane.xlu1 %23049 }
0x1146   :  { %v32109_v35 = vsub.f32 %v23037_v14, %v23070_v40  ;;  %v23071_v28 = vmul.f32 0.03125, %v23050_v48 }
0x1147   :  { %v23053_v10 = vpop.xlane.xlu0 %23052 }
0x1148   :  { %v32111_v49 = vsub.f32 %v23038_v46, %v23071_v28  ;;  %v23072_v62 = vmul.f32 0.03125, %v23053_v10  ;;  %v23086_v32 = vmul.f32 %v32109_v35, %v32109_v35 }
0x114a   :  { %v32115_v50 = vsub.f32 %v23039_v5, %v23072_v62  ;;  %v23094_v4 = vsel %vm265_vm0, %v23086_v32, 0.0  ;;  %v23087_v2 = vmul.f32 %v32111_v49, %v32111_v49 }
0x114b   :  { %23095 = vadd.xlane.f32.xlu1 %v23094_v4  ;;  %v23056_v23 = vpop.xlane.xlu0 %23055  ;;  %v26072_v4 = vld [vmem:[#allocation14] sm:$0xff]  }
0x114c   :  { %v23073_v59 = vmul.f32 0.03125, %v23056_v23  ;;  %v23097_v20 = vsel %vm265_vm0, %v23087_v2, 0.0  ;;  %v23088_v9 = vmul.f32 %v32115_v50, %v32115_v50  ;;  %v26073_v2 = vld [vmem:[#allocation14 + $0x8] sm:$0xff]   ;;  %26018 = vmatprep.subr.bf16.mxu1 %v26072_v4 }
0x114d   :  { %23098 = vadd.xlane.f32.xlu0 %v23097_v20  ;;  %26019 = vmatpush3.bf16.msra.mxu1 %v26072_v4 }
0x114e   :  { %v32123_v6 = vsub.f32 %v23040_v34, %v23073_v59  ;;  %v23100_v26 = vsel %vm265_vm0, %v23088_v9, 0.0  ;;  %26020 = vmatprep.subr.bf16.mxu1 %v26073_v2 }
0x114f   :  { %23101 = vadd.xlane.f32.xlu1 %v23100_v26 }
0x1150   :  { %v23089_v16 = vmul.f32 %v32123_v6, %v32123_v6 }
0x1151   :  { %26021 = vmatpush3.bf16.msra.mxu1 %v26073_v2  ;;  %v24141_v2 = vld [vmem:[#allocation16] ss:$0 sm:$0xff] }
0x1152   :  { %v23103_v55 = vsel %vm265_vm0, %v23089_v16, 0.0 }
0x1153   :  { %23104 = vadd.xlane.f32.xlu0 %v23103_v55 }
0x11c8   :  { %v23059_v37 = vpop.xlane.xlu1 %23058 }
0x11c9   :  { %v23074_v21 = vmul.f32 0.03125, %v23059_v37 }
0x11ca   :  { %v23062_v11 = vpop.xlane.xlu0 %23061 }
0x11cb   :  { %v32129_v51 = vsub.f32 %v23041_v3, %v23074_v21  ;;  %v23075_v41 = vmul.f32 0.03125, %v23062_v11 }
0x11cc   :  { %v23065_v18 = vpop.xlane.xlu1 %23064 }
0x11cd   :  { %v32131_v54 = vsub.f32 %v23042_v44, %v23075_v41  ;;  %v23076_v31 = vmul.f32 0.03125, %v23065_v18  ;;  %v23090_v17 = vmul.f32 %v32129_v51, %v32129_v51 }
0x11ce   :  { %v23068_v14 = vpop.xlane.xlu0 %23067 }
0x11cf   :  { %v32135_v61 = vsub.f32 %v23043_v47, %v23076_v31  ;;  %v23077_v60 = vmul.f32 0.03125, %v23068_v14  ;;  %v23106_v5 = vsel %vm265_vm0, %v23090_v17, 0.0  ;;  %v23091_v36 = vmul.f32 %v32131_v54, %v32131_v54 }
0x11d0   :  { %23107 = vadd.xlane.f32.xlu1 %v23106_v5 }
0x11d1   :  { %v32140_v46 = vsub.f32 %v23044_v24, %v23077_v60  ;;  %v23109_v58 = vsel %vm265_vm0, %v23091_v36, 0.0  ;;  %v23092_v15 = vmul.f32 %v32135_v61, %v32135_v61 }
0x11d2   :  { %23110 = vadd.xlane.f32.xlu0 %v23109_v58 }
0x11d3   :  { %v23112_v34 = vsel %vm265_vm0, %v23092_v15, 0.0  ;;  %v23093_v43 = vmul.f32 %v32140_v46, %v32140_v46 }
0x11d4   :  { %23113 = vadd.xlane.f32.xlu1 %v23112_v34 }
0x11d5   :  { %v23115_v29 = vsel %vm265_vm0, %v23093_v43, 0.0 }
0x11d6   :  { %23116 = vadd.xlane.f32.xlu0 %v23115_v29 }
0x11d8   :  { %v23096_v56 = vpop.xlane.xlu1 %23095 }
0x11d9   :  { %v23118_v12 = vmul.f32 0.03125, %v23096_v56 }
0x11da   :  { %v23099_v25 = vpop.xlane.xlu0 %23098 }
0x11db   :  { %v23126_v45 = vadd.f32 1e-05, %v23118_v12  ;;  %v23119_v8 = vmul.f32 0.03125, %v23099_v25 }
0x11dc   :  { %v23102_v7 = vpop.xlane.xlu1 %23101 }
0x11dd   :  { %26590 = vrsqrt.f32 %v23126_v45  ;;  %v23127_v19 = vadd.f32 1e-05, %v23119_v8  ;;  %v23120_v27 = vmul.f32 0.03125, %v23102_v7 }
0x11df   :  { %26592 = vrsqrt.f32 %v23127_v19  ;;  %v23128_v38 = vadd.f32 1e-05, %v23120_v27 }
0x11e0   :  { %v23105_v22 = vpop.xlane.xlu0 %23104 }
0x11e1   :  { %26594 = vrsqrt.f32 %v23128_v38  ;;  %v23121_v0 = vmul.f32 0.03125, %v23105_v22 }
0x11e3   :  { %v23129_v3 = vadd.f32 1e-05, %v23121_v0 }
0x11e5   :  { %26596 = vrsqrt.f32 %v23129_v3 }
0x11e7   :  { %v26591_v1 = vpop.eup %26590 }
0x11e8   :  { %v23142_v53 = vmul.f32 %v26591_v1, %v32109_v35 }
0x11e9   :  { %v26593_v47 = vpop.eup %26592 }
0x11ea   :  { %v23143_v44 = vmul.f32 %v26593_v47, %v32111_v49  ;;  %v23157_v57 = vmul.f32 %v24132_v13, %v23142_v53 }
0x11eb   :  { %v26595_v24 = vpop.eup %26594 }
0x11ec   :  { %v23144_v39 = vmul.f32 %v26595_v24, %v32115_v50  ;;  %v23158_v33 = vmul.f32 %v24132_v13, %v23143_v44  ;;  %v32152_v42 = vadd.f32 %v24133_v30, %v23157_v57 }
0x11ee   :  { %v32154_v40 = vadd.f32 %v24133_v30, %v23158_v33  ;;  %v23159_v28 = vmul.f32 %v24132_v13, %v23144_v39 }
0x11ef   :  { %v26597_v48 = vpop.eup %26596 }
0x11f0   :  { %v23145_v10 = vmul.f32 %v26597_v48, %v32123_v6  ;;  %v23180_v35 = vpack.c.bf16 %v32154_v40, %v32152_v42  ;;  %v32160_v49 = vadd.f32 %v24133_v30, %v23159_v28 }
0x11f2   :  { %v23160_v62 = vmul.f32 %v24132_v13, %v23145_v10  ;;  %26010 = vmatprep.mubr.msk.bf16.mxu0 %vm265_vm0, %v23180_v35 }
0x11f4   :  { %v32162_v32 = vadd.f32 %v24133_v30, %v23160_v62 }
0x11f6   :  { %v23181_v50 = vpack.c.bf16 %v32162_v32, %v32160_v49 }
0x11f8   :  { %26011 = vmatmul.mubr.msk.bf16.vlgmr.msra.gmra.mrb[8].mxu0 %vm265_vm0, %v23181_v50 }
0x125d   :  { %v23108_v23 = vpop.xlane.xlu1 %23107 }
0x125e   :  { %v23122_v59 = vmul.f32 0.03125, %v23108_v23 }
0x125f   :  { %v23111_v20 = vpop.xlane.xlu0 %23110 }
0x1260   :  { %v23130_v9 = vadd.f32 1e-05, %v23122_v59  ;;  %v23123_v6 = vmul.f32 0.03125, %v23111_v20 }
0x1261   :  { %v23114_v26 = vpop.xlane.xlu1 %23113 }
0x1262   :  { %26598 = vrsqrt.f32 %v23130_v9  ;;  %v23131_v16 = vadd.f32 1e-05, %v23123_v6  ;;  %v23124_v55 = vmul.f32 0.03125, %v23114_v26 }
0x1263   :  { %v23117_v63 = vpop.xlane.xlu0 %23116 }
0x1264   :  { %26600 = vrsqrt.f32 %v23131_v16  ;;  %v23132_v52 = vadd.f32 1e-05, %v23124_v55  ;;  %v23125_v37 = vmul.f32 0.03125, %v23117_v63 }
0x1266   :  { %26602 = vrsqrt.f32 %v23132_v52  ;;  %v23133_v21 = vadd.f32 1e-05, %v23125_v37 }
0x1268   :  { %26604 = vrsqrt.f32 %v23133_v21 }
0x126c   :  { %v26599_v11 = vpop.eup %26598 }
0x126d   :  { %v23146_v41 = vmul.f32 %v26599_v11, %v32129_v51 }
0x126e   :  { %v26601_v18 = vpop.eup %26600 }
0x126f   :  { %v23147_v31 = vmul.f32 %v26601_v18, %v32131_v54  ;;  %v23161_v17 = vmul.f32 %v24132_v13, %v23146_v41 }
0x1270   :  { %v26603_v14 = vpop.eup %26602 }
0x1271   :  { %v23148_v60 = vmul.f32 %v26603_v14, %v32135_v61  ;;  %v23162_v5 = vmul.f32 %v24132_v13, %v23147_v31  ;;  %v32171_v34 = vadd.f32 %v24133_v30, %v23161_v17 }
0x1272   :  { %v26605_v36 = vpop.eup %26604 }
0x1273   :  { %v23163_v58 = vmul.f32 %v24132_v13, %v23148_v60  ;;  %v23149_v15 = vmul.f32 %v26605_v36, %v32140_v46  ;;  %v32173_v43 = vadd.f32 %v24133_v30, %v23162_v5  ;;  %v24134_v46 = vld [vmem:[#allocation13] ss:$0 sm:$0xff] }
0x1275   :  { %v23164_v29 = vmul.f32 %v24132_v13, %v23149_v15  ;;  %v23182_v51 = vpack.c.bf16 %v32173_v43, %v32171_v34  ;;  %v32177_v56 = vadd.f32 %v24133_v30, %v23163_v58 }
0x1277   :  { %v32179_v54 = vadd.f32 %v24133_v30, %v23164_v29  ;;  %26014 = vmatprep.mubr.msk.bf16.mxu0 %vm265_vm0, %v23182_v51 }
0x1279   :  { %v23183_v61 = vpack.c.bf16 %v32179_v54, %v32177_v56 }
0x127b   :  { %26015 = vmatmul.mubr.msk.bf16.gmra.mrb[12].mxu0 %vm265_vm0, %v23183_v61 }
0x12cb   :  { %v26012_v12 = vpop.f32.mrb[8].mxu0 }
0x12cc   :  { %v23262_v25 = vadd.f32 %v26012_v12, %v24134_v46  ;;  %v23253_v45 = vpop.f32.mrb[9].mxu0 }
0x12cd   :  { %v23254_v8 = vadd.f32 %v24134_v46, %v23253_v45  ;;  %v26013_v7 = vpop.f32.mrb[10].mxu0 }
0x12ce   :  { %v23265_v19 = vadd.f32 %v26013_v7, %v24134_v46  ;;  %v23256_v27 = vpop.f32.mrb[11].mxu0  ;;  %v23286_v22 = vmax.f32 %v23262_v25, 0.0 }
0x12cf   :  { %v23257_v38 = vadd.f32 %v24134_v46, %v23256_v27  ;;  %v23284_v3 = vmax.f32 %v23254_v8, 0.0 }
0x12d0   :  { %v23287_v0 = vmax.f32 %v23265_v19, 0.0 }
0x12d1   :  { %v23285_v1 = vmax.f32 %v23257_v38, 0.0 }
0x12d2   :  { %v23293_v13 = vpack.c.bf16 %v23287_v0, %v23286_v22 }
0x12d3   :  { %v23292_v53 = vpack.c.bf16 %v23285_v1, %v23284_v3 }
0x12d5   :  { %26022 = vmatprep.mubr.msk.bf16.mxu1 %vm265_vm0, %v23292_v53 }
0x12d6   :  { %26023 = vmatmul.mubr.msk.bf16.vlgmr.msra.gmra.mrb[12].mxu1 %vm265_vm0, %v23293_v13 }
0x134e   :  { %v26016_v47 = vpop.f32.mrb[12].mxu0 }
0x134f   :  { %v23278_v44 = vadd.f32 %v26016_v47, %v24134_v46  ;;  %v23269_v57 = vpop.f32.mrb[13].mxu0 }
0x1350   :  { %v23270_v24 = vadd.f32 %v24134_v46, %v23269_v57  ;;  %v26017_v30 = vpop.f32.mrb[14].mxu0 }
0x1351   :  { %v23281_v39 = vadd.f32 %v26017_v30, %v24134_v46  ;;  %v23272_v33 = vpop.f32.mrb[15].mxu0  ;;  %v23290_v28 = vmax.f32 %v23278_v44, 0.0 }
0x1352   :  { %v23273_v48 = vadd.f32 %v24134_v46, %v23272_v33  ;;  %v23288_v35 = vmax.f32 %v23270_v24, 0.0 }
0x1353   :  { %v23291_v10 = vmax.f32 %v23281_v39, 0.0 }
0x1354   :  { %v23289_v62 = vmax.f32 %v23273_v48, 0.0 }
0x1355   :  { %v23295_v50 = vpack.c.bf16 %v23291_v10, %v23290_v28 }
0x1356   :  { %v23294_v4 = vpack.c.bf16 %v23289_v62, %v23288_v35 }
0x1358   :  { %26026 = vmatprep.mubr.msk.bf16.mxu1 %vm265_vm0, %v23294_v4 }
0x1359   :  { %26027 = vmatmul.mubr.msk.bf16.gmra.mrb[16].mxu1 %vm265_vm0, %v23295_v50 }
0x13a9   :  { %v26024_v23 = vpop.f32.mrb[12].mxu1 }
0x13aa   :  { %v23374_v59 = vadd.f32 %v26024_v23, %v24141_v2  ;;  %v23365_v20 = vpop.f32.mrb[13].mxu1 }
0x13ab   :  { %v23366_v9 = vadd.f32 %v24141_v2, %v23365_v20  ;;  %v26025_v6 = vpop.f32.mrb[14].mxu1 }
0x13ac   :  { %v23398_v26 = vadd.f32 %v23374_v59, %v32160_v49  ;;  %v23377_v16 = vadd.f32 %v26025_v6, %v24141_v2  ;;  %v23368_v55 = vpop.f32.mrb[15].mxu1 }
0x13ad   :  { %v23369_v63 = vadd.f32 %v24141_v2, %v23368_v55  ;;  %v23396_v52 = vadd.f32 %v23366_v9, %v32152_v42 }
0x13ae   :  { %v23399_v37 = vadd.f32 %v23377_v16, %v32162_v32  ;;  %v23410_v21 = vsel %vm265_vm0, %v23398_v26, 0.0 }
0x13af   :  { %23411 = vadd.xlane.f32.xlu1 %v23410_v21  ;;  %v23397_v11 = vadd.f32 %v23369_v63, %v32154_v40  ;;  %v23404_v18 = vsel %vm265_vm0, %v23396_v52, 0.0 }
0x13b0   :  { %v23413_v41 = vsel %vm265_vm0, %v23399_v37, 0.0 }
0x13b1   :  { %23414 = vadd.xlane.f32.xlu0 %v23413_v41  ;;  %v23407_v49 = vsel %vm265_vm0, %v23397_v11, 0.0 }
0x13b3   :  { %23405 = vadd.xlane.f32.xlu1 %v23404_v18 }
0x13b5   :  { %23408 = vadd.xlane.f32.xlu0 %v23407_v49 }
0x142c   :  { %v26028_v31 = vpop.f32.mrb[16].mxu1 }
0x142d   :  { %v23381_v17 = vpop.f32.mrb[17].mxu1  ;;  %v23390_v14 = vadd.f32 %v26028_v31, %v24141_v2 }
0x142e   :  { %v23382_v42 = vadd.f32 %v24141_v2, %v23381_v17  ;;  %v26029_v60 = vpop.f32.mrb[18].mxu1 }
0x142f   :  { %v23384_v32 = vpop.f32.mrb[19].mxu1  ;;  %v23393_v36 = vadd.f32 %v26029_v60, %v24141_v2  ;;  %v23402_v40 = vadd.f32 %v23390_v14, %v32177_v56 }
0x1430   :  { %v23400_v5 = vadd.f32 %v23382_v42, %v32171_v34  ;;  %v23385_v58 = vadd.f32 %v24141_v2, %v23384_v32  ;;  %v24148_v32 = vld [vmem:[#allocation20] ss:$0 sm:$0xff] }
0x1431   :  { %v23403_v51 = vadd.f32 %v23393_v36, %v32179_v54  ;;  %v23422_v46 = vsel %vm265_vm0, %v23402_v40, 0.0 }
0x1432   :  { %v23401_v15 = vadd.f32 %v23385_v58, %v32173_v43  ;;  %v23416_v29 = vsel %vm265_vm0, %v23400_v5, 0.0  ;;  %v24149_v58 = vld [vmem:[#allocation22] ss:$0 sm:$0xff] }
0x1433   :  { %23417 = vadd.xlane.f32.xlu1 %v23416_v29  ;;  %v23425_v12 = vsel %vm265_vm0, %v23403_v51, 0.0 }
0x1434   :  { %v23419_v61 = vsel %vm265_vm0, %v23401_v15, 0.0 }
0x1435   :  { %23420 = vadd.xlane.f32.xlu0 %v23419_v61 }
0x1437   :  { %23423 = vadd.xlane.f32.xlu1 %v23422_v46 }
0x1439   :  { %23426 = vadd.xlane.f32.xlu0 %v23425_v12 }
0x143c   :  { %v23412_v34 = vpop.xlane.xlu1 %23411 }
0x143d   :  { %v23430_v25 = vmul.f32 0.03125, %v23412_v34 }
0x143e   :  { %v23415_v45 = vpop.xlane.xlu0 %23414 }
0x143f   :  { %v32205_v56 = vsub.f32 %v23398_v26, %v23430_v25  ;;  %v23431_v43 = vmul.f32 0.03125, %v23415_v45 }
0x1440   :  { %v23406_v8 = vpop.xlane.xlu1 %23405 }
0x1441   :  { %v32207_v7 = vsub.f32 %v23399_v37, %v23431_v43  ;;  %v23428_v19 = vmul.f32 0.03125, %v23406_v8  ;;  %v23446_v54 = vmul.f32 %v32205_v56, %v32205_v56 }
0x1442   :  { %v23409_v27 = vpop.xlane.xlu0 %23408 }
0x1443   :  { %v32211_v38 = vsub.f32 %v23396_v52, %v23428_v19  ;;  %v23429_v22 = vmul.f32 0.03125, %v23409_v27  ;;  %v23458_v0 = vsel %vm265_vm0, %v23446_v54, 0.0  ;;  %v23447_v3 = vmul.f32 %v32207_v7, %v32207_v7 }
0x1444   :  { %23459 = vadd.xlane.f32.xlu1 %v23458_v0 }
0x1445   :  { %v32216_v1 = vsub.f32 %v23397_v11, %v23429_v22  ;;  %v23461_v13 = vsel %vm265_vm0, %v23447_v3, 0.0  ;;  %v23444_v53 = vmul.f32 %v32211_v38, %v32211_v38 }
0x1446   :  { %23462 = vadd.xlane.f32.xlu0 %v23461_v13 }
0x1447   :  { %v23452_v47 = vsel %vm265_vm0, %v23444_v53, 0.0  ;;  %v23445_v44 = vmul.f32 %v32216_v1, %v32216_v1 }
0x1448   :  { %23453 = vadd.xlane.f32.xlu1 %v23452_v47 }
0x1449   :  { %v23455_v57 = vsel %vm265_vm0, %v23445_v44, 0.0 }
0x144a   :  { %23456 = vadd.xlane.f32.xlu0 %v23455_v57 }
0x14c0   :  { %v23418_v24 = vpop.xlane.xlu1 %23417 }
0x14c1   :  { %v23432_v30 = vmul.f32 0.03125, %v23418_v24 }
0x14c2   :  { %v23421_v39 = vpop.xlane.xlu0 %23420 }
0x14c3   :  { %v32225_v33 = vsub.f32 %v23400_v5, %v23432_v30  ;;  %v23433_v48 = vmul.f32 0.03125, %v23421_v39 }
0x14c4   :  { %v23424_v28 = vpop.xlane.xlu1 %23423 }
0x14c5   :  { %v32227_v10 = vsub.f32 %v23401_v15, %v23433_v48  ;;  %v23434_v35 = vmul.f32 0.03125, %v23424_v28  ;;  %v23448_v62 = vmul.f32 %v32225_v33, %v32225_v33 }
0x14c6   :  { %v23427_v50 = vpop.xlane.xlu0 %23426 }
0x14c7   :  { %v32231_v4 = vsub.f32 %v23402_v40, %v23434_v35  ;;  %v23435_v2 = vmul.f32 0.03125, %v23427_v50  ;;  %v23464_v23 = vsel %vm265_vm0, %v23448_v62, 0.0  ;;  %v23449_v59 = vmul.f32 %v32227_v10, %v32227_v10 }
0x14c8   :  { %23465 = vadd.xlane.f32.xlu1 %v23464_v23 }
0x14c9   :  { %v32236_v20 = vsub.f32 %v23403_v51, %v23435_v2  ;;  %v23467_v9 = vsel %vm265_vm0, %v23449_v59, 0.0  ;;  %v23450_v6 = vmul.f32 %v32231_v4, %v32231_v4 }
0x14ca   :  { %23468 = vadd.xlane.f32.xlu0 %v23467_v9 }
0x14cb   :  { %v23470_v26 = vsel %vm265_vm0, %v23450_v6, 0.0  ;;  %v23451_v16 = vmul.f32 %v32236_v20, %v32236_v20 }
0x14cc   :  { %23471 = vadd.xlane.f32.xlu1 %v23470_v26 }
0x14cd   :  { %v23473_v55 = vsel %vm265_vm0, %v23451_v16, 0.0 }
0x14ce   :  { %23474 = vadd.xlane.f32.xlu0 %v23473_v55 }
0x14d1   :  { %v23460_v63 = vpop.xlane.xlu1 %23459 }
0x14d2   :  { %v23478_v52 = vmul.f32 0.03125, %v23460_v63 }
0x14d3   :  { %v23463_v37 = vpop.xlane.xlu0 %23462 }
0x14d4   :  { %v23486_v21 = vadd.f32 1e-05, %v23478_v52  ;;  %v23479_v11 = vmul.f32 0.03125, %v23463_v37 }
0x14d5   :  { %v23454_v41 = vpop.xlane.xlu1 %23453 }
0x14d6   :  { %26606 = vrsqrt.f32 %v23486_v21  ;;  %v23487_v18 = vadd.f32 1e-05, %v23479_v11  ;;  %v23476_v49 = vmul.f32 0.03125, %v23454_v41 }
0x14d7   :  { %v23457_v31 = vpop.xlane.xlu0 %23456 }
0x14d8   :  { %26608 = vrsqrt.f32 %v23487_v18  ;;  %v23484_v17 = vadd.f32 1e-05, %v23476_v49  ;;  %v23477_v14 = vmul.f32 0.03125, %v23457_v31 }
0x14da   :  { %26610 = vrsqrt.f32 %v23484_v17  ;;  %v23485_v42 = vadd.f32 1e-05, %v23477_v14 }
0x14dc   :  { %26612 = vrsqrt.f32 %v23485_v42 }
0x14e0   :  { %v26607_v60 = vpop.eup %26606 }
0x14e1   :  { %v23502_v5 = vmul.f32 %v26607_v60, %v32205_v56 }
0x14e2   :  { %v26609_v36 = vpop.eup %26608 }
0x14e3   :  { %v23517_v40 = vmul.f32 %v24148_v32, %v23502_v5  ;;  %v23503_v15 = vmul.f32 %v26609_v36, %v32207_v7 }
0x14e4   :  { %v26611_v29 = vpop.eup %26610 }
0x14e5   :  { %v23532_v51 = vadd.f32 %v24149_v58, %v23517_v40  ;;  %v23518_v61 = vmul.f32 %v24148_v32, %v23503_v15  ;;  %v23500_v46 = vmul.f32 %v26611_v29, %v32211_v38 }
0x14e6   :  { %v26613_v12 = vpop.eup %26612 }
0x14e7   :  { %v24160_v34 = vpack.c.bf16 %v23532_v51, %v23532_v51  ;;  %v23533_v25 = vadd.f32 %v24149_v58, %v23518_v61  ;;  %v23515_v45 = vmul.f32 %v24148_v32, %v23500_v46  ;;  %v23501_v43 = vmul.f32 %v26613_v12, %v32216_v1 }
0x14e9   :  { %23573 = vst.msk [vmem:[#allocation23 + $0x8] sm:$0xf] %vm23570_vm8, %v24160_v34  ;;  %v24161_v56 = vpack.c.bf16 %v23533_v25, %v23533_v25  ;;  %v23530_v8 = vadd.f32 %v24149_v58, %v23515_v45  ;;  %v23516_v19 = vmul.f32 %v24148_v32, %v23501_v43 }
0x14eb   :  { %23574 = vst.msk [vmem:[#allocation23 + $0xc] sm:$0xf] %vm23570_vm8, %v24161_v56  ;;  %v24158_v7 = vpack.c.bf16 %v23530_v8, %v23530_v8  ;;  %v23531_v54 = vadd.f32 %v24149_v58, %v23516_v19 }
0x14ed   :  { %23571 = vst.msk [vmem:[#allocation23] sm:$0xf] %vm23570_vm8, %v24158_v7  ;;  %v24159_v27 = vpack.c.bf16 %v23531_v54, %v23531_v54 }
0x14ef   :  { %23572 = vst.msk [vmem:[#allocation23 + $0x4] sm:$0xf] %vm23570_vm8, %v24159_v27 }
0x1555   :  { %v23466_v38 = vpop.xlane.xlu1 %23465 }
0x1556   :  { %v23480_v22 = vmul.f32 0.03125, %v23466_v38 }
0x1557   :  { %v23469_v0 = vpop.xlane.xlu0 %23468 }
0x1558   :  { %v23488_v3 = vadd.f32 1e-05, %v23480_v22  ;;  %v23481_v13 = vmul.f32 0.03125, %v23469_v0 }
0x1559   :  { %v23472_v1 = vpop.xlane.xlu1 %23471 }
0x155a   :  { %26614 = vrsqrt.f32 %v23488_v3  ;;  %v23489_v53 = vadd.f32 1e-05, %v23481_v13  ;;  %v23482_v47 = vmul.f32 0.03125, %v23472_v1 }
0x155b   :  { %v23475_v44 = vpop.xlane.xlu0 %23474 }
0x155c   :  { %26616 = vrsqrt.f32 %v23489_v53  ;;  %v23490_v57 = vadd.f32 1e-05, %v23482_v47  ;;  %v23483_v24 = vmul.f32 0.03125, %v23475_v44 }
0x155e   :  { %26618 = vrsqrt.f32 %v23490_v57  ;;  %v23491_v30 = vadd.f32 1e-05, %v23483_v24 }
0x1560   :  { %26620 = vrsqrt.f32 %v23491_v30 }
0x1564   :  { %v26615_v39 = vpop.eup %26614 }
0x1565   :  { %v23504_v48 = vmul.f32 %v26615_v39, %v32225_v33 }
0x1566   :  { %v26617_v28 = vpop.eup %26616 }
0x1567   :  { %v23519_v35 = vmul.f32 %v24148_v32, %v23504_v48  ;;  %v23505_v62 = vmul.f32 %v26617_v28, %v32227_v10 }
0x1568   :  { %v26619_v50 = vpop.eup %26618 }
0x1569   :  { %v23534_v2 = vadd.f32 %v24149_v58, %v23519_v35  ;;  %v23520_v23 = vmul.f32 %v24148_v32, %v23505_v62  ;;  %v23506_v59 = vmul.f32 %v26619_v50, %v32231_v4 }
0x156a   :  { %v26621_v9 = vpop.eup %26620 }
0x156b   :  { %v24162_v6 = vpack.c.bf16 %v23534_v2, %v23534_v2  ;;  %v23535_v26 = vadd.f32 %v24149_v58, %v23520_v23  ;;  %v23521_v16 = vmul.f32 %v24148_v32, %v23506_v59  ;;  %v23507_v55 = vmul.f32 %v26621_v9, %v32236_v20 }
0x156d   :  { %23575 = vst.msk [vmem:[#allocation23 + $0x10] sm:$0xf] %vm23570_vm8, %v24162_v6  ;;  %v24163_v63 = vpack.c.bf16 %v23535_v26, %v23535_v26  ;;  %v23536_v52 = vadd.f32 %v24149_v58, %v23521_v16  ;;  %v23522_v33 = vmul.f32 %v24148_v32, %v23507_v55 }
0x156f   :  { %23576 = vst.msk [vmem:[#allocation23 + $0x14] sm:$0xf] %vm23570_vm8, %v24163_v63  ;;  %v24164_v10 = vpack.c.bf16 %v23536_v52, %v23536_v52  ;;  %v23537_v37 = vadd.f32 %v24149_v58, %v23522_v33 }
0x1571   :  { %23577 = vst.msk [vmem:[#allocation23 + $0x18] sm:$0xf] %vm23570_vm8, %v24164_v10  ;;  %v24165_v4 = vpack.c.bf16 %v23537_v37, %v23537_v37 }
0x1573   :  { %23578 = vst.msk [vmem:[#allocation23 + $0x1c] sm:$0xf] %vm23570_vm8, %v24165_v4 }
0x1574   :  { %26923 = shalt.err (!%p26920_p10)
}
0x1575   :  { %s26924_s11 = scalar_lea.hbm %s32289_s13, 512 }
0x1576   :  { %p26925_p11 = scmp.ne.s32.totalorder %s32289_s13, %s26924_s11  ;;  %p26928_p12 = scmp.lt.u32.totalorder %s26924_s11, %s32289_s13 }
0x1578   :  { %p26930_p13 = pnand %p26928_p12, %p26925_p11 }
0x157a   :  { %26933 = shalt.err (!%p26930_p13)
}
0x157b   :  { %23590 = dma.vmem_to_hbm [thread:$0]  %s23585_s22, 512, %s32289_s13, [#allocation4], %s26952_s20, %s26952_s20, %s26953_s21  }
0x157c   :  { %26948 = dma.done.wait [#allocation4], 512  }
0x157d   :  { %26949 = vsyncadd [#allocation4], 4294966784 }
0x157e   :  { %23594 = vsyncpa [#allocation3], 1 }
0x157f   :  { %23595 = vsyncpa [#allocation6], 1 }
0x1580   :  { %23596 = vsyncpa [#allocation9], 1 }
0x1581   :  { %23597 = vsyncpa [#allocation12], 1 }
0x1582   :  { %23598 = vsyncpa [#allocation15], 1 }
0x1583   :  { %23599 = vsyncpa [#allocation18], 1 }
0x1584   :  { %23600 = vsyncpa [#allocation21], 1 }
0x1585   :  { %23601 = vsyncpa [#allocation4], 1 }

</bundles_post_ra>
